<compile_context>
chip_gen: v7x
topology: tpu7x:2x2x1
jax: 0.10.0
libtpu: 0.0.40
codegen_flags: <defaults>
</compile_context>

<pallas_src>
import functools
import math

import jax
import jax.numpy as jnp
from jax.experimental import pallas as pl
from jax.experimental.pallas import tpu as pltpu


def _resize_conv_kernel(x_ref, w_ref, b_ref, o_ref, *, rep_h, p_hi, p_lo,
                        kH, kW, Ho, Wo, Cin, Cout):
    """One batch element per grid step.

    x_ref: (1, Hk, Wp, Cin)  W-upsampled + W-padded rows (NOT yet H-upsampled)
    w_ref: (kH*kW*Cin, Cout) im2col weight matrix, K ordered (kh, kw, cin)
    b_ref: (1, Cout)         bias
    o_ref: (1, Cout, Ho*Wo)  channels-major -> lane-dense store, already NCHW
    """
    x = x_ref[0]                                     # (Hk, Wp, Cin)
    Hk, Wp, _ = x.shape

    # Nearest-neighbour upsample along H (integer factor), fused in-kernel.
    # H is a leading dim in NHWC, so broadcast + leading-dim merge is layout-free.
    if rep_h > 1:
        x = jnp.broadcast_to(x[:, None, :, :], (Hk, rep_h, Wp, Cin))
        x = x.reshape(Hk * rep_h, Wp, Cin)

    # Zero padding along H (ceil rows on top, floor rows on bottom), fused here
    # instead of a separate HBM pad pass.
    if p_hi or p_lo:
        x = jnp.concatenate(
            [jnp.zeros((p_hi, Wp, Cin), x.dtype),
             x,
             jnp.zeros((p_lo, Wp, Cin), x.dtype)], axis=0)    # (Hp, Wp, Cin)

    # im2col: build one (Ho*Wo, kH*kW*Cin) patch matrix -> a single MXU matmul.
    # (Wo is a multiple of 8 here, so the (Ho,Wo,Cin)->(Ho*Wo,Cin) merge is a
    #  layout-preserving leading-dim merge.)
    taps = []
    for kh in range(kH):
        for kw in range(kW):
            taps.append(x[kh:kh + Ho, kw:kw + Wo, :].reshape(Ho * Wo, Cin))
    patches = jnp.concatenate(taps, axis=1)                   # (M, K)

    acc = jnp.dot(patches, w_ref[...],
                  preferred_element_type=jnp.float32)         # (M, Cout)
    acc = acc + b_ref[...]                                    # (1, Cout) bcast

    # Channels-major store: lane axis = Ho*Wo (unmasked vst), and the layout is
    # already NCHW, so the wrapper never transposes the output through HBM.
    o_ref[...] = jnp.transpose(acc).reshape(1, Cout, Ho * Wo).astype(o_ref.dtype)


@functools.partial(jax.jit, static_argnames=("kernel_size", "stride"))
def resize_and_conv(x_nchw, w_oihw, bias, kernel_size, stride):
    """ResizeAndConv forward.  x_nchw: (N,Cin,H,W), w_oihw: (Cout,Cin,kH,kW)."""
    kH, kW = int(kernel_size[0]), int(kernel_size[1])
    sH, sW = float(stride[0]), float(stride[1])
    N, Cin, H, W = x_nchw.shape
    Cout = w_oihw.shape[0]

    # F.interpolate(mode='nearest', scale_factor=stride) output sizes.
    H_up = int(math.floor(H * sH))
    W_up = int(math.floor(W * sW))

    # pad_inputs with conv stride (1,1): pad = (k-1)/2, (ceil, floor) per side.
    pad = (kH - 1) / 2.0
    p_hi, p_lo = int(math.ceil(pad)), int(math.floor(pad))

    # --- glue: ONE small fused XLA pass over the not-yet-H-upsampled tensor ---
    # (NCHW->NHWC, W nearest-upsample with integer index math, W padding).
    x = jnp.transpose(x_nchw, (0, 2, 3, 1))                   # (N, H, W, Cin)
    widx = (jnp.arange(W_up) * W) // W_up                     # integer nearest
    x = x[:, :, widx, :]                                      # (N, H, W_up, Cin)
    x = jnp.pad(x, ((0, 0), (0, 0), (p_hi, p_lo), (0, 0)))    # (N, H, Wp, Cin)

    if H_up % H == 0:
        rep_h = H_up // H       # integer factor: replicate rows inside the kernel
        Hk = H
    else:
        hidx = (jnp.arange(H_up) * H) // H_up                 # general fallback
        x = x[:, hidx, :, :]
        rep_h = 1
        Hk = H_up

    Wp = W_up + p_hi + p_lo
    Hp = H_up + p_hi + p_lo
    Ho, Wo = Hp - kH + 1, Wp - kW + 1                         # == H_up, W_up

    # Weights as a single (K, Cout) im2col matrix, K ordered (kh, kw, cin).
    w_kio = jnp.transpose(w_oihw, (2, 3, 1, 0)).reshape(kH * kW * Cin, Cout)
    b2 = bias.reshape(1, Cout)

    kern = functools.partial(
        _resize_conv_kernel, rep_h=rep_h, p_hi=p_hi, p_lo=p_lo,
        kH=kH, kW=kW, Ho=Ho, Wo=Wo, Cin=Cin, Cout=Cout)

    out = pl.pallas_call(
        kern,
        out_shape=jax.ShapeDtypeStruct((N, Cout, Ho * Wo), x_nchw.dtype),
        grid_spec=pltpu.PrefetchScalarGridSpec(
            num_scalar_prefetch=0,
            grid=(N,),
            in_specs=[
                pl.BlockSpec((1, Hk, Wp, Cin), lambda n: (n, 0, 0, 0)),
                pl.BlockSpec((kH * kW * Cin, Cout), lambda n: (0, 0)),
                pl.BlockSpec((1, Cout), lambda n: (0, 0)),
            ],
            out_specs=pl.BlockSpec((1, Cout, Ho * Wo), lambda n: (n, 0, 0)),
        ),
        compiler_params=pltpu.CompilerParams(
            dimension_semantics=("parallel",),
            vmem_limit_bytes=64 * 1024 * 1024),
    )(x, w_kio, b2)

    # Already channels-first; this reshape is free metadata (no HBM transpose).
    return out.reshape(N, Cout, Ho, Wo)


def _reference(x_nchw, w_oihw, bias, kernel_size, stride):
    """Pure-JAX reference: nearest upsample + (ceil,floor) pad + lax conv."""
    kH, kW = int(kernel_size[0]), int(kernel_size[1])
    N, Cin, H, W = x_nchw.shape
    H_up = int(math.floor(H * float(stride[0])))
    W_up = int(math.floor(W * float(stride[1])))
    hidx = (jnp.arange(H_up) * H) // H_up
    widx = (jnp.arange(W_up) * W) // W_up
    x_up = x_nchw[:, :, hidx, :][:, :, :, widx]
    pad = (kH - 1) / 2.0
    p_hi, p_lo = int(math.ceil(pad)), int(math.floor(pad))
    x_pad = jnp.pad(x_up, ((0, 0), (0, 0), (p_hi, p_lo), (p_hi, p_lo)))
    y = jax.lax.conv_general_dilated(
        x_pad, w_oihw, window_strides=(1, 1), padding="VALID",
        dimension_numbers=("NCHW", "OIHW", "NCHW"))
    return y + bias[None, :, None, None]


if __name__ == "__main__":
    # ResizeAndConv(in_channels=4, out_channels=8, kernel_size=(3,3), stride=(2,2))
    N, Cin, H, W = 2, 4, 16, 16
    Cout = 8
    kernel_size = (3, 3)
    stride = (2, 2)

    key = jax.random.PRNGKey(0)
    kx, kw_, kb = jax.random.split(key, 3)
    x = jax.random.normal(kx, (N, Cin, H, W), jnp.float32)

    # Deterministic Conv2d-style init (uniform in +-1/sqrt(fan_in)).
    fan_in = Cin * kernel_size[0] * kernel_size[1]
    bound = 1.0 / math.sqrt(fan_in)
    w = jax.random.uniform(kw_, (Cout, Cin, kernel_size[0], kernel_size[1]),
                           jnp.float32, -bound, bound)
    b = jax.random.uniform(kb, (Cout,), jnp.float32, -bound, bound)

    y = jax.block_until_ready(resize_and_conv(x, w, b, kernel_size, stride))
    y_ref = jax.block_until_ready(_reference(x, w, b, kernel_size, stride))

    assert y.shape == (N, Cout, H * stride[0], W * stride[1]), y.shape
    assert jnp.allclose(y, y_ref, atol=1e-4, rtol=1e-4), \
        float(jnp.max(jnp.abs(y - y_ref)))

    print("KERNEL_OK")
</pallas_src>

<mosaic_0001>
module attributes {stable_mosaic.version = 11 : i64} {
  func.func @_resize_conv_kernel(%arg0: i32, %arg1: memref<1x16x34x4xf32, #tpu.memory_space<vmem>>, %arg2: memref<36x8xf32, #tpu.memory_space<vmem>>, %arg3: memref<1x8xf32, #tpu.memory_space<vmem>>, %arg4: memref<1x8x1024xf32, #tpu.memory_space<vmem>>) attributes {dimension_semantics = [#tpu.dimension_semantics<parallel>], iteration_bounds = array<i64: 2>, scalar_prefetch = 0 : i64, scratch_operands = 0 : i64, tpu.core_type = #tpu.core_type<tc>, window_params = [{transform_indices = @transform_0, window_bounds = array<i64: 1, 16, 34, 4>}, {pipeline_mode = #tpu.pipeline_mode<synchronous>, transform_indices = @transform_1, window_bounds = array<i64: 36, 8>}, {pipeline_mode = #tpu.pipeline_mode<synchronous>, transform_indices = @transform_2, window_bounds = array<i64: 1, 8>}, {transform_indices = @transform_3, window_bounds = array<i64: 1, 8, 1024>}]} {
    %c0 = arith.constant 0 : index
    %c0_0 = arith.constant 0 : index
    %c0_1 = arith.constant 0 : index
    %c0_2 = arith.constant 0 : index
    %0 = vector.load %arg1[%c0, %c0_0, %c0_1, %c0_2] : memref<1x16x34x4xf32, #tpu.memory_space<vmem>>, vector<1x16x34x4xf32>
    %1 = vector.shape_cast %0 : vector<1x16x34x4xf32> to vector<16x34x4xf32>
    %2 = vector.shape_cast %1 : vector<16x34x4xf32> to vector<16x1x34x4xf32>
    %3 = vector.shape_cast %2 : vector<16x1x34x4xf32> to vector<16x1x34x4xf32>
    %4 = vector.broadcast %3 : vector<16x1x34x4xf32> to vector<16x2x34x4xf32>
    %5 = vector.shape_cast %4 : vector<16x2x34x4xf32> to vector<32x34x4xf32>
    %cst = arith.constant 0.000000e+00 : f32
    %6 = vector.broadcast %cst : f32 to vector<1x34x4xf32>
    %cst_3 = arith.constant 0.000000e+00 : f32
    %7 = vector.broadcast %cst_3 : f32 to vector<1x34x4xf32>
    %8 = tpu.concatenate %6, %5, %7 in 0 : vector<1x34x4xf32>, vector<32x34x4xf32>, vector<1x34x4xf32> -> vector<34x34x4xf32>
    %9 = vector.extract_strided_slice %8 {offsets = [0, 0, 0], sizes = [32, 32, 4], strides = [1, 1, 1]} : vector<34x34x4xf32> to vector<32x32x4xf32>
    %10 = vector.shape_cast %9 : vector<32x32x4xf32> to vector<1024x4xf32>
    %11 = vector.extract_strided_slice %8 {offsets = [0, 1, 0], sizes = [32, 32, 4], strides = [1, 1, 1]} : vector<34x34x4xf32> to vector<32x32x4xf32>
    %12 = vector.shape_cast %11 : vector<32x32x4xf32> to vector<1024x4xf32>
    %13 = vector.extract_strided_slice %8 {offsets = [0, 2, 0], sizes = [32, 32, 4], strides = [1, 1, 1]} : vector<34x34x4xf32> to vector<32x32x4xf32>
    %14 = vector.shape_cast %13 : vector<32x32x4xf32> to vector<1024x4xf32>
    %15 = vector.extract_strided_slice %8 {offsets = [1, 0, 0], sizes = [32, 32, 4], strides = [1, 1, 1]} : vector<34x34x4xf32> to vector<32x32x4xf32>
    %16 = vector.shape_cast %15 : vector<32x32x4xf32> to vector<1024x4xf32>
    %17 = vector.extract_strided_slice %8 {offsets = [1, 1, 0], sizes = [32, 32, 4], strides = [1, 1, 1]} : vector<34x34x4xf32> to vector<32x32x4xf32>
    %18 = vector.shape_cast %17 : vector<32x32x4xf32> to vector<1024x4xf32>
    %19 = vector.extract_strided_slice %8 {offsets = [1, 2, 0], sizes = [32, 32, 4], strides = [1, 1, 1]} : vector<34x34x4xf32> to vector<32x32x4xf32>
    %20 = vector.shape_cast %19 : vector<32x32x4xf32> to vector<1024x4xf32>
    %21 = vector.extract_strided_slice %8 {offsets = [2, 0, 0], sizes = [32, 32, 4], strides = [1, 1, 1]} : vector<34x34x4xf32> to vector<32x32x4xf32>
    %22 = vector.shape_cast %21 : vector<32x32x4xf32> to vector<1024x4xf32>
    %23 = vector.extract_strided_slice %8 {offsets = [2, 1, 0], sizes = [32, 32, 4], strides = [1, 1, 1]} : vector<34x34x4xf32> to vector<32x32x4xf32>
    %24 = vector.shape_cast %23 : vector<32x32x4xf32> to vector<1024x4xf32>
    %25 = vector.extract_strided_slice %8 {offsets = [2, 2, 0], sizes = [32, 32, 4], strides = [1, 1, 1]} : vector<34x34x4xf32> to vector<32x32x4xf32>
    %26 = vector.shape_cast %25 : vector<32x32x4xf32> to vector<1024x4xf32>
    %27 = tpu.concatenate %10, %12, %14, %16, %18, %20, %22, %24, %26 in 1 : vector<1024x4xf32>, vector<1024x4xf32>, vector<1024x4xf32>, vector<1024x4xf32>, vector<1024x4xf32>, vector<1024x4xf32>, vector<1024x4xf32>, vector<1024x4xf32>, vector<1024x4xf32> -> vector<1024x36xf32>
    %c0_4 = arith.constant 0 : index
    %c0_5 = arith.constant 0 : index
    %28 = vector.load %arg2[%c0_4, %c0_5] : memref<36x8xf32, #tpu.memory_space<vmem>>, vector<36x8xf32>
    %cst_6 = arith.constant dense<0.000000e+00> : vector<1024x8xf32>
    %29 = tpu.matmul %27, %28, %cst_6 {dimension_numbers = #tpu.dot_dimension_numbers<[1], [0], [0], [1], [0, 0, 1, 1], [], []>} : vector<1024x36xf32>, vector<36x8xf32>, vector<1024x8xf32> -> vector<1024x8xf32>
    %c0_7 = arith.constant 0 : index
    %c0_8 = arith.constant 0 : index
    %30 = vector.load %arg3[%c0_7, %c0_8] : memref<1x8xf32, #tpu.memory_space<vmem>>, vector<1x8xf32>
    %31 = vector.broadcast %30 : vector<1x8xf32> to vector<1024x8xf32>
    %32 = arith.addf %29, %31 : vector<1024x8xf32>
    %33 = tpu.transpose %32, [1, 0] : vector<1024x8xf32> -> vector<8x1024xf32>
    %34 = vector.shape_cast %33 : vector<8x1024xf32> to vector<1x8x1024xf32>
    %c0_9 = arith.constant 0 : index
    %c0_10 = arith.constant 0 : index
    %c0_11 = arith.constant 0 : index
    %35 = vector.load %arg4[%c0_9, %c0_10, %c0_11] : memref<1x8x1024xf32, #tpu.memory_space<vmem>>, vector<1x8x1024xf32>
    tpu.vector_store %arg4[%c0_9, %c0_10, %c0_11], %34 {strides = array<i32>} : memref<1x8x1024xf32, #tpu.memory_space<vmem>>, vector<1x8x1024xf32>,
    return
  }
  func.func @transform_0(%arg0: i32) -> (i32, i32, i32, i32) {
    %c0_i32 = arith.constant 0 : i32
    %c0_i32_0 = arith.constant 0 : i32
    %c0_i32_1 = arith.constant 0 : i32
    %c0_i32_2 = arith.constant 0 : i32
    return %arg0, %c0_i32, %c0_i32_0, %c0_i32_1 : i32, i32, i32, i32
  }
  func.func @transform_1(%arg0: i32) -> (i32, i32) {
    %c0_i32 = arith.constant 0 : i32
    %c0_i32_0 = arith.constant 0 : i32
    %c0_i32_1 = arith.constant 0 : i32
    return %c0_i32, %c0_i32_0 : i32, i32
  }
  func.func @transform_2(%arg0: i32) -> (i32, i32) {
    %c0_i32 = arith.constant 0 : i32
    %c0_i32_0 = arith.constant 0 : i32
    %c0_i32_1 = arith.constant 0 : i32
    return %c0_i32, %c0_i32_0 : i32, i32
  }
  func.func @transform_3(%arg0: i32) -> (i32, i32, i32) {
    %c0_i32 = arith.constant 0 : i32
    %c0_i32_0 = arith.constant 0 : i32
    %c0_i32_1 = arith.constant 0 : i32
    return %arg0, %c0_i32, %c0_i32_0 : i32, i32, i32
  }
}

</mosaic_0001>

<bundles_post_ra>
// kernel: resize_and_conv.1
= control target key start
LH: loop header
LB: loop body
LE: loop exit
PB: predicated region body
PF: predicated region fallthrough
CT: control target
= control target key end

     0   :  { %8 = vsyncpa [#allocation3], 0  ;;  %s11849_s0 = inlined_call_operand.hbm [shape: f32[2,16,34,4], index: 0, kind: input, shape index: {}]   ;;  %s11850_s1 = inlined_call_operand.hbm [shape: f32[36,8], index: 1, kind: input, shape index: {}]   ;;  %s11851_s2 = inlined_call_operand.hbm [shape: f32[1,8], index: 2, kind: input, shape index: {}]   ;;  %s11852_s3 = inlined_call_operand.hbm [shape: f32[2,8,1024], index: 3, kind: output, shape index: {}]  }
   0x1   :  { %10 = vsyncpa [#allocation3 + $0x1], 0 }
   0x2   :  { %11 = vsyncpa [#allocation6], 0 }
   0x3   :  { %12 = vsyncpa [#allocation4], 0 }
   0x4   :  { %14 = vsyncpa [#allocation4 + $0x1], 0  ;;  %s5465_s12 = smov 0   ;;  %s5467_s13 = smov 0  }
   0x5   :  { %s5469_s14 = smov 0   ;;  %s5471_s15 = smov 0  }
   0x6 LB: > { %s5486_s16 = sadd.s32 4294967295, %s5428_s15   ;;  %s4602_s17 = sadd.s32 4294967294, %s5428_s15   ;;  %s5428_s15 = sphi %s5471_s15, %s14052_s15   ;;  %s5424_s14 = sphi %s5469_s14, %s14051_s14   ;;  %s5420_s13 = sphi %s5467_s13, %s14050_s13   ;;  %s5416_s12 = sphi %s5465_s12, %s14049_s12  }
   0x7   : > { %p40_p0 = scmp.ne.s32.totalorder %s5420_s13, %s5416_s12  ;;  %p11853_p1 = scmp.eq.s32.totalorder %s5486_s16, 0 }
   0x8   : > { %p112_p3 = scmp.eq.s32.totalorder %s4602_s17, 1  ;;  %p4603_p5 = scmp.ge.s32.totalorder %s5428_s15, 1 }
   0x9   : > { %p5495_p4 = por %p11853_p1, %p40_p0  ;;  %p119_p7 = scmp.lt.s32.totalorder %s5428_s15, 3 }
   0xa   : > { %p5500_p6 = por %p112_p3, %p40_p0  ;;  %s5430_s21 = smov [#allocation5]  }
   0xb   : > { %s12497_s18 = scalar_select %p5495_p4, 1, 0 }
   0xc   : > { %s12498_s19 = scalar_select %p5500_p6, 1, 0 }
   0xd   : > { %p5505_p8 = pnand %p4603_p5, %p119_p7  ;;  %s131_s22 = sshll.u32 %s5430_s21, 4  ;;  %s5509_s22 = int_to_ptr.vmem [resolvable:$true] %s131_s22 }
   0xe   : > { %s5431_s24 = smov [#allocation7]   ;;  %s5272_s28 = scalar_lea.hbm %s11850_s1, 640 }
   0xf   : > { %p5112_p9 = pneg %p5505_p8  ;;  %s145_s25 = sshll.u32 %s5431_s24, 4  ;;  %s5520_s25 = int_to_ptr.vmem [resolvable:$true] %s145_s25 }
  0x10   : > { %p5273_p12 = scmp.ne.s32.totalorder %s11850_s1, %s5272_s28  ;;  %p5279_p5 = scmp.lt.u32.totalorder %s5272_s28, %s11850_s1 }
  0x11   : > { %p5516_p11 = pnand %p5112_p9, %p11853_p1 }
  0x13   : > { %p5274_p13 = pneg %p5516_p11 }
  0x15   : > { %p5275_p0 = pnand %p5274_p13, %p5273_p12 }
  0x17   : > { %p5276_p3 = pneg %p5275_p0 }
  0x19   : > { %p5281_p7 = pnand %p5279_p5, %p5276_p3 }
  0x1b   : > { %5284 = shalt.err (!%p5281_p7)
}
  0x1c   : > { %s5285_s6 = scalar_lea.vmem %s5509_s22, 640  ;;  %p5293_p2 = scmp.lt.s32.totalorder %s5509_s22, %s5509_s22 }
  0x1d   : > { %p5286_p9 = scmp.ne.s32.totalorder %s5509_s22, %s5285_s6  ;;  %p5294_p12 = scmp.lt.s32.totalorder %s5285_s6, %s5285_s6 }
  0x1f   : > { %p5288_p10 = pnand %p5286_p9, %p5274_p13  ;;  %p5295_p0 = por %p5294_p12, %p5293_p2 }
  0x21   : > { %p5289_p1 = pneg %p5288_p10 }
  0x23   : > { %p5296_p6 = pnand %p5295_p0, %p5289_p1 }
  0x25   : > { %5299 = shalt.err (!%p5296_p6)
}
  0x26   : > { %s5432_s7 = smov 128   ;;  %s5433_s8 = smov 8  }
  0x27   : > { %5115 = dma.hbm_to_vmem [thread:$0]  (!%p5516_p11), %s11850_s1, 640, %s5509_s22, [#allocation6], %s5432_s7, %s5432_s7, %s5433_s8  }
  0x28   : > { %s5300_s21 = scalar_lea.hbm %s11851_s2, 16 }
  0x29   : > { %p5301_p1 = scmp.ne.s32.totalorder %s11851_s2, %s5300_s21  ;;  %p5307_p10 = scmp.lt.u32.totalorder %s5300_s21, %s11851_s2 }
  0x2b   : > { %p5303_p2 = pnand %p5301_p1, %p5274_p13 }
  0x2d   : > { %p5304_p6 = pneg %p5303_p2 }
  0x2f   : > { %p5309_p3 = pnand %p5307_p10, %p5304_p6 }
  0x31   : > { %5312 = shalt.err (!%p5309_p3)
}
  0x32   : > { %s5313_s22 = scalar_lea.vmem %s5520_s25, 16  ;;  %s5320_s29 = scalar_lea.vmem %s5520_s25, 32 }
  0x33   : > { %p5314_p5 = scmp.ne.s32.totalorder %s5520_s25, %s5313_s22  ;;  %p5321_p12 = scmp.lt.s32.totalorder %s5520_s25, %s5520_s25 }
  0x34   : > { %p5322_p0 = scmp.lt.s32.totalorder %s5320_s29, %s5313_s22 }
  0x35   : > { %p5316_p7 = pnand %p5314_p5, %p5274_p13 }
  0x36   : > { %p5323_p1 = por %p5322_p0, %p5321_p12 }
  0x37   : > { %p5317_p9 = pneg %p5316_p7 }
  0x39   : > { %p5324_p2 = pnand %p5323_p1, %p5317_p9 }
  0x3b   : > { %5327 = shalt.err (!%p5324_p2)
}
  0x3c   : > { %5118 = dma.hbm_to_vmem [thread:$0]  (!%p5516_p11), %s11851_s2, 16, %s5520_s25, [#allocation6]  }
  0x3d   : > { %s5579_s5 = sadd.s32 1, %s5428_s15   ;;  %s27_s23 = sadd.s32 1, %s5424_s14 }
  0x3e   : > { %s24_s6 = ssub.s32 %s5428_s15, %s5579_s5  ;;  %p34_p13 = scmp.ne.s32.totalorder %s5424_s14, %s5420_s13 }
  0x3f   : > { %p25_p6 = scmp.eq.s32.totalorder %s24_s6, 0  ;;  %p35_p10 = scmp.eq.s32.totalorder %s5428_s15, 0 }
  0x40   : > { %p12501_p3 = scmp.eq.s32.totalorder %s5486_s16, 1  ;;  %p5129_p7 = scmp.lt.s32.totalorder %s5428_s15, 2 }
  0x41   : > { %s5595_s10 = scalar_select %p25_p6, %s5424_s14, %s27_s23  }
  0x42   : > { %p5589_p5 = por %p12501_p3, %p34_p13  ;;  %p36_p9 = por %p35_p10, %p34_p13 }
  0x43   : > { %s156_s11 = sand.u32 1, %s5424_s14   ;;  %s5098_s25 = smul.u32 10240, %s5428_s15 }
  0x44   : > { %s12502_s9 = scalar_select %p5589_p5, 1, 0 }
  0x45   : > { %s5097_s17 = smul.u32 640, %s156_s11  ;;  %p5599_p11 = pnand %p5129_p7, %p36_p9 }
  0x46   : > { %s5606_s27 = scalar_lea.hbm %s11849_s0, %s5098_s25  ;;  %s5610_s29 = scalar_lea.sflag [#allocation3], %s156_s11 }
  0x47   : > { %s160_s28 = scalar_lea.vmem [#allocation2], %s5097_s17  ;;  %s5328_s30 = scalar_lea.hbm %s5606_s27, 10240 }
  0x48   : > { %s167_s22 = sshll.u32 %s160_s28, 4  ;;  %p5329_p12 = scmp.ne.s32.totalorder %s5606_s27, %s5328_s30  ;;  %s5608_s22 = int_to_ptr.vmem [resolvable:$true] %s167_s22 }
  0x49   : > { %p5330_p0 = pneg %p5599_p11  ;;  %s5333_s6 = scalar_lea.hbm %s11849_s0, 20480 }
  0x4a   : > { %p5334_p13 = scmp.lt.u32.totalorder %s5606_s27, %s11849_s0  ;;  %p5335_p6 = scmp.lt.u32.totalorder %s5333_s6, %s5328_s30 }
  0x4b   : > { %p5331_p1 = pnand %p5330_p0, %p5329_p12  ;;  %p5337_p3 = scmp.lt.u32.totalorder %s5328_s30, %s5606_s27 }
  0x4c   : > { %p5336_p10 = por %p5335_p6, %p5334_p13 }
  0x4d   : > { %p5332_p2 = pneg %p5331_p1 }
  0x4e   : > { %p5338_p7 = por %p5337_p3, %p5336_p10 }
  0x50   : > { %p5339_p9 = pnand %p5338_p7, %p5332_p2 }
  0x52   : > { %5342 = shalt.err (!%p5339_p9)
}
  0x53   : > { %s5343_s11 = scalar_lea.vmem %s5608_s22, 10240  ;;  %s5434_s17 = smov [#allocation2]  }
  0x54   : > { %p5344_p12 = scmp.ne.s32.totalorder %s5608_s22, %s5343_s11  ;;  %s5348_s26 = sshll.u32 %s5434_s17, 4  ;;  %s5349_s26 = int_to_ptr.vmem [resolvable:$false] %s5348_s26 }
  0x55   : > { %s5350_s28 = scalar_lea.vmem %s5349_s26, 20480  ;;  %p5351_p4 = scmp.lt.s32.totalorder %s5608_s22, %s5349_s26 }
  0x56   : > { %p5346_p1 = pnand %p5344_p12, %p5330_p0  ;;  %p5352_p13 = scmp.lt.s32.totalorder %s5350_s28, %s5343_s11 }
  0x58   : > { %p5347_p5 = pneg %p5346_p1  ;;  %p5353_p6 = por %p5352_p13, %p5351_p4 }
  0x5a   : > { %p5354_p10 = pnand %p5353_p6, %p5347_p5 }
  0x5c   : > { %5357 = shalt.err (!%p5354_p10)
}
  0x5d   : > { %5122 = dma.hbm_to_vmem [thread:$0]  (!%p5599_p11), %s5606_s27, 10240, %s5608_s22, %s5610_s29, %s5432_s7, %s5432_s7, %s5433_s8  }
  0x5e   : > { %179 = sbr.rel (%p5505_p8) target bundleno = 1768 (0x6e8), region = 32 }
  0x65   : > { %s5644_s30 = sand.u32 1, %s5420_s13   ;;  %p12504_p4 = scmp.ne.s32.totalorder %s12497_s18, 0 }
  0x66   : > { %s5099_s4 = smul.u32 640, %s5644_s30  ;;  %s182_s23 = scalar_lea.sflag [#allocation3], %s5644_s30 }
  0x68   : > { %s5648_s6 = scalar_lea.vmem [#allocation2], %s5099_s4 }
  0x69   : > { %5403 = dma.done.wait (%p12504_p4), %s182_s23, 10240  }
  0x6a   : > { %5405 = vsyncadd (%p12504_p4), %s182_s23, 4294957056  ;;  %p12505_p5 = scmp.eq.s32.totalorder %s5486_s16, 0 }
  0x6c   : > { %5407 = dma.done.wait (%p12505_p5), [#allocation6], 656   ;;  %p12506_p8 = pmov %p12505_p5 }
  0x6d   : > { %v11856_v0 = vmov 0.0   ;;  %s5436_s18 = smov 4   ;;  %v5664_v2 = vld [vmem:[%s5648_s6 + $0x8] sm:$0xff]  ;;  %v5667_v3 = vld [vmem:[%s5648_s6 + $0x10] sm:$0xff]  ;;  %vm377_vm0 = vcmask 1046528   ;;  %v5670_v4 = vld [vmem:[%s5648_s6] sm:$0xff] }
  0x6e   : > { %5409 = vsyncadd (%p12506_p8), [#allocation6], 4294966640  ;;  %v5659_v1 = vrot.slane %v11856_v0, 1  ;;  %v381_v5 = vrot.slane %v5664_v2, 1  ;;  %v383_v6 = vrot.slane %v5667_v3, 1  ;;  %v380_v7 = vrot.slane %v5670_v4, 1 }
  0x6f   : > { %v5676_v8 = vld [vmem:[%s5648_s6 + $0x18] sm:$0xff]  ;;  %v5679_v9 = vld [vmem:[%s5648_s6 + $0x20] sm:$0x3]  ;;  %v5684_v12 = vld [vmem:[%s5648_s6 + $0x28] sm:$0xff]  ;;  %vm524_vm1 = vcmask 1045504   ;;  %s5437_s20 = smov 8  }
  0x70   : > { %12507 = vst [vmem:[#allocation12_spill] sm:$0xff] %v5659_v1  ;;  %671 = vrot.lane.b32.xlu0 %v5659_v1, %s5436_s18  ;;  %v385_v10 = vrot.slane %v5676_v8, 1  ;;  %v387_v11 = vrot.slane %v5679_v9, 1  ;;  %v5687_v13 = vld [vmem:[%s5648_s6 + $0x30] sm:$0xff]  ;;  %v5690_v14 = vld [vmem:[%s5648_s6 + $0x38] sm:$0xff]  ;;  %v5693_v15 = vsel %vm377_vm0, %v381_v5, %v383_v6  ;;  %v5696_v16 = vsel %vm377_vm0, %v380_v7, %v381_v5  ;;  %v5712_v22 = vld [vmem:[%s5648_s6 + $0x40] sm:$0xff] }
  0x71   : > { %12508 = vst [vmem:[#allocation13_spill] sm:$0xff] %v5693_v15  ;;  %12509 = vst [vmem:[#allocation14_spill] sm:$0xff] %v5696_v16  ;;  %675 = vrot.lane.b32.xlu1 %v5693_v15, %s5436_s18  ;;  %v389_v17 = vrot.slane %v5684_v12, 1  ;;  %v390_v20 = vrot.slane %v5687_v13, 1  ;;  %v392_v21 = vrot.slane %v5690_v14, 1  ;;  %v394_v26 = vrot.slane %v5712_v22, 1 }
  0x72   : > { %v5704_v18 = vsel %vm377_vm0, %v383_v6, %v385_v10  ;;  %v5707_v19 = vsel %vm377_vm0, %v385_v10, %v387_v11  ;;  %v5715_v23 = vld [vmem:[%s5648_s6 + $0x48] sm:$0x3]  ;;  %v5730_v28 = vld [vmem:[%s5648_s6 + $0x50] sm:$0xff]  ;;  %v5733_v29 = vld [vmem:[%s5648_s6 + $0x58] sm:$0xff]  ;;  %s5438_s7 = smov 12   ;;  %s5439_s8 = smov 16  }
  0x73   : > { %12510 = vst [vmem:[#allocation15_spill] sm:$0xff] %v5704_v18  ;;  %12511 = vst [vmem:[#allocation16_spill] sm:$0xff] %v5707_v19  ;;  %v5722_v24 = vsel %vm377_vm0, %v389_v17, %v390_v20  ;;  %v5725_v25 = vsel %vm377_vm0, %v390_v20, %v392_v21  ;;  %v396_v27 = vrot.slane %v5715_v23, 1  ;;  %v5736_v30 = vld [vmem:[%s5648_s6 + $0x60] sm:$0xff]  ;;  %v398_v31 = vrot.slane %v5730_v28, 1  ;;  %v5752_v36 = vld [vmem:[%s5648_s6 + $0x68] sm:$0xff] }
  0x74   : > { %673 = vrot.lane.b32.xlu0 %v5696_v16, %s5436_s18  ;;  %12512 = vst [vmem:[#allocation17_spill] sm:$0xff] %v5722_v24  ;;  %12513 = vst [vmem:[#allocation18_spill] sm:$0xff] %v5725_v25  ;;  %v5744_v32 = vsel %vm377_vm0, %v392_v21, %v394_v26  ;;  %v399_v34 = vrot.slane %v5733_v29, 1  ;;  %v401_v35 = vrot.slane %v5736_v30, 1  ;;  %v5755_v37 = vld [vmem:[%s5648_s6 + $0x70] sm:$0x3] }
  0x75   : > { %677 = vrot.lane.b32.xlu1 %v5704_v18, %s5436_s18  ;;  %12514 = vst [vmem:[#allocation19_spill] sm:$0xff] %v5744_v32  ;;  %v5747_v33 = vsel %vm377_vm0, %v394_v26, %v396_v27  ;;  %v403_v40 = vrot.slane %v5752_v36, 1  ;;  %v405_v41 = vrot.slane %v5755_v37, 1  ;;  %v5770_v42 = vld [vmem:[%s5648_s6 + $0x78] sm:$0xff]  ;;  %v5773_v43 = vld [vmem:[%s5648_s6 + $0x80] sm:$0xff]  ;;  %v5776_v44 = vld [vmem:[%s5648_s6 + $0x88] sm:$0xff] }
  0x76   : > { %12515 = vst [vmem:[#allocation20_spill] sm:$0xff] %v5747_v33  ;;  %v5762_v38 = vsel %vm377_vm0, %v398_v31, %v399_v34  ;;  %v5765_v39 = vsel %vm377_vm0, %v399_v34, %v401_v35  ;;  %v407_v45 = vrot.slane %v5770_v42, 1  ;;  %v408_v48 = vrot.slane %v5773_v43, 1  ;;  %v5792_v50 = vld [vmem:[%s5648_s6 + $0x90] sm:$0xff]  ;;  %v5795_v51 = vld [vmem:[%s5648_s6 + $0x98] sm:$0x3] }
  0x77   : > { %12516 = vst [vmem:[#allocation21_spill] sm:$0xff] %v5762_v38  ;;  %12517 = vst [vmem:[#allocation22_spill] sm:$0xff] %v5765_v39  ;;  %v5784_v46 = vsel %vm377_vm0, %v401_v35, %v403_v40  ;;  %v5787_v47 = vsel %vm377_vm0, %v403_v40, %v405_v41  ;;  %v410_v49 = vrot.slane %v5776_v44, 1  ;;  %v412_v54 = vrot.slane %v5792_v50, 1  ;;  %v5810_v56 = vld [vmem:[%s5648_s6 + $0xa0] sm:$0xff]  ;;  %v5813_v57 = vld [vmem:[%s5648_s6 + $0xa8] sm:$0xff] }
  0x78   : > { %679 = vrot.lane.b32.xlu0 %v5707_v19, %s5436_s18  ;;  %12518 = vst [vmem:[#allocation23_spill] sm:$0xff] %v5784_v46  ;;  %12519 = vst [vmem:[#allocation24_spill] sm:$0xff] %v5787_v47  ;;  %v5802_v52 = vsel %vm377_vm0, %v407_v45, %v408_v48  ;;  %v414_v55 = vrot.slane %v5795_v51, 1  ;;  %v5816_v58 = vld [vmem:[%s5648_s6 + $0xb0] sm:$0xff]  ;;  %v416_v59 = vrot.slane %v5810_v56, 1  ;;  %v417_v62 = vrot.slane %v5813_v57, 1 }
  0x79   : > { %681 = vrot.lane.b32.xlu1 %v5722_v24, %s5436_s18  ;;  %12520 = vst [vmem:[#allocation25_spill] sm:$0xff] %v5802_v52  ;;  %v5805_v53 = vsel %vm377_vm0, %v408_v48, %v410_v49  ;;  %v5824_v60 = vsel %vm377_vm0, %v410_v49, %v412_v54  ;;  %v419_v63 = vrot.slane %v5816_v58, 1  ;;  %v5832_v5 = vld [vmem:[%s5648_s6 + $0xb8] sm:$0xff]  ;;  %v5835_v6 = vld [vmem:[%s5648_s6 + $0xc0] sm:$0x3]  ;;  %v5850_v20 = vld [vmem:[%s5648_s6 + $0xc8] sm:$0xff] }
  0x7a   : > { %12521 = vst [vmem:[#allocation26_spill] sm:$0xff] %v5805_v53  ;;  %12522 = vst [vmem:[#allocation27_spill] sm:$0xff] %v5824_v60  ;;  %v5827_v61 = vsel %vm377_vm0, %v412_v54, %v414_v55  ;;  %v5842_v7 = vsel %vm377_vm0, %v416_v59, %v417_v62  ;;  %v421_v11 = vrot.slane %v5832_v5, 1  ;;  %v423_v17 = vrot.slane %v5835_v6, 1  ;;  %v5853_v21 = vld [vmem:[%s5648_s6 + $0xd0] sm:$0xff]  ;;  %v5856_v26 = vld [vmem:[%s5648_s6 + $0xd8] sm:$0xff] }
  0x7b   : > { %12523 = vst [vmem:[#allocation28_spill] sm:$0xff] %v5827_v61  ;;  %12524 = vst [vmem:[#allocation29_spill] sm:$0xff] %v5842_v7  ;;  %v5845_v10 = vsel %vm377_vm0, %v417_v62, %v419_v63  ;;  %v425_v27 = vrot.slane %v5850_v20, 1  ;;  %v426_v35 = vrot.slane %v5853_v21, 1  ;;  %v428_v40 = vrot.slane %v5856_v26, 1  ;;  %v5872_v41 = vld [vmem:[%s5648_s6 + $0xe0] sm:$0xff] }
  0x7c   : > { %683 = vrot.lane.b32.xlu0 %v5725_v25, %s5436_s18  ;;  %12525 = vst [vmem:[#allocation30_spill] sm:$0xff] %v5845_v10  ;;  %v5864_v31 = vsel %vm377_vm0, %v419_v63, %v421_v11  ;;  %v5867_v34 = vsel %vm377_vm0, %v421_v11, %v423_v17  ;;  %v5875_v45 = vld [vmem:[%s5648_s6 + $0xe8] sm:$0x3]  ;;  %v430_v54 = vrot.slane %v5872_v41, 1  ;;  %v5890_v59 = vld [vmem:[%s5648_s6 + $0xf0] sm:$0xff]  ;;  %v5893_v62 = vld [vmem:[%s5648_s6 + $0xf8] sm:$0xff] }
  0x7d   : > { %685 = vrot.lane.b32.xlu1 %v5744_v32, %s5436_s18  ;;  %12526 = vst [vmem:[#allocation31_spill] sm:$0xff] %v5864_v31  ;;  %12527 = vst [vmem:[#allocation32_spill] sm:$0xff] %v5867_v34  ;;  %v5882_v48 = vsel %vm377_vm0, %v425_v27, %v426_v35  ;;  %v5885_v49 = vsel %vm377_vm0, %v426_v35, %v428_v40  ;;  %v432_v55 = vrot.slane %v5875_v45, 1  ;;  %v5896_v63 = vld [vmem:[%s5648_s6 + $0x100] sm:$0xff]  ;;  %v434_v11 = vrot.slane %v5890_v59, 1  ;;  %v5912_v1 = vld [vmem:[%s5648_s6 + $0x108] sm:$0xff] }
  0x7e   : > { %12528 = vst [vmem:[#allocation33_spill] sm:$0xff] %v5882_v48  ;;  %12529 = vst [vmem:[#allocation34_spill] sm:$0xff] %v5885_v49  ;;  %v5904_v17 = vsel %vm377_vm0, %v428_v40, %v430_v54  ;;  %v435_v35 = vrot.slane %v5893_v62, 1  ;;  %v437_v0 = vrot.slane %v5896_v63, 1  ;;  %v6032_v25 = vld [vmem:[%s5648_s6 + $0x180] sm:$0xff]  ;;  %v6050_v24 = vld [vmem:[%s5648_s6 + $0x190] sm:$0xff] }
  0x7f   : > { %12530 = vst [vmem:[#allocation35_spill] sm:$0xff] %v5904_v17  ;;  %v5907_v27 = vsel %vm377_vm0, %v430_v54, %v432_v55  ;;  %v439_v55 = vrot.slane %v5912_v1, 1  ;;  %12544 = vst [vmem:[#allocation49_spill] sm:$0xff] %v6032_v25  ;;  %v6053_v19 = vld [vmem:[%s5648_s6 + $0x198] sm:$0xff]  ;;  %v6072_v16 = vld [vmem:[%s5648_s6 + $0x1a8] sm:$0xff]  ;;  %s5440_s21 = smov 20  }
  0x80   : > { %687 = vrot.lane.b32.xlu0 %v5747_v33, %s5436_s18  ;;  %12531 = vst [vmem:[#allocation36_spill] sm:$0xff] %v5907_v27  ;;  %v5922_v40 = vsel %vm377_vm0, %v434_v11, %v435_v35  ;;  %v5925_v54 = vsel %vm377_vm0, %v435_v35, %v437_v0  ;;  %12548 = vst [vmem:[#allocation53_spill] sm:$0xff] %v6050_v24  ;;  %v471_v18 = vrot.slane %v6053_v19, 1  ;;  %s5441_s27 = smov 24   ;;  %s5442_s22 = smov 28   ;;  %vm3525_vm2 = vcmask 1043456  }
  0x81   : > { %689 = vrot.lane.b32.xlu1 %v5762_v38, %s5436_s18  ;;  %12532 = vst [vmem:[#allocation37_spill] sm:$0xff] %v5922_v40  ;;  %12533 = vst [vmem:[#allocation38_spill] sm:$0xff] %v5925_v54  ;;  %v5944_v35 = vsel %vm377_vm0, %v437_v0, %v439_v55  ;;  %v6013_v38 = vld [vmem:[%s5648_s6 + $0x170] sm:$0xff]  ;;  %s5443_s29 = smov 32   ;;  %vm2222_vm3 = vcmask 31744   ;;  %vm2288_vm4 = vcmask 64512  }
  0x82   : > { %12534 = vst [vmem:[#allocation39_spill] sm:$0xff] %v5944_v35  ;;  %v462_v33 = vrot.slane %v6013_v38, 1  ;;  %12549 = vst [vmem:[#allocation54_spill] sm:$0xff] %v6053_v19  ;;  %v6093_v19 = vld [vmem:[%s5648_s6 + $0x1c0] sm:$0xff]  ;;  %vm2354_vm5 = vcmask 97280   ;;  %vm2483_vm6 = vcmask 130048  }
  0x83   : > { %12553 = vst [vmem:[#allocation58_spill] sm:$0xff] %v6072_v16  ;;  %12558 = vst [vmem:[#allocation63_spill] sm:$0xff] %v6093_v19  ;;  %vm2612_vm7 = vcmask 162816   ;;  %vm2741_vm8 = vcmask 195584   ;;  %vm2870_vm9 = vcmask 228352   ;;  %vm2999_vm10 = vcmask 261120  }
  0x84   : > { %691 = vrot.lane.b32.xlu0 %v5765_v39, %s5436_s18  ;;  %v6010_v39 = vld [vmem:[%s5648_s6 + $0x168] sm:$0xff]  ;;  %vm3140_vm11 = vcmask 293888   ;;  %s4611_s25 = sshll.u32 %s5644_s30, 6  ;;  %s4747_s11 = sshll.u32 %s5486_s16, 10 }
  0x85   : > { %693 = vrot.lane.b32.xlu1 %v5784_v46, %s5436_s18  ;;  %v5992_v46 = vld [vmem:[%s5648_s6 + $0x158] sm:$0xff]  ;;  %s11680_s24 = scalar_lea.vmem [#allocation8], %s4611_s25  ;;  %s11804_s4 = scalar_lea.hbm %s11852_s3, %s4747_s11 }
  0x86   : > { %s4513_s17 = sshll.u32 %s11680_s24, 4  ;;  %s4499_s23 = scalar_lea.sflag [#allocation4], %s5644_s30  ;;  %s11806_s17 = int_to_ptr.vmem [resolvable:$true] %s4513_s17 }
  0x87   : > { %p14046_p0 = scmp.ne.s32.totalorder %s12502_s9, 0  ;;  %s5444_s16 = smov [#allocation8]  }
  0x88   : > { %695 = vrot.lane.b32.xlu0 %v5787_v47, %s5436_s18 }
  0x89   : > { %697 = vrot.lane.b32.xlu1 %v5802_v52, %s5436_s18 }
  0x8c   : > { %699 = vrot.lane.b32.xlu0 %v5805_v53, %s5436_s18  ;;  %v5973_v53 = vld [vmem:[%s5648_s6 + $0x148] sm:$0xff] }
  0x8d   : > { %701 = vrot.lane.b32.xlu1 %v5824_v60, %s5436_s18  ;;  %v5970_v60 = vld [vmem:[%s5648_s6 + $0x140] sm:$0xff]  ;;  %v453_v52 = vrot.slane %v5973_v53, 1 }
  0x90   : > { %703 = vrot.lane.b32.xlu0 %v5827_v61, %s5436_s18  ;;  %v5952_v61 = vld [vmem:[%s5648_s6 + $0x130] sm:$0xff] }
  0x91   : > { %705 = vrot.lane.b32.xlu1 %v5842_v7, %s5436_s18 }
  0x94   : > { %707 = vrot.lane.b32.xlu0 %v5845_v10, %s5436_s18 }
  0x95   : > { %709 = vrot.lane.b32.xlu1 %v5864_v31, %s5436_s18  ;;  %v5933_v31 = vld [vmem:[%s5648_s6 + $0x120] sm:$0xff] }
  0x96   : > { %v444_v10 = vrot.slane %v5933_v31, 1 }
  0x98   : > { %711 = vrot.lane.b32.xlu0 %v5867_v34, %s5436_s18  ;;  %v5930_v34 = vld [vmem:[%s5648_s6 + $0x118] sm:$0xff] }
  0x99   : > { %713 = vrot.lane.b32.xlu1 %v5882_v48, %s5436_s18  ;;  %v5915_v48 = vld [vmem:[%s5648_s6 + $0x110] sm:$0x3]  ;;  %v443_v11 = vrot.slane %v5930_v34, 1 }
  0x9b   : > { %v5962_v0 = vsel %vm377_vm0, %v443_v11, %v444_v10 }
  0x9c   : > { %715 = vrot.lane.b32.xlu0 %v5885_v49, %s5436_s18  ;;  %v441_v49 = vrot.slane %v5915_v48, 1  ;;  %12536 = vst [vmem:[#allocation41_spill] sm:$0xff] %v5962_v0 }
  0x9d   : > { %717 = vrot.lane.b32.xlu1 %v5904_v17, %s5436_s18  ;;  %v5936_v17 = vld [vmem:[%s5648_s6 + $0x128] sm:$0xff] }
  0x9e   : > { %v446_v7 = vrot.slane %v5936_v17, 1 }
  0xa0   : > { %719 = vrot.lane.b32.xlu0 %v5907_v27, %s5436_s18  ;;  %v5947_v27 = vsel %vm377_vm0, %v439_v55, %v441_v49  ;;  %v5965_v49 = vsel %vm377_vm0, %v444_v10, %v446_v7  ;;  %v448_v55 = vrot.slane %v5952_v61, 1  ;;  %v452_v10 = vrot.slane %v5970_v60, 1 }
  0xa1   : > { %721 = vrot.lane.b32.xlu1 %v5922_v40, %s5436_s18  ;;  %12535 = vst [vmem:[#allocation40_spill] sm:$0xff] %v5947_v27  ;;  %v5955_v40 = vld [vmem:[%s5648_s6 + $0x138] sm:$0x3]  ;;  %12537 = vst [vmem:[#allocation42_spill] sm:$0xff] %v5965_v49 }
  0xa2   : > { %v5984_v11 = vsel %vm377_vm0, %v446_v7, %v448_v55  ;;  %v6002_v7 = vsel %vm377_vm0, %v452_v10, %v453_v52 }
  0xa3   : > { %12538 = vst [vmem:[#allocation43_spill] sm:$0xff] %v5984_v11  ;;  %12540 = vst [vmem:[#allocation45_spill] sm:$0xff] %v6002_v7 }
  0xa4   : > { %723 = vrot.lane.b32.xlu0 %v5925_v54, %s5436_s18  ;;  %v450_v54 = vrot.slane %v5955_v40, 1 }
  0xa5   : > { %725 = vrot.lane.b32.xlu1 %v5944_v35, %s5436_s18  ;;  %v5976_v35 = vld [vmem:[%s5648_s6 + $0x150] sm:$0xff] }
  0xa6   : > { %v455_v47 = vrot.slane %v5976_v35, 1 }
  0xa8   : > { %727 = vrot.lane.b32.xlu0 %v5947_v27, %s5436_s18  ;;  %v5987_v27 = vsel %vm377_vm0, %v448_v55, %v450_v54  ;;  %v6005_v54 = vsel %vm377_vm0, %v453_v52, %v455_v47  ;;  %v457_v55 = vrot.slane %v5992_v46, 1  ;;  %v461_v52 = vrot.slane %v6010_v39, 1 }
  0xa9   : > { %729 = vrot.lane.b32.xlu1 %v5962_v0, %s5436_s18  ;;  %12539 = vst [vmem:[#allocation44_spill] sm:$0xff] %v5987_v27  ;;  %v5995_v0 = vld [vmem:[%s5648_s6 + $0x160] sm:$0x3]  ;;  %12541 = vst [vmem:[#allocation46_spill] sm:$0xff] %v6005_v54 }
  0xaa   : > { %v6024_v10 = vsel %vm377_vm0, %v455_v47, %v457_v55  ;;  %v6042_v47 = vsel %vm377_vm0, %v461_v52, %v462_v33 }
  0xab   : > { %12542 = vst [vmem:[#allocation47_spill] sm:$0xff] %v6024_v10  ;;  %12546 = vst [vmem:[#allocation51_spill] sm:$0xff] %v6042_v47 }
  0xac   : > { %731 = vrot.lane.b32.xlu0 %v5965_v49, %s5436_s18  ;;  %v459_v49 = vrot.slane %v5995_v0, 1 }
  0xad   : > { %733 = vrot.lane.b32.xlu1 %v5984_v11, %s5436_s18  ;;  %v6016_v11 = vld [vmem:[%s5648_s6 + $0x178] sm:$0xff] }
  0xae   : > { %v464_v32 = vrot.slane %v6016_v11, 1 }
  0xb0   : > { %735 = vrot.lane.b32.xlu0 %v5987_v27, %s5436_s18  ;;  %v6027_v27 = vsel %vm377_vm0, %v457_v55, %v459_v49  ;;  %v6045_v49 = vsel %vm377_vm0, %v462_v33, %v464_v32  ;;  %v466_v55 = vrot.slane %v6032_v25, 1  ;;  %v470_v33 = vrot.slane %v6050_v24, 1  ;;  %v6112_v24 = vld [vmem:[%s5648_s6 + $0x1d0] sm:$0xff]  ;;  %v6281_v25 = vld [vmem:[%s5648_s6 + $0x278] sm:$0x3] }
  0xb1   : > { %737 = vrot.lane.b32.xlu1 %v6002_v7, %s5436_s18  ;;  %12543 = vst [vmem:[#allocation48_spill] sm:$0xff] %v6027_v27  ;;  %v6035_v7 = vld [vmem:[%s5648_s6 + $0x188] sm:$0x3]  ;;  %12547 = vst [vmem:[#allocation52_spill] sm:$0xff] %v6045_v49 }
  0xb2   : > { %12545 = vst [vmem:[#allocation50_spill] sm:$0xff] %v6035_v7  ;;  %v6064_v52 = vsel %vm377_vm0, %v464_v32, %v466_v55  ;;  %v6082_v32 = vsel %vm377_vm0, %v470_v33, %v471_v18  ;;  %12562 = vst [vmem:[#allocation67_spill] sm:$0xff] %v6112_v24 }
  0xb3   : > { %12551 = vst [vmem:[#allocation56_spill] sm:$0xff] %v6064_v52  ;;  %12555 = vst [vmem:[#allocation60_spill] sm:$0xff] %v6082_v32 }
  0xb4   : > { %739 = vrot.lane.b32.xlu0 %v6005_v54, %s5436_s18  ;;  %v468_v54 = vrot.slane %v6035_v7, 1  ;;  %12598 = vst [vmem:[#allocation103_spill] sm:$0xff] %v6281_v25 }
  0xb5   : > { %741 = vrot.lane.b32.xlu1 %v6024_v10, %s5436_s18  ;;  %v6056_v10 = vld [vmem:[%s5648_s6 + $0x1a0] sm:$0xff] }
  0xb6   : > { %12550 = vst [vmem:[#allocation55_spill] sm:$0xff] %v6056_v10  ;;  %v473_v15 = vrot.slane %v6056_v10, 1  ;;  %v6090_v10 = vld [vmem:[%s5648_s6 + $0x1b8] sm:$0xff] }
  0xb7   : > { %12557 = vst [vmem:[#allocation62_spill] sm:$0xff] %v6090_v10 }
  0xb8   : > { %743 = vrot.lane.b32.xlu0 %v6027_v27, %s5436_s18  ;;  %v6067_v27 = vsel %vm377_vm0, %v466_v55, %v468_v54  ;;  %v6085_v54 = vsel %vm377_vm0, %v471_v18, %v473_v15  ;;  %v475_v55 = vrot.slane %v6072_v16, 1  ;;  %v479_v18 = vrot.slane %v6090_v10, 1  ;;  %v6152_v10 = vld [vmem:[%s5648_s6 + $0x1f8] sm:$0xff] }
  0xb9   : > { %745 = vrot.lane.b32.xlu1 %v6042_v47, %s5436_s18  ;;  %12552 = vst [vmem:[#allocation57_spill] sm:$0xff] %v6067_v27  ;;  %v6075_v47 = vld [vmem:[%s5648_s6 + $0x1b0] sm:$0x3]  ;;  %12556 = vst [vmem:[#allocation61_spill] sm:$0xff] %v6085_v54 }
  0xba   : > { %12554 = vst [vmem:[#allocation59_spill] sm:$0xff] %v6075_v47  ;;  %v6104_v33 = vsel %vm377_vm0, %v473_v15, %v475_v55  ;;  %12571 = vst [vmem:[#allocation76_spill] sm:$0xff] %v6152_v10 }
  0xbb   : > { %12560 = vst [vmem:[#allocation65_spill] sm:$0xff] %v6104_v33 }
  0xbc   : > { %747 = vrot.lane.b32.xlu0 %v6045_v49, %s5436_s18  ;;  %v477_v49 = vrot.slane %v6075_v47, 1  ;;  %v480_v47 = vrot.slane %v6093_v19, 1  ;;  %v6133_v19 = vld [vmem:[%s5648_s6 + $0x1e8] sm:$0xff] }
  0xbd   : > { %749 = vrot.lane.b32.xlu1 %v6064_v52, %s5436_s18  ;;  %v6096_v52 = vld [vmem:[%s5648_s6 + $0x1c8] sm:$0xff]  ;;  %12567 = vst [vmem:[#allocation72_spill] sm:$0xff] %v6133_v19 }
  0xbe   : > { %12559 = vst [vmem:[#allocation64_spill] sm:$0xff] %v6096_v52  ;;  %v482_v16 = vrot.slane %v6096_v52, 1  ;;  %v6122_v15 = vsel %vm377_vm0, %v479_v18, %v480_v47  ;;  %v6130_v52 = vld [vmem:[%s5648_s6 + $0x1e0] sm:$0xff] }
  0xbf   : > { %12564 = vst [vmem:[#allocation69_spill] sm:$0xff] %v6122_v15  ;;  %12566 = vst [vmem:[#allocation71_spill] sm:$0xff] %v6130_v52 }
  0xc0   : > { %751 = vrot.lane.b32.xlu0 %v6067_v27, %s5436_s18  ;;  %v6107_v27 = vsel %vm377_vm0, %v475_v55, %v477_v49  ;;  %v6125_v49 = vsel %vm377_vm0, %v480_v47, %v482_v16  ;;  %v484_v55 = vrot.slane %v6112_v24, 1  ;;  %v488_v47 = vrot.slane %v6130_v52, 1  ;;  %v6192_v52 = vld [vmem:[%s5648_s6 + $0x220] sm:$0xff] }
  0xc1   : > { %753 = vrot.lane.b32.xlu1 %v6082_v32, %s5436_s18  ;;  %12561 = vst [vmem:[#allocation66_spill] sm:$0xff] %v6107_v27  ;;  %v6115_v32 = vld [vmem:[%s5648_s6 + $0x1d8] sm:$0x3]  ;;  %12565 = vst [vmem:[#allocation70_spill] sm:$0xff] %v6125_v49 }
  0xc2   : > { %12563 = vst [vmem:[#allocation68_spill] sm:$0xff] %v6115_v32  ;;  %v6144_v18 = vsel %vm377_vm0, %v482_v16, %v484_v55  ;;  %12580 = vst [vmem:[#allocation85_spill] sm:$0xff] %v6192_v52 }
  0xc3   : > { %12569 = vst [vmem:[#allocation74_spill] sm:$0xff] %v6144_v18 }
  0xc4   : > { %755 = vrot.lane.b32.xlu0 %v6085_v54, %s5436_s18  ;;  %v486_v54 = vrot.slane %v6115_v32, 1  ;;  %v489_v32 = vrot.slane %v6133_v19, 1  ;;  %v6173_v19 = vld [vmem:[%s5648_s6 + $0x210] sm:$0xff] }
  0xc5   : > { %757 = vrot.lane.b32.xlu1 %v6104_v33, %s5436_s18  ;;  %v6136_v33 = vld [vmem:[%s5648_s6 + $0x1f0] sm:$0xff]  ;;  %12576 = vst [vmem:[#allocation81_spill] sm:$0xff] %v6173_v19 }
  0xc6   : > { %12568 = vst [vmem:[#allocation73_spill] sm:$0xff] %v6136_v33  ;;  %v491_v24 = vrot.slane %v6136_v33, 1  ;;  %v6162_v16 = vsel %vm377_vm0, %v488_v47, %v489_v32  ;;  %v6170_v33 = vld [vmem:[%s5648_s6 + $0x208] sm:$0xff] }
  0xc7   : > { %12573 = vst [vmem:[#allocation78_spill] sm:$0xff] %v6162_v16  ;;  %12575 = vst [vmem:[#allocation80_spill] sm:$0xff] %v6170_v33 }
  0xc8   : > { %759 = vrot.lane.b32.xlu0 %v6107_v27, %s5436_s18  ;;  %v6147_v27 = vsel %vm377_vm0, %v484_v55, %v486_v54  ;;  %v6165_v54 = vsel %vm377_vm0, %v489_v32, %v491_v24  ;;  %v493_v55 = vrot.slane %v6152_v10, 1  ;;  %v497_v32 = vrot.slane %v6170_v33, 1  ;;  %v6232_v33 = vld [vmem:[%s5648_s6 + $0x248] sm:$0xff] }
  0xc9   : > { %761 = vrot.lane.b32.xlu1 %v6122_v15, %s5436_s18  ;;  %12570 = vst [vmem:[#allocation75_spill] sm:$0xff] %v6147_v27  ;;  %v6155_v15 = vld [vmem:[%s5648_s6 + $0x200] sm:$0x3]  ;;  %12574 = vst [vmem:[#allocation79_spill] sm:$0xff] %v6165_v54 }
  0xca   : > { %12572 = vst [vmem:[#allocation77_spill] sm:$0xff] %v6155_v15  ;;  %v6184_v47 = vsel %vm377_vm0, %v491_v24, %v493_v55  ;;  %12589 = vst [vmem:[#allocation94_spill] sm:$0xff] %v6232_v33 }
  0xcb   : > { %12578 = vst [vmem:[#allocation83_spill] sm:$0xff] %v6184_v47 }
  0xcc   : > { %763 = vrot.lane.b32.xlu0 %v6125_v49, %s5436_s18  ;;  %v495_v49 = vrot.slane %v6155_v15, 1  ;;  %v498_v15 = vrot.slane %v6173_v19, 1  ;;  %v6213_v19 = vld [vmem:[%s5648_s6 + $0x238] sm:$0xff] }
  0xcd   : > { %765 = vrot.lane.b32.xlu1 %v6144_v18, %s5436_s18  ;;  %v6176_v18 = vld [vmem:[%s5648_s6 + $0x218] sm:$0xff]  ;;  %12585 = vst [vmem:[#allocation90_spill] sm:$0xff] %v6213_v19 }
  0xce   : > { %12577 = vst [vmem:[#allocation82_spill] sm:$0xff] %v6176_v18  ;;  %v500_v10 = vrot.slane %v6176_v18, 1  ;;  %v6202_v24 = vsel %vm377_vm0, %v497_v32, %v498_v15  ;;  %v6210_v18 = vld [vmem:[%s5648_s6 + $0x230] sm:$0xff] }
  0xcf   : > { %12582 = vst [vmem:[#allocation87_spill] sm:$0xff] %v6202_v24  ;;  %12584 = vst [vmem:[#allocation89_spill] sm:$0xff] %v6210_v18 }
  0xd0   : > { %767 = vrot.lane.b32.xlu0 %v6147_v27, %s5436_s18  ;;  %v6187_v27 = vsel %vm377_vm0, %v493_v55, %v495_v49  ;;  %v6205_v49 = vsel %vm377_vm0, %v498_v15, %v500_v10  ;;  %v502_v55 = vrot.slane %v6192_v52, 1  ;;  %v506_v15 = vrot.slane %v6210_v18, 1  ;;  %v6258_v18 = vld [vmem:[%s5648_s6 + $0x268] sm:$0xff] }
  0xd1   : > { %769 = vrot.lane.b32.xlu1 %v6162_v16, %s5436_s18  ;;  %12579 = vst [vmem:[#allocation84_spill] sm:$0xff] %v6187_v27  ;;  %v6195_v16 = vld [vmem:[%s5648_s6 + $0x228] sm:$0x3]  ;;  %12583 = vst [vmem:[#allocation88_spill] sm:$0xff] %v6205_v49 }
  0xd2   : > { %12581 = vst [vmem:[#allocation86_spill] sm:$0xff] %v6195_v16  ;;  %v6224_v32 = vsel %vm377_vm0, %v500_v10, %v502_v55 }
  0xd3   : > { %12587 = vst [vmem:[#allocation92_spill] sm:$0xff] %v6224_v32 }
  0xd4   : > { %771 = vrot.lane.b32.xlu0 %v6165_v54, %s5436_s18  ;;  %v504_v54 = vrot.slane %v6195_v16, 1  ;;  %v507_v16 = vrot.slane %v6213_v19, 1  ;;  %v6252_v19 = vld [vmem:[%s5648_s6 + $0x258] sm:$0xff] }
  0xd5   : > { %773 = vrot.lane.b32.xlu1 %v6184_v47, %s5436_s18  ;;  %v6216_v47 = vld [vmem:[%s5648_s6 + $0x240] sm:$0xff] }
  0xd6   : > { %12586 = vst [vmem:[#allocation91_spill] sm:$0xff] %v6216_v47  ;;  %v509_v52 = vrot.slane %v6216_v47, 1  ;;  %v6244_v10 = vsel %vm377_vm0, %v506_v15, %v507_v16 }
  0xd7   : > { %12592 = vst [vmem:[#allocation97_spill] sm:$0xff] %v6244_v10 }
  0xd8   : > { %775 = vrot.lane.b32.xlu0 %v6187_v27, %s5436_s18  ;;  %v6227_v27 = vsel %vm377_vm0, %v502_v55, %v504_v54  ;;  %v6247_v54 = vsel %vm377_vm0, %v507_v16, %v509_v52  ;;  %v511_v55 = vrot.slane %v6232_v33, 1  ;;  %v515_v16 = vrot.slane %v6252_v19, 1 }
  0xd9   : > { %777 = vrot.lane.b32.xlu1 %v6202_v24, %s5436_s18  ;;  %12588 = vst [vmem:[#allocation93_spill] sm:$0xff] %v6227_v27  ;;  %v6235_v24 = vld [vmem:[%s5648_s6 + $0x250] sm:$0x3]  ;;  %12593 = vst [vmem:[#allocation98_spill] sm:$0xff] %v6247_v54 }
  0xda   : > { %12590 = vst [vmem:[#allocation95_spill] sm:$0xff] %v6235_v24  ;;  %v513_v47 = vrot.slane %v6235_v24, 1  ;;  %v6266_v15 = vsel %vm377_vm0, %v509_v52, %v511_v55  ;;  %v518_v24 = vrot.slane %v6258_v18, 1 }
  0xdb   : > { %12594 = vst [vmem:[#allocation99_spill] sm:$0xff] %v6266_v15 }
  0xdc   : > { %779 = vrot.lane.b32.xlu0 %v6205_v49, %s5436_s18 }
  0xdd   : > { %781 = vrot.lane.b32.xlu1 %v6224_v32, %s5436_s18  ;;  %v6255_v32 = vld [vmem:[%s5648_s6 + $0x260] sm:$0xff] }
  0xe0   : > { %783 = vrot.lane.b32.xlu0 %v6227_v27, %s5436_s18  ;;  %v516_v27 = vrot.slane %v6255_v32, 1 }
  0xe1   : > { %785 = vrot.lane.b32.xlu1 %v6244_v10, %s5436_s18  ;;  %v6278_v10 = vld [vmem:[%s5648_s6 + $0x270] sm:$0xff] }
  0xe2   : > { %v6241_v49 = vpop.permute.xlu0 %671  ;;  %v6288_v52 = vsel %vm377_vm0, %v515_v16, %v516_v27 }
  0xe3   : > { %12591 = vst [vmem:[#allocation96_spill] sm:$0xff] %v6241_v49  ;;  %v6269_v49 = vsel %vm377_vm0, %v511_v55, %v513_v47  ;;  %v6273_v33 = vpop.permute.xlu1 %675  ;;  %12599 = vst [vmem:[#allocation104_spill] sm:$0xff] %v6288_v52  ;;  %v6291_v47 = vsel %vm377_vm0, %v516_v27, %v518_v24  ;;  %v520_v55 = vrot.slane %v6278_v10, 1 }
  0xe4   : > { %787 = vrot.lane.b32.xlu0 %v6247_v54, %s5436_s18  ;;  %12595 = vst [vmem:[#allocation100_spill] sm:$0xff] %v6269_v49  ;;  %12596 = vst [vmem:[#allocation101_spill] sm:$0xff] %v6273_v33 }
  0xe5   : > { %789 = vrot.lane.b32.xlu1 %v6266_v15, %s5436_s18  ;;  %12600 = vst [vmem:[#allocation105_spill] sm:$0xff] %v6291_v47  ;;  %v6304_v16 = vsel %vm377_vm0, %v518_v24, %v520_v55  ;;  %v528_v15 = vrot.slane %v5664_v2, 2  ;;  %v12607_v24 = vmov 0.0   ;;  %v532_v2 = vrot.slane %v5676_v8, 2 }
  0xe6   : > { %v6275_v7 = vpop.permute.xlu0 %673  ;;  %12603 = vst [vmem:[#allocation108_spill] sm:$0xff] %v6304_v16  ;;  %v536_v8 = vrot.slane %v5684_v12, 2  ;;  %v539_v12 = vrot.slane %v5690_v14, 2  ;;  %v545_v14 = vrot.slane %v5730_v28, 2  ;;  %v548_v28 = vrot.slane %v5736_v30, 2 }
  0xe7   : > { %12597 = vst [vmem:[#allocation102_spill] sm:$0xff] %v6275_v7  ;;  %v522_v7 = vrot.slane %v6281_v25, 1  ;;  %v6295_v33 = vpop.permute.xlu1 %677  ;;  %v554_v30 = vrot.slane %v5770_v42, 2  ;;  %v557_v42 = vrot.slane %v5776_v44, 2  ;;  %v563_v44 = vrot.slane %v5810_v56, 2 }
  0xe8   : > { %791 = vrot.lane.b32.xlu0 %v6269_v49, %s5436_s18  ;;  %12601 = vst [vmem:[#allocation106_spill] sm:$0xff] %v6295_v33  ;;  %v527_v49 = vrot.slane %v5670_v4, 2  ;;  %v530_v4 = vrot.slane %v5667_v3, 2  ;;  %v566_v56 = vrot.slane %v5816_v58, 2  ;;  %v572_v58 = vrot.slane %v5850_v20, 2 }
  0xe9   : > { %793 = vrot.lane.b32.xlu1 %v6288_v52, %s5436_s18  ;;  %v6307_v27 = vsel %vm377_vm0, %v520_v55, %v522_v7  ;;  %v575_v20 = vrot.slane %v5856_v26, 2  ;;  %v581_v26 = vrot.slane %v5890_v59, 2  ;;  %v586_v59 = vrot.slane %v5912_v1, 2 }
  0xea   : > { %v6297_v54 = vpop.permute.xlu0 %679  ;;  %12604 = vst [vmem:[#allocation109_spill] sm:$0xff] %v6307_v27  ;;  %v6323_v7 = vsel %vm524_vm1, %v527_v49, %v528_v15  ;;  %v6337_v49 = vsel %vm524_vm1, %v528_v15, %v530_v4  ;;  %v6340_v3 = vsel %vm524_vm1, %v530_v4, %v532_v2  ;;  %v590_v1 = vrot.slane %v5930_v34, 2 }
  0xeb   : > { %12602 = vst [vmem:[#allocation107_spill] sm:$0xff] %v6297_v54  ;;  %v6311_v25 = vpop.permute.xlu1 %681  ;;  %v6320_v54 = vrot.slane %v12607_v24, 2 }
  0xec   : > { %795 = vrot.lane.b32.xlu0 %v6291_v47, %s5436_s18  ;;  %12605 = vst [vmem:[#allocation110_spill] sm:$0xff] %v6311_v25  ;;  %v534_v25 = vrot.slane %v5679_v9, 2 }
  0xed   : > { %797 = vrot.lane.b32.xlu1 %v6304_v16, %s5436_s18  ;;  %12608 = vst [vmem:[#allocation112_spill] sm:$0xff] %v6320_v54 }
  0xee   : > { %v6313_v33 = vpop.permute.xlu0 %683  ;;  %v6353_v9 = vsel %vm524_vm1, %v532_v2, %v534_v25  ;;  %v543_v25 = vrot.slane %v5715_v23, 2 }
  0xef   : > { %12606 = vst [vmem:[#allocation111_spill] sm:$0xff] %v6313_v33  ;;  %v6327_v55 = vpop.permute.xlu1 %685 }
  0xf0   : > { %799 = vrot.lane.b32.xlu0 %v6307_v27, %s5436_s18  ;;  %12609 = vst [vmem:[#allocation113_spill] sm:$0xff] %v6327_v55  ;;  %v537_v55 = vrot.slane %v5687_v13, 2  ;;  %v541_v13 = vrot.slane %v5712_v22, 2  ;;  %v546_v22 = vrot.slane %v5733_v29, 2  ;;  %v550_v29 = vrot.slane %v5752_v36, 2  ;;  %s5362_s18 = sshll.u32 %s5444_s16, 4  ;;  %s5363_s18 = int_to_ptr.vmem [resolvable:$false] %s5362_s18 }
  0xf1   : > { %866 = vrot.lane.b32.xlu1 %v6320_v54, %s5437_s20  ;;  %v555_v36 = vrot.slane %v5773_v43, 2  ;;  %v559_v43 = vrot.slane %v5792_v50, 2  ;;  %v564_v50 = vrot.slane %v5813_v57, 2  ;;  %v568_v57 = vrot.slane %v5832_v5, 2  ;;  %p5365_p7 = scmp.lt.s32.totalorder %s11806_s17, %s5363_s18 }
  0xf2   : > { %v6329_v33 = vpop.permute.xlu0 %687  ;;  %v6356_v15 = vsel %vm524_vm1, %v536_v8, %v537_v55  ;;  %v6370_v2 = vsel %vm524_vm1, %v537_v55, %v539_v12  ;;  %v6373_v8 = vsel %vm524_vm1, %v539_v12, %v541_v13  ;;  %v6386_v23 = vsel %vm524_vm1, %v541_v13, %v543_v25 }
  0xf3   : > { %12610 = vst [vmem:[#allocation114_spill] sm:$0xff] %v6329_v33  ;;  %v6344_v33 = vpop.permute.xlu1 %689  ;;  %v6389_v55 = vsel %vm524_vm1, %v545_v14, %v546_v22  ;;  %v552_v13 = vrot.slane %v5755_v37, 2  ;;  %v6403_v25 = vsel %vm524_vm1, %v546_v22, %v548_v28  ;;  %v6406_v14 = vsel %vm524_vm1, %v548_v28, %v550_v29 }
  0xf4   : > { %868 = vrot.lane.b32.xlu0 %v6323_v7, %s5437_s20  ;;  %12611 = vst [vmem:[#allocation115_spill] sm:$0xff] %v6344_v33  ;;  %12619 = vst [vmem:[#allocation123_spill] sm:$0xff] %v6403_v25  ;;  %v6422_v22 = vsel %vm524_vm1, %v554_v30, %v555_v36  ;;  %v6439_v30 = vsel %vm524_vm1, %v557_v42, %v559_v43  ;;  %v573_v5 = vrot.slane %v5853_v21, 2  ;;  %v577_v21 = vrot.slane %v5872_v41, 2 }
  0xf5   : > { %870 = vrot.lane.b32.xlu1 %v6337_v49, %s5437_s20  ;;  %12620 = vst [vmem:[#allocation124_spill] sm:$0xff] %v6406_v14  ;;  %v6419_v37 = vsel %vm524_vm1, %v550_v29, %v552_v13  ;;  %12624 = vst [vmem:[#allocation128_spill] sm:$0xff] %v6422_v22  ;;  %v561_v29 = vrot.slane %v5795_v51, 2  ;;  %v6436_v13 = vsel %vm524_vm1, %v555_v36, %v557_v42  ;;  %v582_v41 = vrot.slane %v5893_v62, 2 }
  0xf6   : > { %v6346_v24 = vpop.permute.xlu0 %691  ;;  %12623 = vst [vmem:[#allocation127_spill] sm:$0xff] %v6419_v37  ;;  %12627 = vst [vmem:[#allocation131_spill] sm:$0xff] %v6436_v13  ;;  %v6455_v36 = vsel %vm524_vm1, %v563_v44, %v564_v50  ;;  %v6472_v44 = vsel %vm524_vm1, %v566_v56, %v568_v57 }
  0xf7   : > { %12612 = vst [vmem:[#allocation116_spill] sm:$0xff] %v6346_v24  ;;  %v6360_v4 = vpop.permute.xlu1 %693  ;;  %12628 = vst [vmem:[#allocation132_spill] sm:$0xff] %v6439_v30  ;;  %v6452_v51 = vsel %vm524_vm1, %v559_v43, %v561_v29  ;;  %v570_v43 = vrot.slane %v5835_v6, 2  ;;  %v6469_v29 = vsel %vm524_vm1, %v564_v50, %v566_v56  ;;  %v6488_v50 = vsel %vm524_vm1, %v572_v58, %v573_v5 }
  0xf8   : > { %872 = vrot.lane.b32.xlu0 %v6340_v3, %s5437_s20  ;;  %12613 = vst [vmem:[#allocation117_spill] sm:$0xff] %v6360_v4  ;;  %12631 = vst [vmem:[#allocation135_spill] sm:$0xff] %v6452_v51  ;;  %v6505_v58 = vsel %vm524_vm1, %v575_v20, %v577_v21 }
  0xf9   : > { %874 = vrot.lane.b32.xlu1 %v6353_v9, %s5437_s20  ;;  %12632 = vst [vmem:[#allocation136_spill] sm:$0xff] %v6455_v36  ;;  %12635 = vst [vmem:[#allocation139_spill] sm:$0xff] %v6469_v29  ;;  %v6485_v6 = vsel %vm524_vm1, %v568_v57, %v570_v43  ;;  %v579_v57 = vrot.slane %v5875_v45, 2  ;;  %v6502_v43 = vsel %vm524_vm1, %v573_v5, %v575_v20  ;;  %v584_v45 = vrot.slane %v5896_v63, 2 }
  0xfa   : > { %v6362_v54 = vpop.permute.xlu0 %695  ;;  %12636 = vst [vmem:[#allocation140_spill] sm:$0xff] %v6472_v44  ;;  %12639 = vst [vmem:[#allocation143_spill] sm:$0xff] %v6485_v6  ;;  %v6522_v20 = vsel %vm524_vm1, %v581_v26, %v582_v41  ;;  %v591_v26 = vrot.slane %v5933_v31, 2  ;;  %v595_v31 = vrot.slane %v5952_v61, 2 }
  0xfb   : > { %12614 = vst [vmem:[#allocation118_spill] sm:$0xff] %v6362_v54  ;;  %v6377_v4 = vpop.permute.xlu1 %697  ;;  %12640 = vst [vmem:[#allocation144_spill] sm:$0xff] %v6488_v50  ;;  %v6519_v5 = vsel %vm524_vm1, %v577_v21, %v579_v57  ;;  %v6534_v63 = vsel %vm524_vm1, %v582_v41, %v584_v45  ;;  %v6537_v21 = vsel %vm524_vm1, %v584_v45, %v586_v59  ;;  %v588_v57 = vrot.slane %v5915_v48, 2 }
  0xfc   : > { %876 = vrot.lane.b32.xlu0 %v6356_v15, %s5437_s20  ;;  %12615 = vst [vmem:[#allocation119_spill] sm:$0xff] %v6377_v4  ;;  %12643 = vst [vmem:[#allocation147_spill] sm:$0xff] %v6502_v43  ;;  %v593_v41 = vrot.slane %v5936_v17, 2  ;;  %v6555_v48 = vsel %vm524_vm1, %v590_v1, %v591_v26  ;;  %v599_v1 = vrot.slane %v5970_v60, 2 }
  0xfd   : > { %878 = vrot.lane.b32.xlu1 %v6370_v2, %s5437_s20  ;;  %12644 = vst [vmem:[#allocation148_spill] sm:$0xff] %v6505_v58  ;;  %12647 = vst [vmem:[#allocation151_spill] sm:$0xff] %v6519_v5  ;;  %v6552_v45 = vsel %vm524_vm1, %v586_v59, %v588_v57  ;;  %v597_v57 = vrot.slane %v5955_v40, 2 }
  0xfe   : > { %v6379_v54 = vpop.permute.xlu0 %699  ;;  %12648 = vst [vmem:[#allocation152_spill] sm:$0xff] %v6522_v20  ;;  %12651 = vst [vmem:[#allocation155_spill] sm:$0xff] %v6534_v63  ;;  %v6567_v17 = vsel %vm524_vm1, %v591_v26, %v593_v41  ;;  %v6570_v59 = vsel %vm524_vm1, %v593_v41, %v595_v31  ;;  %v602_v26 = vrot.slane %v5976_v35, 2 }
  0xff   : > { %12616 = vst [vmem:[#allocation120_spill] sm:$0xff] %v6379_v54  ;;  %v6393_v12 = vpop.permute.xlu1 %701  ;;  %12652 = vst [vmem:[#allocation156_spill] sm:$0xff] %v6537_v21  ;;  %v6585_v41 = vsel %vm524_vm1, %v595_v31, %v597_v57  ;;  %v606_v57 = vrot.slane %v5995_v0, 2  ;;  %v12673_v54 = vld [vmem:[#allocation49_spill] sm:$0xff] }
 0x100   : > { %880 = vrot.lane.b32.xlu0 %v6373_v8, %s5437_s20  ;;  %12617 = vst [vmem:[#allocation121_spill] sm:$0xff] %v6393_v12  ;;  %12655 = vst [vmem:[#allocation159_spill] sm:$0xff] %v6552_v45  ;;  %v613_v24 = vrot.slane %v12673_v54, 2 }
 0x101   : > { %882 = vrot.lane.b32.xlu1 %v6386_v23, %s5437_s20  ;;  %12656 = vst [vmem:[#allocation160_spill] sm:$0xff] %v6555_v48  ;;  %12659 = vst [vmem:[#allocation163_spill] sm:$0xff] %v6567_v17 }
 0x102   : > { %v6395_v4 = vpop.permute.xlu0 %703  ;;  %12660 = vst [vmem:[#allocation164_spill] sm:$0xff] %v6570_v59  ;;  %12663 = vst [vmem:[#allocation167_spill] sm:$0xff] %v6585_v41 }
 0x103   : > { %12618 = vst [vmem:[#allocation122_spill] sm:$0xff] %v6395_v4  ;;  %v6410_v12 = vpop.permute.xlu1 %705 }
 0x104   : > { %884 = vrot.lane.b32.xlu0 %v6389_v55, %s5437_s20  ;;  %12621 = vst [vmem:[#allocation125_spill] sm:$0xff] %v6410_v12 }
 0x105   : > { %886 = vrot.lane.b32.xlu1 %v6403_v25, %s5437_s20 }
 0x106   : > { %v6412_v4 = vpop.permute.xlu0 %707 }
 0x107   : > { %12622 = vst [vmem:[#allocation126_spill] sm:$0xff] %v6412_v4  ;;  %v6426_v28 = vpop.permute.xlu1 %709 }
 0x108   : > { %888 = vrot.lane.b32.xlu0 %v6406_v14, %s5437_s20  ;;  %12625 = vst [vmem:[#allocation129_spill] sm:$0xff] %v6426_v28 }
 0x109   : > { %890 = vrot.lane.b32.xlu1 %v6419_v37, %s5437_s20 }
 0x10a   : > { %v6428_v12 = vpop.permute.xlu0 %711 }
 0x10b   : > { %12626 = vst [vmem:[#allocation130_spill] sm:$0xff] %v6428_v12  ;;  %v6443_v28 = vpop.permute.xlu1 %713 }
 0x10c   : > { %892 = vrot.lane.b32.xlu0 %v6422_v22, %s5437_s20  ;;  %12629 = vst [vmem:[#allocation133_spill] sm:$0xff] %v6443_v28 }
 0x10d   : > { %894 = vrot.lane.b32.xlu1 %v6436_v13, %s5437_s20 }
 0x10e   : > { %v6445_v12 = vpop.permute.xlu0 %715 }
 0x10f   : > { %12630 = vst [vmem:[#allocation134_spill] sm:$0xff] %v6445_v12  ;;  %v6459_v42 = vpop.permute.xlu1 %717 }
 0x110   : > { %896 = vrot.lane.b32.xlu0 %v6439_v30, %s5437_s20  ;;  %12633 = vst [vmem:[#allocation137_spill] sm:$0xff] %v6459_v42 }
 0x111   : > { %898 = vrot.lane.b32.xlu1 %v6452_v51, %s5437_s20 }
 0x112   : > { %v6461_v28 = vpop.permute.xlu0 %719 }
 0x113   : > { %12634 = vst [vmem:[#allocation138_spill] sm:$0xff] %v6461_v28  ;;  %v6476_v42 = vpop.permute.xlu1 %721 }
 0x114   : > { %900 = vrot.lane.b32.xlu0 %v6455_v36, %s5437_s20  ;;  %12637 = vst [vmem:[#allocation141_spill] sm:$0xff] %v6476_v42  ;;  %v12732_v36 = vld [vmem:[#allocation90_spill] sm:$0xff] }
 0x115   : > { %902 = vrot.lane.b32.xlu1 %v6469_v29, %s5437_s20 }
 0x116   : > { %v6478_v28 = vpop.permute.xlu0 %723 }
 0x117   : > { %12638 = vst [vmem:[#allocation142_spill] sm:$0xff] %v6478_v28  ;;  %v6492_v56 = vpop.permute.xlu1 %725  ;;  %v604_v28 = vrot.slane %v5992_v46, 2 }
 0x118   : > { %904 = vrot.lane.b32.xlu0 %v6472_v44, %s5437_s20  ;;  %12641 = vst [vmem:[#allocation145_spill] sm:$0xff] %v6492_v56 }
 0x119   : > { %906 = vrot.lane.b32.xlu1 %v6485_v6, %s5437_s20  ;;  %v6603_v31 = vsel %vm524_vm1, %v602_v26, %v604_v28 }
 0x11a   : > { %v6494_v42 = vpop.permute.xlu0 %727  ;;  %12668 = vst [vmem:[#allocation172_spill] sm:$0xff] %v6603_v31 }
 0x11b   : > { %12642 = vst [vmem:[#allocation146_spill] sm:$0xff] %v6494_v42  ;;  %v6509_v56 = vpop.permute.xlu1 %729 }
 0x11c   : > { %908 = vrot.lane.b32.xlu0 %v6488_v50, %s5437_s20  ;;  %12645 = vst [vmem:[#allocation149_spill] sm:$0xff] %v6509_v56  ;;  %v12719_v50 = vld [vmem:[#allocation81_spill] sm:$0xff] }
 0x11d   : > { %910 = vrot.lane.b32.xlu1 %v6502_v43, %s5437_s20 }
 0x11e   : > { %v6511_v42 = vpop.permute.xlu0 %731 }
 0x11f   : > { %12646 = vst [vmem:[#allocation150_spill] sm:$0xff] %v6511_v42  ;;  %v6525_v62 = vpop.permute.xlu1 %733 }
 0x120   : > { %912 = vrot.lane.b32.xlu0 %v6505_v58, %s5437_s20  ;;  %12649 = vst [vmem:[#allocation153_spill] sm:$0xff] %v6525_v62 }
 0x121   : > { %914 = vrot.lane.b32.xlu1 %v6519_v5, %s5437_s20 }
 0x122   : > { %v6527_v56 = vpop.permute.xlu0 %735 }
 0x123   : > { %12650 = vst [vmem:[#allocation154_spill] sm:$0xff] %v6527_v56  ;;  %v6542_v62 = vpop.permute.xlu1 %737 }
 0x124   : > { %916 = vrot.lane.b32.xlu0 %v6522_v20, %s5437_s20  ;;  %12653 = vst [vmem:[#allocation157_spill] sm:$0xff] %v6542_v62  ;;  %v12706_v20 = vld [vmem:[#allocation72_spill] sm:$0xff] }
 0x125   : > { %918 = vrot.lane.b32.xlu1 %v6534_v63, %s5437_s20 }
 0x126   : > { %v6544_v56 = vpop.permute.xlu0 %739 }
 0x127   : > { %12654 = vst [vmem:[#allocation158_spill] sm:$0xff] %v6544_v56  ;;  %v6558_v42 = vpop.permute.xlu1 %741 }
 0x128   : > { %920 = vrot.lane.b32.xlu0 %v6537_v21, %s5437_s20  ;;  %12657 = vst [vmem:[#allocation161_spill] sm:$0xff] %v6558_v42  ;;  %v600_v42 = vrot.slane %v5973_v53, 2 }
 0x129   : > { %922 = vrot.lane.b32.xlu1 %v6552_v45, %s5437_s20 }
 0x12a   : > { %v6560_v62 = vpop.permute.xlu0 %743  ;;  %v6588_v40 = vsel %vm524_vm1, %v599_v1, %v600_v42  ;;  %v608_v1 = vrot.slane %v6010_v39, 2 }
 0x12b   : > { %12658 = vst [vmem:[#allocation162_spill] sm:$0xff] %v6560_v62  ;;  %v6575_v56 = vpop.permute.xlu1 %745  ;;  %12664 = vst [vmem:[#allocation168_spill] sm:$0xff] %v6588_v40 }
 0x12c   : > { %924 = vrot.lane.b32.xlu0 %v6555_v48, %s5437_s20  ;;  %12661 = vst [vmem:[#allocation165_spill] sm:$0xff] %v6575_v56  ;;  %v12693_v48 = vld [vmem:[#allocation63_spill] sm:$0xff] }
 0x12d   : > { %926 = vrot.lane.b32.xlu1 %v6567_v17, %s5437_s20 }
 0x12e   : > { %v6577_v62 = vpop.permute.xlu0 %747 }
 0x12f   : > { %12662 = vst [vmem:[#allocation166_spill] sm:$0xff] %v6577_v62  ;;  %v6591_v12 = vpop.permute.xlu1 %749  ;;  %v6600_v62 = vsel %vm524_vm1, %v600_v42, %v602_v26  ;;  %v611_v42 = vrot.slane %v6016_v11, 2  ;;  %v6618_v26 = vsel %vm524_vm1, %v604_v28, %v606_v57  ;;  %v12678_v57 = vld [vmem:[#allocation50_spill] sm:$0xff] }
 0x130   : > { %928 = vrot.lane.b32.xlu0 %v6570_v59, %s5437_s20  ;;  %12665 = vst [vmem:[#allocation169_spill] sm:$0xff] %v6591_v12  ;;  %12667 = vst [vmem:[#allocation171_spill] sm:$0xff] %v6600_v62  ;;  %v609_v12 = vrot.slane %v6013_v38, 2 }
 0x131   : > { %930 = vrot.lane.b32.xlu1 %v6585_v41, %s5437_s20  ;;  %12671 = vst [vmem:[#allocation175_spill] sm:$0xff] %v6618_v26  ;;  %v6636_v28 = vsel %vm524_vm1, %v611_v42, %v613_v24 }
 0x132   : > { %v6593_v56 = vpop.permute.xlu0 %751  ;;  %v6621_v0 = vsel %vm524_vm1, %v608_v1, %v609_v12  ;;  %12677 = vst [vmem:[#allocation179_spill] sm:$0xff] %v6636_v28  ;;  %v615_v1 = vrot.slane %v12678_v57, 2 }
 0x133   : > { %12666 = vst [vmem:[#allocation170_spill] sm:$0xff] %v6593_v56  ;;  %v6608_v4 = vpop.permute.xlu1 %753  ;;  %12672 = vst [vmem:[#allocation176_spill] sm:$0xff] %v6621_v0 }
 0x134   : > { %932 = vrot.lane.b32.xlu0 %v6588_v40, %s5437_s20  ;;  %12669 = vst [vmem:[#allocation173_spill] sm:$0xff] %v6608_v4  ;;  %v12680_v40 = vld [vmem:[#allocation54_spill] sm:$0xff] }
 0x135   : > { %934 = vrot.lane.b32.xlu1 %v6600_v62, %s5437_s20 }
 0x136   : > { %v6610_v56 = vpop.permute.xlu0 %755 }
 0x137   : > { %12670 = vst [vmem:[#allocation174_spill] sm:$0xff] %v6610_v56  ;;  %v6624_v33 = vpop.permute.xlu1 %757  ;;  %v6633_v56 = vsel %vm524_vm1, %v609_v12, %v611_v42  ;;  %v12683_v12 = vld [vmem:[#allocation55_spill] sm:$0xff]  ;;  %v6651_v42 = vsel %vm524_vm1, %v613_v24, %v615_v1 }
 0x138   : > { %936 = vrot.lane.b32.xlu0 %v6603_v31, %s5437_s20  ;;  %12674 = vst [vmem:[#allocation49_spill] sm:$0xff] %v6624_v33  ;;  %12676 = vst [vmem:[#allocation178_spill] sm:$0xff] %v6633_v56  ;;  %v12679_v31 = vld [vmem:[#allocation53_spill] sm:$0xff]  ;;  %v618_v33 = vrot.slane %v12680_v40, 2 }
 0x139   : > { %938 = vrot.lane.b32.xlu1 %v6618_v26, %s5437_s20  ;;  %v617_v62 = vrot.slane %v12679_v31, 2  ;;  %12684 = vst [vmem:[#allocation54_spill] sm:$0xff] %v6651_v42  ;;  %v12686_v26 = vld [vmem:[#allocation58_spill] sm:$0xff] }
 0x13a   : > { %v6626_v4 = vpop.permute.xlu0 %759  ;;  %v622_v59 = vrot.slane %v12686_v26, 2 }
 0x13b   : > { %12675 = vst [vmem:[#allocation177_spill] sm:$0xff] %v6626_v4  ;;  %v6641_v41 = vpop.permute.xlu1 %761  ;;  %v6654_v57 = vsel %vm524_vm1, %v617_v62, %v618_v33  ;;  %v12691_v62 = vld [vmem:[#allocation59_spill] sm:$0xff] }
 0x13c   : > { %940 = vrot.lane.b32.xlu0 %v6621_v0, %s5437_s20  ;;  %12681 = vst [vmem:[#allocation50_spill] sm:$0xff] %v6641_v41  ;;  %v620_v0 = vrot.slane %v12683_v12, 2  ;;  %12685 = vst [vmem:[#allocation55_spill] sm:$0xff] %v6654_v57  ;;  %v624_v1 = vrot.slane %v12691_v62, 2 }
 0x13d   : > { %942 = vrot.lane.b32.xlu1 %v6633_v56, %s5437_s20 }
 0x13e   : > { %v6643_v4 = vpop.permute.xlu0 %763  ;;  %v6669_v24 = vsel %vm524_vm1, %v620_v0, %v622_v59 }
 0x13f   : > { %12682 = vst [vmem:[#allocation53_spill] sm:$0xff] %v6643_v4  ;;  %v6657_v17 = vpop.permute.xlu1 %765  ;;  %v6666_v4 = vsel %vm524_vm1, %v618_v33, %v620_v0  ;;  %12690 = vst [vmem:[#allocation182_spill] sm:$0xff] %v6669_v24  ;;  %v12696_v33 = vld [vmem:[#allocation64_spill] sm:$0xff]  ;;  %v6684_v0 = vsel %vm524_vm1, %v622_v59, %v624_v1 }
 0x140   : > { %944 = vrot.lane.b32.xlu0 %v6636_v28, %s5437_s20  ;;  %12687 = vst [vmem:[#allocation58_spill] sm:$0xff] %v6657_v17  ;;  %12689 = vst [vmem:[#allocation181_spill] sm:$0xff] %v6666_v4  ;;  %v12692_v28 = vld [vmem:[#allocation62_spill] sm:$0xff]  ;;  %v627_v17 = vrot.slane %v12693_v48, 2 }
 0x141   : > { %946 = vrot.lane.b32.xlu1 %v6651_v42, %s5437_s20  ;;  %v626_v56 = vrot.slane %v12692_v28, 2  ;;  %12697 = vst [vmem:[#allocation63_spill] sm:$0xff] %v6684_v0  ;;  %v12699_v42 = vld [vmem:[#allocation67_spill] sm:$0xff] }
 0x142   : > { %v6659_v41 = vpop.permute.xlu0 %767  ;;  %v631_v21 = vrot.slane %v12699_v42, 2 }
 0x143   : > { %12688 = vst [vmem:[#allocation180_spill] sm:$0xff] %v6659_v41  ;;  %v6674_v45 = vpop.permute.xlu1 %769  ;;  %v6687_v62 = vsel %vm524_vm1, %v626_v56, %v627_v17  ;;  %v12704_v56 = vld [vmem:[#allocation68_spill] sm:$0xff] }
 0x144   : > { %948 = vrot.lane.b32.xlu0 %v6654_v57, %s5437_s20  ;;  %12694 = vst [vmem:[#allocation59_spill] sm:$0xff] %v6674_v45  ;;  %v629_v57 = vrot.slane %v12696_v33, 2  ;;  %12698 = vst [vmem:[#allocation64_spill] sm:$0xff] %v6687_v62  ;;  %v633_v1 = vrot.slane %v12704_v56, 2 }
 0x145   : > { %950 = vrot.lane.b32.xlu1 %v6666_v4, %s5437_s20 }
 0x146   : > { %v6676_v41 = vpop.permute.xlu0 %771  ;;  %v6702_v59 = vsel %vm524_vm1, %v629_v57, %v631_v21 }
 0x147   : > { %12695 = vst [vmem:[#allocation62_spill] sm:$0xff] %v6676_v41  ;;  %v6690_v63 = vpop.permute.xlu1 %773  ;;  %v6699_v41 = vsel %vm524_vm1, %v627_v17, %v629_v57  ;;  %12703 = vst [vmem:[#allocation185_spill] sm:$0xff] %v6702_v59  ;;  %v12709_v17 = vld [vmem:[#allocation73_spill] sm:$0xff]  ;;  %v6717_v57 = vsel %vm524_vm1, %v631_v21, %v633_v1 }
 0x148   : > { %952 = vrot.lane.b32.xlu0 %v6669_v24, %s5437_s20  ;;  %12700 = vst [vmem:[#allocation67_spill] sm:$0xff] %v6690_v63  ;;  %12702 = vst [vmem:[#allocation184_spill] sm:$0xff] %v6699_v41  ;;  %v12705_v24 = vld [vmem:[#allocation71_spill] sm:$0xff]  ;;  %v636_v63 = vrot.slane %v12706_v20, 2 }
 0x149   : > { %954 = vrot.lane.b32.xlu1 %v6684_v0, %s5437_s20  ;;  %v635_v4 = vrot.slane %v12705_v24, 2  ;;  %12710 = vst [vmem:[#allocation72_spill] sm:$0xff] %v6717_v57  ;;  %v12712_v0 = vld [vmem:[#allocation76_spill] sm:$0xff] }
 0x14a   : > { %v6692_v45 = vpop.permute.xlu0 %775  ;;  %v640_v58 = vrot.slane %v12712_v0, 2 }
 0x14b   : > { %12701 = vst [vmem:[#allocation183_spill] sm:$0xff] %v6692_v45  ;;  %v6707_v5 = vpop.permute.xlu1 %777  ;;  %v6720_v56 = vsel %vm524_vm1, %v635_v4, %v636_v63  ;;  %v12717_v4 = vld [vmem:[#allocation77_spill] sm:$0xff] }
 0x14c   : > { %956 = vrot.lane.b32.xlu0 %v6687_v62, %s5437_s20  ;;  %12707 = vst [vmem:[#allocation68_spill] sm:$0xff] %v6707_v5  ;;  %v638_v62 = vrot.slane %v12709_v17, 2  ;;  %12711 = vst [vmem:[#allocation73_spill] sm:$0xff] %v6720_v56  ;;  %v642_v1 = vrot.slane %v12717_v4, 2 }
 0x14d   : > { %958 = vrot.lane.b32.xlu1 %v6699_v41, %s5437_s20 }
 0x14e   : > { %v6709_v45 = vpop.permute.xlu0 %779  ;;  %v6735_v21 = vsel %vm524_vm1, %v638_v62, %v640_v58 }
 0x14f   : > { %12708 = vst [vmem:[#allocation71_spill] sm:$0xff] %v6709_v45  ;;  %v6723_v43 = vpop.permute.xlu1 %781  ;;  %v6732_v45 = vsel %vm524_vm1, %v636_v63, %v638_v62  ;;  %12716 = vst [vmem:[#allocation188_spill] sm:$0xff] %v6735_v21  ;;  %v12722_v63 = vld [vmem:[#allocation82_spill] sm:$0xff]  ;;  %v6750_v62 = vsel %vm524_vm1, %v640_v58, %v642_v1 }
 0x150   : > { %960 = vrot.lane.b32.xlu0 %v6702_v59, %s5437_s20  ;;  %12713 = vst [vmem:[#allocation76_spill] sm:$0xff] %v6723_v43  ;;  %12715 = vst [vmem:[#allocation187_spill] sm:$0xff] %v6732_v45  ;;  %v12718_v59 = vld [vmem:[#allocation80_spill] sm:$0xff]  ;;  %v645_v43 = vrot.slane %v12719_v50, 2 }
 0x151   : > { %962 = vrot.lane.b32.xlu1 %v6717_v57, %s5437_s20  ;;  %v644_v41 = vrot.slane %v12718_v59, 2  ;;  %12723 = vst [vmem:[#allocation81_spill] sm:$0xff] %v6750_v62  ;;  %v12725_v57 = vld [vmem:[#allocation85_spill] sm:$0xff] }
 0x152   : > { %v6725_v5 = vpop.permute.xlu0 %783  ;;  %v649_v44 = vrot.slane %v12725_v57, 2 }
 0x153   : > { %12714 = vst [vmem:[#allocation186_spill] sm:$0xff] %v6725_v5  ;;  %v6740_v6 = vpop.permute.xlu1 %785  ;;  %v6753_v4 = vsel %vm524_vm1, %v644_v41, %v645_v43  ;;  %v12730_v41 = vld [vmem:[#allocation86_spill] sm:$0xff] }
 0x154   : > { %964 = vrot.lane.b32.xlu0 %v6720_v56, %s5437_s20  ;;  %12720 = vst [vmem:[#allocation77_spill] sm:$0xff] %v6740_v6  ;;  %v647_v56 = vrot.slane %v12722_v63, 2  ;;  %12724 = vst [vmem:[#allocation82_spill] sm:$0xff] %v6753_v4  ;;  %v651_v1 = vrot.slane %v12730_v41, 2 }
 0x155   : > { %966 = vrot.lane.b32.xlu1 %v6732_v45, %s5437_s20 }
 0x156   : > { %v6742_v5 = vpop.permute.xlu0 %787  ;;  %v6768_v58 = vsel %vm524_vm1, %v647_v56, %v649_v44 }
 0x157   : > { %12721 = vst [vmem:[#allocation80_spill] sm:$0xff] %v6742_v5  ;;  %v6756_v29 = vpop.permute.xlu1 %789  ;;  %v6765_v5 = vsel %vm524_vm1, %v645_v43, %v647_v56  ;;  %12729 = vst [vmem:[#allocation191_spill] sm:$0xff] %v6768_v58  ;;  %v12735_v43 = vld [vmem:[#allocation91_spill] sm:$0xff]  ;;  %v6783_v56 = vsel %vm524_vm1, %v649_v44, %v651_v1 }
 0x158   : > { %968 = vrot.lane.b32.xlu0 %v6735_v21, %s5437_s20  ;;  %12726 = vst [vmem:[#allocation85_spill] sm:$0xff] %v6756_v29  ;;  %12728 = vst [vmem:[#allocation190_spill] sm:$0xff] %v6765_v5  ;;  %v12731_v21 = vld [vmem:[#allocation89_spill] sm:$0xff]  ;;  %v654_v29 = vrot.slane %v12732_v36, 2 }
 0x159   : > { %970 = vrot.lane.b32.xlu1 %v6750_v62, %s5437_s20  ;;  %v653_v45 = vrot.slane %v12731_v21, 2  ;;  %12736 = vst [vmem:[#allocation90_spill] sm:$0xff] %v6783_v56  ;;  %v12738_v62 = vld [vmem:[#allocation94_spill] sm:$0xff] }
 0x15a   : > { %v6758_v6 = vpop.permute.xlu0 %791  ;;  %v658_v30 = vrot.slane %v12738_v62, 2 }
 0x15b   : > { %12727 = vst [vmem:[#allocation189_spill] sm:$0xff] %v6758_v6  ;;  %v6773_v51 = vpop.permute.xlu1 %793  ;;  %v6786_v41 = vsel %vm524_vm1, %v653_v45, %v654_v29  ;;  %v12743_v45 = vld [vmem:[#allocation95_spill] sm:$0xff] }
 0x15c   : > { %972 = vrot.lane.b32.xlu0 %v6753_v4, %s5437_s20  ;;  %12733 = vst [vmem:[#allocation86_spill] sm:$0xff] %v6773_v51  ;;  %v656_v4 = vrot.slane %v12735_v43, 2  ;;  %12737 = vst [vmem:[#allocation91_spill] sm:$0xff] %v6786_v41  ;;  %v660_v1 = vrot.slane %v12743_v45, 2  ;;  %v665_v45 = vrot.slane %v6258_v18, 2 }
 0x15d   : > { %974 = vrot.lane.b32.xlu1 %v6765_v5, %s5437_s20 }
 0x15e   : > { %v6775_v6 = vpop.permute.xlu0 %795  ;;  %v6801_v44 = vsel %vm524_vm1, %v656_v4, %v658_v30 }
 0x15f   : > { %12734 = vst [vmem:[#allocation89_spill] sm:$0xff] %v6775_v6  ;;  %v6789_v13 = vpop.permute.xlu1 %797  ;;  %v6798_v6 = vsel %vm524_vm1, %v654_v29, %v656_v4  ;;  %12742 = vst [vmem:[#allocation194_spill] sm:$0xff] %v6801_v44  ;;  %v6815_v29 = vsel %vm524_vm1, %v658_v30, %v660_v1  ;;  %v12752_v1 = vld [vmem:[#allocation103_spill] sm:$0xff] }
 0x160   : > { %976 = vrot.lane.b32.xlu0 %v6768_v58, %s5437_s20  ;;  %12739 = vst [vmem:[#allocation94_spill] sm:$0xff] %v6789_v13  ;;  %12741 = vst [vmem:[#allocation193_spill] sm:$0xff] %v6798_v6  ;;  %v662_v58 = vrot.slane %v6252_v19, 2  ;;  %v663_v13 = vrot.slane %v6255_v32, 2 }
 0x161   : > { %978 = vrot.lane.b32.xlu1 %v6783_v56, %s5437_s20  ;;  %12746 = vst [vmem:[#allocation196_spill] sm:$0xff] %v6815_v29 }
 0x162   : > { %v6791_v51 = vpop.permute.xlu0 %799  ;;  %v6818_v4 = vsel %vm524_vm1, %v662_v58, %v663_v13  ;;  %v6831_v30 = vsel %vm524_vm1, %v663_v13, %v665_v45 }
 0x163   : > { %12740 = vst [vmem:[#allocation192_spill] sm:$0xff] %v6791_v51  ;;  %v6806_v5 = vpop.permute.xlu1 %866  ;;  %12747 = vst [vmem:[#allocation197_spill] sm:$0xff] %v6818_v4 }
 0x164   : > { %980 = vrot.lane.b32.xlu0 %v6786_v41, %s5437_s20  ;;  %12744 = vst [vmem:[#allocation95_spill] sm:$0xff] %v6806_v5  ;;  %v667_v41 = vrot.slane %v6278_v10, 2  ;;  %12750 = vst [vmem:[#allocation200_spill] sm:$0xff] %v6831_v30 }
 0x165   : > { %982 = vrot.lane.b32.xlu1 %v6798_v6, %s5437_s20 }
 0x166   : > { %v6808_v51 = vpop.permute.xlu0 %868  ;;  %v6834_v58 = vsel %vm524_vm1, %v665_v45, %v667_v41 }
 0x167   : > { %12745 = vst [vmem:[#allocation195_spill] sm:$0xff] %v6808_v51  ;;  %v6822_v5 = vpop.permute.xlu1 %870  ;;  %12751 = vst [vmem:[#allocation201_spill] sm:$0xff] %v6834_v58 }
 0x168   : > { %984 = vrot.lane.b32.xlu0 %v6801_v44, %s5437_s20  ;;  %12748 = vst [vmem:[#allocation198_spill] sm:$0xff] %v6822_v5  ;;  %v669_v44 = vrot.slane %v12752_v1, 2  ;;  %v6855_v1 = vld [vmem:[%s5648_s6] sm:$0xff] }
 0x169   : > { %986 = vrot.lane.b32.xlu1 %v6815_v29, %s5437_s20  ;;  %12758 = vst [vmem:[#allocation206_spill] sm:$0xff] %v6855_v1 }
 0x16a   : > { %v6824_v51 = vpop.permute.xlu0 %872  ;;  %v6846_v13 = vsel %vm524_vm1, %v667_v41, %v669_v44  ;;  %v6864_v44 = vld [vmem:[%s5648_s6 + $0x8] sm:$0xff] }
 0x16b   : > { %12749 = vst [vmem:[#allocation199_spill] sm:$0xff] %v6824_v51  ;;  %v6837_v6 = vpop.permute.xlu1 %874  ;;  %12755 = vst [vmem:[#allocation203_spill] sm:$0xff] %v6846_v13 }
 0x16c   : > { %988 = vrot.lane.b32.xlu0 %v6818_v4, %s5437_s20  ;;  %12753 = vst [vmem:[#allocation103_spill] sm:$0xff] %v6837_v6  ;;  %12761 = vst [vmem:[#allocation209_spill] sm:$0xff] %v6864_v44 }
 0x16d   : > { %990 = vrot.lane.b32.xlu1 %v6831_v30, %s5437_s20 }
 0x16e   : > { %v6839_v5 = vpop.permute.xlu0 %876 }
 0x16f   : > { %12754 = vst [vmem:[#allocation202_spill] sm:$0xff] %v6839_v5  ;;  %v6848_v51 = vpop.permute.xlu1 %878 }
 0x170   : > { %992 = vrot.lane.b32.xlu0 %v6834_v58, %s5437_s20  ;;  %12756 = vst [vmem:[#allocation204_spill] sm:$0xff] %v6848_v51 }
 0x171   : > { %994 = vrot.lane.b32.xlu1 %v6846_v13, %s5437_s20  ;;  %s5364_s20 = scalar_lea.vmem %s5363_s18, 2048 }
 0x172   : > { %v6850_v45 = vpop.permute.xlu0 %880 }
 0x173   : > { %12757 = vst [vmem:[#allocation205_spill] sm:$0xff] %v6850_v45  ;;  %v6859_v5 = vpop.permute.xlu1 %882  ;;  %v6869_v45 = vld [vmem:[%s5648_s6 + $0x10] sm:$0xff] }
 0x174   : > { %1061 = vrot.lane.b32.xlu0 %v6855_v1, %s5438_s7  ;;  %12759 = vst [vmem:[#allocation207_spill] sm:$0xff] %v6859_v5  ;;  %12762 = vst [vmem:[#allocation210_spill] sm:$0xff] %v6869_v45  ;;  %v6878_v5 = vld [vmem:[%s5648_s6 + $0x18] sm:$0xff] }
 0x175   : > { %1063 = vrot.lane.b32.xlu1 %v6864_v44, %s5438_s7  ;;  %12765 = vst [vmem:[#allocation213_spill] sm:$0xff] %v6878_v5 }
 0x176   : > { %v6861_v41 = vpop.permute.xlu0 %884 }
 0x177   : > { %12760 = vst [vmem:[#allocation208_spill] sm:$0xff] %v6861_v41  ;;  %v6873_v51 = vpop.permute.xlu1 %886  ;;  %v6883_v41 = vld [vmem:[%s5648_s6 + $0x28] sm:$0xff] }
 0x178   : > { %1065 = vrot.lane.b32.xlu0 %v6869_v45, %s5438_s7  ;;  %12763 = vst [vmem:[#allocation211_spill] sm:$0xff] %v6873_v51  ;;  %12766 = vst [vmem:[#allocation214_spill] sm:$0xff] %v6883_v41  ;;  %v6892_v51 = vld [vmem:[%s5648_s6 + $0x30] sm:$0xff] }
 0x179   : > { %1067 = vrot.lane.b32.xlu1 %v6878_v5, %s5438_s7  ;;  %12769 = vst [vmem:[#allocation217_spill] sm:$0xff] %v6892_v51 }
 0x17a   : > { %v6875_v6 = vpop.permute.xlu0 %888 }
 0x17b   : > { %12764 = vst [vmem:[#allocation212_spill] sm:$0xff] %v6875_v6  ;;  %v6887_v44 = vpop.permute.xlu1 %890  ;;  %v6897_v6 = vld [vmem:[%s5648_s6 + $0x38] sm:$0xff] }
 0x17c   : > { %1069 = vrot.lane.b32.xlu0 %v6883_v41, %s5438_s7  ;;  %12767 = vst [vmem:[#allocation215_spill] sm:$0xff] %v6887_v44  ;;  %12770 = vst [vmem:[#allocation218_spill] sm:$0xff] %v6897_v6  ;;  %v6906_v44 = vld [vmem:[%s5648_s6 + $0x40] sm:$0xff] }
 0x17d   : > { %1071 = vrot.lane.b32.xlu1 %v6892_v51, %s5438_s7  ;;  %12773 = vst [vmem:[#allocation221_spill] sm:$0xff] %v6906_v44 }
 0x17e   : > { %v6889_v45 = vpop.permute.xlu0 %892 }
 0x17f   : > { %12768 = vst [vmem:[#allocation216_spill] sm:$0xff] %v6889_v45  ;;  %v6901_v5 = vpop.permute.xlu1 %894  ;;  %v6911_v45 = vld [vmem:[%s5648_s6 + $0x50] sm:$0xff] }
 0x180   : > { %1073 = vrot.lane.b32.xlu0 %v6897_v6, %s5438_s7  ;;  %12771 = vst [vmem:[#allocation219_spill] sm:$0xff] %v6901_v5  ;;  %12774 = vst [vmem:[#allocation222_spill] sm:$0xff] %v6911_v45  ;;  %v6920_v5 = vld [vmem:[%s5648_s6 + $0x58] sm:$0xff] }
 0x181   : > { %1075 = vrot.lane.b32.xlu1 %v6906_v44, %s5438_s7  ;;  %12777 = vst [vmem:[#allocation225_spill] sm:$0xff] %v6920_v5 }
 0x182   : > { %v6903_v41 = vpop.permute.xlu0 %896 }
 0x183   : > { %12772 = vst [vmem:[#allocation220_spill] sm:$0xff] %v6903_v41  ;;  %v6915_v51 = vpop.permute.xlu1 %898  ;;  %v6925_v41 = vld [vmem:[%s5648_s6 + $0x60] sm:$0xff] }
 0x184   : > { %1077 = vrot.lane.b32.xlu0 %v6911_v45, %s5438_s7  ;;  %12775 = vst [vmem:[#allocation223_spill] sm:$0xff] %v6915_v51  ;;  %12778 = vst [vmem:[#allocation226_spill] sm:$0xff] %v6925_v41  ;;  %v6934_v51 = vld [vmem:[%s5648_s6 + $0x68] sm:$0xff] }
 0x185   : > { %1079 = vrot.lane.b32.xlu1 %v6920_v5, %s5438_s7  ;;  %12781 = vst [vmem:[#allocation229_spill] sm:$0xff] %v6934_v51 }
 0x186   : > { %v6917_v6 = vpop.permute.xlu0 %900 }
 0x187   : > { %12776 = vst [vmem:[#allocation224_spill] sm:$0xff] %v6917_v6  ;;  %v6929_v44 = vpop.permute.xlu1 %902  ;;  %v6939_v6 = vld [vmem:[%s5648_s6 + $0x78] sm:$0xff] }
 0x188   : > { %1081 = vrot.lane.b32.xlu0 %v6925_v41, %s5438_s7  ;;  %12779 = vst [vmem:[#allocation227_spill] sm:$0xff] %v6929_v44  ;;  %12782 = vst [vmem:[#allocation230_spill] sm:$0xff] %v6939_v6  ;;  %v6948_v44 = vld [vmem:[%s5648_s6 + $0x80] sm:$0xff] }
 0x189   : > { %1083 = vrot.lane.b32.xlu1 %v6934_v51, %s5438_s7  ;;  %12785 = vst [vmem:[#allocation233_spill] sm:$0xff] %v6948_v44 }
 0x18a   : > { %v6931_v45 = vpop.permute.xlu0 %904 }
 0x18b   : > { %12780 = vst [vmem:[#allocation228_spill] sm:$0xff] %v6931_v45  ;;  %v6943_v5 = vpop.permute.xlu1 %906  ;;  %v6953_v45 = vld [vmem:[%s5648_s6 + $0x88] sm:$0xff] }
 0x18c   : > { %1085 = vrot.lane.b32.xlu0 %v6939_v6, %s5438_s7  ;;  %12783 = vst [vmem:[#allocation231_spill] sm:$0xff] %v6943_v5  ;;  %12786 = vst [vmem:[#allocation234_spill] sm:$0xff] %v6953_v45  ;;  %v6962_v5 = vld [vmem:[%s5648_s6 + $0x90] sm:$0xff] }
 0x18d   : > { %1087 = vrot.lane.b32.xlu1 %v6948_v44, %s5438_s7  ;;  %12789 = vst [vmem:[#allocation237_spill] sm:$0xff] %v6962_v5 }
 0x18e   : > { %v6945_v41 = vpop.permute.xlu0 %908 }
 0x18f   : > { %12784 = vst [vmem:[#allocation232_spill] sm:$0xff] %v6945_v41  ;;  %v6957_v51 = vpop.permute.xlu1 %910  ;;  %v6967_v41 = vld [vmem:[%s5648_s6 + $0xa0] sm:$0xff] }
 0x190   : > { %1089 = vrot.lane.b32.xlu0 %v6953_v45, %s5438_s7  ;;  %12787 = vst [vmem:[#allocation235_spill] sm:$0xff] %v6957_v51  ;;  %12790 = vst [vmem:[#allocation238_spill] sm:$0xff] %v6967_v41  ;;  %v6976_v51 = vld [vmem:[%s5648_s6 + $0xa8] sm:$0xff] }
 0x191   : > { %1091 = vrot.lane.b32.xlu1 %v6962_v5, %s5438_s7  ;;  %12793 = vst [vmem:[#allocation241_spill] sm:$0xff] %v6976_v51 }
 0x192   : > { %v6959_v6 = vpop.permute.xlu0 %912 }
 0x193   : > { %12788 = vst [vmem:[#allocation236_spill] sm:$0xff] %v6959_v6  ;;  %v6971_v44 = vpop.permute.xlu1 %914  ;;  %v6981_v6 = vld [vmem:[%s5648_s6 + $0xb0] sm:$0xff] }
 0x194   : > { %1093 = vrot.lane.b32.xlu0 %v6967_v41, %s5438_s7  ;;  %12791 = vst [vmem:[#allocation239_spill] sm:$0xff] %v6971_v44  ;;  %12794 = vst [vmem:[#allocation242_spill] sm:$0xff] %v6981_v6  ;;  %v6990_v44 = vld [vmem:[%s5648_s6 + $0xb8] sm:$0xff] }
 0x195   : > { %1095 = vrot.lane.b32.xlu1 %v6976_v51, %s5438_s7  ;;  %12797 = vst [vmem:[#allocation245_spill] sm:$0xff] %v6990_v44 }
 0x196   : > { %v6973_v45 = vpop.permute.xlu0 %916 }
 0x197   : > { %12792 = vst [vmem:[#allocation240_spill] sm:$0xff] %v6973_v45  ;;  %v6985_v5 = vpop.permute.xlu1 %918  ;;  %v6995_v45 = vld [vmem:[%s5648_s6 + $0xc8] sm:$0xff] }
 0x198   : > { %1097 = vrot.lane.b32.xlu0 %v6981_v6, %s5438_s7  ;;  %12795 = vst [vmem:[#allocation243_spill] sm:$0xff] %v6985_v5  ;;  %12798 = vst [vmem:[#allocation246_spill] sm:$0xff] %v6995_v45  ;;  %v7004_v5 = vld [vmem:[%s5648_s6 + $0xd0] sm:$0xff] }
 0x199   : > { %1099 = vrot.lane.b32.xlu1 %v6990_v44, %s5438_s7  ;;  %12801 = vst [vmem:[#allocation249_spill] sm:$0xff] %v7004_v5 }
 0x19a   : > { %v6987_v41 = vpop.permute.xlu0 %920 }
 0x19b   : > { %12796 = vst [vmem:[#allocation244_spill] sm:$0xff] %v6987_v41  ;;  %v6999_v51 = vpop.permute.xlu1 %922  ;;  %v7009_v41 = vld [vmem:[%s5648_s6 + $0xd8] sm:$0xff] }
 0x19c   : > { %1101 = vrot.lane.b32.xlu0 %v6995_v45, %s5438_s7  ;;  %12799 = vst [vmem:[#allocation247_spill] sm:$0xff] %v6999_v51  ;;  %12802 = vst [vmem:[#allocation250_spill] sm:$0xff] %v7009_v41  ;;  %v7018_v45 = vld [vmem:[%s5648_s6 + $0xe0] sm:$0xff] }
 0x19d   : > { %1103 = vrot.lane.b32.xlu1 %v7004_v5, %s5438_s7  ;;  %12805 = vst [vmem:[#allocation253_spill] sm:$0xff] %v7018_v45 }
 0x19e   : > { %v7001_v6 = vpop.permute.xlu0 %924 }
 0x19f   : > { %12800 = vst [vmem:[#allocation248_spill] sm:$0xff] %v7001_v6  ;;  %v7013_v44 = vpop.permute.xlu1 %926  ;;  %v7023_v6 = vld [vmem:[%s5648_s6 + $0xf0] sm:$0xff] }
 0x1a0   : > { %1105 = vrot.lane.b32.xlu0 %v7009_v41, %s5438_s7  ;;  %12803 = vst [vmem:[#allocation251_spill] sm:$0xff] %v7013_v44  ;;  %12806 = vst [vmem:[#allocation254_spill] sm:$0xff] %v7023_v6  ;;  %v7032_v41 = vld [vmem:[%s5648_s6 + $0xf8] sm:$0xff] }
 0x1a1   : > { %1107 = vrot.lane.b32.xlu1 %v7018_v45, %s5438_s7  ;;  %12809 = vst [vmem:[#allocation257_spill] sm:$0xff] %v7032_v41 }
 0x1a2   : > { %v7015_v1 = vpop.permute.xlu0 %928 }
 0x1a3   : > { %12804 = vst [vmem:[#allocation252_spill] sm:$0xff] %v7015_v1  ;;  %v7027_v51 = vpop.permute.xlu1 %930  ;;  %v7037_v1 = vld [vmem:[%s5648_s6 + $0x100] sm:$0xff] }
 0x1a4   : > { %1109 = vrot.lane.b32.xlu0 %v7023_v6, %s5438_s7  ;;  %12807 = vst [vmem:[#allocation255_spill] sm:$0xff] %v7027_v51  ;;  %v7046_v6 = vld [vmem:[%s5648_s6 + $0x108] sm:$0xff] }
 0x1a5   : > { %1111 = vrot.lane.b32.xlu1 %v7032_v41, %s5438_s7  ;;  %12812 = vst [vmem:[#allocation260_spill] sm:$0xff] %v7046_v6  ;;  %v7057_v41 = vld [vmem:[%s5648_s6 + $0x120] sm:$0xff] }
 0x1a6   : > { %v7029_v5 = vpop.permute.xlu0 %932 }
 0x1a7   : > { %12808 = vst [vmem:[#allocation256_spill] sm:$0xff] %v7029_v5  ;;  %v7041_v44 = vpop.permute.xlu1 %934 }
 0x1a8   : > { %1113 = vrot.lane.b32.xlu0 %v7037_v1, %s5438_s7  ;;  %12810 = vst [vmem:[#allocation258_spill] sm:$0xff] %v7041_v44  ;;  %v7062_v44 = vld [vmem:[%s5648_s6 + $0x128] sm:$0xff] }
 0x1a9   : > { %1115 = vrot.lane.b32.xlu1 %v7046_v6, %s5438_s7 }
 0x1aa   : > { %v7043_v45 = vpop.permute.xlu0 %936 }
 0x1ab   : > { %12811 = vst [vmem:[#allocation259_spill] sm:$0xff] %v7043_v45  ;;  %v7052_v5 = vpop.permute.xlu1 %938 }
 0x1ac   : > { %1117 = vrot.lane.b32.xlu0 %v5930_v34, %s5438_s7  ;;  %12813 = vst [vmem:[#allocation261_spill] sm:$0xff] %v7052_v5 }
 0x1ad   : > { %1119 = vrot.lane.b32.xlu1 %v7057_v41, %s5438_s7 }
 0x1ae   : > { %v7054_v51 = vpop.permute.xlu0 %940 }
 0x1af   : > { %12814 = vst [vmem:[#allocation262_spill] sm:$0xff] %v7054_v51  ;;  %v7066_v45 = vpop.permute.xlu1 %942 }
 0x1b0   : > { %1121 = vrot.lane.b32.xlu0 %v7062_v44, %s5438_s7  ;;  %12815 = vst [vmem:[#allocation263_spill] sm:$0xff] %v7066_v45 }
 0x1b1   : > { %1123 = vrot.lane.b32.xlu1 %v5952_v61, %s5438_s7 }
 0x1b2   : > { %v7068_v6 = vpop.permute.xlu0 %944 }
 0x1b3   : > { %12816 = vst [vmem:[#allocation264_spill] sm:$0xff] %v7068_v6  ;;  %v7074_v34 = vpop.permute.xlu1 %946 }
 0x1b4   : > { %1125 = vrot.lane.b32.xlu0 %v5970_v60, %s5438_s7  ;;  %12817 = vst [vmem:[#allocation265_spill] sm:$0xff] %v7074_v34  ;;  %v12913_v34 = vld [vmem:[#allocation45_spill] sm:$0xff] }
 0x1b5   : > { %1127 = vrot.lane.b32.xlu1 %v5973_v53, %s5438_s7 }
 0x1b6   : > { %v7076_v51 = vpop.permute.xlu0 %948 }
 0x1b7   : > { %12818 = vst [vmem:[#allocation266_spill] sm:$0xff] %v7076_v51  ;;  %v7082_v5 = vpop.permute.xlu1 %950 }
 0x1b8   : > { %1129 = vrot.lane.b32.xlu0 %v5976_v35, %s5438_s7  ;;  %12819 = vst [vmem:[#allocation267_spill] sm:$0xff] %v7082_v5  ;;  %v12909_v5 = vld [vmem:[#allocation43_spill] sm:$0xff] }
 0x1b9   : > { %1131 = vrot.lane.b32.xlu1 %v5992_v46, %s5438_s7 }
 0x1ba   : > { %v7084_v45 = vpop.permute.xlu0 %952 }
 0x1bb   : > { %12820 = vst [vmem:[#allocation268_spill] sm:$0xff] %v7084_v45  ;;  %v7090_v60 = vpop.permute.xlu1 %954 }
 0x1bc   : > { %1133 = vrot.lane.b32.xlu0 %v6010_v39, %s5438_s7  ;;  %12821 = vst [vmem:[#allocation269_spill] sm:$0xff] %v7090_v60  ;;  %v12905_v60 = vld [vmem:[#allocation41_spill] sm:$0xff] }
 0x1bd   : > { %1135 = vrot.lane.b32.xlu1 %v6013_v38, %s5438_s7 }
 0x1be   : > { %v7092_v61 = vpop.permute.xlu0 %956 }
 0x1bf   : > { %12822 = vst [vmem:[#allocation270_spill] sm:$0xff] %v7092_v61  ;;  %v7098_v53 = vpop.permute.xlu1 %958 }
 0x1c0   : > { %1137 = vrot.lane.b32.xlu0 %v6016_v11, %s5438_s7  ;;  %12823 = vst [vmem:[#allocation271_spill] sm:$0xff] %v7098_v53  ;;  %v12901_v53 = vld [vmem:[#allocation39_spill] sm:$0xff] }
 0x1c1   : > { %1139 = vrot.lane.b32.xlu1 %v12673_v54, %s5438_s7 }
 0x1c2   : > { %v7100_v35 = vpop.permute.xlu0 %960 }
 0x1c3   : > { %12824 = vst [vmem:[#allocation272_spill] sm:$0xff] %v7100_v35  ;;  %v7106_v39 = vpop.permute.xlu1 %962 }
 0x1c4   : > { %1141 = vrot.lane.b32.xlu0 %v12679_v31, %s5438_s7  ;;  %12825 = vst [vmem:[#allocation273_spill] sm:$0xff] %v7106_v39  ;;  %v12897_v39 = vld [vmem:[#allocation37_spill] sm:$0xff] }
 0x1c5   : > { %1143 = vrot.lane.b32.xlu1 %v12680_v40, %s5438_s7 }
 0x1c6   : > { %v7108_v46 = vpop.permute.xlu0 %964 }
 0x1c7   : > { %12826 = vst [vmem:[#allocation274_spill] sm:$0xff] %v7108_v46  ;;  %v7114_v38 = vpop.permute.xlu1 %966 }
 0x1c8   : > { %1145 = vrot.lane.b32.xlu0 %v12683_v12, %s5438_s7  ;;  %12827 = vst [vmem:[#allocation275_spill] sm:$0xff] %v7114_v38  ;;  %v12893_v38 = vld [vmem:[#allocation35_spill] sm:$0xff] }
 0x1c9   : > { %1147 = vrot.lane.b32.xlu1 %v12686_v26, %s5438_s7 }
 0x1ca   : > { %v7116_v11 = vpop.permute.xlu0 %968 }
 0x1cb   : > { %12828 = vst [vmem:[#allocation276_spill] sm:$0xff] %v7116_v11  ;;  %v7122_v54 = vpop.permute.xlu1 %970 }
 0x1cc   : > { %1149 = vrot.lane.b32.xlu0 %v12692_v28, %s5438_s7  ;;  %12829 = vst [vmem:[#allocation277_spill] sm:$0xff] %v7122_v54  ;;  %v12889_v54 = vld [vmem:[#allocation33_spill] sm:$0xff] }
 0x1cd   : > { %1151 = vrot.lane.b32.xlu1 %v12693_v48, %s5438_s7 }
 0x1ce   : > { %v7124_v31 = vpop.permute.xlu0 %972 }
 0x1cf   : > { %12830 = vst [vmem:[#allocation278_spill] sm:$0xff] %v7124_v31  ;;  %v7130_v40 = vpop.permute.xlu1 %974 }
 0x1d0   : > { %1153 = vrot.lane.b32.xlu0 %v12696_v33, %s5438_s7  ;;  %12831 = vst [vmem:[#allocation279_spill] sm:$0xff] %v7130_v40  ;;  %v12885_v40 = vld [vmem:[#allocation31_spill] sm:$0xff] }
 0x1d1   : > { %1155 = vrot.lane.b32.xlu1 %v12699_v42, %s5438_s7 }
 0x1d2   : > { %v7132_v12 = vpop.permute.xlu0 %976 }
 0x1d3   : > { %12832 = vst [vmem:[#allocation280_spill] sm:$0xff] %v7132_v12  ;;  %v7138_v26 = vpop.permute.xlu1 %978 }
 0x1d4   : > { %1157 = vrot.lane.b32.xlu0 %v12705_v24, %s5438_s7  ;;  %12833 = vst [vmem:[#allocation281_spill] sm:$0xff] %v7138_v26  ;;  %v12881_v26 = vld [vmem:[#allocation29_spill] sm:$0xff] }
 0x1d5   : > { %1159 = vrot.lane.b32.xlu1 %v12706_v20, %s5438_s7 }
 0x1d6   : > { %v7140_v28 = vpop.permute.xlu0 %980 }
 0x1d7   : > { %12834 = vst [vmem:[#allocation282_spill] sm:$0xff] %v7140_v28  ;;  %v7146_v48 = vpop.permute.xlu1 %982 }
 0x1d8   : > { %1161 = vrot.lane.b32.xlu0 %v12709_v17, %s5438_s7  ;;  %12835 = vst [vmem:[#allocation283_spill] sm:$0xff] %v7146_v48  ;;  %v12877_v48 = vld [vmem:[#allocation27_spill] sm:$0xff] }
 0x1d9   : > { %1163 = vrot.lane.b32.xlu1 %v12712_v0, %s5438_s7 }
 0x1da   : > { %v7148_v33 = vpop.permute.xlu0 %984 }
 0x1db   : > { %12836 = vst [vmem:[#allocation284_spill] sm:$0xff] %v7148_v33  ;;  %v7154_v42 = vpop.permute.xlu1 %986 }
 0x1dc   : > { %1165 = vrot.lane.b32.xlu0 %v12718_v59, %s5438_s7  ;;  %12837 = vst [vmem:[#allocation285_spill] sm:$0xff] %v7154_v42  ;;  %v12873_v42 = vld [vmem:[#allocation25_spill] sm:$0xff] }
 0x1dd   : > { %1167 = vrot.lane.b32.xlu1 %v12719_v50, %s5438_s7 }
 0x1de   : > { %v7156_v24 = vpop.permute.xlu0 %988 }
 0x1df   : > { %12838 = vst [vmem:[#allocation286_spill] sm:$0xff] %v7156_v24  ;;  %v7162_v20 = vpop.permute.xlu1 %990 }
 0x1e0   : > { %1169 = vrot.lane.b32.xlu0 %v12722_v63, %s5438_s7  ;;  %12839 = vst [vmem:[#allocation287_spill] sm:$0xff] %v7162_v20  ;;  %v12869_v20 = vld [vmem:[#allocation23_spill] sm:$0xff] }
 0x1e1   : > { %1171 = vrot.lane.b32.xlu1 %v12725_v57, %s5438_s7 }
 0x1e2   : > { %v7164_v17 = vpop.permute.xlu0 %992 }
 0x1e3   : > { %12840 = vst [vmem:[#allocation288_spill] sm:$0xff] %v7164_v17  ;;  %v7170_v0 = vpop.permute.xlu1 %994 }
 0x1e4   : > { %1173 = vrot.lane.b32.xlu0 %v12731_v21, %s5438_s7  ;;  %12841 = vst [vmem:[#allocation289_spill] sm:$0xff] %v7170_v0 }
 0x1e5   : > { %1175 = vrot.lane.b32.xlu1 %v12732_v36, %s5438_s7 }
 0x1e6   : > { %v7172_v59 = vpop.permute.xlu0 %1061 }
 0x1e7   : > { %12842 = vst [vmem:[#allocation290_spill] sm:$0xff] %v7172_v59  ;;  %v7178_v50 = vpop.permute.xlu1 %1063  ;;  %v12865_v59 = vld [vmem:[#allocation21_spill] sm:$0xff] }
 0x1e8   : > { %1177 = vrot.lane.b32.xlu0 %v12735_v43, %s5438_s7  ;;  %12843 = vst [vmem:[#allocation291_spill] sm:$0xff] %v7178_v50 }
 0x1e9   : > { %1179 = vrot.lane.b32.xlu1 %v12738_v62, %s5438_s7 }
 0x1ea   : > { %v7180_v63 = vpop.permute.xlu0 %1065 }
 0x1eb   : > { %12844 = vst [vmem:[#allocation292_spill] sm:$0xff] %v7180_v63  ;;  %v7186_v57 = vpop.permute.xlu1 %1067  ;;  %v12861_v63 = vld [vmem:[#allocation19_spill] sm:$0xff] }
 0x1ec   : > { %1181 = vrot.lane.b32.xlu0 %v6252_v19, %s5438_s7  ;;  %12845 = vst [vmem:[#allocation293_spill] sm:$0xff] %v7186_v57  ;;  %v12849_v19 = vld [vmem:[#allocation14_spill] sm:$0xff] }
 0x1ed   : > { %1183 = vrot.lane.b32.xlu1 %v6255_v32, %s5438_s7  ;;  %v12852_v32 = vld [vmem:[#allocation13_spill] sm:$0xff] }
 0x1ee   : > { %v7188_v21 = vpop.permute.xlu0 %1069 }
 0x1ef   : > { %12846 = vst [vmem:[#allocation294_spill] sm:$0xff] %v7188_v21  ;;  %v7194_v36 = vpop.permute.xlu1 %1071  ;;  %v12857_v21 = vld [vmem:[#allocation17_spill] sm:$0xff] }
 0x1f0   : > { %1185 = vrot.lane.b32.xlu0 %v6258_v18, %s5438_s7  ;;  %12847 = vst [vmem:[#allocation295_spill] sm:$0xff] %v7194_v36  ;;  %v12853_v18 = vld [vmem:[#allocation15_spill] sm:$0xff] }
 0x1f1   : > { %1187 = vrot.lane.b32.xlu1 %v6278_v10, %s5438_s7  ;;  %v12856_v10 = vld [vmem:[#allocation16_spill] sm:$0xff] }
 0x1f2   : > { %v7196_v43 = vpop.permute.xlu0 %1073 }
 0x1f3   : > { %12848 = vst [vmem:[#allocation296_spill] sm:$0xff] %v7196_v43  ;;  %v7202_v62 = vpop.permute.xlu1 %1075 }
 0x1f4   : > { %1253 = vrot.lane.b32.xlu0 %v12849_v19, %s5439_s8  ;;  %12850 = vst [vmem:[#allocation14_spill] sm:$0xff] %v7202_v62 }
 0x1f5   : > { %1255 = vrot.lane.b32.xlu1 %v12852_v32, %s5439_s8 }
 0x1f6   : > { %v7204_v0 = vpop.permute.xlu0 %1077 }
 0x1f7   : > { %12851 = vst [vmem:[#allocation297_spill] sm:$0xff] %v7204_v0  ;;  %v7210_v36 = vpop.permute.xlu1 %1079  ;;  %v12860_v0 = vld [vmem:[#allocation18_spill] sm:$0xff] }
 0x1f8   : > { %1257 = vrot.lane.b32.xlu0 %v12853_v18, %s5439_s8  ;;  %12854 = vst [vmem:[#allocation13_spill] sm:$0xff] %v7210_v36 }
 0x1f9   : > { %1259 = vrot.lane.b32.xlu1 %v12856_v10, %s5439_s8 }
 0x1fa   : > { %v7212_v43 = vpop.permute.xlu0 %1081 }
 0x1fb   : > { %12855 = vst [vmem:[#allocation15_spill] sm:$0xff] %v7212_v43  ;;  %v7218_v57 = vpop.permute.xlu1 %1083  ;;  %v12864_v43 = vld [vmem:[#allocation20_spill] sm:$0xff] }
 0x1fc   : > { %1261 = vrot.lane.b32.xlu0 %v12857_v21, %s5439_s8  ;;  %12858 = vst [vmem:[#allocation16_spill] sm:$0xff] %v7218_v57 }
 0x1fd   : > { %1263 = vrot.lane.b32.xlu1 %v12860_v0, %s5439_s8 }
 0x1fe   : > { %v7220_v62 = vpop.permute.xlu0 %1085 }
 0x1ff   : > { %12859 = vst [vmem:[#allocation17_spill] sm:$0xff] %v7220_v62  ;;  %v7226_v50 = vpop.permute.xlu1 %1087  ;;  %v12868_v62 = vld [vmem:[#allocation22_spill] sm:$0xff] }
 0x200   : > { %1265 = vrot.lane.b32.xlu0 %v12861_v63, %s5439_s8  ;;  %12862 = vst [vmem:[#allocation18_spill] sm:$0xff] %v7226_v50 }
 0x201   : > { %1267 = vrot.lane.b32.xlu1 %v12864_v43, %s5439_s8 }
 0x202   : > { %v7228_v36 = vpop.permute.xlu0 %1089 }
 0x203   : > { %12863 = vst [vmem:[#allocation19_spill] sm:$0xff] %v7228_v36  ;;  %v7234_v17 = vpop.permute.xlu1 %1091  ;;  %v12872_v36 = vld [vmem:[#allocation24_spill] sm:$0xff] }
 0x204   : > { %1269 = vrot.lane.b32.xlu0 %v12865_v59, %s5439_s8  ;;  %12866 = vst [vmem:[#allocation20_spill] sm:$0xff] %v7234_v17 }
 0x205   : > { %1271 = vrot.lane.b32.xlu1 %v12868_v62, %s5439_s8 }
 0x206   : > { %v7236_v57 = vpop.permute.xlu0 %1093 }
 0x207   : > { %12867 = vst [vmem:[#allocation21_spill] sm:$0xff] %v7236_v57  ;;  %v7242_v24 = vpop.permute.xlu1 %1095  ;;  %v12876_v57 = vld [vmem:[#allocation26_spill] sm:$0xff] }
 0x208   : > { %1273 = vrot.lane.b32.xlu0 %v12869_v20, %s5439_s8  ;;  %12870 = vst [vmem:[#allocation22_spill] sm:$0xff] %v7242_v24 }
 0x209   : > { %1275 = vrot.lane.b32.xlu1 %v12872_v36, %s5439_s8 }
 0x20a   : > { %v7244_v50 = vpop.permute.xlu0 %1097 }
 0x20b   : > { %12871 = vst [vmem:[#allocation23_spill] sm:$0xff] %v7244_v50  ;;  %v7250_v33 = vpop.permute.xlu1 %1099  ;;  %v12880_v50 = vld [vmem:[#allocation28_spill] sm:$0xff] }
 0x20c   : > { %1277 = vrot.lane.b32.xlu0 %v12873_v42, %s5439_s8  ;;  %12874 = vst [vmem:[#allocation24_spill] sm:$0xff] %v7250_v33 }
 0x20d   : > { %1279 = vrot.lane.b32.xlu1 %v12876_v57, %s5439_s8 }
 0x20e   : > { %v7252_v17 = vpop.permute.xlu0 %1101 }
 0x20f   : > { %12875 = vst [vmem:[#allocation25_spill] sm:$0xff] %v7252_v17  ;;  %v7258_v28 = vpop.permute.xlu1 %1103  ;;  %v12884_v17 = vld [vmem:[#allocation30_spill] sm:$0xff] }
 0x210   : > { %1281 = vrot.lane.b32.xlu0 %v12877_v48, %s5439_s8  ;;  %12878 = vst [vmem:[#allocation26_spill] sm:$0xff] %v7258_v28 }
 0x211   : > { %1283 = vrot.lane.b32.xlu1 %v12880_v50, %s5439_s8 }
 0x212   : > { %v7260_v24 = vpop.permute.xlu0 %1105 }
 0x213   : > { %12879 = vst [vmem:[#allocation27_spill] sm:$0xff] %v7260_v24  ;;  %v7266_v12 = vpop.permute.xlu1 %1107  ;;  %v12888_v24 = vld [vmem:[#allocation32_spill] sm:$0xff] }
 0x214   : > { %1285 = vrot.lane.b32.xlu0 %v12881_v26, %s5439_s8  ;;  %12882 = vst [vmem:[#allocation28_spill] sm:$0xff] %v7266_v12 }
 0x215   : > { %1287 = vrot.lane.b32.xlu1 %v12884_v17, %s5439_s8 }
 0x216   : > { %v7268_v33 = vpop.permute.xlu0 %1109 }
 0x217   : > { %12883 = vst [vmem:[#allocation29_spill] sm:$0xff] %v7268_v33  ;;  %v7274_v31 = vpop.permute.xlu1 %1111  ;;  %v12892_v33 = vld [vmem:[#allocation34_spill] sm:$0xff] }
 0x218   : > { %1289 = vrot.lane.b32.xlu0 %v12885_v40, %s5439_s8  ;;  %12886 = vst [vmem:[#allocation30_spill] sm:$0xff] %v7274_v31 }
 0x219   : > { %1291 = vrot.lane.b32.xlu1 %v12888_v24, %s5439_s8 }
 0x21a   : > { %v7276_v28 = vpop.permute.xlu0 %1113 }
 0x21b   : > { %12887 = vst [vmem:[#allocation31_spill] sm:$0xff] %v7276_v28  ;;  %v7282_v11 = vpop.permute.xlu1 %1115  ;;  %v12896_v28 = vld [vmem:[#allocation36_spill] sm:$0xff] }
 0x21c   : > { %1293 = vrot.lane.b32.xlu0 %v12889_v54, %s5439_s8  ;;  %12890 = vst [vmem:[#allocation32_spill] sm:$0xff] %v7282_v11 }
 0x21d   : > { %1295 = vrot.lane.b32.xlu1 %v12892_v33, %s5439_s8 }
 0x21e   : > { %v7284_v12 = vpop.permute.xlu0 %1117 }
 0x21f   : > { %12891 = vst [vmem:[#allocation33_spill] sm:$0xff] %v7284_v12  ;;  %v7290_v46 = vpop.permute.xlu1 %1119  ;;  %v12900_v12 = vld [vmem:[#allocation38_spill] sm:$0xff] }
 0x220   : > { %1297 = vrot.lane.b32.xlu0 %v12893_v38, %s5439_s8  ;;  %12894 = vst [vmem:[#allocation34_spill] sm:$0xff] %v7290_v46 }
 0x221   : > { %1299 = vrot.lane.b32.xlu1 %v12896_v28, %s5439_s8 }
 0x222   : > { %v7292_v31 = vpop.permute.xlu0 %1121 }
 0x223   : > { %12895 = vst [vmem:[#allocation35_spill] sm:$0xff] %v7292_v31  ;;  %v7298_v35 = vpop.permute.xlu1 %1123  ;;  %v12904_v31 = vld [vmem:[#allocation40_spill] sm:$0xff] }
 0x224   : > { %1301 = vrot.lane.b32.xlu0 %v12897_v39, %s5439_s8  ;;  %12898 = vst [vmem:[#allocation36_spill] sm:$0xff] %v7298_v35 }
 0x225   : > { %1303 = vrot.lane.b32.xlu1 %v12900_v12, %s5439_s8 }
 0x226   : > { %v7300_v11 = vpop.permute.xlu0 %1125 }
 0x227   : > { %12899 = vst [vmem:[#allocation37_spill] sm:$0xff] %v7300_v11  ;;  %v7306_v61 = vpop.permute.xlu1 %1127  ;;  %v12908_v11 = vld [vmem:[#allocation42_spill] sm:$0xff] }
 0x228   : > { %1305 = vrot.lane.b32.xlu0 %v12901_v53, %s5439_s8  ;;  %12902 = vst [vmem:[#allocation38_spill] sm:$0xff] %v7306_v61 }
 0x229   : > { %1307 = vrot.lane.b32.xlu1 %v12904_v31, %s5439_s8 }
 0x22a   : > { %v7308_v46 = vpop.permute.xlu0 %1129 }
 0x22b   : > { %12903 = vst [vmem:[#allocation39_spill] sm:$0xff] %v7308_v46  ;;  %v7314_v45 = vpop.permute.xlu1 %1131  ;;  %v12912_v46 = vld [vmem:[#allocation44_spill] sm:$0xff] }
 0x22c   : > { %1309 = vrot.lane.b32.xlu0 %v12905_v60, %s5439_s8  ;;  %12906 = vst [vmem:[#allocation40_spill] sm:$0xff] %v7314_v45 }
 0x22d   : > { %1311 = vrot.lane.b32.xlu1 %v12908_v11, %s5439_s8  ;;  %v12917_v11 = vld [vmem:[#allocation47_spill] sm:$0xff] }
 0x22e   : > { %v7316_v35 = vpop.permute.xlu0 %1133 }
 0x22f   : > { %12907 = vst [vmem:[#allocation41_spill] sm:$0xff] %v7316_v35  ;;  %v7322_v51 = vpop.permute.xlu1 %1135  ;;  %v12916_v35 = vld [vmem:[#allocation46_spill] sm:$0xff] }
 0x230   : > { %1313 = vrot.lane.b32.xlu0 %v12909_v5, %s5439_s8  ;;  %12910 = vst [vmem:[#allocation298_spill] sm:$0xff] %v7322_v51 }
 0x231   : > { %1315 = vrot.lane.b32.xlu1 %v12912_v46, %s5439_s8  ;;  %v12921_v46 = vld [vmem:[#allocation51_spill] sm:$0xff] }
 0x232   : > { %v7324_v61 = vpop.permute.xlu0 %1137 }
 0x233   : > { %12911 = vst [vmem:[#allocation299_spill] sm:$0xff] %v7324_v61  ;;  %v7330_v6 = vpop.permute.xlu1 %1139  ;;  %v12920_v61 = vld [vmem:[#allocation48_spill] sm:$0xff] }
 0x234   : > { %1317 = vrot.lane.b32.xlu0 %v12913_v34, %s5439_s8  ;;  %12914 = vst [vmem:[#allocation300_spill] sm:$0xff] %v7330_v6 }
 0x235   : > { %1319 = vrot.lane.b32.xlu1 %v12916_v35, %s5439_s8  ;;  %v12925_v35 = vld [vmem:[#allocation56_spill] sm:$0xff] }
 0x236   : > { %v7332_v45 = vpop.permute.xlu0 %1141 }
 0x237   : > { %12915 = vst [vmem:[#allocation301_spill] sm:$0xff] %v7332_v45  ;;  %v7338_v5 = vpop.permute.xlu1 %1143  ;;  %v12924_v45 = vld [vmem:[#allocation52_spill] sm:$0xff] }
 0x238   : > { %1321 = vrot.lane.b32.xlu0 %v12917_v11, %s5439_s8  ;;  %12918 = vst [vmem:[#allocation302_spill] sm:$0xff] %v7338_v5 }
 0x239   : > { %1323 = vrot.lane.b32.xlu1 %v12920_v61, %s5439_s8  ;;  %v12929_v61 = vld [vmem:[#allocation60_spill] sm:$0xff] }
 0x23a   : > { %v7340_v51 = vpop.permute.xlu0 %1145 }
 0x23b   : > { %12919 = vst [vmem:[#allocation303_spill] sm:$0xff] %v7340_v51  ;;  %v7346_v34 = vpop.permute.xlu1 %1147  ;;  %v12928_v51 = vld [vmem:[#allocation57_spill] sm:$0xff] }
 0x23c   : > { %1325 = vrot.lane.b32.xlu0 %v12921_v46, %s5439_s8  ;;  %12922 = vst [vmem:[#allocation304_spill] sm:$0xff] %v7346_v34 }
 0x23d   : > { %1327 = vrot.lane.b32.xlu1 %v12924_v45, %s5439_s8  ;;  %v12933_v45 = vld [vmem:[#allocation65_spill] sm:$0xff] }
 0x23e   : > { %v7348_v6 = vpop.permute.xlu0 %1149 }
 0x23f   : > { %12923 = vst [vmem:[#allocation305_spill] sm:$0xff] %v7348_v6  ;;  %v7354_v11 = vpop.permute.xlu1 %1151  ;;  %v12932_v6 = vld [vmem:[#allocation61_spill] sm:$0xff] }
 0x240   : > { %1329 = vrot.lane.b32.xlu0 %v12925_v35, %s5439_s8  ;;  %12926 = vst [vmem:[#allocation306_spill] sm:$0xff] %v7354_v11 }
 0x241   : > { %1331 = vrot.lane.b32.xlu1 %v12928_v51, %s5439_s8  ;;  %v12937_v51 = vld [vmem:[#allocation69_spill] sm:$0xff] }
 0x242   : > { %v7356_v5 = vpop.permute.xlu0 %1153 }
 0x243   : > { %12927 = vst [vmem:[#allocation307_spill] sm:$0xff] %v7356_v5  ;;  %v7362_v46 = vpop.permute.xlu1 %1155  ;;  %v12936_v5 = vld [vmem:[#allocation66_spill] sm:$0xff] }
 0x244   : > { %1333 = vrot.lane.b32.xlu0 %v12929_v61, %s5439_s8  ;;  %12930 = vst [vmem:[#allocation308_spill] sm:$0xff] %v7362_v46 }
 0x245   : > { %1335 = vrot.lane.b32.xlu1 %v12932_v6, %s5439_s8  ;;  %v12941_v6 = vld [vmem:[#allocation74_spill] sm:$0xff] }
 0x246   : > { %v7364_v34 = vpop.permute.xlu0 %1157 }
 0x247   : > { %12931 = vst [vmem:[#allocation309_spill] sm:$0xff] %v7364_v34  ;;  %v7370_v35 = vpop.permute.xlu1 %1159  ;;  %v12940_v34 = vld [vmem:[#allocation70_spill] sm:$0xff] }
 0x248   : > { %1337 = vrot.lane.b32.xlu0 %v12933_v45, %s5439_s8  ;;  %12934 = vst [vmem:[#allocation310_spill] sm:$0xff] %v7370_v35 }
 0x249   : > { %1339 = vrot.lane.b32.xlu1 %v12936_v5, %s5439_s8  ;;  %v12945_v5 = vld [vmem:[#allocation78_spill] sm:$0xff] }
 0x24a   : > { %v7372_v11 = vpop.permute.xlu0 %1161 }
 0x24b   : > { %12935 = vst [vmem:[#allocation311_spill] sm:$0xff] %v7372_v11  ;;  %v7378_v61 = vpop.permute.xlu1 %1163  ;;  %v12944_v11 = vld [vmem:[#allocation75_spill] sm:$0xff] }
 0x24c   : > { %1341 = vrot.lane.b32.xlu0 %v12937_v51, %s5439_s8  ;;  %12938 = vst [vmem:[#allocation312_spill] sm:$0xff] %v7378_v61 }
 0x24d   : > { %1343 = vrot.lane.b32.xlu1 %v12940_v34, %s5439_s8  ;;  %v12949_v34 = vld [vmem:[#allocation83_spill] sm:$0xff] }
 0x24e   : > { %v7380_v46 = vpop.permute.xlu0 %1165 }
 0x24f   : > { %12939 = vst [vmem:[#allocation313_spill] sm:$0xff] %v7380_v46  ;;  %v7386_v45 = vpop.permute.xlu1 %1167  ;;  %v12948_v46 = vld [vmem:[#allocation79_spill] sm:$0xff] }
 0x250   : > { %1345 = vrot.lane.b32.xlu0 %v12941_v6, %s5439_s8  ;;  %12942 = vst [vmem:[#allocation314_spill] sm:$0xff] %v7386_v45 }
 0x251   : > { %1347 = vrot.lane.b32.xlu1 %v12944_v11, %s5439_s8  ;;  %v12953_v11 = vld [vmem:[#allocation87_spill] sm:$0xff] }
 0x252   : > { %v7388_v35 = vpop.permute.xlu0 %1169 }
 0x253   : > { %12943 = vst [vmem:[#allocation315_spill] sm:$0xff] %v7388_v35  ;;  %v7394_v51 = vpop.permute.xlu1 %1171  ;;  %v12952_v35 = vld [vmem:[#allocation84_spill] sm:$0xff] }
 0x254   : > { %1349 = vrot.lane.b32.xlu0 %v12945_v5, %s5439_s8  ;;  %12946 = vst [vmem:[#allocation316_spill] sm:$0xff] %v7394_v51 }
 0x255   : > { %1351 = vrot.lane.b32.xlu1 %v12948_v46, %s5439_s8  ;;  %v12957_v46 = vld [vmem:[#allocation92_spill] sm:$0xff] }
 0x256   : > { %v7396_v61 = vpop.permute.xlu0 %1173 }
 0x257   : > { %12947 = vst [vmem:[#allocation317_spill] sm:$0xff] %v7396_v61  ;;  %v7402_v6 = vpop.permute.xlu1 %1175  ;;  %v12956_v61 = vld [vmem:[#allocation88_spill] sm:$0xff] }
 0x258   : > { %1353 = vrot.lane.b32.xlu0 %v12949_v34, %s5439_s8  ;;  %12950 = vst [vmem:[#allocation318_spill] sm:$0xff] %v7402_v6 }
 0x259   : > { %1355 = vrot.lane.b32.xlu1 %v12952_v35, %s5439_s8  ;;  %v12961_v35 = vld [vmem:[#allocation97_spill] sm:$0xff] }
 0x25a   : > { %v7404_v45 = vpop.permute.xlu0 %1177 }
 0x25b   : > { %12951 = vst [vmem:[#allocation319_spill] sm:$0xff] %v7404_v45  ;;  %v7410_v5 = vpop.permute.xlu1 %1179  ;;  %v12960_v45 = vld [vmem:[#allocation93_spill] sm:$0xff] }
 0x25c   : > { %1357 = vrot.lane.b32.xlu0 %v12953_v11, %s5439_s8  ;;  %12954 = vst [vmem:[#allocation320_spill] sm:$0xff] %v7410_v5 }
 0x25d   : > { %1359 = vrot.lane.b32.xlu1 %v12956_v61, %s5439_s8  ;;  %v12965_v61 = vld [vmem:[#allocation99_spill] sm:$0xff] }
 0x25e   : > { %v7412_v51 = vpop.permute.xlu0 %1181 }
 0x25f   : > { %12955 = vst [vmem:[#allocation321_spill] sm:$0xff] %v7412_v51  ;;  %v7418_v34 = vpop.permute.xlu1 %1183  ;;  %v12964_v51 = vld [vmem:[#allocation98_spill] sm:$0xff] }
 0x260   : > { %1361 = vrot.lane.b32.xlu0 %v12957_v46, %s5439_s8  ;;  %12958 = vst [vmem:[#allocation322_spill] sm:$0xff] %v7418_v34 }
 0x261   : > { %1363 = vrot.lane.b32.xlu1 %v12960_v45, %s5439_s8 }
 0x262   : > { %v7420_v6 = vpop.permute.xlu0 %1185 }
 0x263   : > { %12959 = vst [vmem:[#allocation323_spill] sm:$0xff] %v7420_v6  ;;  %v7426_v11 = vpop.permute.xlu1 %1187  ;;  %v12968_v6 = vld [vmem:[#allocation100_spill] sm:$0xff] }
 0x264   : > { %1365 = vrot.lane.b32.xlu0 %v12961_v35, %s5439_s8  ;;  %12962 = vst [vmem:[#allocation324_spill] sm:$0xff] %v7426_v11 }
 0x265   : > { %1367 = vrot.lane.b32.xlu1 %v12964_v51, %s5439_s8 }
 0x266   : > { %v7428_v5 = vpop.permute.xlu0 %1253 }
 0x267   : > { %12963 = vst [vmem:[#allocation325_spill] sm:$0xff] %v7428_v5  ;;  %v7434_v46 = vpop.permute.xlu1 %1255 }
 0x268   : > { %1369 = vrot.lane.b32.xlu0 %v12965_v61, %s5439_s8  ;;  %12966 = vst [vmem:[#allocation326_spill] sm:$0xff] %v7434_v46  ;;  %v13000_v46 = vld [vmem:[#allocation144_spill] sm:$0xff] }
 0x269   : > { %1371 = vrot.lane.b32.xlu1 %v12968_v6, %s5439_s8 }
 0x26a   : > { %v7436_v34 = vpop.permute.xlu0 %1257 }
 0x26b   : > { %12967 = vst [vmem:[#allocation327_spill] sm:$0xff] %v7436_v34  ;;  %v7442_v35 = vpop.permute.xlu1 %1259 }
 0x26c   : > { %1373 = vrot.lane.b32.xlu0 %v6288_v52, %s5439_s8  ;;  %12969 = vst [vmem:[#allocation328_spill] sm:$0xff] %v7442_v35  ;;  %v12996_v35 = vld [vmem:[#allocation140_spill] sm:$0xff] }
 0x26d   : > { %1375 = vrot.lane.b32.xlu1 %v6291_v47, %s5439_s8 }
 0x26e   : > { %v7444_v11 = vpop.permute.xlu0 %1261 }
 0x26f   : > { %12970 = vst [vmem:[#allocation329_spill] sm:$0xff] %v7444_v11  ;;  %v7450_v61 = vpop.permute.xlu1 %1263 }
 0x270   : > { %1377 = vrot.lane.b32.xlu0 %v6304_v16, %s5439_s8  ;;  %12971 = vst [vmem:[#allocation330_spill] sm:$0xff] %v7450_v61  ;;  %v12992_v61 = vld [vmem:[#allocation136_spill] sm:$0xff] }
 0x271   : > { %1379 = vrot.lane.b32.xlu1 %v6307_v27, %s5439_s8 }
 0x272   : > { %v7452_v51 = vpop.permute.xlu0 %1265 }
 0x273   : > { %12972 = vst [vmem:[#allocation331_spill] sm:$0xff] %v7452_v51  ;;  %v7458_v52 = vpop.permute.xlu1 %1267 }
 0x274   : > { %1445 = vrot.lane.b32.xlu0 %v6323_v7, %s5440_s21  ;;  %12973 = vst [vmem:[#allocation332_spill] sm:$0xff] %v7458_v52  ;;  %v12988_v52 = vld [vmem:[#allocation132_spill] sm:$0xff] }
 0x275   : > { %1447 = vrot.lane.b32.xlu1 %v6337_v49, %s5440_s21 }
 0x276   : > { %v7460_v6 = vpop.permute.xlu0 %1269 }
 0x277   : > { %12974 = vst [vmem:[#allocation333_spill] sm:$0xff] %v7460_v6  ;;  %v7466_v16 = vpop.permute.xlu1 %1271 }
 0x278   : > { %1449 = vrot.lane.b32.xlu0 %v6340_v3, %s5440_s21  ;;  %12975 = vst [vmem:[#allocation334_spill] sm:$0xff] %v7466_v16 }
 0x279   : > { %1451 = vrot.lane.b32.xlu1 %v6353_v9, %s5440_s21 }
 0x27a   : > { %v7468_v47 = vpop.permute.xlu0 %1273 }
 0x27b   : > { %12976 = vst [vmem:[#allocation335_spill] sm:$0xff] %v7468_v47  ;;  %v7474_v27 = vpop.permute.xlu1 %1275 }
 0x27c   : > { %1453 = vrot.lane.b32.xlu0 %v6356_v15, %s5440_s21  ;;  %12977 = vst [vmem:[#allocation336_spill] sm:$0xff] %v7474_v27 }
 0x27d   : > { %1455 = vrot.lane.b32.xlu1 %v6370_v2, %s5440_s21 }
 0x27e   : > { %v7476_v45 = vpop.permute.xlu0 %1277 }
 0x27f   : > { %12978 = vst [vmem:[#allocation337_spill] sm:$0xff] %v7476_v45  ;;  %v7482_v6 = vpop.permute.xlu1 %1279 }
 0x280   : > { %1457 = vrot.lane.b32.xlu0 %v6373_v8, %s5440_s21  ;;  %12979 = vst [vmem:[#allocation338_spill] sm:$0xff] %v7482_v6 }
 0x281   : > { %1459 = vrot.lane.b32.xlu1 %v6386_v23, %s5440_s21 }
 0x282   : > { %v7484_v16 = vpop.permute.xlu0 %1281 }
 0x283   : > { %12980 = vst [vmem:[#allocation339_spill] sm:$0xff] %v7484_v16  ;;  %v7490_v47 = vpop.permute.xlu1 %1283 }
 0x284   : > { %1461 = vrot.lane.b32.xlu0 %v6389_v55, %s5440_s21  ;;  %12981 = vst [vmem:[#allocation340_spill] sm:$0xff] %v7490_v47 }
 0x285   : > { %1463 = vrot.lane.b32.xlu1 %v6403_v25, %s5440_s21  ;;  %v13048_v25 = vld [vmem:[#allocation64_spill] sm:$0xff] }
 0x286   : > { %v7492_v27 = vpop.permute.xlu0 %1285 }
 0x287   : > { %12982 = vst [vmem:[#allocation341_spill] sm:$0xff] %v7492_v27  ;;  %v7498_v45 = vpop.permute.xlu1 %1287  ;;  %v12987_v27 = vld [vmem:[#allocation131_spill] sm:$0xff] }
 0x288   : > { %1465 = vrot.lane.b32.xlu0 %v6406_v14, %s5440_s21  ;;  %12983 = vst [vmem:[#allocation342_spill] sm:$0xff] %v7498_v45 }
 0x289   : > { %1467 = vrot.lane.b32.xlu1 %v6419_v37, %s5440_s21  ;;  %v13044_v37 = vld [vmem:[#allocation182_spill] sm:$0xff] }
 0x28a   : > { %v7500_v6 = vpop.permute.xlu0 %1289 }
 0x28b   : > { %12984 = vst [vmem:[#allocation343_spill] sm:$0xff] %v7500_v6  ;;  %v7506_v16 = vpop.permute.xlu1 %1291  ;;  %v12991_v6 = vld [vmem:[#allocation135_spill] sm:$0xff] }
 0x28c   : > { %1469 = vrot.lane.b32.xlu0 %v6422_v22, %s5440_s21  ;;  %12985 = vst [vmem:[#allocation344_spill] sm:$0xff] %v7506_v16 }
 0x28d   : > { %1471 = vrot.lane.b32.xlu1 %v12987_v27, %s5440_s21  ;;  %v13040_v27 = vld [vmem:[#allocation55_spill] sm:$0xff] }
 0x28e   : > { %v7508_v47 = vpop.permute.xlu0 %1293 }
 0x28f   : > { %12986 = vst [vmem:[#allocation345_spill] sm:$0xff] %v7508_v47  ;;  %v7514_v51 = vpop.permute.xlu1 %1295  ;;  %v12995_v47 = vld [vmem:[#allocation139_spill] sm:$0xff] }
 0x290   : > { %1473 = vrot.lane.b32.xlu0 %v12988_v52, %s5440_s21  ;;  %12989 = vst [vmem:[#allocation346_spill] sm:$0xff] %v7514_v51 }
 0x291   : > { %1475 = vrot.lane.b32.xlu1 %v12991_v6, %s5440_s21  ;;  %v13036_v6 = vld [vmem:[#allocation179_spill] sm:$0xff] }
 0x292   : > { %v7516_v45 = vpop.permute.xlu0 %1297 }
 0x293   : > { %12990 = vst [vmem:[#allocation347_spill] sm:$0xff] %v7516_v45  ;;  %v7522_v11 = vpop.permute.xlu1 %1299  ;;  %v12999_v45 = vld [vmem:[#allocation143_spill] sm:$0xff] }
 0x294   : > { %1477 = vrot.lane.b32.xlu0 %v12992_v61, %s5440_s21  ;;  %12993 = vst [vmem:[#allocation348_spill] sm:$0xff] %v7522_v11 }
 0x295   : > { %1479 = vrot.lane.b32.xlu1 %v12995_v47, %s5440_s21  ;;  %v13004_v47 = vld [vmem:[#allocation148_spill] sm:$0xff] }
 0x296   : > { %v7524_v16 = vpop.permute.xlu0 %1301 }
 0x297   : > { %12994 = vst [vmem:[#allocation349_spill] sm:$0xff] %v7524_v16  ;;  %v7530_v34 = vpop.permute.xlu1 %1303  ;;  %v13003_v16 = vld [vmem:[#allocation147_spill] sm:$0xff] }
 0x298   : > { %1481 = vrot.lane.b32.xlu0 %v12996_v35, %s5440_s21  ;;  %12997 = vst [vmem:[#allocation350_spill] sm:$0xff] %v7530_v34 }
 0x299   : > { %1483 = vrot.lane.b32.xlu1 %v12999_v45, %s5440_s21  ;;  %v13008_v45 = vld [vmem:[#allocation152_spill] sm:$0xff] }
 0x29a   : > { %v7532_v51 = vpop.permute.xlu0 %1305 }
 0x29b   : > { %12998 = vst [vmem:[#allocation351_spill] sm:$0xff] %v7532_v51  ;;  %v7538_v5 = vpop.permute.xlu1 %1307  ;;  %v13007_v51 = vld [vmem:[#allocation151_spill] sm:$0xff] }
 0x29c   : > { %1485 = vrot.lane.b32.xlu0 %v13000_v46, %s5440_s21  ;;  %13001 = vst [vmem:[#allocation352_spill] sm:$0xff] %v7538_v5 }
 0x29d   : > { %1487 = vrot.lane.b32.xlu1 %v13003_v16, %s5440_s21  ;;  %v13012_v16 = vld [vmem:[#allocation156_spill] sm:$0xff] }
 0x29e   : > { %v7540_v11 = vpop.permute.xlu0 %1309 }
 0x29f   : > { %13002 = vst [vmem:[#allocation353_spill] sm:$0xff] %v7540_v11  ;;  %v7546_v35 = vpop.permute.xlu1 %1311  ;;  %v13011_v11 = vld [vmem:[#allocation155_spill] sm:$0xff] }
 0x2a0   : > { %1489 = vrot.lane.b32.xlu0 %v13004_v47, %s5440_s21  ;;  %13005 = vst [vmem:[#allocation354_spill] sm:$0xff] %v7546_v35 }
 0x2a1   : > { %1491 = vrot.lane.b32.xlu1 %v13007_v51, %s5440_s21  ;;  %v13016_v51 = vld [vmem:[#allocation160_spill] sm:$0xff] }
 0x2a2   : > { %v7548_v34 = vpop.permute.xlu0 %1313 }
 0x2a3   : > { %13006 = vst [vmem:[#allocation355_spill] sm:$0xff] %v7548_v34  ;;  %v7554_v46 = vpop.permute.xlu1 %1315  ;;  %v13015_v34 = vld [vmem:[#allocation159_spill] sm:$0xff] }
 0x2a4   : > { %1493 = vrot.lane.b32.xlu0 %v13008_v45, %s5440_s21  ;;  %13009 = vst [vmem:[#allocation356_spill] sm:$0xff] %v7554_v46 }
 0x2a5   : > { %1495 = vrot.lane.b32.xlu1 %v13011_v11, %s5440_s21  ;;  %v13020_v11 = vld [vmem:[#allocation164_spill] sm:$0xff] }
 0x2a6   : > { %v7556_v5 = vpop.permute.xlu0 %1317 }
 0x2a7   : > { %13010 = vst [vmem:[#allocation357_spill] sm:$0xff] %v7556_v5  ;;  %v7562_v47 = vpop.permute.xlu1 %1319  ;;  %v13019_v5 = vld [vmem:[#allocation163_spill] sm:$0xff] }
 0x2a8   : > { %1497 = vrot.lane.b32.xlu0 %v13012_v16, %s5440_s21  ;;  %13013 = vst [vmem:[#allocation358_spill] sm:$0xff] %v7562_v47 }
 0x2a9   : > { %1499 = vrot.lane.b32.xlu1 %v13015_v34, %s5440_s21  ;;  %v13024_v34 = vld [vmem:[#allocation168_spill] sm:$0xff] }
 0x2aa   : > { %v7564_v35 = vpop.permute.xlu0 %1321 }
 0x2ab   : > { %13014 = vst [vmem:[#allocation359_spill] sm:$0xff] %v7564_v35  ;;  %v7570_v45 = vpop.permute.xlu1 %1323  ;;  %v13023_v35 = vld [vmem:[#allocation167_spill] sm:$0xff] }
 0x2ac   : > { %1501 = vrot.lane.b32.xlu0 %v13016_v51, %s5440_s21  ;;  %13017 = vst [vmem:[#allocation360_spill] sm:$0xff] %v7570_v45 }
 0x2ad   : > { %1503 = vrot.lane.b32.xlu1 %v13019_v5, %s5440_s21  ;;  %v13028_v5 = vld [vmem:[#allocation172_spill] sm:$0xff] }
 0x2ae   : > { %v7572_v46 = vpop.permute.xlu0 %1325 }
 0x2af   : > { %13018 = vst [vmem:[#allocation361_spill] sm:$0xff] %v7572_v46  ;;  %v7578_v16 = vpop.permute.xlu1 %1327  ;;  %v13027_v46 = vld [vmem:[#allocation171_spill] sm:$0xff] }
 0x2b0   : > { %1505 = vrot.lane.b32.xlu0 %v13020_v11, %s5440_s21  ;;  %13021 = vst [vmem:[#allocation362_spill] sm:$0xff] %v7578_v16 }
 0x2b1   : > { %1507 = vrot.lane.b32.xlu1 %v13023_v35, %s5440_s21  ;;  %v13032_v35 = vld [vmem:[#allocation176_spill] sm:$0xff] }
 0x2b2   : > { %v7580_v47 = vpop.permute.xlu0 %1329 }
 0x2b3   : > { %13022 = vst [vmem:[#allocation363_spill] sm:$0xff] %v7580_v47  ;;  %v7586_v51 = vpop.permute.xlu1 %1331  ;;  %v13031_v47 = vld [vmem:[#allocation175_spill] sm:$0xff] }
 0x2b4   : > { %1509 = vrot.lane.b32.xlu0 %v13024_v34, %s5440_s21  ;;  %13025 = vst [vmem:[#allocation168_spill] sm:$0xff] %v7586_v51 }
 0x2b5   : > { %1511 = vrot.lane.b32.xlu1 %v13027_v46, %s5440_s21 }
 0x2b6   : > { %v7588_v45 = vpop.permute.xlu0 %1333 }
 0x2b7   : > { %13026 = vst [vmem:[#allocation364_spill] sm:$0xff] %v7588_v45  ;;  %v7594_v11 = vpop.permute.xlu1 %1335  ;;  %v13035_v45 = vld [vmem:[#allocation178_spill] sm:$0xff] }
 0x2b8   : > { %1513 = vrot.lane.b32.xlu0 %v13028_v5, %s5440_s21  ;;  %13029 = vst [vmem:[#allocation171_spill] sm:$0xff] %v7594_v11 }
 0x2b9   : > { %1515 = vrot.lane.b32.xlu1 %v13031_v47, %s5440_s21 }
 0x2ba   : > { %v7596_v16 = vpop.permute.xlu0 %1337 }
 0x2bb   : > { %13030 = vst [vmem:[#allocation172_spill] sm:$0xff] %v7596_v16  ;;  %v7602_v61 = vpop.permute.xlu1 %1339  ;;  %v13039_v16 = vld [vmem:[#allocation54_spill] sm:$0xff] }
 0x2bc   : > { %1517 = vrot.lane.b32.xlu0 %v13032_v35, %s5440_s21  ;;  %13033 = vst [vmem:[#allocation175_spill] sm:$0xff] %v7602_v61 }
 0x2bd   : > { %1519 = vrot.lane.b32.xlu1 %v13035_v45, %s5440_s21 }
 0x2be   : > { %v7604_v51 = vpop.permute.xlu0 %1341 }
 0x2bf   : > { %13034 = vst [vmem:[#allocation176_spill] sm:$0xff] %v7604_v51  ;;  %v7610_v52 = vpop.permute.xlu1 %1343  ;;  %v13043_v51 = vld [vmem:[#allocation181_spill] sm:$0xff] }
 0x2c0   : > { %1521 = vrot.lane.b32.xlu0 %v13036_v6, %s5440_s21  ;;  %13037 = vst [vmem:[#allocation178_spill] sm:$0xff] %v7610_v52 }
 0x2c1   : > { %1523 = vrot.lane.b32.xlu1 %v13039_v16, %s5440_s21 }
 0x2c2   : > { %v7612_v11 = vpop.permute.xlu0 %1345 }
 0x2c3   : > { %13038 = vst [vmem:[#allocation179_spill] sm:$0xff] %v7612_v11  ;;  %v7618_v22 = vpop.permute.xlu1 %1347  ;;  %v13047_v11 = vld [vmem:[#allocation63_spill] sm:$0xff] }
 0x2c4   : > { %1525 = vrot.lane.b32.xlu0 %v13040_v27, %s5440_s21  ;;  %13041 = vst [vmem:[#allocation54_spill] sm:$0xff] %v7618_v22 }
 0x2c5   : > { %1527 = vrot.lane.b32.xlu1 %v13043_v51, %s5440_s21  ;;  %v13052_v51 = vld [vmem:[#allocation185_spill] sm:$0xff] }
 0x2c6   : > { %v7620_v61 = vpop.permute.xlu0 %1349 }
 0x2c7   : > { %13042 = vst [vmem:[#allocation365_spill] sm:$0xff] %v7620_v61  ;;  %v7626_v14 = vpop.permute.xlu1 %1351  ;;  %v13051_v61 = vld [vmem:[#allocation184_spill] sm:$0xff] }
 0x2c8   : > { %1529 = vrot.lane.b32.xlu0 %v13044_v37, %s5440_s21  ;;  %13045 = vst [vmem:[#allocation366_spill] sm:$0xff] %v7626_v14 }
 0x2c9   : > { %1531 = vrot.lane.b32.xlu1 %v13047_v11, %s5440_s21  ;;  %v13056_v11 = vld [vmem:[#allocation73_spill] sm:$0xff] }
 0x2ca   : > { %v7628_v52 = vpop.permute.xlu0 %1353 }
 0x2cb   : > { %13046 = vst [vmem:[#allocation367_spill] sm:$0xff] %v7628_v52  ;;  %v7634_v27 = vpop.permute.xlu1 %1355  ;;  %v13055_v52 = vld [vmem:[#allocation72_spill] sm:$0xff] }
 0x2cc   : > { %1533 = vrot.lane.b32.xlu0 %v13048_v25, %s5440_s21  ;;  %13049 = vst [vmem:[#allocation368_spill] sm:$0xff] %v7634_v27 }
 0x2cd   : > { %1535 = vrot.lane.b32.xlu1 %v13051_v61, %s5440_s21  ;;  %v13060_v61 = vld [vmem:[#allocation188_spill] sm:$0xff] }
 0x2ce   : > { %v7636_v22 = vpop.permute.xlu0 %1357 }
 0x2cf   : > { %13050 = vst [vmem:[#allocation369_spill] sm:$0xff] %v7636_v22  ;;  %v7642_v37 = vpop.permute.xlu1 %1359  ;;  %v13059_v22 = vld [vmem:[#allocation187_spill] sm:$0xff] }
 0x2d0   : > { %1537 = vrot.lane.b32.xlu0 %v13052_v51, %s5440_s21  ;;  %13053 = vst [vmem:[#allocation370_spill] sm:$0xff] %v7642_v37 }
 0x2d1   : > { %1539 = vrot.lane.b32.xlu1 %v13055_v52, %s5440_s21  ;;  %v13064_v52 = vld [vmem:[#allocation82_spill] sm:$0xff] }
 0x2d2   : > { %v7644_v14 = vpop.permute.xlu0 %1361 }
 0x2d3   : > { %13054 = vst [vmem:[#allocation371_spill] sm:$0xff] %v7644_v14  ;;  %v7650_v25 = vpop.permute.xlu1 %1363  ;;  %v13063_v14 = vld [vmem:[#allocation81_spill] sm:$0xff] }
 0x2d4   : > { %1541 = vrot.lane.b32.xlu0 %v13056_v11, %s5440_s21  ;;  %13057 = vst [vmem:[#allocation372_spill] sm:$0xff] %v7650_v25 }
 0x2d5   : > { %1543 = vrot.lane.b32.xlu1 %v13059_v22, %s5440_s21  ;;  %v13068_v22 = vld [vmem:[#allocation191_spill] sm:$0xff] }
 0x2d6   : > { %v7652_v27 = vpop.permute.xlu0 %1365 }
 0x2d7   : > { %13058 = vst [vmem:[#allocation373_spill] sm:$0xff] %v7652_v27  ;;  %v7658_v51 = vpop.permute.xlu1 %1367  ;;  %v13067_v27 = vld [vmem:[#allocation190_spill] sm:$0xff] }
 0x2d8   : > { %1545 = vrot.lane.b32.xlu0 %v13060_v61, %s5440_s21  ;;  %13061 = vst [vmem:[#allocation374_spill] sm:$0xff] %v7658_v51 }
 0x2d9   : > { %1547 = vrot.lane.b32.xlu1 %v13063_v14, %s5440_s21 }
 0x2da   : > { %v7660_v37 = vpop.permute.xlu0 %1369 }
 0x2db   : > { %13062 = vst [vmem:[#allocation375_spill] sm:$0xff] %v7660_v37  ;;  %v7666_v11 = vpop.permute.xlu1 %1371  ;;  %v13071_v37 = vld [vmem:[#allocation91_spill] sm:$0xff] }
 0x2dc   : > { %1549 = vrot.lane.b32.xlu0 %v13064_v52, %s5440_s21  ;;  %13065 = vst [vmem:[#allocation376_spill] sm:$0xff] %v7666_v11 }
 0x2dd   : > { %1551 = vrot.lane.b32.xlu1 %v13067_v27, %s5440_s21  ;;  %v13075_v27 = vld [vmem:[#allocation194_spill] sm:$0xff] }
 0x2de   : > { %v7668_v25 = vpop.permute.xlu0 %1373 }
 0x2df   : > { %13066 = vst [vmem:[#allocation377_spill] sm:$0xff] %v7668_v25  ;;  %v7674_v61 = vpop.permute.xlu1 %1375  ;;  %v13074_v25 = vld [vmem:[#allocation193_spill] sm:$0xff] }
 0x2e0   : > { %1553 = vrot.lane.b32.xlu0 %v13068_v22, %s5440_s21  ;;  %13069 = vst [vmem:[#allocation378_spill] sm:$0xff] %v7674_v61 }
 0x2e1   : > { %1555 = vrot.lane.b32.xlu1 %v6783_v56, %s5440_s21 }
 0x2e2   : > { %v7676_v51 = vpop.permute.xlu0 %1377 }
 0x2e3   : > { %13070 = vst [vmem:[#allocation379_spill] sm:$0xff] %v7676_v51  ;;  %v7682_v52 = vpop.permute.xlu1 %1379 }
 0x2e4   : > { %1557 = vrot.lane.b32.xlu0 %v13071_v37, %s5440_s21  ;;  %13072 = vst [vmem:[#allocation380_spill] sm:$0xff] %v7682_v52 }
 0x2e5   : > { %1559 = vrot.lane.b32.xlu1 %v13074_v25, %s5440_s21 }
 0x2e6   : > { %v7684_v11 = vpop.permute.xlu0 %1445 }
 0x2e7   : > { %13073 = vst [vmem:[#allocation381_spill] sm:$0xff] %v7684_v11  ;;  %v7690_v22 = vpop.permute.xlu1 %1447 }
 0x2e8   : > { %1561 = vrot.lane.b32.xlu0 %v13075_v27, %s5440_s21  ;;  %13076 = vst [vmem:[#allocation382_spill] sm:$0xff] %v7690_v22 }
 0x2e9   : > { %1563 = vrot.lane.b32.xlu1 %v6815_v29, %s5440_s21 }
 0x2ea   : > { %v7692_v61 = vpop.permute.xlu0 %1449 }
 0x2eb   : > { %13077 = vst [vmem:[#allocation383_spill] sm:$0xff] %v7692_v61  ;;  %v7698_v51 = vpop.permute.xlu1 %1451 }
 0x2ec   : > { %1565 = vrot.lane.b32.xlu0 %v6818_v4, %s5440_s21  ;;  %13078 = vst [vmem:[#allocation384_spill] sm:$0xff] %v7698_v51  ;;  %v13082_v4 = vld [vmem:[#allocation206_spill] sm:$0xff] }
 0x2ed   : > { %1567 = vrot.lane.b32.xlu1 %v6831_v30, %s5440_s21  ;;  %v13085_v30 = vld [vmem:[#allocation209_spill] sm:$0xff]  ;;  %v13090_v51 = vld [vmem:[#allocation214_spill] sm:$0xff] }
 0x2ee   : > { %v7700_v52 = vpop.permute.xlu0 %1453 }
 0x2ef   : > { %13079 = vst [vmem:[#allocation385_spill] sm:$0xff] %v7700_v52  ;;  %v7706_v27 = vpop.permute.xlu1 %1455 }
 0x2f0   : > { %1569 = vrot.lane.b32.xlu0 %v6834_v58, %s5440_s21  ;;  %13080 = vst [vmem:[#allocation386_spill] sm:$0xff] %v7706_v27  ;;  %v13086_v58 = vld [vmem:[#allocation210_spill] sm:$0xff] }
 0x2f1   : > { %1571 = vrot.lane.b32.xlu1 %v6846_v13, %s5440_s21  ;;  %v13089_v13 = vld [vmem:[#allocation213_spill] sm:$0xff] }
 0x2f2   : > { %v7708_v25 = vpop.permute.xlu0 %1457 }
 0x2f3   : > { %13081 = vst [vmem:[#allocation387_spill] sm:$0xff] %v7708_v25  ;;  %v7714_v29 = vpop.permute.xlu1 %1459 }
 0x2f4   : > { %1637 = vrot.lane.b32.xlu0 %v13082_v4, %s5441_s27  ;;  %13083 = vst [vmem:[#allocation206_spill] sm:$0xff] %v7714_v29 }
 0x2f5   : > { %1639 = vrot.lane.b32.xlu1 %v13085_v30, %s5441_s27  ;;  %v13094_v30 = vld [vmem:[#allocation218_spill] sm:$0xff] }
 0x2f6   : > { %v7716_v52 = vpop.permute.xlu0 %1461 }
 0x2f7   : > { %13084 = vst [vmem:[#allocation388_spill] sm:$0xff] %v7716_v52  ;;  %v7722_v27 = vpop.permute.xlu1 %1463  ;;  %v13093_v52 = vld [vmem:[#allocation217_spill] sm:$0xff] }
 0x2f8   : > { %1641 = vrot.lane.b32.xlu0 %v13086_v58, %s5441_s27  ;;  %13087 = vst [vmem:[#allocation209_spill] sm:$0xff] %v7722_v27 }
 0x2f9   : > { %1643 = vrot.lane.b32.xlu1 %v13089_v13, %s5441_s27  ;;  %v13098_v13 = vld [vmem:[#allocation222_spill] sm:$0xff] }
 0x2fa   : > { %v7724_v25 = vpop.permute.xlu0 %1465 }
 0x2fb   : > { %13088 = vst [vmem:[#allocation210_spill] sm:$0xff] %v7724_v25  ;;  %v7730_v4 = vpop.permute.xlu1 %1467  ;;  %v13097_v25 = vld [vmem:[#allocation221_spill] sm:$0xff] }
 0x2fc   : > { %1645 = vrot.lane.b32.xlu0 %v13090_v51, %s5441_s27  ;;  %13091 = vst [vmem:[#allocation213_spill] sm:$0xff] %v7730_v4 }
 0x2fd   : > { %1647 = vrot.lane.b32.xlu1 %v13093_v52, %s5441_s27  ;;  %v13102_v52 = vld [vmem:[#allocation226_spill] sm:$0xff] }
 0x2fe   : > { %v7732_v29 = vpop.permute.xlu0 %1469 }
 0x2ff   : > { %13092 = vst [vmem:[#allocation214_spill] sm:$0xff] %v7732_v29  ;;  %v7738_v58 = vpop.permute.xlu1 %1471  ;;  %v13101_v29 = vld [vmem:[#allocation225_spill] sm:$0xff] }
 0x300   : > { %1649 = vrot.lane.b32.xlu0 %v13094_v30, %s5441_s27  ;;  %13095 = vst [vmem:[#allocation217_spill] sm:$0xff] %v7738_v58 }
 0x301   : > { %1651 = vrot.lane.b32.xlu1 %v13097_v25, %s5441_s27  ;;  %v13106_v25 = vld [vmem:[#allocation230_spill] sm:$0xff] }
 0x302   : > { %v7740_v27 = vpop.permute.xlu0 %1473 }
 0x303   : > { %13096 = vst [vmem:[#allocation218_spill] sm:$0xff] %v7740_v27  ;;  %v7746_v51 = vpop.permute.xlu1 %1475  ;;  %v13105_v27 = vld [vmem:[#allocation229_spill] sm:$0xff] }
 0x304   : > { %1653 = vrot.lane.b32.xlu0 %v13098_v13, %s5441_s27  ;;  %13099 = vst [vmem:[#allocation221_spill] sm:$0xff] %v7746_v51 }
 0x305   : > { %1655 = vrot.lane.b32.xlu1 %v13101_v29, %s5441_s27  ;;  %v13110_v29 = vld [vmem:[#allocation234_spill] sm:$0xff] }
 0x306   : > { %v7748_v4 = vpop.permute.xlu0 %1477 }
 0x307   : > { %13100 = vst [vmem:[#allocation222_spill] sm:$0xff] %v7748_v4  ;;  %v7754_v30 = vpop.permute.xlu1 %1479  ;;  %v13109_v4 = vld [vmem:[#allocation233_spill] sm:$0xff] }
 0x308   : > { %1657 = vrot.lane.b32.xlu0 %v13102_v52, %s5441_s27  ;;  %13103 = vst [vmem:[#allocation225_spill] sm:$0xff] %v7754_v30 }
 0x309   : > { %1659 = vrot.lane.b32.xlu1 %v13105_v27, %s5441_s27  ;;  %v13114_v27 = vld [vmem:[#allocation238_spill] sm:$0xff] }
 0x30a   : > { %v7756_v58 = vpop.permute.xlu0 %1481 }
 0x30b   : > { %13104 = vst [vmem:[#allocation226_spill] sm:$0xff] %v7756_v58  ;;  %v7762_v13 = vpop.permute.xlu1 %1483  ;;  %v13113_v58 = vld [vmem:[#allocation237_spill] sm:$0xff] }
 0x30c   : > { %1661 = vrot.lane.b32.xlu0 %v13106_v25, %s5441_s27  ;;  %13107 = vst [vmem:[#allocation229_spill] sm:$0xff] %v7762_v13 }
 0x30d   : > { %1663 = vrot.lane.b32.xlu1 %v13109_v4, %s5441_s27  ;;  %v13118_v4 = vld [vmem:[#allocation242_spill] sm:$0xff] }
 0x30e   : > { %v7764_v51 = vpop.permute.xlu0 %1485 }
 0x30f   : > { %13108 = vst [vmem:[#allocation230_spill] sm:$0xff] %v7764_v51  ;;  %v7770_v52 = vpop.permute.xlu1 %1487  ;;  %v13117_v51 = vld [vmem:[#allocation241_spill] sm:$0xff] }
 0x310   : > { %1665 = vrot.lane.b32.xlu0 %v13110_v29, %s5441_s27  ;;  %13111 = vst [vmem:[#allocation233_spill] sm:$0xff] %v7770_v52 }
 0x311   : > { %1667 = vrot.lane.b32.xlu1 %v13113_v58, %s5441_s27  ;;  %v13122_v58 = vld [vmem:[#allocation246_spill] sm:$0xff] }
 0x312   : > { %v7772_v30 = vpop.permute.xlu0 %1489 }
 0x313   : > { %13112 = vst [vmem:[#allocation234_spill] sm:$0xff] %v7772_v30  ;;  %v7778_v25 = vpop.permute.xlu1 %1491  ;;  %v13121_v30 = vld [vmem:[#allocation245_spill] sm:$0xff] }
 0x314   : > { %1669 = vrot.lane.b32.xlu0 %v13114_v27, %s5441_s27  ;;  %13115 = vst [vmem:[#allocation237_spill] sm:$0xff] %v7778_v25 }
 0x315   : > { %1671 = vrot.lane.b32.xlu1 %v13117_v51, %s5441_s27  ;;  %v13125_v51 = vld [vmem:[#allocation249_spill] sm:$0xff] }
 0x316   : > { %v7780_v13 = vpop.permute.xlu0 %1493 }
 0x317   : > { %13116 = vst [vmem:[#allocation238_spill] sm:$0xff] %v7780_v13  ;;  %v7786_v29 = vpop.permute.xlu1 %1495 }
 0x318   : > { %1673 = vrot.lane.b32.xlu0 %v13118_v4, %s5441_s27  ;;  %13119 = vst [vmem:[#allocation241_spill] sm:$0xff] %v7786_v29  ;;  %v13126_v4 = vld [vmem:[#allocation250_spill] sm:$0xff] }
 0x319   : > { %1675 = vrot.lane.b32.xlu1 %v13121_v30, %s5441_s27  ;;  %v13129_v30 = vld [vmem:[#allocation253_spill] sm:$0xff] }
 0x31a   : > { %v7788_v52 = vpop.permute.xlu0 %1497 }
 0x31b   : > { %13120 = vst [vmem:[#allocation242_spill] sm:$0xff] %v7788_v52  ;;  %v7794_v27 = vpop.permute.xlu1 %1499 }
 0x31c   : > { %1677 = vrot.lane.b32.xlu0 %v13122_v58, %s5441_s27  ;;  %13123 = vst [vmem:[#allocation245_spill] sm:$0xff] %v7794_v27  ;;  %v13130_v58 = vld [vmem:[#allocation254_spill] sm:$0xff] }
 0x31d   : > { %1679 = vrot.lane.b32.xlu1 %v13125_v51, %s5441_s27  ;;  %v13133_v51 = vld [vmem:[#allocation257_spill] sm:$0xff] }
 0x31e   : > { %v7796_v13 = vpop.permute.xlu0 %1501 }
 0x31f   : > { %13124 = vst [vmem:[#allocation246_spill] sm:$0xff] %v7796_v13  ;;  %v7802_v29 = vpop.permute.xlu1 %1503 }
 0x320   : > { %1681 = vrot.lane.b32.xlu0 %v13126_v4, %s5441_s27  ;;  %13127 = vst [vmem:[#allocation249_spill] sm:$0xff] %v7802_v29 }
 0x321   : > { %1683 = vrot.lane.b32.xlu1 %v13129_v30, %s5441_s27  ;;  %v13136_v30 = vld [vmem:[#allocation260_spill] sm:$0xff] }
 0x322   : > { %v7804_v52 = vpop.permute.xlu0 %1505 }
 0x323   : > { %13128 = vst [vmem:[#allocation250_spill] sm:$0xff] %v7804_v52  ;;  %v7810_v27 = vpop.permute.xlu1 %1507 }
 0x324   : > { %1685 = vrot.lane.b32.xlu0 %v13130_v58, %s5441_s27  ;;  %13131 = vst [vmem:[#allocation253_spill] sm:$0xff] %v7810_v27  ;;  %v7825_v58 = vld [vmem:[%s5648_s6 + $0x118] sm:$0xff] }
 0x325   : > { %1687 = vrot.lane.b32.xlu1 %v13133_v51, %s5441_s27 }
 0x326   : > { %v7812_v25 = vpop.permute.xlu0 %1509 }
 0x327   : > { %13132 = vst [vmem:[#allocation254_spill] sm:$0xff] %v7812_v25  ;;  %v7818_v4 = vpop.permute.xlu1 %1511 }
 0x328   : > { %1689 = vrot.lane.b32.xlu0 %v7037_v1, %s5441_s27  ;;  %13134 = vst [vmem:[#allocation257_spill] sm:$0xff] %v7818_v4 }
 0x329   : > { %1691 = vrot.lane.b32.xlu1 %v13136_v30, %s5441_s27 }
 0x32a   : > { %v7820_v37 = vpop.permute.xlu0 %1513 }
 0x32b   : > { %13135 = vst [vmem:[#allocation389_spill] sm:$0xff] %v7820_v37  ;;  %v7829_v27 = vpop.permute.xlu1 %1515  ;;  %v7842_v37 = vld [vmem:[%s5648_s6 + $0x130] sm:$0xff] }
 0x32c   : > { %1693 = vrot.lane.b32.xlu0 %v7825_v58, %s5441_s27  ;;  %13137 = vst [vmem:[#allocation260_spill] sm:$0xff] %v7829_v27  ;;  %v7847_v27 = vld [vmem:[%s5648_s6 + $0x140] sm:$0xff] }
 0x32d   : > { %1695 = vrot.lane.b32.xlu1 %v7057_v41, %s5441_s27 }
 0x32e   : > { %v7831_v51 = vpop.permute.xlu0 %1517 }
 0x32f   : > { %13138 = vst [vmem:[#allocation390_spill] sm:$0xff] %v7831_v51  ;;  %v7837_v1 = vpop.permute.xlu1 %1519 }
 0x330   : > { %1697 = vrot.lane.b32.xlu0 %v7062_v44, %s5441_s27  ;;  %13139 = vst [vmem:[#allocation391_spill] sm:$0xff] %v7837_v1  ;;  %v7856_v1 = vld [vmem:[%s5648_s6 + $0x148] sm:$0xff] }
 0x331   : > { %1699 = vrot.lane.b32.xlu1 %v7842_v37, %s5441_s27 }
 0x332   : > { %v7839_v30 = vpop.permute.xlu0 %1521 }
 0x333   : > { %13140 = vst [vmem:[#allocation392_spill] sm:$0xff] %v7839_v30  ;;  %v7851_v41 = vpop.permute.xlu1 %1523  ;;  %v7861_v30 = vld [vmem:[%s5648_s6 + $0x150] sm:$0xff] }
 0x334   : > { %1701 = vrot.lane.b32.xlu0 %v7847_v27, %s5441_s27  ;;  %13141 = vst [vmem:[#allocation393_spill] sm:$0xff] %v7851_v41  ;;  %v7870_v41 = vld [vmem:[%s5648_s6 + $0x158] sm:$0xff] }
 0x335   : > { %1703 = vrot.lane.b32.xlu1 %v7856_v1, %s5441_s27 }
 0x336   : > { %v7853_v44 = vpop.permute.xlu0 %1525 }
 0x337   : > { %13142 = vst [vmem:[#allocation394_spill] sm:$0xff] %v7853_v44  ;;  %v7865_v51 = vpop.permute.xlu1 %1527  ;;  %v7875_v44 = vld [vmem:[%s5648_s6 + $0x168] sm:$0xff] }
 0x338   : > { %1705 = vrot.lane.b32.xlu0 %v7861_v30, %s5441_s27  ;;  %13143 = vst [vmem:[#allocation395_spill] sm:$0xff] %v7865_v51  ;;  %v7884_v51 = vld [vmem:[%s5648_s6 + $0x170] sm:$0xff] }
 0x339   : > { %1707 = vrot.lane.b32.xlu1 %v7870_v41, %s5441_s27 }
 0x33a   : > { %v7867_v52 = vpop.permute.xlu0 %1529 }
 0x33b   : > { %13144 = vst [vmem:[#allocation396_spill] sm:$0xff] %v7867_v52  ;;  %v7879_v61 = vpop.permute.xlu1 %1531  ;;  %v7889_v52 = vld [vmem:[%s5648_s6 + $0x178] sm:$0xff] }
 0x33c   : > { %1709 = vrot.lane.b32.xlu0 %v7875_v44, %s5441_s27  ;;  %13145 = vst [vmem:[#allocation397_spill] sm:$0xff] %v7879_v61  ;;  %v7898_v61 = vld [vmem:[%s5648_s6 + $0x180] sm:$0xff] }
 0x33d   : > { %1711 = vrot.lane.b32.xlu1 %v7884_v51, %s5441_s27 }
 0x33e   : > { %v7881_v4 = vpop.permute.xlu0 %1533 }
 0x33f   : > { %13146 = vst [vmem:[#allocation398_spill] sm:$0xff] %v7881_v4  ;;  %v7893_v29 = vpop.permute.xlu1 %1535  ;;  %v7903_v4 = vld [vmem:[%s5648_s6 + $0x190] sm:$0xff] }
 0x340   : > { %1713 = vrot.lane.b32.xlu0 %v7889_v52, %s5441_s27  ;;  %13147 = vst [vmem:[#allocation399_spill] sm:$0xff] %v7893_v29  ;;  %13149 = vst [vmem:[#allocation401_spill] sm:$0xff] %v7903_v4  ;;  %v7912_v29 = vld [vmem:[%s5648_s6 + $0x198] sm:$0xff] }
 0x341   : > { %1715 = vrot.lane.b32.xlu1 %v7898_v61, %s5441_s27  ;;  %13152 = vst [vmem:[#allocation404_spill] sm:$0xff] %v7912_v29 }
 0x342   : > { %v7895_v22 = vpop.permute.xlu0 %1537 }
 0x343   : > { %13148 = vst [vmem:[#allocation400_spill] sm:$0xff] %v7895_v22  ;;  %v7907_v56 = vpop.permute.xlu1 %1539  ;;  %v7917_v22 = vld [vmem:[%s5648_s6 + $0x1a0] sm:$0xff] }
 0x344   : > { %1717 = vrot.lane.b32.xlu0 %v7903_v4, %s5441_s27  ;;  %13150 = vst [vmem:[#allocation402_spill] sm:$0xff] %v7907_v56  ;;  %13153 = vst [vmem:[#allocation405_spill] sm:$0xff] %v7917_v22  ;;  %v7926_v56 = vld [vmem:[%s5648_s6 + $0x1a8] sm:$0xff]  ;;  %v8052_v4 = vld [vmem:[%s5648_s6 + $0x260] sm:$0xff] }
 0x345   : > { %1719 = vrot.lane.b32.xlu1 %v7912_v29, %s5441_s27  ;;  %13156 = vst [vmem:[#allocation408_spill] sm:$0xff] %v7926_v56  ;;  %13191 = vst [vmem:[#allocation443_spill] sm:$0xff] %v8052_v4 }
 0x346   : > { %v7909_v25 = vpop.permute.xlu0 %1541 }
 0x347   : > { %13151 = vst [vmem:[#allocation403_spill] sm:$0xff] %v7909_v25  ;;  %v7921_v13 = vpop.permute.xlu1 %1543  ;;  %v7931_v25 = vld [vmem:[%s5648_s6 + $0x1b8] sm:$0xff] }
 0x348   : > { %1721 = vrot.lane.b32.xlu0 %v7917_v22, %s5441_s27  ;;  %13154 = vst [vmem:[#allocation406_spill] sm:$0xff] %v7921_v13  ;;  %13157 = vst [vmem:[#allocation409_spill] sm:$0xff] %v7931_v25  ;;  %v7940_v13 = vld [vmem:[%s5648_s6 + $0x1c0] sm:$0xff] }
 0x349   : > { %1723 = vrot.lane.b32.xlu1 %v7926_v56, %s5441_s27  ;;  %13160 = vst [vmem:[#allocation412_spill] sm:$0xff] %v7940_v13 }
 0x34a   : > { %v7923_v11 = vpop.permute.xlu0 %1545 }
 0x34b   : > { %13155 = vst [vmem:[#allocation407_spill] sm:$0xff] %v7923_v11  ;;  %v7935_v14 = vpop.permute.xlu1 %1547  ;;  %v7945_v11 = vld [vmem:[%s5648_s6 + $0x1c8] sm:$0xff] }
 0x34c   : > { %1725 = vrot.lane.b32.xlu0 %v7931_v25, %s5441_s27  ;;  %13158 = vst [vmem:[#allocation410_spill] sm:$0xff] %v7935_v14  ;;  %13161 = vst [vmem:[#allocation413_spill] sm:$0xff] %v7945_v11  ;;  %v7954_v14 = vld [vmem:[%s5648_s6 + $0x1d0] sm:$0xff] }
 0x34d   : > { %1727 = vrot.lane.b32.xlu1 %v7940_v13, %s5441_s27  ;;  %13164 = vst [vmem:[#allocation416_spill] sm:$0xff] %v7954_v14 }
 0x34e   : > { %v7937_v22 = vpop.permute.xlu0 %1549 }
 0x34f   : > { %13159 = vst [vmem:[#allocation411_spill] sm:$0xff] %v7937_v22  ;;  %v7949_v56 = vpop.permute.xlu1 %1551  ;;  %v7959_v22 = vld [vmem:[%s5648_s6 + $0x1e0] sm:$0xff] }
 0x350   : > { %1729 = vrot.lane.b32.xlu0 %v7945_v11, %s5441_s27  ;;  %13162 = vst [vmem:[#allocation414_spill] sm:$0xff] %v7949_v56  ;;  %13165 = vst [vmem:[#allocation417_spill] sm:$0xff] %v7959_v22  ;;  %v7968_v56 = vld [vmem:[%s5648_s6 + $0x1e8] sm:$0xff] }
 0x351   : > { %1731 = vrot.lane.b32.xlu1 %v7954_v14, %s5441_s27  ;;  %13168 = vst [vmem:[#allocation420_spill] sm:$0xff] %v7968_v56 }
 0x352   : > { %v7951_v25 = vpop.permute.xlu0 %1553 }
 0x353   : > { %13163 = vst [vmem:[#allocation415_spill] sm:$0xff] %v7951_v25  ;;  %v7963_v13 = vpop.permute.xlu1 %1555  ;;  %v7973_v25 = vld [vmem:[%s5648_s6 + $0x1f0] sm:$0xff] }
 0x354   : > { %1733 = vrot.lane.b32.xlu0 %v7959_v22, %s5441_s27  ;;  %13166 = vst [vmem:[#allocation418_spill] sm:$0xff] %v7963_v13  ;;  %13169 = vst [vmem:[#allocation421_spill] sm:$0xff] %v7973_v25  ;;  %v7982_v13 = vld [vmem:[%s5648_s6 + $0x1f8] sm:$0xff] }
 0x355   : > { %1735 = vrot.lane.b32.xlu1 %v7968_v56, %s5441_s27  ;;  %13172 = vst [vmem:[#allocation424_spill] sm:$0xff] %v7982_v13 }
 0x356   : > { %v7965_v11 = vpop.permute.xlu0 %1557 }
 0x357   : > { %13167 = vst [vmem:[#allocation419_spill] sm:$0xff] %v7965_v11  ;;  %v7977_v14 = vpop.permute.xlu1 %1559  ;;  %v7987_v11 = vld [vmem:[%s5648_s6 + $0x208] sm:$0xff] }
 0x358   : > { %1737 = vrot.lane.b32.xlu0 %v7973_v25, %s5441_s27  ;;  %13170 = vst [vmem:[#allocation422_spill] sm:$0xff] %v7977_v14  ;;  %13173 = vst [vmem:[#allocation425_spill] sm:$0xff] %v7987_v11  ;;  %v7996_v14 = vld [vmem:[%s5648_s6 + $0x210] sm:$0xff] }
 0x359   : > { %1739 = vrot.lane.b32.xlu1 %v7982_v13, %s5441_s27  ;;  %13176 = vst [vmem:[#allocation428_spill] sm:$0xff] %v7996_v14 }
 0x35a   : > { %v7979_v22 = vpop.permute.xlu0 %1561 }
 0x35b   : > { %13171 = vst [vmem:[#allocation423_spill] sm:$0xff] %v7979_v22  ;;  %v7991_v56 = vpop.permute.xlu1 %1563  ;;  %v8001_v22 = vld [vmem:[%s5648_s6 + $0x218] sm:$0xff] }
 0x35c   : > { %1741 = vrot.lane.b32.xlu0 %v7987_v11, %s5441_s27  ;;  %13174 = vst [vmem:[#allocation426_spill] sm:$0xff] %v7991_v56  ;;  %13177 = vst [vmem:[#allocation429_spill] sm:$0xff] %v8001_v22  ;;  %v8010_v56 = vld [vmem:[%s5648_s6 + $0x220] sm:$0xff] }
 0x35d   : > { %1743 = vrot.lane.b32.xlu1 %v7996_v14, %s5441_s27  ;;  %13180 = vst [vmem:[#allocation432_spill] sm:$0xff] %v8010_v56 }
 0x35e   : > { %v7993_v25 = vpop.permute.xlu0 %1565 }
 0x35f   : > { %13175 = vst [vmem:[#allocation427_spill] sm:$0xff] %v7993_v25  ;;  %v8005_v13 = vpop.permute.xlu1 %1567  ;;  %v8015_v25 = vld [vmem:[%s5648_s6 + $0x230] sm:$0xff] }
 0x360   : > { %1745 = vrot.lane.b32.xlu0 %v8001_v22, %s5441_s27  ;;  %13178 = vst [vmem:[#allocation430_spill] sm:$0xff] %v8005_v13  ;;  %13181 = vst [vmem:[#allocation433_spill] sm:$0xff] %v8015_v25  ;;  %v8024_v13 = vld [vmem:[%s5648_s6 + $0x238] sm:$0xff] }
 0x361   : > { %1747 = vrot.lane.b32.xlu1 %v8010_v56, %s5441_s27  ;;  %13184 = vst [vmem:[#allocation436_spill] sm:$0xff] %v8024_v13 }
 0x362   : > { %v8007_v11 = vpop.permute.xlu0 %1569 }
 0x363   : > { %13179 = vst [vmem:[#allocation431_spill] sm:$0xff] %v8007_v11  ;;  %v8019_v14 = vpop.permute.xlu1 %1571  ;;  %v8029_v11 = vld [vmem:[%s5648_s6 + $0x240] sm:$0xff] }
 0x364   : > { %1749 = vrot.lane.b32.xlu0 %v8015_v25, %s5441_s27  ;;  %13182 = vst [vmem:[#allocation434_spill] sm:$0xff] %v8019_v14  ;;  %13185 = vst [vmem:[#allocation437_spill] sm:$0xff] %v8029_v11  ;;  %v8038_v25 = vld [vmem:[%s5648_s6 + $0x248] sm:$0xff]  ;;  %v8043_v14 = vld [vmem:[%s5648_s6 + $0x258] sm:$0xff] }
 0x365   : > { %1751 = vrot.lane.b32.xlu1 %v8024_v13, %s5441_s27  ;;  %13188 = vst [vmem:[#allocation440_spill] sm:$0xff] %v8038_v25 }
 0x366   : > { %v8021_v22 = vpop.permute.xlu0 %1637 }
 0x367   : > { %13183 = vst [vmem:[#allocation435_spill] sm:$0xff] %v8021_v22  ;;  %v8033_v56 = vpop.permute.xlu1 %1639 }
 0x368   : > { %1753 = vrot.lane.b32.xlu0 %v8029_v11, %s5441_s27  ;;  %13186 = vst [vmem:[#allocation438_spill] sm:$0xff] %v8033_v56  ;;  %v8066_v11 = vld [vmem:[%s5648_s6 + $0x270] sm:$0xff] }
 0x369   : > { %1755 = vrot.lane.b32.xlu1 %v8038_v25, %s5441_s27 }
 0x36a   : > { %v8035_v29 = vpop.permute.xlu0 %1641 }
 0x36b   : > { %13187 = vst [vmem:[#allocation439_spill] sm:$0xff] %v8035_v29  ;;  %v8047_v22 = vpop.permute.xlu1 %1643  ;;  %v8057_v29 = vld [vmem:[%s5648_s6 + $0x268] sm:$0xff] }
 0x36c   : > { %1757 = vrot.lane.b32.xlu0 %v8043_v14, %s5441_s27  ;;  %13189 = vst [vmem:[#allocation441_spill] sm:$0xff] %v8047_v22 }
 0x36d   : > { %1759 = vrot.lane.b32.xlu1 %v8052_v4, %s5441_s27 }
 0x36e   : > { %v8049_v13 = vpop.permute.xlu0 %1645 }
 0x36f   : > { %13190 = vst [vmem:[#allocation442_spill] sm:$0xff] %v8049_v13  ;;  %v8061_v56 = vpop.permute.xlu1 %1647  ;;  %v13194_v13 = vmov 0.0  }
 0x370   : > { %1761 = vrot.lane.b32.xlu0 %v8057_v29, %s5441_s27  ;;  %13192 = vst [vmem:[#allocation444_spill] sm:$0xff] %v8061_v56 }
 0x371   : > { %1763 = vrot.lane.b32.xlu1 %v8066_v11, %s5441_s27 }
 0x372   : > { %v8063_v25 = vpop.permute.xlu0 %1649 }
 0x373   : > { %13193 = vst [vmem:[#allocation445_spill] sm:$0xff] %v8063_v25  ;;  %v8072_v22 = vpop.permute.xlu1 %1651 }
 0x374   : > { %1765 = vrot.lane.b32.xlu0 %v13194_v13, %s5441_s27  ;;  %13195 = vst [vmem:[#allocation446_spill] sm:$0xff] %v8072_v22  ;;  %v13320_v22 = vld [vmem:[#allocation146_spill] sm:$0xff] }
 0x375   : > { %1832 = vrot.lane.b32.xlu1 %v12849_v19, %s5442_s22 }
 0x376   : > { %v8074_v4 = vpop.permute.xlu0 %1653 }
 0x377   : > { %13196 = vst [vmem:[#allocation447_spill] sm:$0xff] %v8074_v4  ;;  %v8080_v25 = vpop.permute.xlu1 %1655 }
 0x378   : > { %1834 = vrot.lane.b32.xlu0 %v12852_v32, %s5442_s22  ;;  %13197 = vst [vmem:[#allocation448_spill] sm:$0xff] %v8080_v25  ;;  %v13318_v25 = vld [vmem:[#allocation142_spill] sm:$0xff] }
 0x379   : > { %1836 = vrot.lane.b32.xlu1 %v12853_v18, %s5442_s22 }
 0x37a   : > { %v8082_v56 = vpop.permute.xlu0 %1657 }
 0x37b   : > { %13198 = vst [vmem:[#allocation449_spill] sm:$0xff] %v8082_v56  ;;  %v8088_v13 = vpop.permute.xlu1 %1659 }
 0x37c   : > { %1838 = vrot.lane.b32.xlu0 %v12856_v10, %s5442_s22  ;;  %13199 = vst [vmem:[#allocation450_spill] sm:$0xff] %v8088_v13  ;;  %v13307_v13 = vld [vmem:[#allocation125_spill] sm:$0xff] }
 0x37d   : > { %1840 = vrot.lane.b32.xlu1 %v12857_v21, %s5442_s22 }
 0x37e   : > { %v8090_v4 = vpop.permute.xlu0 %1661 }
 0x37f   : > { %13200 = vst [vmem:[#allocation451_spill] sm:$0xff] %v8090_v4  ;;  %v8096_v19 = vpop.permute.xlu1 %1663 }
 0x380   : > { %1842 = vrot.lane.b32.xlu0 %v12860_v0, %s5442_s22  ;;  %13201 = vst [vmem:[#allocation452_spill] sm:$0xff] %v8096_v19 }
 0x381   : > { %1844 = vrot.lane.b32.xlu1 %v12861_v63, %s5442_s22 }
 0x382   : > { %v8098_v32 = vpop.permute.xlu0 %1665 }
 0x383   : > { %13202 = vst [vmem:[#allocation453_spill] sm:$0xff] %v8098_v32  ;;  %v8104_v18 = vpop.permute.xlu1 %1667  ;;  %v13299_v32 = vld [vmem:[#allocation117_spill] sm:$0xff] }
 0x384   : > { %1846 = vrot.lane.b32.xlu0 %v12864_v43, %s5442_s22  ;;  %13203 = vst [vmem:[#allocation454_spill] sm:$0xff] %v8104_v18 }
 0x385   : > { %1848 = vrot.lane.b32.xlu1 %v12865_v59, %s5442_s22 }
 0x386   : > { %v8106_v10 = vpop.permute.xlu0 %1669 }
 0x387   : > { %13204 = vst [vmem:[#allocation455_spill] sm:$0xff] %v8106_v10  ;;  %v8112_v0 = vpop.permute.xlu1 %1671 }
 0x388   : > { %1850 = vrot.lane.b32.xlu0 %v12868_v62, %s5442_s22  ;;  %13205 = vst [vmem:[#allocation456_spill] sm:$0xff] %v8112_v0 }
 0x389   : > { %1852 = vrot.lane.b32.xlu1 %v12869_v20, %s5442_s22 }
 0x38a   : > { %v8114_v21 = vpop.permute.xlu0 %1673 }
 0x38b   : > { %13206 = vst [vmem:[#allocation457_spill] sm:$0xff] %v8114_v21  ;;  %v8120_v63 = vpop.permute.xlu1 %1675  ;;  %v13245_v21 = vld [vmem:[#allocation57_spill] sm:$0xff] }
 0x38c   : > { %1854 = vrot.lane.b32.xlu0 %v12872_v36, %s5442_s22  ;;  %13207 = vst [vmem:[#allocation458_spill] sm:$0xff] %v8120_v63  ;;  %v13244_v63 = vld [vmem:[#allocation56_spill] sm:$0xff] }
 0x38d   : > { %1856 = vrot.lane.b32.xlu1 %v12873_v42, %s5442_s22 }
 0x38e   : > { %v8122_v43 = vpop.permute.xlu0 %1677 }
 0x38f   : > { %13208 = vst [vmem:[#allocation459_spill] sm:$0xff] %v8122_v43  ;;  %v8128_v59 = vpop.permute.xlu1 %1679 }
 0x390   : > { %1858 = vrot.lane.b32.xlu0 %v12876_v57, %s5442_s22  ;;  %13209 = vst [vmem:[#allocation460_spill] sm:$0xff] %v8128_v59 }
 0x391   : > { %1860 = vrot.lane.b32.xlu1 %v12877_v48, %s5442_s22 }
 0x392   : > { %v8130_v62 = vpop.permute.xlu0 %1681 }
 0x393   : > { %13210 = vst [vmem:[#allocation461_spill] sm:$0xff] %v8130_v62  ;;  %v8136_v20 = vpop.permute.xlu1 %1683 }
 0x394   : > { %1862 = vrot.lane.b32.xlu0 %v12880_v50, %s5442_s22  ;;  %13211 = vst [vmem:[#allocation462_spill] sm:$0xff] %v8136_v20  ;;  %v3129_v20 = vld [vmem:[#allocation5 + $0x8] sm:$0xff] }
 0x395   : > { %1864 = vrot.lane.b32.xlu1 %v12881_v26, %s5442_s22 }
 0x396   : > { %v8138_v36 = vpop.permute.xlu0 %1685 }
 0x397   : > { %13212 = vst [vmem:[#allocation463_spill] sm:$0xff] %v8138_v36  ;;  %v8144_v42 = vpop.permute.xlu1 %1687  ;;  %v3128_v36 = vld [vmem:[#allocation5] sm:$0xff] }
 0x398   : > { %1866 = vrot.lane.b32.xlu0 %v12884_v17, %s5442_s22  ;;  %13213 = vst [vmem:[#allocation464_spill] sm:$0xff] %v8144_v42  ;;  %v5083_v62 = vpack.c.bf16 %v3129_v20, %v3128_v36  ;;  %v13248_v36 = vld [vmem:[#allocation60_spill] sm:$0xff] }
 0x399   : > { %1868 = vrot.lane.b32.xlu1 %v12885_v40, %s5442_s22 }
 0x39a   : > { %v8146_v57 = vpop.permute.xlu0 %1689  ;;  %5084 = vmatprep.subr.bf16.mxu0 %v5083_v62  ;;  %5091 = vmatprep.subr.bf16.mxu1 %v5083_v62 }
 0x39b   : > { %13214 = vst [vmem:[#allocation465_spill] sm:$0xff] %v8146_v57  ;;  %v8152_v48 = vpop.permute.xlu1 %1691  ;;  %v13236_v57 = vld [vmem:[#allocation47_spill] sm:$0xff]  ;;  %5086 = vmatpush3.bf16.msra.mxu0 %v5083_v62  ;;  %5094 = vmatpush3.bf16.msra.mxu1 %v5083_v62  ;;  %v13252_v62 = vld [vmem:[#allocation65_spill] sm:$0xff] }
 0x39c   : > { %1870 = vrot.lane.b32.xlu0 %v12888_v24, %s5442_s22  ;;  %13215 = vst [vmem:[#allocation466_spill] sm:$0xff] %v8152_v48 }
 0x39d   : > { %1872 = vrot.lane.b32.xlu1 %v12889_v54, %s5442_s22 }
 0x39e   : > { %v8154_v50 = vpop.permute.xlu0 %1693 }
 0x39f   : > { %13216 = vst [vmem:[#allocation467_spill] sm:$0xff] %v8154_v50  ;;  %v8160_v26 = vpop.permute.xlu1 %1695  ;;  %v13232_v50 = vld [vmem:[#allocation45_spill] sm:$0xff] }
 0x3a0   : > { %1874 = vrot.lane.b32.xlu0 %v12892_v33, %s5442_s22  ;;  %13217 = vst [vmem:[#allocation468_spill] sm:$0xff] %v8160_v26 }
 0x3a1   : > { %1876 = vrot.lane.b32.xlu1 %v12893_v38, %s5442_s22 }
 0x3a2   : > { %v8162_v17 = vpop.permute.xlu0 %1697 }
 0x3a3   : > { %13218 = vst [vmem:[#allocation469_spill] sm:$0xff] %v8162_v17  ;;  %v8168_v40 = vpop.permute.xlu1 %1699  ;;  %v13228_v17 = vld [vmem:[#allocation43_spill] sm:$0xff] }
 0x3a4   : > { %1878 = vrot.lane.b32.xlu0 %v12896_v28, %s5442_s22  ;;  %13219 = vst [vmem:[#allocation470_spill] sm:$0xff] %v8168_v40 }
 0x3a5   : > { %1880 = vrot.lane.b32.xlu1 %v12897_v39, %s5442_s22  ;;  %v13225_v39 = vld [vmem:[#allocation42_spill] sm:$0xff] }
 0x3a6   : > { %v8170_v24 = vpop.permute.xlu0 %1701 }
 0x3a7   : > { %13220 = vst [vmem:[#allocation471_spill] sm:$0xff] %v8170_v24  ;;  %v8176_v54 = vpop.permute.xlu1 %1703  ;;  %v13365_v24 = vld [vmem:[#allocation421_spill] sm:$0xff] }
 0x3a8   : > { %1882 = vrot.lane.b32.xlu0 %v12900_v12, %s5442_s22  ;;  %13221 = vst [vmem:[#allocation472_spill] sm:$0xff] %v8176_v54 }
 0x3a9   : > { %1884 = vrot.lane.b32.xlu1 %v12901_v53, %s5442_s22  ;;  %v13229_v53 = vld [vmem:[#allocation44_spill] sm:$0xff] }
 0x3aa   : > { %v8178_v33 = vpop.permute.xlu0 %1705 }
 0x3ab   : > { %13222 = vst [vmem:[#allocation473_spill] sm:$0xff] %v8178_v33  ;;  %v8184_v38 = vpop.permute.xlu1 %1707 }
 0x3ac   : > { %1886 = vrot.lane.b32.xlu0 %v12904_v31, %s5442_s22  ;;  %13223 = vst [vmem:[#allocation474_spill] sm:$0xff] %v8184_v38  ;;  %v13347_v38 = vld [vmem:[#allocation409_spill] sm:$0xff] }
 0x3ad   : > { %1888 = vrot.lane.b32.xlu1 %v12905_v60, %s5442_s22  ;;  %v13233_v60 = vld [vmem:[#allocation46_spill] sm:$0xff] }
 0x3ae   : > { %v8186_v28 = vpop.permute.xlu0 %1709 }
 0x3af   : > { %13224 = vst [vmem:[#allocation475_spill] sm:$0xff] %v8186_v28  ;;  %v8192_v12 = vpop.permute.xlu1 %1711  ;;  %v13343_v28 = vld [vmem:[#allocation405_spill] sm:$0xff] }
 0x3b0   : > { %1890 = vrot.lane.b32.xlu0 %v13225_v39, %s5442_s22  ;;  %13226 = vst [vmem:[#allocation42_spill] sm:$0xff] %v8192_v12 }
 0x3b1   : > { %1892 = vrot.lane.b32.xlu1 %v13228_v17, %s5442_s22  ;;  %v13237_v17 = vld [vmem:[#allocation48_spill] sm:$0xff] }
 0x3b2   : > { %v8194_v40 = vpop.permute.xlu0 %1713 }
 0x3b3   : > { %13227 = vst [vmem:[#allocation476_spill] sm:$0xff] %v8194_v40  ;;  %v8200_v31 = vpop.permute.xlu1 %1715 }
 0x3b4   : > { %1894 = vrot.lane.b32.xlu0 %v13229_v53, %s5442_s22  ;;  %13230 = vst [vmem:[#allocation43_spill] sm:$0xff] %v8200_v31  ;;  %v13319_v31 = vld [vmem:[#allocation145_spill] sm:$0xff] }
 0x3b5   : > { %1896 = vrot.lane.b32.xlu1 %v13232_v50, %s5442_s22  ;;  %v13240_v50 = vld [vmem:[#allocation51_spill] sm:$0xff] }
 0x3b6   : > { %v8202_v26 = vpop.permute.xlu0 %1717 }
 0x3b7   : > { %13231 = vst [vmem:[#allocation44_spill] sm:$0xff] %v8202_v26  ;;  %v8208_v39 = vpop.permute.xlu1 %1719 }
 0x3b8   : > { %1898 = vrot.lane.b32.xlu0 %v13233_v60, %s5442_s22  ;;  %13234 = vst [vmem:[#allocation45_spill] sm:$0xff] %v8208_v39  ;;  %v13241_v60 = vld [vmem:[#allocation52_spill] sm:$0xff] }
 0x3b9   : > { %1900 = vrot.lane.b32.xlu1 %v13236_v57, %s5442_s22  ;;  %v3130_v57 = vld [vmem:[#allocation5 + $0x10] sm:$0xff] }
 0x3ba   : > { %v8210_v48 = vpop.permute.xlu0 %1721 }
 0x3bb   : > { %13235 = vst [vmem:[#allocation46_spill] sm:$0xff] %v8210_v48  ;;  %v8216_v53 = vpop.permute.xlu1 %1723 }
 0x3bc   : > { %1902 = vrot.lane.b32.xlu0 %v13237_v17, %s5442_s22  ;;  %13238 = vst [vmem:[#allocation47_spill] sm:$0xff] %v8216_v53  ;;  %v3131_v17 = vld [vmem:[#allocation5 + $0x18] sm:$0xff] }
 0x3bd   : > { %1904 = vrot.lane.b32.xlu1 %v13240_v50, %s5442_s22  ;;  %v5087_v50 = vpack.c.bf16 %v3131_v17, %v3130_v57  ;;  %v13253_v57 = vld [vmem:[#allocation66_spill] sm:$0xff] }
 0x3be   : > { %v8218_v42 = vpop.permute.xlu0 %1725  ;;  %v13306_v53 = vld [vmem:[#allocation122_spill] sm:$0xff] }
 0x3bf   : > { %13239 = vst [vmem:[#allocation48_spill] sm:$0xff] %v8218_v42  ;;  %v8224_v59 = vpop.permute.xlu1 %1727  ;;  %5088 = vmatprep.subr.bf16.mxu0 %v5087_v50  ;;  %5092 = vmatprep.subr.bf16.mxu1 %v5087_v50 }
 0x3c0   : > { %1906 = vrot.lane.b32.xlu0 %v13241_v60, %s5442_s22  ;;  %13242 = vst [vmem:[#allocation51_spill] sm:$0xff] %v8224_v59  ;;  %5090 = vmatpush3.bf16.msra.mxu0 %v5087_v50  ;;  %v13249_v60 = vld [vmem:[#allocation61_spill] sm:$0xff] }
 0x3c1   : > { %1908 = vrot.lane.b32.xlu1 %v13244_v63, %s5442_s22  ;;  %5095 = vmatpush3.bf16.msra.mxu1 %v5087_v50  ;;  %v3132_v63 = vld [vmem:[#allocation5 + $0x20] sm:$0xf]  ;;  %v13256_v50 = vld [vmem:[#allocation69_spill] sm:$0xff] }
 0x3c2   : > { %v8226_v43 = vpop.permute.xlu0 %1729  ;;  %4889 = vmatprep.subr.msk.mxu0 %vm3525_vm2, %v3132_v63  ;;  %5093 = vmatprep.subr.msk.mxu1 %vm3525_vm2, %v3132_v63 }
 0x3c3   : > { %13243 = vst [vmem:[#allocation52_spill] sm:$0xff] %v8226_v43  ;;  %v8232_v0 = vpop.permute.xlu1 %1731  ;;  %v5252_v43 = vld [vmem:[%s5648_s6 + $0x60] sm:$0xff] }
 0x3c4   : > { %1910 = vrot.lane.b32.xlu0 %v13245_v21, %s5442_s22  ;;  %13246 = vst [vmem:[#allocation56_spill] sm:$0xff] %v8232_v0  ;;  %4890 = vmatpush3.msk.msra.mxu0 %vm3525_vm2, %v3132_v63 }
 0x3c5   : > { %1912 = vrot.lane.b32.xlu1 %v13248_v36, %s5442_s22  ;;  %5096 = vmatpush3.msk.msra.mxu1 %vm3525_vm2, %v3132_v63 }
 0x3c6   : > { %v8234_v20 = vpop.permute.xlu0 %1733 }
 0x3c7   : > { %13247 = vst [vmem:[#allocation57_spill] sm:$0xff] %v8234_v20  ;;  %v8240_v10 = vpop.permute.xlu1 %1735 }
 0x3c8   : > { %1914 = vrot.lane.b32.xlu0 %v13249_v60, %s5442_s22  ;;  %13250 = vst [vmem:[#allocation60_spill] sm:$0xff] %v8240_v10  ;;  %v13257_v60 = vld [vmem:[#allocation70_spill] sm:$0xff] }
 0x3c9   : > { %1916 = vrot.lane.b32.xlu1 %v13252_v62, %s5442_s22 }
 0x3ca   : > { %v8242_v21 = vpop.permute.xlu0 %1737 }
 0x3cb   : > { %13251 = vst [vmem:[#allocation61_spill] sm:$0xff] %v8242_v21  ;;  %v8248_v17 = vpop.permute.xlu1 %1739 }
 0x3cc   : > { %1918 = vrot.lane.b32.xlu0 %v13253_v57, %s5442_s22  ;;  %13254 = vst [vmem:[#allocation65_spill] sm:$0xff] %v8248_v17 }
 0x3cd   : > { %1920 = vrot.lane.b32.xlu1 %v13256_v50, %s5442_s22 }
 0x3ce   : > { %v8250_v36 = vpop.permute.xlu0 %1741 }
 0x3cf   : > { %13255 = vst [vmem:[#allocation66_spill] sm:$0xff] %v8250_v36  ;;  %v8256_v21 = vpop.permute.xlu1 %1743 }
 0x3d0   : > { %1922 = vrot.lane.b32.xlu0 %v13257_v60, %s5442_s22  ;;  %13258 = vst [vmem:[#allocation69_spill] sm:$0xff] %v8256_v21 }
 0x3d1   : > { %2027 = vrot.lane.b32.xlu1 %v6323_v7, %s5443_s29 }
 0x3d2   : > { %v8258_v10 = vpop.permute.xlu0 %1745 }
 0x3d3   : > { %13259 = vst [vmem:[#allocation70_spill] sm:$0xff] %v8258_v10  ;;  %v8264_v63 = vpop.permute.xlu1 %1747  ;;  %v13290_v10 = vld [vmem:[#allocation107_spill] sm:$0xff] }
 0x3d4   : > { %2091 = vrot.lane.b32.xlu0 %v13024_v34, %s5443_s29  ;;  %13260 = vst [vmem:[#allocation477_spill] sm:$0xff] %v8264_v63  ;;  %v5245_v63 = vld [vmem:[%s5648_s6 + $0x18] sm:$0xff] }
 0x3d5   : > { %2029 = vrot.lane.b32.xlu1 %v6337_v49, %s5443_s29  ;;  %v8366_v21 = vsel %vm2222_vm3, %v5245_v63, %v13290_v10  ;;  %v13294_v10 = vld [vmem:[#allocation127_spill] sm:$0xff] }
 0x3d6   : > { %v8266_v62 = vpop.permute.xlu0 %1749  ;;  %v13295_v63 = vld [vmem:[#allocation63_spill] sm:$0xff] }
 0x3d7   : > { %13261 = vst [vmem:[#allocation478_spill] sm:$0xff] %v8266_v62  ;;  %v8272_v57 = vpop.permute.xlu1 %1751  ;;  %v13289_v62 = vld [vmem:[#allocation106_spill] sm:$0xff] }
 0x3d8   : > { %2093 = vrot.lane.b32.xlu0 %v13027_v46, %s5443_s29  ;;  %13262 = vst [vmem:[#allocation479_spill] sm:$0xff] %v8272_v57 }
 0x3d9   : > { %2031 = vrot.lane.b32.xlu1 %v6340_v3, %s5443_s29 }
 0x3da   : > { %v8274_v50 = vpop.permute.xlu0 %1753 }
 0x3db   : > { %13263 = vst [vmem:[#allocation480_spill] sm:$0xff] %v8274_v50  ;;  %v8280_v7 = vpop.permute.xlu1 %1755  ;;  %v13288_v50 = vld [vmem:[#allocation102_spill] sm:$0xff] }
 0x3dc   : > { %2095 = vrot.lane.b32.xlu0 %v13028_v5, %s5443_s29  ;;  %13264 = vst [vmem:[#allocation481_spill] sm:$0xff] %v8280_v7  ;;  %v5243_v7 = vld [vmem:[%s5648_s6] sm:$0xff] }
 0x3dd   : > { %2033 = vrot.lane.b32.xlu1 %v6353_v9, %s5443_s29  ;;  %v8356_v57 = vsel %vm2222_vm3, %v5243_v7, %v13288_v50  ;;  %v5247_v50 = vld [vmem:[%s5648_s6 + $0x30] sm:$0xff]  ;;  %v13292_v7 = vld [vmem:[#allocation111_spill] sm:$0xff] }
 0x3de   : > { %v8282_v34 = vpop.permute.xlu0 %1757  ;;  %v8376_v17 = vsel %vm2222_vm3, %v5247_v50, %v13292_v7  ;;  %v5250_v50 = vld [vmem:[%s5648_s6 + $0x50] sm:$0xff]  ;;  %v13297_v7 = vld [vmem:[#allocation115_spill] sm:$0xff] }
 0x3df   : > { %13265 = vst [vmem:[#allocation482_spill] sm:$0xff] %v8282_v34  ;;  %v8288_v49 = vpop.permute.xlu1 %1759  ;;  %v8395_v18 = vsel %vm2222_vm3, %v5250_v50, %v13297_v7  ;;  %v5254_v50 = vld [vmem:[%s5648_s6 + $0x78] sm:$0xff]  ;;  %v13301_v7 = vld [vmem:[#allocation119_spill] sm:$0xff] }
 0x3e0   : > { %2097 = vrot.lane.b32.xlu0 %v13031_v47, %s5443_s29  ;;  %13266 = vst [vmem:[#allocation483_spill] sm:$0xff] %v8288_v49  ;;  %v5242_v49 = vld [vmem:[%s5648_s6 + $0x8] sm:$0xff]  ;;  %v8415_v19 = vsel %vm2222_vm3, %v5254_v50, %v13301_v7  ;;  %v5258_v7 = vld [vmem:[%s5648_s6 + $0xa0] sm:$0xff] }
 0x3e1   : > { %2035 = vrot.lane.b32.xlu1 %v6356_v15, %s5443_s29 }
 0x3e2   : > { %v8290_v46 = vpop.permute.xlu0 %1761 }
 0x3e3   : > { %13267 = vst [vmem:[#allocation484_spill] sm:$0xff] %v8290_v46  ;;  %v8296_v3 = vpop.permute.xlu1 %1763 }
 0x3e4   : > { %2099 = vrot.lane.b32.xlu0 %v13032_v35, %s5443_s29  ;;  %13268 = vst [vmem:[#allocation485_spill] sm:$0xff] %v8296_v3 }
 0x3e5   : > { %2037 = vrot.lane.b32.xlu1 %v6370_v2, %s5443_s29 }
 0x3e6   : > { %v8298_v5 = vpop.permute.xlu0 %1765 }
 0x3e7   : > { %13269 = vst [vmem:[#allocation486_spill] sm:$0xff] %v8298_v5  ;;  %v8304_v47 = vpop.permute.xlu1 %1832 }
 0x3e8   : > { %2101 = vrot.lane.b32.xlu0 %v13035_v45, %s5443_s29  ;;  %13270 = vst [vmem:[#allocation487_spill] sm:$0xff] %v8304_v47  ;;  %v13362_v47 = vld [vmem:[#allocation420_spill] sm:$0xff] }
 0x3e9   : > { %2039 = vrot.lane.b32.xlu1 %v6373_v8, %s5443_s29  ;;  %v13276_v8 = vld [vmem:[#allocation55_spill] sm:$0xff] }
 0x3ea   : > { %v8306_v9 = vpop.permute.xlu0 %1834 }
 0x3eb   : > { %13271 = vst [vmem:[#allocation488_spill] sm:$0xff] %v8306_v9  ;;  %v8312_v15 = vpop.permute.xlu1 %1836 }
 0x3ec   : > { %2103 = vrot.lane.b32.xlu0 %v13036_v6, %s5443_s29  ;;  %13272 = vst [vmem:[#allocation489_spill] sm:$0xff] %v8312_v15 }
 0x3ed   : > { %2041 = vrot.lane.b32.xlu1 %v6386_v23, %s5443_s29  ;;  %v13279_v23 = vld [vmem:[#allocation123_spill] sm:$0xff] }
 0x3ee   : > { %v8314_v35 = vpop.permute.xlu0 %1838 }
 0x3ef   : > { %13273 = vst [vmem:[#allocation490_spill] sm:$0xff] %v8314_v35  ;;  %v8320_v2 = vpop.permute.xlu1 %1840  ;;  %v13345_v35 = vld [vmem:[#allocation408_spill] sm:$0xff] }
 0x3f0   : > { %2105 = vrot.lane.b32.xlu0 %v13039_v16, %s5443_s29  ;;  %13274 = vst [vmem:[#allocation491_spill] sm:$0xff] %v8320_v2  ;;  %v13280_v16 = vld [vmem:[#allocation181_spill] sm:$0xff]  ;;  %v13341_v2 = vld [vmem:[#allocation404_spill] sm:$0xff] }
 0x3f1   : > { %2043 = vrot.lane.b32.xlu1 %v6389_v55, %s5443_s29  ;;  %v13283_v55 = vld [vmem:[#allocation124_spill] sm:$0xff] }
 0x3f2   : > { %v8322_v45 = vpop.permute.xlu0 %1842 }
 0x3f3   : > { %13275 = vst [vmem:[#allocation492_spill] sm:$0xff] %v8322_v45  ;;  %v8328_v6 = vpop.permute.xlu1 %1844 }
 0x3f4   : > { %2107 = vrot.lane.b32.xlu0 %v13276_v8, %s5443_s29  ;;  %13277 = vst [vmem:[#allocation55_spill] sm:$0xff] %v8328_v6  ;;  %v13284_v8 = vld [vmem:[#allocation182_spill] sm:$0xff] }
 0x3f5   : > { %2045 = vrot.lane.b32.xlu1 %v13279_v23, %s5443_s29  ;;  %v13322_v6 = vld [vmem:[#allocation150_spill] sm:$0xff] }
 0x3f6   : > { %v8330_v60 = vpop.permute.xlu0 %1846 }
 0x3f7   : > { %13278 = vst [vmem:[#allocation493_spill] sm:$0xff] %v8330_v60  ;;  %v8336_v5 = vpop.permute.xlu1 %1848  ;;  %v5268_v60 = vld [vmem:[%s5648_s6 + $0x100] sm:$0xff] }
 0x3f8   : > { %2109 = vrot.lane.b32.xlu0 %v13280_v16, %s5443_s29  ;;  %13281 = vst [vmem:[#allocation123_spill] sm:$0xff] %v8336_v5  ;;  %v13287_v16 = vld [vmem:[#allocation101_spill] sm:$0xff] }
 0x3f9   : > { %2047 = vrot.lane.b32.xlu1 %v13283_v55, %s5443_s29  ;;  %v8351_v34 = vsel %vm2222_vm3, %v5242_v49, %v13287_v16  ;;  %v5244_v55 = vld [vmem:[%s5648_s6 + $0x10] sm:$0xff]  ;;  %v5246_v49 = vld [vmem:[%s5648_s6 + $0x28] sm:$0xff]  ;;  %v13291_v16 = vld [vmem:[#allocation110_spill] sm:$0xff] }
 0x3fa   : > { %v8338_v3 = vpop.permute.xlu0 %1850  ;;  %v8371_v36 = vsel %vm2222_vm3, %v5246_v49, %v13291_v16  ;;  %v5249_v49 = vld [vmem:[%s5648_s6 + $0x40] sm:$0xff] }
 0x3fb   : > { %13282 = vst [vmem:[#allocation181_spill] sm:$0xff] %v8338_v3  ;;  %v8344_v46 = vpop.permute.xlu1 %1852  ;;  %v13296_v16 = vld [vmem:[#allocation114_spill] sm:$0xff] }
 0x3fc   : > { %2111 = vrot.lane.b32.xlu0 %v13284_v8, %s5443_s29  ;;  %13285 = vst [vmem:[#allocation124_spill] sm:$0xff] %v8344_v46  ;;  %v8361_v8 = vsel %vm2222_vm3, %v5244_v55, %v13289_v62  ;;  %v5248_v62 = vld [vmem:[%s5648_s6 + $0x38] sm:$0xff]  ;;  %v8390_v0 = vsel %vm2222_vm3, %v5249_v49, %v13296_v16  ;;  %v5253_v49 = vld [vmem:[%s5648_s6 + $0x68] sm:$0xff] }
 0x3fd   : > { %v13293_v55 = vld [vmem:[#allocation113_spill] sm:$0xff]  ;;  %2049 = vrot.lane.b32.xlu1 %v13294_v10, %s5443_s29  ;;  %v13300_v16 = vld [vmem:[#allocation118_spill] sm:$0xff] }
 0x3fe   : > { %v8346_v23 = vpop.permute.xlu0 %1854  ;;  %v8381_v20 = vsel %vm2222_vm3, %v5248_v62, %v13293_v55  ;;  %v5251_v62 = vld [vmem:[%s5648_s6 + $0x58] sm:$0xff]  ;;  %v13298_v55 = vld [vmem:[#allocation116_spill] sm:$0xff]  ;;  %v8410_v59 = vsel %vm2222_vm3, %v5253_v49, %v13300_v16 }
 0x3ff   : > { %13286 = vst [vmem:[#allocation182_spill] sm:$0xff] %v8346_v23  ;;  %v8400_v10 = vsel %vm2222_vm3, %v5251_v62, %v13298_v55  ;;  %v5255_v62 = vld [vmem:[%s5648_s6 + $0x80] sm:$0xff]  ;;  %v13302_v55 = vld [vmem:[#allocation120_spill] sm:$0xff]  ;;  %v8427_v49 = vpop.permute.xlu1 %1856 }
 0x400   : > { %2113 = vrot.lane.b32.xlu0 %v13295_v63, %s5443_s29  ;;  %v8405_v63 = vsel %vm2222_vm3, %v5252_v43, %v13299_v32  ;;  %v8420_v42 = vsel %vm2222_vm3, %v5255_v62, %v13302_v55  ;;  %v5256_v32 = vld [vmem:[%s5648_s6 + $0x88] sm:$0xff]  ;;  %v13303_v43 = vld [vmem:[#allocation121_spill] sm:$0xff]  ;;  %13304 = vst [vmem:[#allocation101_spill] sm:$0xff] %v8427_v49  ;;  %v8439_v62 = vsel %vm2222_vm3, %v5258_v7, %v13307_v13  ;;  %v13308_v46 = vld [vmem:[#allocation126_spill] sm:$0xff] }
 0x401   : > { %v8425_v4 = vsel %vm2222_vm3, %v5256_v32, %v13303_v43  ;;  %v5257_v23 = vld [vmem:[%s5648_s6 + $0x90] sm:$0xff]  ;;  %v5259_v55 = vld [vmem:[%s5648_s6 + $0xa8] sm:$0xff] }
 0x402   : > { %v8429_v16 = vpop.permute.xlu0 %1858  ;;  %v8434_v50 = vsel %vm2222_vm3, %v5257_v23, %v13306_v53  ;;  %v8444_v32 = vsel %vm2222_vm3, %v5259_v55, %v13308_v46  ;;  %v5260_v43 = vld [vmem:[%s5648_s6 + $0xb0] sm:$0xff]  ;;  %v5261_v53 = vld [vmem:[%s5648_s6 + $0xb8] sm:$0xff]  ;;  %v5262_v13 = vld [vmem:[%s5648_s6 + $0xc8] sm:$0xff] }
 0x403   : > { %13305 = vst [vmem:[#allocation102_spill] sm:$0xff] %v8429_v16  ;;  %v13309_v16 = vld [vmem:[#allocation129_spill] sm:$0xff]  ;;  %v13310_v23 = vld [vmem:[#allocation130_spill] sm:$0xff] }
 0x404   : > { %v8449_v49 = vsel %vm2222_vm3, %v5260_v43, %v13309_v16  ;;  %v8454_v3 = vsel %vm2222_vm3, %v5261_v53, %v13310_v23  ;;  %v13311_v7 = vld [vmem:[#allocation133_spill] sm:$0xff]  ;;  %v13312_v55 = vld [vmem:[#allocation134_spill] sm:$0xff]  ;;  %v13313_v16 = vld [vmem:[#allocation128_spill] sm:$0xff] }
 0x405   : > { %v8459_v48 = vsel %vm2222_vm3, %v5262_v13, %v13311_v7  ;;  %v5263_v46 = vld [vmem:[%s5648_s6 + $0xd0] sm:$0xff]  ;;  %2051 = vrot.lane.b32.xlu1 %v13313_v16, %s5443_s29  ;;  %v5264_v53 = vld [vmem:[%s5648_s6 + $0xd8] sm:$0xff]  ;;  %v5265_v13 = vld [vmem:[%s5648_s6 + $0xe0] sm:$0xff] }
 0x406   : > { %v8464_v5 = vsel %vm2222_vm3, %v5263_v46, %v13312_v55  ;;  %v13314_v43 = vld [vmem:[#allocation64_spill] sm:$0xff]  ;;  %v13315_v23 = vld [vmem:[#allocation137_spill] sm:$0xff]  ;;  %v13316_v7 = vld [vmem:[#allocation138_spill] sm:$0xff]  ;;  %v8512_v40 = vpop.permute.xlu0 %1862 }
 0x407   : > { %2115 = vrot.lane.b32.xlu0 %v13314_v43, %s5443_s29  ;;  %v8473_v39 = vsel %vm2222_vm3, %v5264_v53, %v13315_v23  ;;  %v8478_v26 = vsel %vm2222_vm3, %v5265_v13, %v13316_v7  ;;  %v5266_v46 = vld [vmem:[%s5648_s6 + $0xf0] sm:$0xff]  ;;  %v5267_v16 = vld [vmem:[%s5648_s6 + $0xf8] sm:$0xff]  ;;  %v8493_v53 = vsel %vm2222_vm3, %v5268_v60, %v13319_v31  ;;  %v5269_v23 = vld [vmem:[%s5648_s6 + $0x108] sm:$0xff]  ;;  %13324 = vst [vmem:[#allocation107_spill] sm:$0xff] %v8512_v40 }
 0x408   : > { %v13317_v55 = vld [vmem:[#allocation141_spill] sm:$0xff]  ;;  %v8488_v43 = vsel %vm2222_vm3, %v5267_v16, %v13318_v25  ;;  %v8498_v13 = vsel %vm2222_vm3, %v5269_v23, %v13320_v22  ;;  %v8510_v16 = vpop.permute.xlu1 %1860  ;;  %v5271_v31 = vld [vmem:[%s5648_s6 + $0x128] sm:$0xff]  ;;  %v13326_v22 = vld [vmem:[#allocation154_spill] sm:$0xff] }
 0x409   : > { %v8483_v56 = vsel %vm2222_vm3, %v5266_v46, %v13317_v55  ;;  %v13321_v7 = vld [vmem:[#allocation149_spill] sm:$0xff]  ;;  %v5270_v55 = vld [vmem:[%s5648_s6 + $0x120] sm:$0xff]  ;;  %13323 = vst [vmem:[#allocation106_spill] sm:$0xff] %v8510_v16  ;;  %v8522_v23 = vsel %vm2222_vm3, %v7842_v37, %v13326_v22  ;;  %v13329_v40 = vld [vmem:[#allocation96_spill] sm:$0xff]  ;;  %s5358_s6 = scalar_lea.vmem %s11806_s17, 1024 }
 0x40a   : > { %v8503_v46 = vsel %vm2222_vm3, %v7825_v58, %v13321_v7  ;;  %v8508_v25 = vsel %vm2222_vm3, %v5270_v55, %v13322_v6  ;;  %v13325_v60 = vld [vmem:[#allocation153_spill] sm:$0xff]  ;;  %v13328_v6 = vld [vmem:[#allocation158_spill] sm:$0xff]  ;;  %v2223_v16 = vsel %vm2222_vm3, 0.0, %v13329_v40  ;;  %v13334_v40 = vld [vmem:[#allocation184_spill] sm:$0xff]  ;;  %v8597_v15 = vpop.permute.xlu0 %1866  ;;  %p5359_p11 = scmp.ne.s32.totalorder %s11806_s17, %s5358_s6  ;;  %p5366_p9 = scmp.lt.s32.totalorder %s5364_s20, %s5358_s6 }
 0x40b   : > { %v8517_v45 = vsel %vm2222_vm3, %v5271_v31, %v13325_v60  ;;  %v13327_v58 = vld [vmem:[#allocation157_spill] sm:$0xff]  ;;  %v8532_v55 = vsel %vm2222_vm3, %v7856_v1, %v13328_v6  ;;  %v13331_v37 = vld [vmem:[#allocation162_spill] sm:$0xff]  ;;  %v13333_v1 = vld [vmem:[#allocation131_spill] sm:$0xff]  ;;  %2117 = vrot.lane.b32.xlu0 %v13334_v40, %s5443_s29  ;;  %13349 = vst [vmem:[#allocation111_spill] sm:$0xff] %v8597_v15 }
 0x40c   : > { %v8527_v7 = vsel %vm2222_vm3, %v7847_v27, %v13327_v58  ;;  %v13330_v31 = vld [vmem:[#allocation161_spill] sm:$0xff]  ;;  %v8544_v22 = vsel %vm2222_vm3, %v7870_v41, %v13331_v37  ;;  %2053 = vrot.lane.b32.xlu1 %v13333_v1, %s5443_s29  ;;  %v13335_v6 = vld [vmem:[#allocation166_spill] sm:$0xff]  ;;  %p5360_p2 = pnand %p5359_p11, %p14046_p0  ;;  %p5367_p12 = por %p5366_p9, %p5365_p7 }
 0x40d   : > { %v8539_v60 = vsel %vm2222_vm3, %v7861_v30, %v13330_v31  ;;  %v13332_v27 = vld [vmem:[#allocation165_spill] sm:$0xff]  ;;  %v8558_v30 = vsel %vm2222_vm3, %v7884_v51, %v13335_v6  ;;  %v13337_v37 = vld [vmem:[#allocation170_spill] sm:$0xff] }
 0x40e   : > { %v8549_v58 = vsel %vm2222_vm3, %v7875_v44, %v13332_v27  ;;  %v13336_v31 = vld [vmem:[#allocation169_spill] sm:$0xff]  ;;  %v8568_v44 = vsel %vm2222_vm3, %v7898_v61, %v13337_v37  ;;  %v13340_v40 = vld [vmem:[#allocation174_spill] sm:$0xff]  ;;  %p5361_p3 = pneg %p5360_p2 }
 0x40f   : > { %v8563_v41 = vsel %vm2222_vm3, %v7889_v52, %v13336_v31  ;;  %v13338_v27 = vld [vmem:[#allocation173_spill] sm:$0xff]  ;;  %v8578_v51 = vsel %vm2222_vm3, %v13341_v2, %v13340_v40  ;;  %v13346_v37 = vld [vmem:[#allocation50_spill] sm:$0xff]  ;;  %v13351_v40 = vld [vmem:[#allocation412_spill] sm:$0xff] }
 0x410   : > { %v13339_v1 = vld [vmem:[#allocation401_spill] sm:$0xff]  ;;  %v13361_v15 = vld [vmem:[#allocation62_spill] sm:$0xff]  ;;  %p5368_p1 = pnand %p5367_p12, %p5361_p3 }
 0x411   : > { %v8573_v12 = vsel %vm2222_vm3, %v13339_v1, %v13338_v27  ;;  %v13342_v6 = vld [vmem:[#allocation49_spill] sm:$0xff]  ;;  %v8593_v27 = vsel %vm2222_vm3, %v13347_v38, %v13346_v37  ;;  %v8595_v1 = vpop.permute.xlu1 %1864  ;;  %v13358_v38 = vld [vmem:[#allocation59_spill] sm:$0xff] }
 0x412   : > { %v8583_v52 = vsel %vm2222_vm3, %v13343_v28, %v13342_v6  ;;  %v13344_v31 = vld [vmem:[#allocation177_spill] sm:$0xff]  ;;  %13348 = vst [vmem:[#allocation110_spill] sm:$0xff] %v8595_v1  ;;  %v13352_v28 = vld [vmem:[#allocation58_spill] sm:$0xff] }
 0x413   : > { %v8588_v61 = vsel %vm2222_vm3, %v13345_v35, %v13344_v31  ;;  %v13350_v2 = vld [vmem:[#allocation53_spill] sm:$0xff]  ;;  %v13355_v35 = vld [vmem:[#allocation180_spill] sm:$0xff] }
 0x414   : > { %v8602_v33 = vsel %vm2222_vm3, %v13351_v40, %v13350_v2  ;;  %v13353_v6 = vld [vmem:[#allocation413_spill] sm:$0xff]  ;;  %v13356_v31 = vld [vmem:[#allocation416_spill] sm:$0xff]  ;;  %v8622_v2 = vsel %vm2222_vm3, %v13362_v47, %v13361_v15  ;;  %v13364_v40 = vld [vmem:[#allocation67_spill] sm:$0xff] }
 0x415   : > { %v8607_v9 = vsel %vm2222_vm3, %v13353_v6, %v13352_v28  ;;  %v8612_v54 = vsel %vm2222_vm3, %v13356_v31, %v13355_v35  ;;  %v13359_v37 = vld [vmem:[#allocation417_spill] sm:$0xff]  ;;  %13363 = vst [vmem:[#allocation114_spill] sm:$0xff] %v8622_v2  ;;  %v8627_v28 = vsel %vm2222_vm3, %v13365_v24, %v13364_v40  ;;  %v13367_v6 = vld [vmem:[#allocation183_spill] sm:$0xff]  ;;  %v13370_v31 = vld [vmem:[#allocation74_spill] sm:$0xff] }
 0x416   : > { %13354 = vst [vmem:[#allocation113_spill] sm:$0xff] %v8607_v9  ;;  %13357 = vst [vmem:[#allocation127_spill] sm:$0xff] %v8612_v54  ;;  %v8617_v1 = vsel %vm2222_vm3, %v13359_v37, %v13358_v38  ;;  %v13368_v9 = vld [vmem:[#allocation424_spill] sm:$0xff]  ;;  %1924 = vrot.lane.b32.xlu1 %v13370_v31, %s5442_s22  ;;  %v13371_v38 = vld [vmem:[#allocation75_spill] sm:$0xff] }
 0x417   : > { %13360 = vst [vmem:[#allocation63_spill] sm:$0xff] %v8617_v1  ;;  %13366 = vst [vmem:[#allocation115_spill] sm:$0xff] %v8627_v28  ;;  %v8632_v35 = vsel %vm2222_vm3, %v13368_v9, %v13367_v6  ;;  %1926 = vrot.lane.b32.xlu0 %v13371_v38, %s5442_s22  ;;  %v13372_v37 = vld [vmem:[#allocation68_spill] sm:$0xff]  ;;  %v13373_v47 = vld [vmem:[#allocation425_spill] sm:$0xff] }
 0x418   : > { %13369 = vst [vmem:[#allocation116_spill] sm:$0xff] %v8632_v35  ;;  %v8641_v15 = vsel %vm2222_vm3, %v13373_v47, %v13372_v37  ;;  %v13375_v2 = vld [vmem:[#allocation71_spill] sm:$0xff]  ;;  %v13376_v24 = vld [vmem:[#allocation428_spill] sm:$0xff]  ;;  %v13379_v9 = vld [vmem:[#allocation429_spill] sm:$0xff] }
 0x419   : > { %13374 = vst [vmem:[#allocation117_spill] sm:$0xff] %v8641_v15  ;;  %v8646_v40 = vsel %vm2222_vm3, %v13376_v24, %v13375_v2  ;;  %v13378_v28 = vld [vmem:[#allocation76_spill] sm:$0xff]  ;;  %v13381_v35 = vld [vmem:[#allocation186_spill] sm:$0xff]  ;;  %v13384_v38 = vld [vmem:[#allocation77_spill] sm:$0xff] }
 0x41a   : > { %13377 = vst [vmem:[#allocation118_spill] sm:$0xff] %v8646_v40  ;;  %v8651_v6 = vsel %vm2222_vm3, %v13379_v9, %v13378_v28  ;;  %v13382_v31 = vld [vmem:[#allocation432_spill] sm:$0xff]  ;;  %v13385_v54 = vld [vmem:[#allocation433_spill] sm:$0xff] }
 0x41b   : > { %13380 = vst [vmem:[#allocation119_spill] sm:$0xff] %v8651_v6  ;;  %v8656_v1 = vsel %vm2222_vm3, %v13382_v31, %v13381_v35  ;;  %v8661_v37 = vsel %vm2222_vm3, %v13385_v54, %v13384_v38  ;;  %v13386_v47 = vld [vmem:[#allocation80_spill] sm:$0xff]  ;;  %v13389_v24 = vld [vmem:[#allocation85_spill] sm:$0xff]  ;;  %v8678_v31 = vpop.permute.xlu1 %1868  ;;  %v13395_v54 = vld [vmem:[#allocation86_spill] sm:$0xff] }
 0x41c   : > { %13383 = vst [vmem:[#allocation120_spill] sm:$0xff] %v8656_v1  ;;  %v13387_v15 = vld [vmem:[#allocation436_spill] sm:$0xff]  ;;  %v13390_v40 = vld [vmem:[#allocation437_spill] sm:$0xff]  ;;  %13393 = vst [vmem:[#allocation122_spill] sm:$0xff] %v8678_v31  ;;  %v8680_v1 = vpop.permute.xlu0 %1870  ;;  %v8685_v38 = vsel %vm2222_vm3, %v8043_v14, %v13395_v54 }
 0x41d   : > { %v8666_v2 = vsel %vm2222_vm3, %v13387_v15, %v13386_v47  ;;  %v8671_v28 = vsel %vm2222_vm3, %v13390_v40, %v13389_v24  ;;  %v13391_v9 = vld [vmem:[#allocation189_spill] sm:$0xff]  ;;  %v13392_v6 = vld [vmem:[#allocation440_spill] sm:$0xff]  ;;  %13394 = vst [vmem:[#allocation125_spill] sm:$0xff] %v8680_v1  ;;  %v13397_v47 = vld [vmem:[#allocation443_spill] sm:$0xff] }
 0x41e   : > { %13388 = vst [vmem:[#allocation121_spill] sm:$0xff] %v8666_v2  ;;  %v8676_v35 = vsel %vm2222_vm3, %v13392_v6, %v13391_v9  ;;  %v13396_v15 = vld [vmem:[#allocation89_spill] sm:$0xff]  ;;  %v13398_v40 = vld [vmem:[#allocation94_spill] sm:$0xff]  ;;  %v13399_v6 = vld [vmem:[#allocation192_spill] sm:$0xff] }
 0x41f   : > { %v8690_v2 = vsel %vm2222_vm3, %v13397_v47, %v13396_v15  ;;  %v8695_v24 = vsel %vm2222_vm3, %v8057_v29, %v13398_v40  ;;  %v8700_v9 = vsel %vm2222_vm3, %v8066_v11, %v13399_v6  ;;  %v13401_v1 = vld [vmem:[#allocation95_spill] sm:$0xff]  ;;  %v13403_v15 = vld [vmem:[#allocation198_spill] sm:$0xff]  ;;  %v13404_v29 = vld [vmem:[#allocation132_spill] sm:$0xff] }
 0x420   : > { %13400 = vst [vmem:[#allocation126_spill] sm:$0xff] %v8700_v9  ;;  %v8704_v31 = vsel %vm2288_vm4, %v2223_v16, %v13401_v1  ;;  %v13402_v14 = vld [vmem:[#allocation195_spill] sm:$0xff]  ;;  %v8714_v47 = vsel %vm2288_vm4, %v8351_v34, %v13403_v15  ;;  %2055 = vrot.lane.b32.xlu1 %v13404_v29, %s5443_s29  ;;  %v13405_v11 = vld [vmem:[#allocation185_spill] sm:$0xff]  ;;  %v13408_v6 = vld [vmem:[#allocation202_spill] sm:$0xff] }
 0x421   : > { %v8709_v54 = vsel %vm2288_vm4, %v8356_v57, %v13402_v14  ;;  %2119 = vrot.lane.b32.xlu0 %v13405_v11, %s5443_s29  ;;  %v13406_v40 = vld [vmem:[#allocation199_spill] sm:$0xff]  ;;  %v8733_v34 = vsel %vm2288_vm4, %v8371_v36, %v13408_v6  ;;  %v13409_v14 = vld [vmem:[#allocation204_spill] sm:$0xff]  ;;  %v13410_v29 = vld [vmem:[#allocation205_spill] sm:$0xff]  ;;  %v8760_v6 = vpop.permute.xlu1 %1872 }
 0x422   : > { %v8723_v16 = vsel %vm2288_vm4, %v8361_v8, %v13406_v40  ;;  %v13407_v1 = vld [vmem:[#allocation103_spill] sm:$0xff]  ;;  %v8738_v15 = vsel %vm2288_vm4, %v8376_v17, %v13409_v14  ;;  %v8743_v8 = vsel %vm2288_vm4, %v8381_v20, %v13410_v29  ;;  %v13412_v40 = vld [vmem:[#allocation208_spill] sm:$0xff]  ;;  %13414 = vst [vmem:[#allocation129_spill] sm:$0xff] %v8760_v6  ;;  %v8762_v14 = vpop.permute.xlu0 %1874  ;;  %v13491_v6 = vld [vmem:[#allocation117_spill] sm:$0xff] }
 0x423   : > { %v8728_v57 = vsel %vm2288_vm4, %v8366_v21, %v13407_v1  ;;  %v13411_v11 = vld [vmem:[#allocation207_spill] sm:$0xff]  ;;  %v8753_v36 = vsel %vm2288_vm4, %v8395_v18, %v13412_v40  ;;  %13415 = vst [vmem:[#allocation130_spill] sm:$0xff] %v8762_v14  ;;  %v13416_v20 = vld [vmem:[#allocation212_spill] sm:$0xff] }
 0x424   : > { %v8748_v21 = vsel %vm2288_vm4, %v8390_v0, %v13411_v11  ;;  %v13413_v1 = vld [vmem:[#allocation211_spill] sm:$0xff]  ;;  %v8767_v29 = vsel %vm2288_vm4, %v8405_v63, %v13416_v20  ;;  %v13418_v18 = vld [vmem:[#allocation216_spill] sm:$0xff] }
 0x425   : > { %v8758_v17 = vsel %vm2288_vm4, %v8400_v10, %v13413_v1  ;;  %v13417_v0 = vld [vmem:[#allocation215_spill] sm:$0xff]  ;;  %v8777_v40 = vsel %vm2288_vm4, %v8415_v19, %v13418_v18  ;;  %v13420_v9 = vld [vmem:[#allocation220_spill] sm:$0xff] }
 0x426   : > { %v8772_v11 = vsel %vm2288_vm4, %v8410_v59, %v13417_v0  ;;  %v13419_v10 = vld [vmem:[#allocation219_spill] sm:$0xff]  ;;  %v8787_v63 = vsel %vm2288_vm4, %v8425_v4, %v13420_v9  ;;  %v13422_v0 = vld [vmem:[#allocation224_spill] sm:$0xff]  ;;  %v8845_v14 = vpop.permute.xlu0 %1878 }
 0x427   : > { %v8782_v1 = vsel %vm2288_vm4, %v8420_v42, %v13419_v10  ;;  %v13421_v20 = vld [vmem:[#allocation223_spill] sm:$0xff]  ;;  %v8797_v19 = vsel %vm2288_vm4, %v8439_v62, %v13422_v0  ;;  %v13424_v42 = vld [vmem:[#allocation72_spill] sm:$0xff]  ;;  %13439 = vst [vmem:[#allocation141_spill] sm:$0xff] %v8845_v14 }
 0x428   : > { %v8792_v59 = vsel %vm2288_vm4, %v8434_v50, %v13421_v20  ;;  %v13423_v18 = vld [vmem:[#allocation135_spill] sm:$0xff]  ;;  %2121 = vrot.lane.b32.xlu0 %v13424_v42, %s5443_s29  ;;  %v13426_v9 = vld [vmem:[#allocation228_spill] sm:$0xff] }
 0x429   : > { %2057 = vrot.lane.b32.xlu1 %v13423_v18, %s5443_s29  ;;  %v13425_v10 = vld [vmem:[#allocation227_spill] sm:$0xff]  ;;  %v8811_v50 = vsel %vm2288_vm4, %v8449_v49, %v13426_v9  ;;  %v13428_v0 = vld [vmem:[#allocation232_spill] sm:$0xff] }
 0x42a   : > { %v8806_v4 = vsel %vm2288_vm4, %v8444_v32, %v13425_v10  ;;  %v13427_v20 = vld [vmem:[#allocation231_spill] sm:$0xff]  ;;  %v8821_v18 = vsel %vm2288_vm4, %v8459_v48, %v13428_v0  ;;  %v13432_v10 = vld [vmem:[#allocation236_spill] sm:$0xff]  ;;  %v8843_v0 = vpop.permute.xlu1 %1876 }
 0x42b   : > { %v8816_v62 = vsel %vm2288_vm4, %v8454_v3, %v13427_v20  ;;  %13429 = vst [vmem:[#allocation133_spill] sm:$0xff] %v8821_v18  ;;  %v13430_v42 = vld [vmem:[#allocation235_spill] sm:$0xff]  ;;  %v8831_v49 = vsel %vm2288_vm4, %v8473_v39, %v13432_v10  ;;  %v13436_v20 = vld [vmem:[#allocation240_spill] sm:$0xff]  ;;  %13438 = vst [vmem:[#allocation138_spill] sm:$0xff] %v8843_v0 }
 0x42c   : > { %v8826_v32 = vsel %vm2288_vm4, %v8464_v5, %v13430_v42  ;;  %13433 = vst [vmem:[#allocation128_spill] sm:$0xff] %v8831_v49  ;;  %v13434_v9 = vld [vmem:[#allocation239_spill] sm:$0xff]  ;;  %v8841_v48 = vsel %vm2288_vm4, %v8483_v56, %v13436_v20  ;;  %v13442_v39 = vld [vmem:[#allocation244_spill] sm:$0xff] }
 0x42d   : > { %13431 = vst [vmem:[#allocation134_spill] sm:$0xff] %v8826_v32  ;;  %v8836_v3 = vsel %vm2288_vm4, %v8478_v26, %v13434_v9  ;;  %13437 = vst [vmem:[#allocation137_spill] sm:$0xff] %v8841_v48  ;;  %v13440_v5 = vld [vmem:[#allocation243_spill] sm:$0xff]  ;;  %v8855_v10 = vsel %vm2288_vm4, %v8493_v53, %v13442_v39  ;;  %v13446_v56 = vld [vmem:[#allocation248_spill] sm:$0xff] }
 0x42e   : > { %13435 = vst [vmem:[#allocation64_spill] sm:$0xff] %v8836_v3  ;;  %v8850_v42 = vsel %vm2288_vm4, %v8488_v43, %v13440_v5  ;;  %13443 = vst [vmem:[#allocation145_spill] sm:$0xff] %v8855_v10  ;;  %v13444_v26 = vld [vmem:[#allocation247_spill] sm:$0xff]  ;;  %v8865_v20 = vsel %vm2288_vm4, %v8503_v46, %v13446_v56  ;;  %v13448_v5 = vld [vmem:[#allocation252_spill] sm:$0xff] }
 0x42f   : > { %13441 = vst [vmem:[#allocation142_spill] sm:$0xff] %v8850_v42  ;;  %v8860_v9 = vsel %vm2288_vm4, %v8498_v13, %v13444_v26  ;;  %v13447_v48 = vld [vmem:[#allocation251_spill] sm:$0xff]  ;;  %v8875_v53 = vsel %vm2288_vm4, %v8517_v45, %v13448_v5  ;;  %v13450_v26 = vld [vmem:[#allocation78_spill] sm:$0xff]  ;;  %v13452_v56 = vld [vmem:[#allocation256_spill] sm:$0xff] }
 0x430   : > { %13445 = vst [vmem:[#allocation146_spill] sm:$0xff] %v8860_v9  ;;  %v8870_v43 = vsel %vm2288_vm4, %v8508_v25, %v13447_v48  ;;  %v13449_v39 = vld [vmem:[#allocation255_spill] sm:$0xff]  ;;  %1928 = vrot.lane.b32.xlu1 %v13450_v26, %s5442_s22  ;;  %v8889_v25 = vsel %vm2288_vm4, %v8527_v7, %v13452_v56  ;;  %v13453_v48 = vld [vmem:[#allocation258_spill] sm:$0xff]  ;;  %v8928_v9 = vpop.permute.xlu0 %1882  ;;  %v13484_v14 = vld [vmem:[#allocation276_spill] sm:$0xff] }
 0x431   : > { %v8880_v13 = vsel %vm2288_vm4, %v8522_v23, %v13449_v39  ;;  %v13451_v46 = vld [vmem:[#allocation79_spill] sm:$0xff]  ;;  %v8894_v45 = vsel %vm2288_vm4, %v8532_v55, %v13453_v48  ;;  %v13455_v39 = vld [vmem:[#allocation261_spill] sm:$0xff]  ;;  %v13458_v48 = vld [vmem:[#allocation264_spill] sm:$0xff]  ;;  %13461 = vst [vmem:[#allocation150_spill] sm:$0xff] %v8928_v9 }
 0x432   : > { %1930 = vrot.lane.b32.xlu0 %v13451_v46, %s5442_s22  ;;  %v13454_v5 = vld [vmem:[#allocation259_spill] sm:$0xff]  ;;  %v8904_v26 = vsel %vm2288_vm4, %v8544_v22, %v13455_v39  ;;  %v13456_v46 = vld [vmem:[#allocation262_spill] sm:$0xff]  ;;  %v8926_v39 = vpop.permute.xlu1 %1880  ;;  %v13471_v9 = vld [vmem:[#allocation113_spill] sm:$0xff] }
 0x433   : > { %v8899_v23 = vsel %vm2288_vm4, %v8539_v60, %v13454_v5  ;;  %v8909_v7 = vsel %vm2288_vm4, %v8549_v58, %v13456_v46  ;;  %v13457_v56 = vld [vmem:[#allocation263_spill] sm:$0xff]  ;;  %v8919_v60 = vsel %vm2288_vm4, %v8563_v41, %v13458_v48  ;;  %v13459_v5 = vld [vmem:[#allocation265_spill] sm:$0xff]  ;;  %13460 = vst [vmem:[#allocation149_spill] sm:$0xff] %v8926_v39  ;;  %v13462_v58 = vld [vmem:[#allocation266_spill] sm:$0xff] }
 0x434   : > { %v8914_v55 = vsel %vm2288_vm4, %v8558_v30, %v13457_v56  ;;  %v8924_v22 = vsel %vm2288_vm4, %v8568_v44, %v13459_v5  ;;  %v8933_v46 = vsel %vm2288_vm4, %v8573_v12, %v13462_v58  ;;  %v13463_v30 = vld [vmem:[#allocation267_spill] sm:$0xff]  ;;  %v13464_v41 = vld [vmem:[#allocation268_spill] sm:$0xff]  ;;  %v13465_v44 = vld [vmem:[#allocation269_spill] sm:$0xff] }
 0x435   : > { %v8938_v56 = vsel %vm2288_vm4, %v8578_v51, %v13463_v30  ;;  %v8943_v48 = vsel %vm2288_vm4, %v8583_v52, %v13464_v41  ;;  %v8948_v5 = vsel %vm2288_vm4, %v8588_v61, %v13465_v44  ;;  %v13466_v10 = vld [vmem:[#allocation270_spill] sm:$0xff]  ;;  %v13468_v58 = vld [vmem:[#allocation271_spill] sm:$0xff]  ;;  %v13470_v30 = vld [vmem:[#allocation272_spill] sm:$0xff] }
 0x436   : > { %v8953_v12 = vsel %vm2288_vm4, %v8593_v27, %v13466_v10  ;;  %v8958_v51 = vsel %vm2288_vm4, %v8602_v33, %v13468_v58  ;;  %v8963_v52 = vsel %vm2288_vm4, %v13471_v9, %v13470_v30  ;;  %v13473_v41 = vld [vmem:[#allocation136_spill] sm:$0xff]  ;;  %v13474_v61 = vld [vmem:[#allocation73_spill] sm:$0xff]  ;;  %v13476_v27 = vld [vmem:[#allocation127_spill] sm:$0xff] }
 0x437   : > { %13467 = vst [vmem:[#allocation153_spill] sm:$0xff] %v8953_v12  ;;  %13469 = vst [vmem:[#allocation154_spill] sm:$0xff] %v8958_v51  ;;  %2059 = vrot.lane.b32.xlu1 %v13473_v41, %s5443_s29  ;;  %2123 = vrot.lane.b32.xlu0 %v13474_v61, %s5443_s29  ;;  %v13475_v44 = vld [vmem:[#allocation273_spill] sm:$0xff]  ;;  %v13478_v42 = vld [vmem:[#allocation274_spill] sm:$0xff] }
 0x438   : > { %13472 = vst [vmem:[#allocation157_spill] sm:$0xff] %v8963_v52  ;;  %v8972_v10 = vsel %vm2288_vm4, %v13476_v27, %v13475_v44  ;;  %v13479_v33 = vld [vmem:[#allocation63_spill] sm:$0xff]  ;;  %v13482_v9 = vld [vmem:[#allocation114_spill] sm:$0xff]  ;;  %v13487_v61 = vld [vmem:[#allocation277_spill] sm:$0xff] }
 0x439   : > { %13477 = vst [vmem:[#allocation158_spill] sm:$0xff] %v8972_v10  ;;  %v8977_v58 = vsel %vm2288_vm4, %v13479_v33, %v13478_v42  ;;  %v13481_v39 = vld [vmem:[#allocation275_spill] sm:$0xff]  ;;  %v13488_v3 = vld [vmem:[#allocation116_spill] sm:$0xff]  ;;  %v13490_v27 = vld [vmem:[#allocation278_spill] sm:$0xff] }
 0x43a   : > { %13480 = vst [vmem:[#allocation96_spill] sm:$0xff] %v8977_v58  ;;  %v8982_v30 = vsel %vm2288_vm4, %v13482_v9, %v13481_v39  ;;  %v13485_v41 = vld [vmem:[#allocation115_spill] sm:$0xff]  ;;  %v8992_v44 = vsel %vm2288_vm4, %v13488_v3, %v13487_v61  ;;  %v8997_v42 = vsel %vm2288_vm4, %v13491_v6, %v13490_v27  ;;  %v13494_v58 = vld [vmem:[#allocation118_spill] sm:$0xff]  ;;  %v13496_v9 = vld [vmem:[#allocation280_spill] sm:$0xff] }
 0x43b   : > { %13483 = vst [vmem:[#allocation161_spill] sm:$0xff] %v8982_v30  ;;  %v8987_v0 = vsel %vm2288_vm4, %v13485_v41, %v13484_v14  ;;  %13489 = vst [vmem:[#allocation165_spill] sm:$0xff] %v8992_v44  ;;  %v13493_v33 = vld [vmem:[#allocation279_spill] sm:$0xff]  ;;  %v9009_v41 = vpop.permute.xlu1 %1884  ;;  %v13501_v3 = vld [vmem:[#allocation281_spill] sm:$0xff] }
 0x43c   : > { %13486 = vst [vmem:[#allocation162_spill] sm:$0xff] %v8987_v0  ;;  %13492 = vst [vmem:[#allocation131_spill] sm:$0xff] %v8997_v42  ;;  %v9002_v39 = vsel %vm2288_vm4, %v13494_v58, %v13493_v33  ;;  %v13497_v30 = vld [vmem:[#allocation119_spill] sm:$0xff]  ;;  %v9011_v0 = vpop.permute.xlu0 %1886  ;;  %v13502_v61 = vld [vmem:[#allocation120_spill] sm:$0xff] }
 0x43d   : > { %13495 = vst [vmem:[#allocation184_spill] sm:$0xff] %v9002_v39  ;;  %v9007_v14 = vsel %vm2288_vm4, %v13497_v30, %v13496_v9  ;;  %13499 = vst [vmem:[#allocation169_spill] sm:$0xff] %v9009_v41  ;;  %v9016_v44 = vsel %vm2288_vm4, %v13502_v61, %v13501_v3  ;;  %v13504_v6 = vld [vmem:[#allocation282_spill] sm:$0xff]  ;;  %v13506_v58 = vld [vmem:[#allocation283_spill] sm:$0xff] }
 0x43e   : > { %13498 = vst [vmem:[#allocation166_spill] sm:$0xff] %v9007_v14  ;;  %13500 = vst [vmem:[#allocation170_spill] sm:$0xff] %v9011_v0  ;;  %v9021_v27 = vsel %vm2288_vm4, %v8661_v37, %v13504_v6  ;;  %v13507_v33 = vld [vmem:[#allocation121_spill] sm:$0xff]  ;;  %v13509_v30 = vld [vmem:[#allocation284_spill] sm:$0xff] }
 0x43f   : > { %13503 = vst [vmem:[#allocation173_spill] sm:$0xff] %v9016_v44  ;;  %13505 = vst [vmem:[#allocation401_spill] sm:$0xff] %v9021_v27  ;;  %v9026_v39 = vsel %vm2288_vm4, %v13507_v33, %v13506_v58  ;;  %v9031_v9 = vsel %vm2288_vm4, %v8671_v28, %v13509_v30  ;;  %v13511_v0 = vld [vmem:[#allocation285_spill] sm:$0xff]  ;;  %v13513_v61 = vld [vmem:[#allocation286_spill] sm:$0xff] }
 0x440   : > { %13508 = vst [vmem:[#allocation174_spill] sm:$0xff] %v9026_v39  ;;  %13510 = vst [vmem:[#allocation404_spill] sm:$0xff] %v9031_v9  ;;  %v9036_v3 = vsel %vm2288_vm4, %v8676_v35, %v13511_v0  ;;  %v9041_v37 = vsel %vm2288_vm4, %v8685_v38, %v13513_v61  ;;  %v13515_v6 = vld [vmem:[#allocation287_spill] sm:$0xff]  ;;  %v13519_v30 = vld [vmem:[#allocation288_spill] sm:$0xff] }
 0x441   : > { %13512 = vst [vmem:[#allocation49_spill] sm:$0xff] %v9036_v3  ;;  %13514 = vst [vmem:[#allocation405_spill] sm:$0xff] %v9041_v37  ;;  %v9046_v58 = vsel %vm2288_vm4, %v8690_v2, %v13515_v6  ;;  %v13517_v33 = vld [vmem:[#allocation139_spill] sm:$0xff]  ;;  %v9055_v35 = vsel %vm2288_vm4, %v8695_v24, %v13519_v30  ;;  %v13521_v0 = vld [vmem:[#allocation290_spill] sm:$0xff]  ;;  %v9094_v37 = vpop.permute.xlu0 %1890 }
 0x442   : > { %13516 = vst [vmem:[#allocation177_spill] sm:$0xff] %v9046_v58  ;;  %2061 = vrot.lane.b32.xlu1 %v13517_v33, %s5443_s29  ;;  %v13518_v28 = vld [vmem:[#allocation187_spill] sm:$0xff]  ;;  %13520 = vst [vmem:[#allocation408_spill] sm:$0xff] %v9055_v35  ;;  %v9060_v38 = vsel %vm2354_vm5, %v8704_v31, %v13521_v0  ;;  %v9065_v2 = vsel %vm2354_vm5, %v8709_v54, %v13521_v0  ;;  %v13523_v33 = vld [vmem:[#allocation292_spill] sm:$0xff]  ;;  %v9092_v58 = vpop.permute.xlu1 %1888 }
 0x443   : > { %2125 = vrot.lane.b32.xlu0 %v13518_v28, %s5443_s29  ;;  %v13522_v61 = vld [vmem:[#allocation291_spill] sm:$0xff]  ;;  %v9080_v28 = vsel %vm2354_vm5, %v8704_v31, %v13523_v33  ;;  %v9085_v30 = vsel %vm2354_vm5, %v8723_v16, %v13523_v33  ;;  %v13524_v0 = vld [vmem:[#allocation293_spill] sm:$0xff]  ;;  %13525 = vst [vmem:[#allocation50_spill] sm:$0xff] %v9092_v58  ;;  %13526 = vst [vmem:[#allocation409_spill] sm:$0xff] %v9094_v37 }
 0x444   : > { %v9070_v6 = vsel %vm2354_vm5, %v8704_v31, %v13522_v61  ;;  %v9075_v24 = vsel %vm2354_vm5, %v8714_v47, %v13522_v61  ;;  %v9090_v35 = vsel %vm2354_vm5, %v8704_v31, %v13524_v0  ;;  %v9099_v61 = vsel %vm2354_vm5, %v8728_v57, %v13524_v0  ;;  %v13527_v3 = vld [vmem:[#allocation294_spill] sm:$0xff]  ;;  %v13528_v31 = vld [vmem:[#allocation295_spill] sm:$0xff]  ;;  %v13529_v37 = vld [vmem:[#allocation296_spill] sm:$0xff] }
 0x445   : > { %v9104_v9 = vsel %vm2354_vm5, %v8709_v54, %v13527_v3  ;;  %v9109_v33 = vsel %vm2354_vm5, %v8733_v34, %v13527_v3  ;;  %v9114_v58 = vsel %vm2354_vm5, %v8714_v47, %v13528_v31  ;;  %v9119_v0 = vsel %vm2354_vm5, %v8738_v15, %v13528_v31  ;;  %v13530_v41 = vld [vmem:[#allocation83_spill] sm:$0xff]  ;;  %v13531_v47 = vld [vmem:[#allocation84_spill] sm:$0xff]  ;;  %v13532_v39 = vld [vmem:[#allocation14_spill] sm:$0xff]  ;;  %v9177_v42 = vpop.permute.xlu0 %1894 }
 0x446   : > { %v9124_v54 = vsel %vm2354_vm5, %v8723_v16, %v13529_v37  ;;  %v9129_v3 = vsel %vm2354_vm5, %v8743_v8, %v13529_v37  ;;  %1932 = vrot.lane.b32.xlu1 %v13530_v41, %s5442_s22  ;;  %v9138_v31 = vsel %vm2354_vm5, %v8728_v57, %v13532_v39  ;;  %v9143_v16 = vsel %vm2354_vm5, %v8748_v21, %v13532_v39  ;;  %v13533_v27 = vld [vmem:[#allocation297_spill] sm:$0xff]  ;;  %v13535_v44 = vld [vmem:[#allocation15_spill] sm:$0xff]  ;;  %v9175_v14 = vpop.permute.xlu1 %1892 }
 0x447   : > { %1934 = vrot.lane.b32.xlu0 %v13531_v47, %s5442_s22  ;;  %v9148_v37 = vsel %vm2354_vm5, %v8733_v34, %v13533_v27  ;;  %v9153_v41 = vsel %vm2354_vm5, %v8753_v36, %v13533_v27  ;;  %v13534_v47 = vld [vmem:[#allocation13_spill] sm:$0xff]  ;;  %v9168_v34 = vsel %vm2354_vm5, %v8743_v8, %v13535_v44  ;;  %v9173_v27 = vsel %vm2354_vm5, %v8767_v29, %v13535_v44 }
 0x448   : > { %v9158_v57 = vsel %vm2354_vm5, %v8738_v15, %v13534_v47  ;;  %v9163_v39 = vsel %vm2354_vm5, %v8758_v17, %v13534_v47  ;;  %13536 = vst [vmem:[#allocation53_spill] sm:$0xff] %v9175_v14  ;;  %13537 = vst [vmem:[#allocation412_spill] sm:$0xff] %v9177_v42  ;;  %v13538_v15 = vld [vmem:[#allocation16_spill] sm:$0xff]  ;;  %v13539_v8 = vld [vmem:[#allocation17_spill] sm:$0xff] }
 0x449   : > { %v9182_v10 = vsel %vm2354_vm5, %v8748_v21, %v13538_v15  ;;  %v9187_v47 = vsel %vm2354_vm5, %v8772_v11, %v13538_v15  ;;  %v9192_v52 = vsel %vm2354_vm5, %v8753_v36, %v13539_v8  ;;  %v9197_v44 = vsel %vm2354_vm5, %v8777_v40, %v13539_v8  ;;  %v13541_v42 = vld [vmem:[#allocation18_spill] sm:$0xff]  ;;  %v13543_v14 = vld [vmem:[#allocation19_spill] sm:$0xff]  ;;  %v13546_v8 = vld [vmem:[#allocation188_spill] sm:$0xff] }
 0x44a   : > { %13540 = vst [vmem:[#allocation58_spill] sm:$0xff] %v9192_v52  ;;  %v9202_v21 = vsel %vm2354_vm5, %v8758_v17, %v13541_v42  ;;  %v9207_v15 = vsel %vm2354_vm5, %v8782_v1, %v13541_v42  ;;  %v9212_v36 = vsel %vm2354_vm5, %v8767_v29, %v13543_v14  ;;  %v13545_v52 = vld [vmem:[#allocation140_spill] sm:$0xff]  ;;  %v9221_v17 = vsel %vm2354_vm5, %v8787_v63, %v13543_v14 }
 0x44b   : > { %13542 = vst [vmem:[#allocation413_spill] sm:$0xff] %v9202_v21  ;;  %13544 = vst [vmem:[#allocation180_spill] sm:$0xff] %v9212_v36  ;;  %2063 = vrot.lane.b32.xlu1 %v13545_v52, %s5443_s29  ;;  %2127 = vrot.lane.b32.xlu0 %v13546_v8, %s5443_s29  ;;  %v13548_v21 = vld [vmem:[#allocation20_spill] sm:$0xff]  ;;  %v13550_v36 = vld [vmem:[#allocation21_spill] sm:$0xff] }
 0x44c   : > { %13547 = vst [vmem:[#allocation416_spill] sm:$0xff] %v9221_v17  ;;  %v9226_v42 = vsel %vm2354_vm5, %v8772_v11, %v13548_v21  ;;  %v9231_v29 = vsel %vm2354_vm5, %v8792_v59, %v13548_v21  ;;  %v9236_v52 = vsel %vm2354_vm5, %v8777_v40, %v13550_v36  ;;  %v9241_v14 = vsel %vm2354_vm5, %v8797_v19, %v13550_v36  ;;  %v13553_v8 = vld [vmem:[#allocation22_spill] sm:$0xff]  ;;  %v9260_v17 = vpop.permute.xlu0 %1898 }
 0x44d   : > { %13549 = vst [vmem:[#allocation59_spill] sm:$0xff] %v9231_v29  ;;  %13551 = vst [vmem:[#allocation417_spill] sm:$0xff] %v9236_v52  ;;  %v9246_v11 = vsel %vm2354_vm5, %v8782_v1, %v13553_v8  ;;  %v9251_v21 = vsel %vm2354_vm5, %v8806_v4, %v13553_v8  ;;  %v13556_v29 = vld [vmem:[#allocation23_spill] sm:$0xff]  ;;  %v9258_v52 = vpop.permute.xlu1 %1896  ;;  %v13561_v1 = vld [vmem:[#allocation24_spill] sm:$0xff] }
 0x44e   : > { %13552 = vst [vmem:[#allocation62_spill] sm:$0xff] %v9241_v14  ;;  %13554 = vst [vmem:[#allocation420_spill] sm:$0xff] %v9246_v11  ;;  %v9256_v40 = vsel %vm2354_vm5, %v8787_v63, %v13556_v29  ;;  %v9265_v36 = vsel %vm2354_vm5, %v8811_v50, %v13556_v29  ;;  %v9270_v11 = vsel %vm2354_vm5, %v8792_v59, %v13561_v1  ;;  %v13564_v63 = vld [vmem:[#allocation25_spill] sm:$0xff]  ;;  %v13590_v14 = vld [vmem:[#allocation298_spill] sm:$0xff] }
 0x44f   : > { %13555 = vst [vmem:[#allocation67_spill] sm:$0xff] %v9251_v21  ;;  %13557 = vst [vmem:[#allocation421_spill] sm:$0xff] %v9256_v40  ;;  %v9275_v8 = vsel %vm2354_vm5, %v8816_v62, %v13561_v1  ;;  %v9280_v40 = vsel %vm2354_vm5, %v8797_v19, %v13564_v63  ;;  %v9285_v29 = vsel %vm2354_vm5, %v8821_v18, %v13564_v63  ;;  %v13571_v19 = vld [vmem:[#allocation81_spill] sm:$0xff] }
 0x450   : > { %13558 = vst [vmem:[#allocation183_spill] sm:$0xff] %v9258_v52  ;;  %13559 = vst [vmem:[#allocation424_spill] sm:$0xff] %v9260_v17  ;;  %2129 = vrot.lane.b32.xlu0 %v13571_v19, %s5443_s29  ;;  %v13578_v19 = vld [vmem:[#allocation34_spill] sm:$0xff]  ;;  %v13589_v21 = vld [vmem:[#allocation41_spill] sm:$0xff] }
 0x451   : > { %13560 = vst [vmem:[#allocation74_spill] sm:$0xff] %v9265_v36  ;;  %13562 = vst [vmem:[#allocation75_spill] sm:$0xff] %v9270_v11  ;;  %v13567_v36 = vld [vmem:[#allocation26_spill] sm:$0xff]  ;;  %v13587_v11 = vld [vmem:[#allocation87_spill] sm:$0xff] }
 0x452   : > { %13563 = vst [vmem:[#allocation68_spill] sm:$0xff] %v9275_v8  ;;  %13565 = vst [vmem:[#allocation425_spill] sm:$0xff] %v9280_v40  ;;  %v9290_v59 = vsel %vm2354_vm5, %v8806_v4, %v13567_v36  ;;  %v9295_v1 = vsel %vm2354_vm5, %v8826_v32, %v13567_v36  ;;  %v13570_v8 = vld [vmem:[#allocation143_spill] sm:$0xff]  ;;  %v13577_v32 = vld [vmem:[#allocation33_spill] sm:$0xff] }
 0x453   : > { %13566 = vst [vmem:[#allocation71_spill] sm:$0xff] %v9285_v29  ;;  %13568 = vst [vmem:[#allocation428_spill] sm:$0xff] %v9290_v59  ;;  %2065 = vrot.lane.b32.xlu1 %v13570_v8, %s5443_s29  ;;  %v13572_v40 = vld [vmem:[#allocation27_spill] sm:$0xff]  ;;  %v13575_v59 = vld [vmem:[#allocation28_spill] sm:$0xff]  ;;  %v9319_v8 = vsel %vm2354_vm5, %v8865_v20, %v13577_v32 }
 0x454   : > { %13569 = vst [vmem:[#allocation76_spill] sm:$0xff] %v9295_v1  ;;  %v9304_v63 = vsel %vm2354_vm5, %v8811_v50, %v13572_v40  ;;  %v9309_v4 = vsel %vm2354_vm5, %v8831_v49, %v13572_v40  ;;  %v9314_v36 = vsel %vm2354_vm5, %v8816_v62, %v13575_v59  ;;  %v9324_v50 = vsel %vm2354_vm5, %v8870_v43, %v13578_v19  ;;  %v13581_v49 = vld [vmem:[#allocation37_spill] sm:$0xff]  ;;  %v9343_v1 = vpop.permute.xlu0 %1902  ;;  %v13586_v59 = vld [vmem:[#allocation40_spill] sm:$0xff] }
 0x455   : > { %13573 = vst [vmem:[#allocation429_spill] sm:$0xff] %v9304_v63  ;;  %13574 = vst [vmem:[#allocation186_spill] sm:$0xff] %v9309_v4  ;;  %v13579_v63 = vld [vmem:[#allocation35_spill] sm:$0xff]  ;;  %v13580_v4 = vld [vmem:[#allocation36_spill] sm:$0xff]  ;;  %v9339_v32 = vsel %vm2354_vm5, %v8865_v20, %v13581_v49  ;;  %v9348_v19 = vsel %vm2354_vm5, %v8889_v25, %v13581_v49 }
 0x456   : > { %13576 = vst [vmem:[#allocation432_spill] sm:$0xff] %v9314_v36  ;;  %v9329_v40 = vsel %vm2354_vm5, %v8875_v53, %v13579_v63  ;;  %v9334_v62 = vsel %vm2354_vm5, %v8880_v13, %v13580_v4  ;;  %v9341_v36 = vpop.permute.xlu1 %1900  ;;  %13583 = vst [vmem:[#allocation433_spill] sm:$0xff] %v9343_v1  ;;  %v13584_v63 = vld [vmem:[#allocation38_spill] sm:$0xff]  ;;  %v13585_v20 = vld [vmem:[#allocation39_spill] sm:$0xff] }
 0x457   : > { %13582 = vst [vmem:[#allocation77_spill] sm:$0xff] %v9341_v36  ;;  %v9353_v29 = vsel %vm2354_vm5, %v8870_v43, %v13584_v63  ;;  %v9358_v4 = vsel %vm2354_vm5, %v8894_v45, %v13584_v63  ;;  %v9363_v18 = vsel %vm2354_vm5, %v8875_v53, %v13585_v20  ;;  %v9368_v49 = vsel %vm2354_vm5, %v8899_v23, %v13585_v20  ;;  %v13588_v53 = vld [vmem:[#allocation88_spill] sm:$0xff] }
 0x458   : > { %v9373_v43 = vsel %vm2354_vm5, %v8880_v13, %v13586_v59  ;;  %v9378_v63 = vsel %vm2354_vm5, %v8904_v26, %v13586_v59  ;;  %1936 = vrot.lane.b32.xlu1 %v13587_v11, %s5442_s22  ;;  %1938 = vrot.lane.b32.xlu0 %v13588_v53, %s5442_s22  ;;  %v9387_v20 = vsel %vm2354_vm5, %v8889_v25, %v13589_v21  ;;  %v13591_v53 = vld [vmem:[#allocation299_spill] sm:$0xff]  ;;  %v13592_v1 = vld [vmem:[#allocation300_spill] sm:$0xff]  ;;  %v9426_v17 = vpop.permute.xlu0 %1906 }
 0x459   : > { %v9392_v13 = vsel %vm2354_vm5, %v8909_v7, %v13589_v21  ;;  %v9397_v59 = vsel %vm2354_vm5, %v8894_v45, %v13590_v14  ;;  %v9402_v11 = vsel %vm2354_vm5, %v8914_v55, %v13590_v14  ;;  %v9407_v25 = vsel %vm2354_vm5, %v8899_v23, %v13591_v53  ;;  %13595 = vst [vmem:[#allocation85_spill] sm:$0xff] %v9426_v17  ;;  %v13596_v23 = vld [vmem:[#allocation301_spill] sm:$0xff]  ;;  %v13599_v17 = vld [vmem:[#allocation303_spill] sm:$0xff] }
 0x45a   : > { %v9412_v21 = vsel %vm2354_vm5, %v8919_v60, %v13591_v53  ;;  %v9417_v45 = vsel %vm2354_vm5, %v8904_v26, %v13592_v1  ;;  %v9422_v14 = vsel %vm2354_vm5, %v8924_v22, %v13592_v1  ;;  %v9424_v36 = vpop.permute.xlu1 %1904  ;;  %v9431_v52 = vsel %vm2354_vm5, %v8909_v7, %v13596_v23  ;;  %v13597_v26 = vld [vmem:[#allocation302_spill] sm:$0xff] }
 0x45b   : > { %13593 = vst [vmem:[#allocation80_spill] sm:$0xff] %v9417_v45  ;;  %13594 = vst [vmem:[#allocation436_spill] sm:$0xff] %v9424_v36  ;;  %v9436_v53 = vsel %vm2354_vm5, %v8933_v46, %v13596_v23  ;;  %v9441_v45 = vsel %vm2354_vm5, %v8914_v55, %v13597_v26  ;;  %v9446_v1 = vsel %vm2354_vm5, %v8938_v56, %v13597_v26  ;;  %v13601_v36 = vld [vmem:[#allocation304_spill] sm:$0xff]  ;;  %v13604_v26 = vld [vmem:[#allocation82_spill] sm:$0xff] }
 0x45c   : > { %13598 = vst [vmem:[#allocation437_spill] sm:$0xff] %v9441_v45  ;;  %v9451_v7 = vsel %vm2354_vm5, %v8919_v60, %v13599_v17  ;;  %v9456_v23 = vsel %vm2354_vm5, %v8943_v48, %v13599_v17  ;;  %v9461_v55 = vsel %vm2354_vm5, %v8924_v22, %v13601_v36  ;;  %v13603_v45 = vld [vmem:[#allocation144_spill] sm:$0xff]  ;;  %2131 = vrot.lane.b32.xlu0 %v13604_v26, %s5443_s29  ;;  %v13611_v26 = vld [vmem:[#allocation307_spill] sm:$0xff] }
 0x45d   : > { %13600 = vst [vmem:[#allocation189_spill] sm:$0xff] %v9451_v7  ;;  %13602 = vst [vmem:[#allocation440_spill] sm:$0xff] %v9461_v55  ;;  %2067 = vrot.lane.b32.xlu1 %v13603_v45, %s5443_s29  ;;  %v9470_v60 = vsel %vm2354_vm5, %v8948_v5, %v13601_v36  ;;  %v13605_v7 = vld [vmem:[#allocation305_spill] sm:$0xff]  ;;  %v13608_v55 = vld [vmem:[#allocation306_spill] sm:$0xff] }
 0x45e   : > { %v9475_v17 = vsel %vm2354_vm5, %v8933_v46, %v13605_v7  ;;  %v9480_v22 = vsel %vm2354_vm5, %v8953_v12, %v13605_v7  ;;  %v9485_v45 = vsel %vm2354_vm5, %v8938_v56, %v13608_v55  ;;  %v9490_v36 = vsel %vm2354_vm5, %v8958_v51, %v13608_v55  ;;  %v13615_v12 = vld [vmem:[#allocation325_spill] sm:$0xff] }
 0x45f   : > { %13606 = vst [vmem:[#allocation86_spill] sm:$0xff] %v9475_v17  ;;  %13607 = vst [vmem:[#allocation89_spill] sm:$0xff] %v9480_v22  ;;  %v9495_v46 = vsel %vm2354_vm5, %v8943_v48, %v13611_v26  ;;  %v13613_v17 = vld [vmem:[#allocation308_spill] sm:$0xff]  ;;  %v9505_v56 = vsel %vm2483_vm6, %v9060_v38, %v13615_v12  ;;  %v9509_v22 = vpop.permute.xlu0 %1910  ;;  %v9514_v55 = vsel %vm2483_vm6, %v9065_v2, %v13615_v12  ;;  %v13616_v48 = vld [vmem:[#allocation326_spill] sm:$0xff] }
 0x460   : > { %13609 = vst [vmem:[#allocation443_spill] sm:$0xff] %v9485_v45  ;;  %13610 = vst [vmem:[#allocation94_spill] sm:$0xff] %v9490_v36  ;;  %v9500_v7 = vsel %vm2354_vm5, %v8948_v5, %v13613_v17  ;;  %v9507_v45 = vpop.permute.xlu1 %1908  ;;  %v9519_v51 = vsel %vm2483_vm6, %v9070_v6, %v13616_v48  ;;  %v9524_v5 = vsel %vm2483_vm6, %v9075_v24, %v13616_v48  ;;  %v13617_v38 = vld [vmem:[#allocation327_spill] sm:$0xff]  ;;  %v13618_v2 = vld [vmem:[#allocation328_spill] sm:$0xff] }
 0x461   : > { %13612 = vst [vmem:[#allocation192_spill] sm:$0xff] %v9495_v46  ;;  %13614 = vst [vmem:[#allocation95_spill] sm:$0xff] %v9500_v7  ;;  %v9529_v17 = vsel %vm2483_vm6, %v9080_v28, %v13617_v38  ;;  %v9534_v12 = vsel %vm2483_vm6, %v9085_v30, %v13617_v38  ;;  %v9539_v6 = vsel %vm2483_vm6, %v9090_v35, %v13618_v2  ;;  %v13619_v48 = vld [vmem:[#allocation147_spill] sm:$0xff]  ;;  %v13620_v28 = vld [vmem:[#allocation190_spill] sm:$0xff] }
 0x462   : > { %v9544_v24 = vsel %vm2483_vm6, %v9099_v61, %v13618_v2  ;;  %2069 = vrot.lane.b32.xlu1 %v13619_v48, %s5443_s29  ;;  %2133 = vrot.lane.b32.xlu0 %v13620_v28, %s5443_s29  ;;  %v13621_v26 = vld [vmem:[#allocation329_spill] sm:$0xff]  ;;  %v13622_v38 = vld [vmem:[#allocation330_spill] sm:$0xff]  ;;  %v13623_v48 = vld [vmem:[#allocation331_spill] sm:$0xff] }
 0x463   : > { %v9553_v30 = vsel %vm2483_vm6, %v9104_v9, %v13621_v26  ;;  %v9558_v35 = vsel %vm2483_vm6, %v9109_v33, %v13621_v26  ;;  %v9563_v61 = vsel %vm2483_vm6, %v9114_v58, %v13622_v38  ;;  %v9568_v2 = vsel %vm2483_vm6, %v9119_v0, %v13622_v38  ;;  %v13624_v26 = vld [vmem:[#allocation332_spill] sm:$0xff]  ;;  %v9592_v38 = vpop.permute.xlu0 %1914  ;;  %v13636_v36 = vld [vmem:[#allocation58_spill] sm:$0xff] }
 0x464   : > { %v9573_v9 = vsel %vm2483_vm6, %v9124_v54, %v13623_v48  ;;  %v9578_v33 = vsel %vm2483_vm6, %v9129_v3, %v13623_v48  ;;  %v9583_v58 = vsel %vm2483_vm6, %v9138_v31, %v13624_v26  ;;  %v9588_v0 = vsel %vm2483_vm6, %v9143_v16, %v13624_v26  ;;  %v9590_v28 = vpop.permute.xlu1 %1912  ;;  %13625 = vst [vmem:[#allocation195_spill] sm:$0xff] %v9592_v38  ;;  %v13626_v54 = vld [vmem:[#allocation333_spill] sm:$0xff]  ;;  %v13627_v31 = vld [vmem:[#allocation334_spill] sm:$0xff]  ;;  %v13629_v26 = vld [vmem:[#allocation335_spill] sm:$0xff] }
 0x465   : > { %v9597_v7 = vsel %vm2483_vm6, %v9148_v37, %v13626_v54  ;;  %v9602_v3 = vsel %vm2483_vm6, %v9153_v41, %v13626_v54  ;;  %v9607_v48 = vsel %vm2483_vm6, %v9158_v57, %v13627_v31  ;;  %v9612_v16 = vsel %vm2483_vm6, %v9163_v39, %v13627_v31  ;;  %v13631_v54 = vld [vmem:[#allocation336_spill] sm:$0xff]  ;;  %v13633_v39 = vld [vmem:[#allocation93_spill] sm:$0xff] }
 0x466   : > { %13628 = vst [vmem:[#allocation198_spill] sm:$0xff] %v9612_v16  ;;  %v9617_v37 = vsel %vm2483_vm6, %v9168_v34, %v13629_v26  ;;  %v9622_v41 = vsel %vm2483_vm6, %v9173_v27, %v13629_v26  ;;  %v9627_v57 = vsel %vm2483_vm6, %v9182_v10, %v13631_v54  ;;  %v13632_v46 = vld [vmem:[#allocation92_spill] sm:$0xff]  ;;  %1942 = vrot.lane.b32.xlu0 %v13633_v39, %s5442_s22  ;;  %v13635_v31 = vld [vmem:[#allocation337_spill] sm:$0xff]  ;;  %v13639_v26 = vld [vmem:[#allocation338_spill] sm:$0xff] }
 0x467   : > { %13630 = vst [vmem:[#allocation132_spill] sm:$0xff] %v9622_v41  ;;  %1940 = vrot.lane.b32.xlu1 %v13632_v46, %s5442_s22  ;;  %v9636_v34 = vsel %vm2483_vm6, %v9187_v47, %v13631_v54  ;;  %v9641_v27 = vsel %vm2483_vm6, %v13636_v36, %v13635_v31  ;;  %v9646_v10 = vsel %vm2483_vm6, %v9197_v44, %v13635_v31  ;;  %v13640_v46 = vld [vmem:[#allocation413_spill] sm:$0xff]  ;;  %v13643_v54 = vld [vmem:[#allocation339_spill] sm:$0xff]  ;;  %v13644_v39 = vld [vmem:[#allocation180_spill] sm:$0xff] }
 0x468   : > { %13634 = vst [vmem:[#allocation185_spill] sm:$0xff] %v9636_v34  ;;  %13637 = vst [vmem:[#allocation199_spill] sm:$0xff] %v9641_v27  ;;  %v9651_v41 = vsel %vm2483_vm6, %v13640_v46, %v13639_v26  ;;  %v9656_v47 = vsel %vm2483_vm6, %v9207_v15, %v13639_v26  ;;  %v9661_v36 = vsel %vm2483_vm6, %v13644_v39, %v13643_v54  ;;  %v13646_v27 = vld [vmem:[#allocation340_spill] sm:$0xff]  ;;  %v13648_v31 = vld [vmem:[#allocation353_spill] sm:$0xff] }
 0x469   : > { %13638 = vst [vmem:[#allocation103_spill] sm:$0xff] %v9646_v10  ;;  %13641 = vst [vmem:[#allocation202_spill] sm:$0xff] %v9651_v41  ;;  %v9666_v44 = vsel %vm2483_vm6, %v9226_v42, %v13646_v27  ;;  %v2544_v46 = vsel %vm2483_vm6, %v9319_v8, %v13648_v31  ;;  %v9671_v41 = vpop.permute.xlu1 %1916  ;;  %v9673_v10 = vpop.permute.xlu0 %1918  ;;  %v13651_v15 = vld [vmem:[#allocation354_spill] sm:$0xff]  ;;  %v13653_v54 = vld [vmem:[#allocation356_spill] sm:$0xff] }
 0x46a   : > { %13642 = vst [vmem:[#allocation204_spill] sm:$0xff] %v9656_v47  ;;  %13645 = vst [vmem:[#allocation205_spill] sm:$0xff] %v9661_v36  ;;  %v2545_v26 = vsel %vm2483_vm6, %v9324_v50, %v13651_v15  ;;  %v13652_v47 = vld [vmem:[#allocation355_spill] sm:$0xff]  ;;  %v9686_v42 = vsel %vm2483_vm6, %v9334_v62, %v13653_v54  ;;  %v13654_v27 = vld [vmem:[#allocation357_spill] sm:$0xff] }
 0x46b   : > { %13647 = vst [vmem:[#allocation207_spill] sm:$0xff] %v9666_v44  ;;  %13649 = vst [vmem:[#allocation208_spill] sm:$0xff] %v9671_v41  ;;  %v9681_v39 = vsel %vm2483_vm6, %v9329_v40, %v13652_v47  ;;  %v2548_v8 = vsel %vm2483_vm6, %v9339_v32, %v13654_v27  ;;  %v9694_v31 = vsel %vm2483_vm6, %v9348_v19, %v13654_v27  ;;  %v13655_v50 = vld [vmem:[#allocation358_spill] sm:$0xff]  ;;  %v13656_v62 = vld [vmem:[#allocation148_spill] sm:$0xff] }
 0x46c   : > { %13650 = vst [vmem:[#allocation211_spill] sm:$0xff] %v9673_v10  ;;  %v2549_v15 = vsel %vm2483_vm6, %v9353_v29, %v13655_v50  ;;  %v9702_v40 = vsel %vm2483_vm6, %v9358_v4, %v13655_v50  ;;  %2071 = vrot.lane.b32.xlu1 %v13656_v62, %s5443_s29  ;;  %v13657_v32 = vld [vmem:[#allocation191_spill] sm:$0xff]  ;;  %v13659_v27 = vld [vmem:[#allocation360_spill] sm:$0xff]  ;;  %v13660_v62 = vld [vmem:[#allocation361_spill] sm:$0xff] }
 0x46d   : > { %2135 = vrot.lane.b32.xlu0 %v13657_v32, %s5443_s29  ;;  %v13658_v54 = vld [vmem:[#allocation359_spill] sm:$0xff]  ;;  %v9719_v4 = vsel %vm2483_vm6, %v9373_v43, %v13659_v27  ;;  %v9724_v50 = vsel %vm2483_vm6, %v9378_v63, %v13659_v27  ;;  %v9729_v32 = vsel %vm2483_vm6, %v9387_v20, %v13660_v62  ;;  %v9743_v63 = vpop.permute.xlu0 %1922  ;;  %v13666_v44 = vld [vmem:[#allocation246_spill] sm:$0xff] }
 0x46e   : > { %v2550_v19 = vsel %vm2483_vm6, %v9363_v18, %v13658_v54  ;;  %v9714_v29 = vsel %vm2483_vm6, %v9368_v49, %v13658_v54  ;;  %v9734_v18 = vsel %vm2483_vm6, %v9392_v13, %v13660_v62  ;;  %v13661_v49 = vld [vmem:[#allocation362_spill] sm:$0xff]  ;;  %v9741_v54 = vpop.permute.xlu1 %1920  ;;  %13663 = vst [vmem:[#allocation215_spill] sm:$0xff] %v9743_v63  ;;  %v13664_v27 = vld [vmem:[#allocation363_spill] sm:$0xff]  ;;  %v13665_v62 = vld [vmem:[#allocation381_spill] sm:$0xff]  ;;  %v2673_v36 = vsel %vm2612_vm7, %v2544_v46, %v13666_v44 }
 0x46f   : > { %v9739_v43 = vsel %vm2483_vm6, %v9397_v59, %v13661_v49  ;;  %13662 = vst [vmem:[#allocation212_spill] sm:$0xff] %v9741_v54  ;;  %v9748_v20 = vsel %vm2483_vm6, %v9402_v11, %v13661_v49  ;;  %v9753_v13 = vsel %vm2483_vm6, %v9407_v25, %v13664_v27  ;;  %v9758_v59 = vsel %vm2483_vm6, %v9412_v21, %v13664_v27  ;;  %v13667_v11 = vld [vmem:[#allocation254_spill] sm:$0xff]  ;;  %v13668_v34 = vld [vmem:[#allocation151_spill] sm:$0xff]  ;;  %v13672_v46 = vld [vmem:[#allocation168_spill] sm:$0xff] }
 0x470   : > { %v2613_v47 = vsel %vm2612_vm7, %v9505_v56, %v13665_v62  ;;  %v2677_v49 = vsel %vm2612_vm7, %v2548_v8, %v13667_v11  ;;  %2073 = vrot.lane.b32.xlu1 %v13668_v34, %s5443_s29  ;;  %v13669_v25 = vld [vmem:[#allocation90_spill] sm:$0xff]  ;;  %v13670_v21 = vld [vmem:[#allocation435_spill] sm:$0xff]  ;;  %v13673_v44 = vld [vmem:[#allocation80_spill] sm:$0xff] }
 0x471   : > { %2137 = vrot.lane.b32.xlu0 %v13669_v25, %s5443_s29  ;;  %v2742_v27 = vsel %vm2741_vm8, %v2613_v47, %v13670_v21  ;;  %v13671_v63 = vld [vmem:[#allocation471_spill] sm:$0xff]  ;;  %v9780_v8 = vsel %vm2483_vm6, %v13673_v44, %v13672_v46  ;;  %v2092_v47 = vpop.permute.xlu0 %2091 }
 0x472   : > { %v2802_v54 = vsel %vm2741_vm8, %v2673_v36, %v13671_v63  ;;  %v2806_v56 = vsel %vm2741_vm8, %v2677_v49, %v13671_v63  ;;  %v13674_v34 = vld [vmem:[#allocation487_spill] sm:$0xff]  ;;  %v2028_v38 = vpop.permute.xlu1 %2027  ;;  %v9791_v63 = vsel %vm2483_vm6, %v9422_v14, %v13672_v46  ;;  %v13680_v14 = vld [vmem:[#allocation97_spill] sm:$0xff] }
 0x473   : > { %v2871_v16 = vsel %vm2870_vm9, %v2742_v27, %v13674_v34  ;;  %v13675_v25 = vld [vmem:[#allocation183_spill] sm:$0xff]  ;;  %v13677_v27 = vld [vmem:[#allocation382_spill] sm:$0xff]  ;;  %v13678_v34 = vld [vmem:[#allocation249_spill] sm:$0xff] }
 0x474   : > { %v2931_v10 = vsel %vm2870_vm9, %v2802_v54, %v13675_v25  ;;  %v2935_v36 = vsel %vm2870_vm9, %v2806_v56, %v13675_v25  ;;  %v3000_v44 = vsel %vm2999_vm10, %v2871_v16, %v2028_v38  ;;  %v2614_v54 = vsel %vm2612_vm7, %v9519_v51, %v13677_v27  ;;  %v13679_v56 = vld [vmem:[#allocation257_spill] sm:$0xff]  ;;  %1944 = vrot.lane.b32.xlu1 %v13680_v14, %s5442_s22  ;;  %v13682_v16 = vld [vmem:[#allocation472_spill] sm:$0xff] }
 0x475   : > { %v9794_v49 = vsel %vm2999_vm10, %v2931_v10, %v2092_v47  ;;  %v3064_v21 = vsel %vm2999_vm10, %v2935_v36, %v2092_v47  ;;  %v2674_v41 = vsel %vm2612_vm7, %v2545_v26, %v13678_v34  ;;  %v2678_v25 = vsel %vm2612_vm7, %v2549_v15, %v13679_v56  ;;  %4891 = vmatprep.mubr.msk.f32.mxu0 %vm3140_vm11, %v3000_v44  ;;  %v13681_v10 = vld [vmem:[#allocation438_spill] sm:$0xff]  ;;  %v13684_v15 = vld [vmem:[#allocation364_spill] sm:$0xff] }
 0x476   : > { %13676 = vst [vmem:[#allocation216_spill] sm:$0xff] %v9794_v49  ;;  %v2743_v38 = vsel %vm2741_vm8, %v2614_v54, %v13681_v10  ;;  %v2803_v46 = vsel %vm2741_vm8, %v2674_v41, %v13682_v16  ;;  %v2807_v51 = vsel %vm2741_vm8, %v2678_v25, %v13682_v16  ;;  %v13683_v47 = vld [vmem:[#allocation98_spill] sm:$0xff]  ;;  %4987 = vmatprep.mubr.msk.f32.mxu1 %vm3140_vm11, %v3064_v21  ;;  %v13685_v36 = vld [vmem:[#allocation488_spill] sm:$0xff]  ;;  %v2030_v25 = vpop.permute.xlu1 %2029  ;;  %v2094_v10 = vpop.permute.xlu0 %2093 }
 0x477   : > { %1946 = vrot.lane.b32.xlu0 %v13683_v47, %s5442_s22  ;;  %v9820_v26 = vsel %vm2483_vm6, %v9431_v52, %v13684_v15  ;;  %v2872_v44 = vsel %vm2870_vm9, %v2743_v38, %v13685_v36  ;;  %v13686_v54 = vld [vmem:[#allocation424_spill] sm:$0xff]  ;;  %v9831_v21 = vsel %vm2483_vm6, %v9436_v53, %v13684_v15  ;;  %v13688_v47 = vld [vmem:[#allocation383_spill] sm:$0xff]  ;;  %v13689_v36 = vld [vmem:[#allocation250_spill] sm:$0xff] }
 0x478   : > { %v2932_v14 = vsel %vm2870_vm9, %v2803_v46, %v13686_v54  ;;  %v2936_v41 = vsel %vm2870_vm9, %v2807_v51, %v13686_v54  ;;  %v3001_v16 = vsel %vm2999_vm10, %v2872_v44, %v2030_v25  ;;  %v2615_v46 = vsel %vm2612_vm7, %v9529_v17, %v13688_v47  ;;  %v13690_v54 = vld [vmem:[#allocation389_spill] sm:$0xff]  ;;  %v13691_v53 = vld [vmem:[#allocation152_spill] sm:$0xff]  ;;  %v13692_v15 = vld [vmem:[#allocation439_spill] sm:$0xff] }
 0x479   : > { %v9835_v52 = vsel %vm2999_vm10, %v2932_v14, %v2094_v10  ;;  %v3065_v38 = vsel %vm2999_vm10, %v2936_v41, %v2094_v10  ;;  %v2675_v51 = vsel %vm2612_vm7, %v9681_v39, %v13689_v36  ;;  %v2679_v49 = vsel %vm2612_vm7, %v2550_v19, %v13690_v54  ;;  %2075 = vrot.lane.b32.xlu1 %v13691_v53, %s5443_s29  ;;  %v13693_v14 = vld [vmem:[#allocation473_spill] sm:$0xff]  ;;  %v13694_v25 = vld [vmem:[#allocation91_spill] sm:$0xff]  ;;  %v13741_v36 = vld [vmem:[#allocation390_spill] sm:$0xff] }
 0x47a   : > { %13687 = vst [vmem:[#allocation219_spill] sm:$0xff] %v9835_v52  ;;  %4892 = vmatmul.mubr.msk.f32.vlgmr.msra.gmra.mrb[0].mxu0 %vm3140_vm11, %v3001_v16  ;;  %v2744_v44 = vsel %vm2741_vm8, %v2615_v46, %v13692_v15  ;;  %v2804_v41 = vsel %vm2741_vm8, %v2675_v51, %v13693_v14  ;;  %v2808_v17 = vsel %vm2741_vm8, %v2679_v49, %v13693_v14  ;;  %v13695_v39 = vld [vmem:[#allocation171_spill] sm:$0xff]  ;;  %v13696_v19 = vld [vmem:[#allocation437_spill] sm:$0xff]  ;;  %v2032_v49 = vpop.permute.xlu1 %2031  ;;  %v2096_v14 = vpop.permute.xlu0 %2095 }
 0x47b   : > { %2139 = vrot.lane.b32.xlu0 %v13694_v25, %s5443_s29  ;;  %4988 = vmatmul.mubr.msk.f32.vlgmr.msra.gmra.mrb[0].mxu1 %vm3140_vm11, %v3065_v38  ;;  %v9861_v10 = vsel %vm2483_vm6, %v13696_v19, %v13695_v39  ;;  %v13697_v16 = vld [vmem:[#allocation489_spill] sm:$0xff]  ;;  %v9872_v38 = vsel %vm2483_vm6, %v9446_v1, %v13695_v39  ;;  %v13703_v39 = vld [vmem:[#allocation155_spill] sm:$0xff] }
 0x47c   : > { %v2873_v53 = vsel %vm2870_vm9, %v2744_v44, %v13697_v16  ;;  %v13698_v46 = vld [vmem:[#allocation77_spill] sm:$0xff]  ;;  %v13700_v16 = vld [vmem:[#allocation384_spill] sm:$0xff] }
 0x47d   : > { %v2933_v15 = vsel %vm2870_vm9, %v2804_v41, %v13698_v46  ;;  %v2937_v51 = vsel %vm2870_vm9, %v2808_v17, %v13698_v46  ;;  %v3002_v25 = vsel %vm2999_vm10, %v2873_v53, %v2032_v49  ;;  %v2616_v41 = vsel %vm2612_vm7, %v9539_v6, %v13700_v16  ;;  %v13701_v52 = vld [vmem:[#allocation253_spill] sm:$0xff]  ;;  %v13702_v46 = vld [vmem:[#allocation260_spill] sm:$0xff]  ;;  %2077 = vrot.lane.b32.xlu1 %v13703_v39, %s5443_s29 }
 0x47e   : > { %v9876_v19 = vsel %vm2999_vm10, %v2933_v15, %v2096_v14  ;;  %v3066_v44 = vsel %vm2999_vm10, %v2937_v51, %v2096_v14  ;;  %v2676_v17 = vsel %vm2612_vm7, %v9686_v42, %v13701_v52  ;;  %v2680_v1 = vsel %vm2612_vm7, %v9719_v4, %v13702_v46  ;;  %4894 = vmatprep.mubr.msk.f32.mxu0 %vm3140_vm11, %v3002_v25  ;;  %v13704_v53 = vld [vmem:[#allocation441_spill] sm:$0xff]  ;;  %v13705_v51 = vld [vmem:[#allocation474_spill] sm:$0xff]  ;;  %v13707_v4 = vld [vmem:[#allocation172_spill] sm:$0xff] }
 0x47f   : > { %13699 = vst [vmem:[#allocation220_spill] sm:$0xff] %v9876_v19  ;;  %v2745_v15 = vsel %vm2741_vm8, %v2616_v41, %v13704_v53  ;;  %v2805_v49 = vsel %vm2741_vm8, %v2676_v17, %v13705_v51  ;;  %v2809_v6 = vsel %vm2741_vm8, %v2680_v1, %v13705_v51  ;;  %v13706_v42 = vld [vmem:[#allocation193_spill] sm:$0xff]  ;;  %4990 = vmatprep.mubr.msk.f32.mxu1 %vm3140_vm11, %v3066_v44  ;;  %v13709_v25 = vld [vmem:[#allocation490_spill] sm:$0xff]  ;;  %v2034_v1 = vpop.permute.xlu1 %2033  ;;  %v2098_v51 = vpop.permute.xlu0 %2097  ;;  %v13714_v52 = vld [vmem:[#allocation440_spill] sm:$0xff] }
 0x480   : > { %2141 = vrot.lane.b32.xlu0 %v13706_v42, %s5443_s29  ;;  %v13708_v14 = vld [vmem:[#allocation189_spill] sm:$0xff]  ;;  %v2874_v19 = vsel %vm2870_vm9, %v2745_v15, %v13709_v25  ;;  %v9914_v44 = vsel %vm2483_vm6, %v9456_v23, %v13707_v4  ;;  %v13713_v25 = vld [vmem:[#allocation175_spill] sm:$0xff]  ;;  %v2681_v23 = vsel %vm2612_vm7, %v9694_v31, %v13667_v11  ;;  %v2618_v31 = vsel %vm2612_vm7, %v9524_v5, %v13677_v27 }
 0x481   : > { %v9903_v39 = vsel %vm2483_vm6, %v13708_v14, %v13707_v4  ;;  %v13710_v41 = vld [vmem:[#allocation433_spill] sm:$0xff]  ;;  %13711 = vst [vmem:[#allocation223_spill] sm:$0xff] %v9914_v44  ;;  %v3003_v42 = vsel %vm2999_vm10, %v2874_v19, %v2034_v1  ;;  %v13715_v19 = vld [vmem:[#allocation99_spill] sm:$0xff]  ;;  %v9938_v4 = vsel %vm2483_vm6, %v9470_v60, %v13713_v25  ;;  %v2619_v60 = vsel %vm2612_vm7, %v9534_v12, %v13688_v47  ;;  %v13721_v1 = vld [vmem:[#allocation436_spill] sm:$0xff] }
 0x482   : > { %v2934_v53 = vsel %vm2870_vm9, %v2805_v49, %v13710_v41  ;;  %v2938_v17 = vsel %vm2870_vm9, %v2809_v6, %v13710_v41  ;;  %v9924_v49 = vsel %vm2483_vm6, %v13714_v52, %v13713_v25  ;;  %v2617_v6 = vsel %vm2612_vm7, %v9514_v55, %v13665_v62  ;;  %1948 = vrot.lane.b32.xlu1 %v13715_v19, %s5442_s22  ;;  %v13717_v52 = vld [vmem:[#allocation442_spill] sm:$0xff]  ;;  %v13719_v62 = vld [vmem:[#allocation100_spill] sm:$0xff]  ;;  %v13720_v11 = vld [vmem:[#allocation491_spill] sm:$0xff] }
 0x483   : > { %v9918_v14 = vsel %vm2999_vm10, %v2934_v53, %v2098_v51  ;;  %v3067_v15 = vsel %vm2999_vm10, %v2938_v17, %v2098_v51  ;;  %4895 = vmatmul.mubr.msk.f32.gmra.mrb[2].mxu0 %vm3140_vm11, %v3003_v42  ;;  %13716 = vst [vmem:[#allocation135_spill] sm:$0xff] %v9938_v4  ;;  %v2746_v41 = vsel %vm2741_vm8, %v2617_v6, %v13717_v52  ;;  %v13718_v53 = vld [vmem:[#allocation475_spill] sm:$0xff]  ;;  %v9957_v42 = vpop.permute.xlu1 %2035  ;;  %v9959_v25 = vpop.permute.xlu0 %2099  ;;  %v13722_v6 = vld [vmem:[#allocation385_spill] sm:$0xff] }
 0x484   : > { %13712 = vst [vmem:[#allocation224_spill] sm:$0xff] %v9918_v14  ;;  %v2810_v55 = vsel %vm2741_vm8, %v2681_v23, %v13718_v53  ;;  %1950 = vrot.lane.b32.xlu0 %v13719_v62, %s5442_s22  ;;  %4991 = vmatmul.mubr.msk.f32.gmra.mrb[2].mxu1 %vm3140_vm11, %v3067_v15  ;;  %v2875_v17 = vsel %vm2870_vm9, %v2746_v41, %v13720_v11  ;;  %v13723_v23 = vld [vmem:[#allocation386_spill] sm:$0xff]  ;;  %v13742_v4 = vld [vmem:[#allocation391_spill] sm:$0xff] }
 0x485   : > { %v2939_v51 = vsel %vm2870_vm9, %v2810_v55, %v13721_v1  ;;  %v2620_v15 = vsel %vm2612_vm7, %v9544_v24, %v13700_v16  ;;  %v2621_v5 = vsel %vm2612_vm7, %v9553_v30, %v13722_v6  ;;  %v3004_v12 = vsel %vm2999_vm10, %v2875_v17, %v9957_v42  ;;  %v13724_v30 = vld [vmem:[#allocation156_spill] sm:$0xff]  ;;  %v13726_v55 = vld [vmem:[#allocation42_spill] sm:$0xff] }
 0x486   : > { %v3068_v27 = vsel %vm2999_vm10, %v2939_v51, %v9959_v25  ;;  %v9974_v47 = vsel %vm2612_vm7, %v9558_v35, %v13722_v6  ;;  %v2622_v19 = vsel %vm2612_vm7, %v9563_v61, %v13723_v23  ;;  %v2682_v24 = vsel %vm2612_vm7, %v9702_v40, %v13679_v56  ;;  %2079 = vrot.lane.b32.xlu1 %v13724_v30, %s5443_s29  ;;  %v13725_v35 = vld [vmem:[#allocation444_spill] sm:$0xff]  ;;  %v13727_v62 = vld [vmem:[#allocation194_spill] sm:$0xff]  ;;  %v13728_v40 = vld [vmem:[#allocation387_spill] sm:$0xff] }
 0x487   : > { %4897 = vmatprep.mubr.msk.f32.mxu0 %vm3140_vm11, %v3004_v12  ;;  %v9988_v16 = vsel %vm2612_vm7, %v9568_v2, %v13723_v23  ;;  %v2747_v41 = vsel %vm2741_vm8, %v2618_v31, %v13725_v35  ;;  %v2811_v61 = vsel %vm2741_vm8, %v2682_v24, %v13726_v55  ;;  %4993 = vmatprep.mubr.msk.f32.mxu1 %vm3140_vm11, %v3068_v27  ;;  %v13729_v17 = vld [vmem:[#allocation492_spill] sm:$0xff]  ;;  %v13730_v51 = vld [vmem:[#allocation85_spill] sm:$0xff]  ;;  %v10009_v12 = vpop.permute.xlu1 %2037  ;;  %v10011_v23 = vpop.permute.xlu0 %2101  ;;  %v13731_v27 = vld [vmem:[#allocation206_spill] sm:$0xff] }
 0x488   : > { %2143 = vrot.lane.b32.xlu0 %v13727_v62, %s5443_s29  ;;  %v2623_v56 = vsel %vm2612_vm7, %v9573_v9, %v13728_v40  ;;  %v10003_v2 = vsel %vm2612_vm7, %v9578_v33, %v13728_v40  ;;  %v2876_v31 = vsel %vm2870_vm9, %v2747_v41, %v13729_v17  ;;  %v2940_v6 = vsel %vm2870_vm9, %v2811_v61, %v13730_v51  ;;  %v13732_v41 = vld [vmem:[#allocation388_spill] sm:$0xff]  ;;  %v13733_v62 = vld [vmem:[#allocation159_spill] sm:$0xff]  ;;  %v13734_v40 = vld [vmem:[#allocation209_spill] sm:$0xff] }
 0x489   : > { %v2624_v24 = vsel %vm2612_vm7, %v9583_v58, %v13731_v27  ;;  %v10019_v9 = vsel %vm2612_vm7, %v9588_v0, %v13731_v27  ;;  %v3005_v33 = vsel %vm2999_vm10, %v2876_v31, %v10009_v12  ;;  %v3069_v30 = vsel %vm2999_vm10, %v2940_v6, %v10011_v23  ;;  %v13736_v27 = vld [vmem:[#allocation476_spill] sm:$0xff] }
 0x48a   : > { %v10028_v61 = vsel %vm2612_vm7, %v9597_v7, %v13732_v41  ;;  %v10033_v58 = vsel %vm2612_vm7, %v9602_v3, %v13732_v41  ;;  %v2683_v0 = vsel %vm2612_vm7, %v9714_v29, %v13690_v54  ;;  %2081 = vrot.lane.b32.xlu1 %v13733_v62, %s5443_s29  ;;  %4898 = vmatmul.mubr.msk.f32.gmra.mrb[4].mxu0 %vm3140_vm11, %v3005_v33  ;;  %v13735_v7 = vld [vmem:[#allocation445_spill] sm:$0xff]  ;;  %v13737_v41 = vld [vmem:[#allocation196_spill] sm:$0xff]  ;;  %v13738_v29 = vld [vmem:[#allocation210_spill] sm:$0xff] }
 0x48b   : > { %v10044_v31 = vsel %vm2612_vm7, %v9607_v48, %v13734_v40  ;;  %v2748_v6 = vsel %vm2741_vm8, %v2619_v60, %v13735_v7  ;;  %v2812_v3 = vsel %vm2741_vm8, %v2683_v0, %v13736_v27  ;;  %4994 = vmatmul.mubr.msk.f32.gmra.mrb[4].mxu1 %vm3140_vm11, %v3069_v30  ;;  %v10056_v54 = vsel %vm2612_vm7, %v9617_v37, %v13738_v29  ;;  %v13739_v33 = vld [vmem:[#allocation213_spill] sm:$0xff]  ;;  %v13740_v62 = vld [vmem:[#allocation55_spill] sm:$0xff]  ;;  %v2040_v14 = vpop.permute.xlu1 %2039  ;;  %v13750_v29 = vld [vmem:[#allocation160_spill] sm:$0xff] }
 0x48c   : > { %2145 = vrot.lane.b32.xlu0 %v13737_v41, %s5443_s29  ;;  %v10061_v48 = vsel %vm2612_vm7, %v9627_v57, %v13739_v33  ;;  %v2877_v60 = vsel %vm2870_vm9, %v2748_v6, %v13740_v62  ;;  %v2941_v0 = vsel %vm2870_vm9, %v2812_v3, %v9507_v45  ;;  %v2104_v41 = vpop.permute.xlu0 %2103  ;;  %v2684_v30 = vsel %vm2612_vm7, %v9724_v50, %v13702_v46  ;;  %v13743_v46 = vld [vmem:[#allocation104_spill] sm:$0xff] }
 0x48d   : > { %v2685_v37 = vsel %vm2612_vm7, %v9729_v32, %v13741_v36  ;;  %v3006_v34 = vsel %vm2999_vm10, %v2877_v60, %v2040_v14  ;;  %v3070_v57 = vsel %vm2999_vm10, %v2941_v0, %v2104_v41  ;;  %v2689_v6 = vsel %vm2612_vm7, %v9734_v18, %v13741_v36  ;;  %v13744_v32 = vld [vmem:[#allocation392_spill] sm:$0xff]  ;;  %v13745_v0 = vld [vmem:[#allocation446_spill] sm:$0xff]  ;;  %v13746_v36 = vld [vmem:[#allocation43_spill] sm:$0xff] }
 0x48e   : > { %v2686_v3 = vsel %vm2612_vm7, %v9739_v43, %v13742_v4  ;;  %v2690_v50 = vsel %vm2612_vm7, %v9748_v20, %v13742_v4  ;;  %1952 = vrot.lane.b32.xlu1 %v13743_v46, %s5442_s22  ;;  %4900 = vmatprep.mubr.msk.f32.mxu0 %vm3140_vm11, %v3006_v34  ;;  %v2687_v60 = vsel %vm2612_vm7, %v9753_v13, %v13744_v32  ;;  %v13747_v43 = vld [vmem:[#allocation105_spill] sm:$0xff] }
 0x48f   : > { %v2749_v18 = vsel %vm2741_vm8, %v2620_v15, %v13745_v0  ;;  %v2813_v33 = vsel %vm2741_vm8, %v2684_v30, %v13746_v36  ;;  %4996 = vmatprep.mubr.msk.f32.mxu1 %vm3140_vm11, %v3070_v57  ;;  %v2691_v20 = vsel %vm2612_vm7, %v9758_v59, %v13744_v32  ;;  %v13748_v34 = vld [vmem:[#allocation393_spill] sm:$0xff]  ;;  %v2042_v30 = vpop.permute.xlu1 %2041  ;;  %v2814_v57 = vsel %vm2741_vm8, %v2685_v37, %v13718_v53 }
 0x490   : > { %1954 = vrot.lane.b32.xlu0 %v13747_v43, %s5442_s22  ;;  %v2688_v4 = vsel %vm2612_vm7, %v9780_v8, %v13748_v34  ;;  %v13749_v13 = vld [vmem:[#allocation493_spill] sm:$0xff]  ;;  %v2942_v15 = vsel %vm2870_vm9, %v2813_v33, %v9509_v22  ;;  %v2106_v44 = vpop.permute.xlu0 %2105  ;;  %v2750_v43 = vsel %vm2741_vm8, %v2621_v5, %v13717_v52  ;;  %v2751_v8 = vsel %vm2741_vm8, %v2622_v19, %v13725_v35 }
 0x491   : > { %v2878_v46 = vsel %vm2870_vm9, %v2749_v18, %v13749_v13  ;;  %v3071_v32 = vsel %vm2999_vm10, %v2942_v15, %v2106_v44  ;;  %v2879_v18 = vsel %vm2870_vm9, %v2750_v43, %v13720_v11  ;;  %v2943_v33 = vsel %vm2870_vm9, %v2814_v57, %v13721_v1  ;;  %v13751_v19 = vld [vmem:[#allocation197_spill] sm:$0xff] }
 0x492   : > { %v3007_v59 = vsel %vm2999_vm10, %v2878_v46, %v2042_v30  ;;  %2083 = vrot.lane.b32.xlu1 %v13750_v29, %s5443_s29  ;;  %v2752_v52 = vsel %vm2741_vm8, %v2623_v56, %v13735_v7  ;;  %v3008_v53 = vsel %vm2999_vm10, %v2879_v18, %v9957_v42  ;;  %v3072_v5 = vsel %vm2999_vm10, %v2943_v33, %v9959_v25  ;;  %v13752_v56 = vld [vmem:[#allocation447_spill] sm:$0xff]  ;;  %v13758_v43 = vld [vmem:[#allocation45_spill] sm:$0xff] }
 0x493   : > { %4901 = vmatmul.mubr.msk.f32.gmra.mrb[6].mxu0 %vm3140_vm11, %v3007_v59  ;;  %4997 = vmatmul.mubr.msk.f32.gmra.mrb[6].mxu1 %vm3140_vm11, %v3071_v32  ;;  %v2753_v11 = vsel %vm2741_vm8, %v2624_v24, %v13745_v0  ;;  %v2815_v1 = vsel %vm2741_vm8, %v2686_v3, %v13726_v55  ;;  %v2880_v35 = vsel %vm2870_vm9, %v2751_v8, %v13729_v17  ;;  %v10139_v42 = vpop.permute.xlu1 %2043  ;;  %v13760_v8 = vld [vmem:[#allocation108_spill] sm:$0xff]  ;;  %v13762_v18 = vld [vmem:[#allocation109_spill] sm:$0xff] }
 0x494   : > { %2147 = vrot.lane.b32.xlu0 %v13751_v19, %s5443_s29  ;;  %4903 = vmatprep.mubr.msk.f32.mxu0 %vm3140_vm11, %v3008_v53  ;;  %v10141_v25 = vpop.permute.xlu0 %2107  ;;  %v2754_v7 = vsel %vm2741_vm8, %v9974_v47, %v13752_v56  ;;  %v2816_v24 = vsel %vm2741_vm8, %v2687_v60, %v13736_v27  ;;  %v2944_v55 = vsel %vm2870_vm9, %v2815_v1, %v13730_v51  ;;  %v13753_v47 = vld [vmem:[#allocation163_spill] sm:$0xff]  ;;  %v13754_v27 = vld [vmem:[#allocation448_spill] sm:$0xff] }
 0x495   : > { %4999 = vmatprep.mubr.msk.f32.mxu1 %vm3140_vm11, %v3072_v5  ;;  %v3009_v17 = vsel %vm2999_vm10, %v2880_v35, %v10009_v12  ;;  %v2881_v29 = vsel %vm2870_vm9, %v2752_v52, %v13740_v62  ;;  %v2945_v37 = vsel %vm2870_vm9, %v2816_v24, %v9507_v45  ;;  %v3073_v3 = vsel %vm2999_vm10, %v2944_v55, %v10011_v23  ;;  %v13755_v62 = vld [vmem:[#allocation200_spill] sm:$0xff]  ;;  %v13756_v45 = vld [vmem:[#allocation449_spill] sm:$0xff]  ;;  %v13766_v1 = vld [vmem:[#allocation195_spill] sm:$0xff] }
 0x496   : > { %2085 = vrot.lane.b32.xlu1 %v13753_v47, %s5443_s29  ;;  %v2755_v51 = vsel %vm2741_vm8, %v9988_v16, %v13754_v27  ;;  %v3010_v12 = vsel %vm2999_vm10, %v2881_v29, %v2040_v14  ;;  %v3074_v60 = vsel %vm2999_vm10, %v2945_v37, %v2104_v41  ;;  %v2756_v23 = vsel %vm2741_vm8, %v10003_v2, %v13756_v45  ;;  %v13757_v41 = vld [vmem:[#allocation44_spill] sm:$0xff]  ;;  %v13767_v29 = vld [vmem:[#allocation394_spill] sm:$0xff] }
 0x497   : > { %4904 = vmatmul.mubr.msk.f32.gmra.mrb[8].mxu0 %vm3140_vm11, %v3009_v17  ;;  %5000 = vmatmul.mubr.msk.f32.gmra.mrb[8].mxu1 %vm3140_vm11, %v3073_v3  ;;  %v2817_v0 = vsel %vm2741_vm8, %v2688_v4, %v13746_v36  ;;  %v2882_v46 = vsel %vm2870_vm9, %v2753_v11, %v13749_v13  ;;  %v10178_v14 = vpop.permute.xlu1 %2045  ;;  %v2818_v15 = vsel %vm2741_vm8, %v2689_v6, %v13757_v41  ;;  %v13759_v13 = vld [vmem:[#allocation123_spill] sm:$0xff]  ;;  %v13761_v6 = vld [vmem:[#allocation46_spill] sm:$0xff]  ;;  %v13764_v52 = vld [vmem:[#allocation124_spill] sm:$0xff] }
 0x498   : > { %2149 = vrot.lane.b32.xlu0 %v13755_v62, %s5443_s29  ;;  %4906 = vmatprep.mubr.msk.f32.mxu0 %vm3140_vm11, %v3010_v12  ;;  %v10180_v16 = vpop.permute.xlu0 %2109  ;;  %v2819_v2 = vsel %vm2741_vm8, %v2690_v50, %v13758_v43  ;;  %v2946_v36 = vsel %vm2870_vm9, %v2817_v0, %v9509_v22  ;;  %v3011_v4 = vsel %vm2999_vm10, %v2882_v46, %v2042_v30  ;;  %v13765_v5 = vld [vmem:[#allocation208_spill] sm:$0xff]  ;;  %v13769_v12 = vld [vmem:[#allocation450_spill] sm:$0xff]  ;;  %v13772_v62 = vld [vmem:[#allocation395_spill] sm:$0xff] }
 0x499   : > { %5002 = vmatprep.mubr.msk.f32.mxu1 %vm3140_vm11, %v3074_v60  ;;  %v2883_v57 = vsel %vm2870_vm9, %v2754_v7, %v13759_v13  ;;  %v2947_v59 = vsel %vm2870_vm9, %v2818_v15, %v9590_v28  ;;  %v3075_v32 = vsel %vm2999_vm10, %v2946_v36, %v2106_v44  ;;  %v2820_v50 = vsel %vm2741_vm8, %v2691_v20, %v13761_v6  ;;  %v13763_v44 = vld [vmem:[#allocation181_spill] sm:$0xff]  ;;  %v13768_v47 = vld [vmem:[#allocation164_spill] sm:$0xff]  ;;  %v13773_v0 = vld [vmem:[#allocation182_spill] sm:$0xff] }
 0x49a   : > { %1956 = vrot.lane.b32.xlu1 %v13760_v8, %s5442_s22  ;;  %v3012_v22 = vsel %vm2999_vm10, %v2883_v57, %v10139_v42  ;;  %v3076_v30 = vsel %vm2999_vm10, %v2947_v59, %v10141_v25  ;;  %v2884_v33 = vsel %vm2870_vm9, %v2755_v51, %v13763_v44  ;;  %v2885_v53 = vsel %vm2870_vm9, %v2756_v23, %v13764_v52  ;;  %v13775_v59 = vld [vmem:[#allocation396_spill] sm:$0xff] }
 0x49b   : > { %4907 = vmatmul.mubr.msk.f32.gmra.mrb[10].mxu0 %vm3140_vm11, %v3011_v4  ;;  %5003 = vmatmul.mubr.msk.f32.gmra.mrb[10].mxu1 %vm3140_vm11, %v3075_v32  ;;  %v2949_v20 = vsel %vm2870_vm9, %v2820_v50, %v13765_v5  ;;  %v2048_v19 = vpop.permute.xlu1 %2047  ;;  %v2948_v35 = vsel %vm2870_vm9, %v2819_v2, %v13766_v1  ;;  %v3013_v7 = vsel %vm2999_vm10, %v2884_v33, %v10178_v14  ;;  %v13778_v33 = vld [vmem:[#allocation12_spill] sm:$0xff] }
 0x49c   : > { %1958 = vrot.lane.b32.xlu0 %v13762_v18, %s5442_s22  ;;  %4909 = vmatprep.mubr.msk.f32.mxu0 %vm3140_vm11, %v3012_v22  ;;  %v2112_v11 = vpop.permute.xlu0 %2111  ;;  %v3014_v24 = vsel %vm2999_vm10, %v2885_v53, %v2048_v19  ;;  %v2692_v17 = vsel %vm2612_vm7, %v9791_v63, %v13748_v34  ;;  %v2693_v37 = vsel %vm2612_vm7, %v9820_v26, %v13767_v29  ;;  %v13770_v34 = vld [vmem:[#allocation47_spill] sm:$0xff]  ;;  %v13771_v26 = vld [vmem:[#allocation201_spill] sm:$0xff] }
 0x49d   : > { %5005 = vmatprep.mubr.msk.f32.mxu1 %vm3140_vm11, %v3076_v30  ;;  %v3078_v55 = vsel %vm2999_vm10, %v2949_v20, %v2112_v11  ;;  %v3077_v3 = vsel %vm2999_vm10, %v2948_v35, %v10180_v16  ;;  %v2697_v51 = vsel %vm2612_vm7, %v9831_v21, %v13767_v29  ;;  %v2757_v63 = vsel %vm2741_vm8, %v10019_v9, %v13769_v12  ;;  %v13774_v21 = vld [vmem:[#allocation211_spill] sm:$0xff] }
 0x49e   : > { %2087 = vrot.lane.b32.xlu1 %v13768_v47, %s5443_s29  ;;  %v2821_v60 = vsel %vm2741_vm8, %v2692_v17, %v13770_v34  ;;  %v2694_v23 = vsel %vm2612_vm7, %v9861_v10, %v13772_v62  ;;  %v2886_v46 = vsel %vm2870_vm9, %v2757_v63, %v13773_v0  ;;  %v2758_v36 = vsel %vm2741_vm8, %v10028_v61, %v13752_v56  ;;  %v13776_v22 = vld [vmem:[#allocation167_spill] sm:$0xff]  ;;  %v13784_v17 = vld [vmem:[#allocation198_spill] sm:$0xff]  ;;  %v13786_v63 = vld [vmem:[#allocation452_spill] sm:$0xff] }
 0x49f   : > { %4910 = vmatmul.mubr.msk.f32.gmra.mrb[12].mxu0 %vm3140_vm11, %v3013_v7  ;;  %5006 = vmatmul.mubr.msk.f32.gmra.mrb[12].mxu1 %vm3140_vm11, %v3077_v3  ;;  %v2950_v15 = vsel %vm2870_vm9, %v2821_v60, %v13774_v21  ;;  %v2050_v9 = vpop.permute.xlu1 %2049  ;;  %v2822_v4 = vsel %vm2741_vm8, %v2693_v37, %v13757_v41  ;;  %v2695_v32 = vsel %vm2612_vm7, %v9903_v39, %v13775_v59  ;;  %v13777_v41 = vld [vmem:[#allocation203_spill] sm:$0xff]  ;;  %v13783_v7 = vld [vmem:[#allocation101_spill] sm:$0xff]  ;;  %v13785_v37 = vld [vmem:[#allocation212_spill] sm:$0xff] }
 0x4a0   : > { %2151 = vrot.lane.b32.xlu0 %v13771_v26, %s5443_s29  ;;  %4912 = vmatprep.mubr.msk.f32.mxu0 %vm3140_vm11, %v3014_v24  ;;  %v2114_v2 = vpop.permute.xlu0 %2113  ;;  %v3015_v10 = vsel %vm2999_vm10, %v2886_v46, %v2050_v9  ;;  %v2887_v8 = vsel %vm2870_vm9, %v2758_v36, %v13759_v13  ;;  %v2951_v50 = vsel %vm2870_vm9, %v2822_v4, %v9590_v28  ;;  %v13787_v60 = vld [vmem:[#allocation176_spill] sm:$0xff]  ;;  %v13788_v26 = vld [vmem:[#allocation86_spill] sm:$0xff]  ;;  %v13793_v4 = vld [vmem:[#allocation443_spill] sm:$0xff] }
 0x4a1   : > { %5008 = vmatprep.mubr.msk.f32.mxu1 %vm3140_vm11, %v3078_v55  ;;  %v3079_v57 = vsel %vm2999_vm10, %v2950_v15, %v2114_v2  ;;  %v2759_v61 = vsel %vm2741_vm8, %v10044_v31, %v13754_v27  ;;  %v3016_v56 = vsel %vm2999_vm10, %v2887_v8, %v10139_v42  ;;  %v3080_v39 = vsel %vm2999_vm10, %v2951_v50, %v10141_v25  ;;  %v13792_v36 = vld [vmem:[#allocation178_spill] sm:$0xff]  ;;  %v13795_v8 = vld [vmem:[#allocation215_spill] sm:$0xff] }
 0x4a2   : > { %2089 = vrot.lane.b32.xlu1 %v13776_v22, %s5443_s29  ;;  %v2760_v28 = vsel %vm2741_vm8, %v10056_v54, %v13756_v45  ;;  %v2823_v13 = vsel %vm2741_vm8, %v2694_v23, %v13758_v43  ;;  %v2888_v31 = vsel %vm2870_vm9, %v2759_v61, %v13763_v44  ;;  %v2824_v27 = vsel %vm2741_vm8, %v2695_v32, %v13761_v6  ;;  %v13779_v6 = vld [vmem:[#allocation397_spill] sm:$0xff]  ;;  %v13796_v61 = vld [vmem:[#allocation179_spill] sm:$0xff] }
 0x4a3   : > { %4913 = vmatmul.mubr.msk.f32.gmra.mrb[14].mxu0 %vm3140_vm11, %v3015_v10  ;;  %5009 = vmatmul.mubr.msk.f32.gmra.mrb[14].mxu1 %vm3140_vm11, %v3079_v57  ;;  %v10287_v42 = vpop.permute.xlu1 %2051  ;;  %v2889_v54 = vsel %vm2870_vm9, %v2760_v28, %v13764_v52  ;;  %v2952_v45 = vsel %vm2870_vm9, %v2823_v13, %v13766_v1  ;;  %v3017_v43 = vsel %vm2999_vm10, %v2888_v31, %v10178_v14  ;;  %v13782_v1 = vld [vmem:[#allocation48_spill] sm:$0xff]  ;;  %v13794_v57 = vld [vmem:[#allocation94_spill] sm:$0xff]  ;;  %v13800_v31 = vld [vmem:[#allocation223_spill] sm:$0xff] }
 0x4a4   : > { %2153 = vrot.lane.b32.xlu0 %v13777_v41, %s5443_s29  ;;  %4915 = vmatprep.mubr.msk.f32.mxu0 %vm3140_vm11, %v3016_v56  ;;  %v10289_v25 = vpop.permute.xlu0 %2115  ;;  %v2953_v30 = vsel %vm2870_vm9, %v2824_v27, %v13765_v5  ;;  %v3081_v18 = vsel %vm2999_vm10, %v2952_v45, %v10180_v16  ;;  %v3018_v44 = vsel %vm2999_vm10, %v2889_v54, %v2048_v19  ;;  %v13780_v16 = vld [vmem:[#allocation451_spill] sm:$0xff]  ;;  %v13781_v19 = vld [vmem:[#allocation112_spill] sm:$0xff]  ;;  %v13798_v41 = vld [vmem:[#allocation210_spill] sm:$0xff] }
 0x4a5   : > { %5011 = vmatprep.mubr.msk.f32.mxu1 %vm3140_vm11, %v3080_v39  ;;  %v2696_v52 = vsel %vm2612_vm7, %v9924_v49, %v13779_v6  ;;  %v2761_v14 = vsel %vm2741_vm8, %v10061_v48, %v13769_v12  ;;  %v3082_v53 = vsel %vm2999_vm10, %v2953_v30, %v2112_v11  ;;  %v2762_v5 = vsel %vm2741_vm8, %v10033_v58, %v13780_v16  ;;  %v13797_v56 = vld [vmem:[#allocation192_spill] sm:$0xff]  ;;  %v13801_v45 = vld [vmem:[#allocation54_spill] sm:$0xff] }
 0x4a6   : > { %1960 = vrot.lane.b32.xlu1 %v13778_v33, %s5442_s22  ;;  %v2825_v20 = vsel %vm2741_vm8, %v2696_v52, %v13770_v34  ;;  %v2890_v49 = vsel %vm2870_vm9, %v2761_v14, %v13773_v0  ;;  %v2826_v35 = vsel %vm2741_vm8, %v2697_v51, %v13782_v1  ;;  %v2891_v58 = vsel %vm2870_vm9, %v2762_v5, %v13783_v7  ;;  %v13789_v0 = vld [vmem:[#allocation89_spill] sm:$0xff]  ;;  %v13799_v28 = vld [vmem:[#allocation132_spill] sm:$0xff] }
 0x4a7   : > { %4916 = vmatmul.mubr.msk.f32.gmra.mrb[16].mxu0 %vm3140_vm11, %v3017_v43  ;;  %5012 = vmatmul.mubr.msk.f32.gmra.mrb[16].mxu1 %vm3140_vm11, %v3081_v18  ;;  %v10326_v48 = vpop.permute.xlu1 %2053  ;;  %v2954_v24 = vsel %vm2870_vm9, %v2825_v20, %v13774_v21  ;;  %v3019_v55 = vsel %vm2999_vm10, %v2890_v49, %v2050_v9  ;;  %v2634_v29 = vsel %vm2612_vm7, %v13784_v17, %v13734_v40  ;;  %v13790_v21 = vld [vmem:[#allocation51_spill] sm:$0xff]  ;;  %v13803_v18 = vld [vmem:[#allocation213_spill] sm:$0xff] }
 0x4a8   : > { %4918 = vmatprep.mubr.msk.f32.mxu0 %vm3140_vm11, %v3018_v44  ;;  %2155 = vrot.lane.b32.xlu0 %v13781_v19, %s5443_s29  ;;  %v10328_v11 = vpop.permute.xlu0 %2117  ;;  %v2955_v3 = vsel %vm2870_vm9, %v2826_v35, %v13785_v37  ;;  %v3083_v47 = vsel %vm2999_vm10, %v2954_v24, %v2114_v2  ;;  %v3020_v51 = vsel %vm2999_vm10, %v2891_v58, %v10287_v42  ;;  %v13802_v43 = vld [vmem:[#allocation95_spill] sm:$0xff]  ;;  %v13804_v44 = vld [vmem:[#allocation185_spill] sm:$0xff]  ;;  %v13810_v58 = vld [vmem:[#allocation106_spill] sm:$0xff] }
 0x4a9   : > { %5014 = vmatprep.mubr.msk.f32.mxu1 %vm3140_vm11, %v3082_v53  ;;  %v2698_v12 = vsel %vm2612_vm7, %v9872_v38, %v13772_v62  ;;  %v2763_v34 = vsel %vm2741_vm8, %v2634_v29, %v13786_v63  ;;  %v3084_v40 = vsel %vm2999_vm10, %v2955_v3, %v10289_v25  ;;  %v2572_v23 = vsel %vm2483_vm6, %v13788_v26, %v13787_v60  ;;  %v13791_v62 = vld [vmem:[#allocation102_spill] sm:$0xff]  ;;  %v13805_v52 = vld [vmem:[#allocation453_spill] sm:$0xff]  ;;  %v13806_v53 = vld [vmem:[#allocation52_spill] sm:$0xff] }
 0x4aa   : > { %v2576_v46 = vsel %vm2483_vm6, %v13789_v0, %v13787_v60  ;;  %v2827_v38 = vsel %vm2741_vm8, %v2698_v12, %v13790_v21  ;;  %v2892_v15 = vsel %vm2870_vm9, %v2763_v34, %v13791_v62  ;;  %v2573_v10 = vsel %vm2483_vm6, %v13793_v4, %v13792_v36  ;;  %v13808_v20 = vld [vmem:[#allocation199_spill] sm:$0xff]  ;;  %v13811_v3 = vld [vmem:[#allocation217_spill] sm:$0xff]  ;;  %v13813_v12 = vld [vmem:[#allocation218_spill] sm:$0xff] }
 0x4ab   : > { %4919 = vmatmul.mubr.msk.f32.gmra.mrb[18].mxu0 %vm3140_vm11, %v3019_v55  ;;  %5015 = vmatmul.mubr.msk.f32.gmra.mrb[18].mxu1 %vm3140_vm11, %v3083_v47  ;;  %v10366_v9 = vpop.permute.xlu1 %1924  ;;  %v10376_v32 = vsel %vm2483_vm6, %v13794_v57, %v13792_v36  ;;  %v2956_v50 = vsel %vm2870_vm9, %v2827_v38, %v13795_v8  ;;  %v3021_v22 = vsel %vm2999_vm10, %v2892_v15, %v10326_v48  ;;  %v13809_v19 = vld [vmem:[#allocation103_spill] sm:$0xff]  ;;  %v13812_v47 = vld [vmem:[#allocation202_spill] sm:$0xff]  ;;  %v13814_v34 = vld [vmem:[#allocation205_spill] sm:$0xff] }
 0x4ac   : > { %4921 = vmatprep.mubr.msk.f32.mxu0 %vm3140_vm11, %v3020_v51  ;;  %5017 = vmatprep.mubr.msk.f32.mxu1 %vm3140_vm11, %v3084_v40  ;;  %v10368_v2 = vpop.permute.xlu0 %1926  ;;  %v2574_v39 = vsel %vm2483_vm6, %v13797_v56, %v13796_v61  ;;  %v2635_v13 = vsel %vm2612_vm7, %v13799_v28, %v13798_v41  ;;  %v2699_v27 = vsel %vm2612_vm7, %v13800_v31, %v13775_v59  ;;  %v13807_v59 = vld [vmem:[#allocation214_spill] sm:$0xff]  ;;  %v13815_v0 = vld [vmem:[#allocation221_spill] sm:$0xff]  ;;  %v13816_v38 = vld [vmem:[#allocation207_spill] sm:$0xff] }
 0x4ad   : > { %v3085_v54 = vsel %vm2999_vm10, %v2956_v50, %v10328_v11  ;;  %v2575_v30 = vsel %vm2483_vm6, %v13802_v43, %v13801_v45  ;;  %v2636_v33 = vsel %vm2612_vm7, %v13804_v44, %v13803_v18  ;;  %v2764_v14 = vsel %vm2741_vm8, %v2635_v13, %v13805_v52  ;;  %v13817_v36 = vld [vmem:[#allocation135_spill] sm:$0xff]  ;;  %v13818_v57 = vld [vmem:[#allocation398_spill] sm:$0xff]  ;;  %v13821_v31 = vld [vmem:[#allocation56_spill] sm:$0xff] }
 0x4ae   : > { %v2828_v5 = vsel %vm2741_vm8, %v2699_v27, %v13806_v53  ;;  %v2637_v49 = vsel %vm2612_vm7, %v13808_v20, %v13807_v59  ;;  %v2641_v35 = vsel %vm2612_vm7, %v13809_v19, %v13807_v59  ;;  %v2893_v24 = vsel %vm2870_vm9, %v2764_v14, %v13810_v58  ;;  %v13819_v56 = vld [vmem:[#allocation399_spill] sm:$0xff]  ;;  %v13820_v28 = vld [vmem:[#allocation454_spill] sm:$0xff] }
 0x4af   : > { %4922 = vmatmul.mubr.msk.f32.gmra.mrb[20].mxu0 %vm3140_vm11, %v3021_v22  ;;  %5018 = vmatmul.mubr.msk.f32.gmra.mrb[20].mxu1 %vm3140_vm11, %v3085_v54  ;;  %v2957_v55 = vsel %vm2870_vm9, %v2828_v5, %v10366_v9  ;;  %v2056_v17 = vpop.permute.xlu1 %2055  ;;  %v2638_v51 = vsel %vm2612_vm7, %v13812_v47, %v13811_v3  ;;  %v2639_v40 = vsel %vm2612_vm7, %v13814_v34, %v13813_v12  ;;  %v13822_v54 = vld [vmem:[#allocation107_spill] sm:$0xff]  ;;  %v13823_v5 = vld [vmem:[#allocation400_spill] sm:$0xff] }
 0x4b0   : > { %v2120_v29 = vpop.permute.xlu0 %2119  ;;  %v3022_v60 = vsel %vm2999_vm10, %v2893_v24, %v2056_v17  ;;  %v2640_v15 = vsel %vm2612_vm7, %v13816_v38, %v13815_v0  ;;  %v2700_v4 = vsel %vm2612_vm7, %v13817_v36, %v13779_v6  ;;  %v2701_v50 = vsel %vm2612_vm7, %v2572_v23, %v13818_v57 }
 0x4b1   : > { %v3086_v26 = vsel %vm2999_vm10, %v2957_v55, %v2120_v29  ;;  %4924 = vmatprep.mubr.msk.f32.mxu0 %vm3140_vm11, %v3022_v60  ;;  %v2705_v22 = vsel %vm2612_vm7, %v2576_v46, %v13818_v57  ;;  %v2702_v41 = vsel %vm2612_vm7, %v2573_v10, %v13819_v56  ;;  %v2765_v13 = vsel %vm2741_vm8, %v2636_v33, %v13820_v28  ;;  %v13828_v57 = vld [vmem:[#allocation307_spill] sm:$0xff] }
 0x4b2   : > { %5020 = vmatprep.mubr.msk.f32.mxu1 %vm3140_vm11, %v3086_v26  ;;  %v2829_v27 = vsel %vm2741_vm8, %v2700_v4, %v13821_v31  ;;  %v2766_v6 = vsel %vm2741_vm8, %v2637_v49, %v13780_v16  ;;  %v2830_v23 = vsel %vm2741_vm8, %v2701_v50, %v13782_v1  ;;  %v2894_v43 = vsel %vm2870_vm9, %v2765_v13, %v13822_v54  ;;  %v13829_v50 = vld [vmem:[#allocation157_spill] sm:$0xff]  ;;  %v13831_v13 = vld [vmem:[#allocation308_spill] sm:$0xff] }
 0x4b3   : > { %v2958_v46 = vsel %vm2870_vm9, %v2829_v27, %v10368_v2  ;;  %v2058_v18 = vpop.permute.xlu1 %2057  ;;  %v2895_v44 = vsel %vm2870_vm9, %v2766_v6, %v13783_v7  ;;  %v2959_v33 = vsel %vm2870_vm9, %v2830_v23, %v13785_v37  ;;  %v2703_v1 = vsel %vm2612_vm7, %v2574_v39, %v13823_v5  ;;  %v13824_v7 = vld [vmem:[#allocation402_spill] sm:$0xff]  ;;  %v13833_v6 = vld [vmem:[#allocation456_spill] sm:$0xff] }
 0x4b4   : > { %v2122_v10 = vpop.permute.xlu0 %2121  ;;  %v3023_v14 = vsel %vm2999_vm10, %v2894_v43, %v2058_v18  ;;  %v3024_v59 = vsel %vm2999_vm10, %v2895_v44, %v10287_v42  ;;  %v3088_v20 = vsel %vm2999_vm10, %v2959_v33, %v10289_v25  ;;  %v2704_v37 = vsel %vm2612_vm7, %v2575_v30, %v13824_v7 }
 0x4b5   : > { %v3087_v16 = vsel %vm2999_vm10, %v2958_v46, %v2122_v10  ;;  %4925 = vmatmul.mubr.msk.f32.gmra.mrb[22].mxu0 %vm3140_vm11, %v3023_v14  ;;  %v2767_v49 = vsel %vm2741_vm8, %v2638_v51, %v13786_v63  ;;  %v2831_v19 = vsel %vm2741_vm8, %v2702_v41, %v13790_v21  ;;  %v2768_v42 = vsel %vm2741_vm8, %v2639_v40, %v13805_v52  ;;  %v13826_v51 = vld [vmem:[#allocation57_spill] sm:$0xff]  ;;  %v13837_v46 = vld [vmem:[#allocation96_spill] sm:$0xff] }
 0x4b6   : > { %5021 = vmatmul.mubr.msk.f32.gmra.mrb[22].mxu1 %vm3140_vm11, %v3087_v16  ;;  %4927 = vmatprep.mubr.msk.f32.mxu0 %vm3140_vm11, %v3024_v59  ;;  %v2832_v25 = vsel %vm2741_vm8, %v2703_v1, %v13806_v53  ;;  %v2896_v39 = vsel %vm2870_vm9, %v2767_v49, %v13791_v62  ;;  %v2960_v30 = vsel %vm2870_vm9, %v2831_v19, %v13795_v8  ;;  %v13839_v1 = vld [vmem:[#allocation310_spill] sm:$0xff] }
 0x4b7   : > { %5023 = vmatprep.mubr.msk.f32.mxu1 %vm3140_vm11, %v3088_v20  ;;  %v10479_v63 = vpop.permute.xlu1 %1928  ;;  %v2897_v21 = vsel %vm2870_vm9, %v2768_v42, %v13810_v58  ;;  %v3025_v55 = vsel %vm2999_vm10, %v2896_v39, %v10326_v48  ;;  %v3089_v52 = vsel %vm2999_vm10, %v2960_v30, %v10328_v11  ;;  %v2961_v53 = vsel %vm2870_vm9, %v2832_v25, %v10366_v9  ;;  %v13825_v58 = vld [vmem:[#allocation455_spill] sm:$0xff]  ;;  %v13840_v59 = vld [vmem:[#allocation154_spill] sm:$0xff]  ;;  %v13843_v30 = vld [vmem:[#allocation312_spill] sm:$0xff] }
 0x4b8   : > { %v10481_v24 = vpop.permute.xlu0 %1930  ;;  %v2769_v62 = vsel %vm2741_vm8, %v2640_v15, %v13820_v28  ;;  %v3026_v8 = vsel %vm2999_vm10, %v2897_v21, %v2056_v17  ;;  %v3090_v47 = vsel %vm2999_vm10, %v2961_v53, %v2120_v29  ;;  %v2770_v48 = vsel %vm2741_vm8, %v2641_v35, %v13825_v58  ;;  %v13827_v29 = vld [vmem:[#allocation110_spill] sm:$0xff]  ;;  %v13842_v25 = vld [vmem:[#allocation311_spill] sm:$0xff] }
 0x4b9   : > { %4928 = vmatmul.mubr.msk.f32.gmra.mrb[24].mxu0 %vm3140_vm11, %v3025_v55  ;;  %v2833_v11 = vsel %vm2741_vm8, %v2704_v37, %v13821_v31  ;;  %v2834_v9 = vsel %vm2741_vm8, %v2705_v22, %v13826_v51  ;;  %v2898_v17 = vsel %vm2870_vm9, %v2769_v62, %v13822_v54  ;;  %v2899_v34 = vsel %vm2870_vm9, %v2770_v48, %v13827_v29  ;;  %v13830_v22 = vld [vmem:[#allocation204_spill] sm:$0xff]  ;;  %v13832_v31 = vld [vmem:[#allocation158_spill] sm:$0xff]  ;;  %v13841_v37 = vld [vmem:[#allocation161_spill] sm:$0xff] }
 0x4ba   : > { %5024 = vmatmul.mubr.msk.f32.gmra.mrb[24].mxu1 %vm3140_vm11, %v3089_v52  ;;  %4930 = vmatprep.mubr.msk.f32.mxu0 %vm3140_vm11, %v3026_v8  ;;  %v2962_v40 = vsel %vm2870_vm9, %v2833_v11, %v10368_v2  ;;  %v2963_v35 = vsel %vm2870_vm9, %v2834_v9, %v10479_v63  ;;  %v3027_v38 = vsel %vm2999_vm10, %v2898_v17, %v2058_v18  ;;  %v13834_v54 = vld [vmem:[#allocation60_spill] sm:$0xff]  ;;  %v13844_v55 = vld [vmem:[#allocation339_spill] sm:$0xff]  ;;  %v13848_v48 = vld [vmem:[#allocation341_spill] sm:$0xff] }
 0x4bb   : > { %5026 = vmatprep.mubr.msk.f32.mxu1 %vm3140_vm11, %v3090_v47  ;;  %v10513_v60 = vpop.permute.xlu1 %2059  ;;  %v3091_v15 = vsel %vm2999_vm10, %v2962_v40, %v2122_v10  ;;  %v2449_v2 = vsel %vm2354_vm5, %v13829_v50, %v13828_v57  ;;  %v2642_v41 = vsel %vm2612_vm7, %v13830_v22, %v13811_v3  ;;  %v2706_v28 = vsel %vm2612_vm7, %v10376_v32, %v13819_v56  ;;  %v13835_v3 = vld [vmem:[#allocation309_spill] sm:$0xff]  ;;  %v13838_v10 = vld [vmem:[#allocation111_spill] sm:$0xff]  ;;  %v13845_v52 = vld [vmem:[#allocation416_spill] sm:$0xff] }
 0x4bc   : > { %v10515_v26 = vpop.permute.xlu0 %2123  ;;  %v3028_v36 = vsel %vm2999_vm10, %v2899_v34, %v10513_v60  ;;  %v2450_v27 = vsel %vm2354_vm5, %v13832_v31, %v13831_v13  ;;  %v2771_v23 = vsel %vm2741_vm8, %v2642_v41, %v13833_v6  ;;  %v2835_v43 = vsel %vm2741_vm8, %v2706_v28, %v13834_v54  ;;  %v13836_v32 = vld [vmem:[#allocation153_spill] sm:$0xff]  ;;  %v13846_v62 = vld [vmem:[#allocation340_spill] sm:$0xff]  ;;  %v13847_v8 = vld [vmem:[#allocation59_spill] sm:$0xff] }
 0x4bd   : > { %v3092_v4 = vsel %vm2999_vm10, %v2963_v35, %v10515_v26  ;;  %4931 = vmatmul.mubr.msk.f32.gmra.mrb[26].mxu0 %vm3140_vm11, %v3027_v38  ;;  %v2451_v56 = vsel %vm2354_vm5, %v13836_v32, %v13835_v3  ;;  %v2455_v18 = vsel %vm2354_vm5, %v13837_v46, %v13835_v3  ;;  %v2900_v44 = vsel %vm2870_vm9, %v2771_v23, %v13838_v10  ;;  %v13849_v11 = vld [vmem:[#allocation417_spill] sm:$0xff]  ;;  %v13850_v17 = vld [vmem:[#allocation62_spill] sm:$0xff]  ;;  %v13852_v35 = vld [vmem:[#allocation420_spill] sm:$0xff] }
 0x4be   : > { %5027 = vmatmul.mubr.msk.f32.gmra.mrb[26].mxu1 %vm3140_vm11, %v3091_v15  ;;  %4933 = vmatprep.mubr.msk.f32.mxu0 %vm3140_vm11, %v3028_v36  ;;  %v2964_v33 = vsel %vm2870_vm9, %v2835_v43, %v10481_v24  ;;  %v2452_v20 = vsel %vm2354_vm5, %v13840_v59, %v13839_v1  ;;  %v2456_v49 = vsel %vm2354_vm5, %v13841_v37, %v13839_v1  ;;  %v13851_v40 = vld [vmem:[#allocation342_spill] sm:$0xff]  ;;  %v13853_v15 = vld [vmem:[#allocation67_spill] sm:$0xff]  ;;  %v13855_v57 = vld [vmem:[#allocation421_spill] sm:$0xff] }
 0x4bf   : > { %5029 = vmatprep.mubr.msk.f32.mxu1 %vm3140_vm11, %v3092_v4  ;;  %v10553_v14 = vpop.permute.xlu1 %2061  ;;  %v2453_v39 = vsel %vm2354_vm5, %v13829_v50, %v13842_v25  ;;  %v2454_v21 = vsel %vm2354_vm5, %v13832_v31, %v13843_v30  ;;  %v2514_v53 = vsel %vm2483_vm6, %v13845_v52, %v13844_v55  ;;  %v2515_v47 = vsel %vm2483_vm6, %v13847_v8, %v13846_v62  ;;  %v13854_v4 = vld [vmem:[#allocation343_spill] sm:$0xff]  ;;  %v13856_v22 = vld [vmem:[#allocation344_spill] sm:$0xff]  ;;  %v13858_v3 = vld [vmem:[#allocation365_spill] sm:$0xff] }
 0x4c0   : > { %v10555_v16 = vpop.permute.xlu0 %2125  ;;  %v3029_v19 = vsel %vm2999_vm10, %v2900_v44, %v10553_v14  ;;  %v2516_v9 = vsel %vm2483_vm6, %v13849_v11, %v13848_v48  ;;  %v2520_v34 = vsel %vm2483_vm6, %v13850_v17, %v13848_v48  ;;  %v2517_v38 = vsel %vm2483_vm6, %v13852_v35, %v13851_v40  ;;  %v13857_v41 = vld [vmem:[#allocation75_spill] sm:$0xff]  ;;  %v13864_v52 = vld [vmem:[#allocation222_spill] sm:$0xff]  ;;  %v13866_v8 = vld [vmem:[#allocation225_spill] sm:$0xff] }
 0x4c1   : > { %v3093_v42 = vsel %vm2999_vm10, %v2964_v33, %v10555_v16  ;;  %4934 = vmatmul.mubr.msk.f32.gmra.mrb[28].mxu0 %vm3140_vm11, %v3029_v19  ;;  %v10593_v36 = vsel %vm2483_vm6, %v13853_v15, %v13851_v40  ;;  %v2518_v50 = vsel %vm2483_vm6, %v13855_v57, %v13854_v4  ;;  %v2519_v28 = vsel %vm2483_vm6, %v13857_v41, %v13856_v22  ;;  %v13859_v33 = vld [vmem:[#allocation366_spill] sm:$0xff]  ;;  %v13868_v40 = vld [vmem:[#allocation229_spill] sm:$0xff]  ;;  %v13869_v15 = vld [vmem:[#allocation403_spill] sm:$0xff] }
 0x4c2   : > { %5030 = vmatmul.mubr.msk.f32.gmra.mrb[28].mxu1 %vm3140_vm11, %v3093_v42  ;;  %v2578_v13 = vsel %vm2483_vm6, %v2449_v2, %v13796_v61  ;;  %v2579_v43 = vsel %vm2483_vm6, %v2450_v27, %v13801_v45  ;;  %v2580_v32 = vsel %vm2483_vm6, %v2451_v56, %v13858_v3  ;;  %v2584_v44 = vsel %vm2483_vm6, %v2455_v18, %v13858_v3  ;;  %v13860_v61 = vld [vmem:[#allocation367_spill] sm:$0xff]  ;;  %v13861_v27 = vld [vmem:[#allocation368_spill] sm:$0xff]  ;;  %v13867_v48 = vld [vmem:[#allocation226_spill] sm:$0xff] }
 0x4c3   : > { %v10603_v31 = vpop.permute.xlu1 %1932  ;;  %v2581_v1 = vsel %vm2483_vm6, %v2452_v20, %v13859_v33  ;;  %v10617_v59 = vsel %vm2483_vm6, %v2456_v49, %v13859_v33  ;;  %v2582_v2 = vsel %vm2483_vm6, %v2453_v39, %v13860_v61  ;;  %v2643_v19 = vsel %vm2612_vm7, %v2514_v53, %v13813_v12  ;;  %v13862_v20 = vld [vmem:[#allocation457_spill] sm:$0xff]  ;;  %v13865_v53 = vld [vmem:[#allocation122_spill] sm:$0xff] }
 0x4c4   : > { %v10605_v23 = vpop.permute.xlu0 %1934  ;;  %v2707_v45 = vsel %vm2612_vm7, %v2578_v13, %v13823_v5  ;;  %v2583_v56 = vsel %vm2483_vm6, %v2454_v21, %v13861_v27  ;;  %v2644_v18 = vsel %vm2612_vm7, %v2515_v47, %v13815_v0  ;;  %v2772_v42 = vsel %vm2741_vm8, %v2643_v19, %v13862_v20  ;;  %v13863_v49 = vld [vmem:[#allocation61_spill] sm:$0xff]  ;;  %v13871_v13 = vld [vmem:[#allocation458_spill] sm:$0xff] }
 0x4c5   : > { %v2836_v55 = vsel %vm2741_vm8, %v2707_v45, %v13863_v49  ;;  %v2645_v39 = vsel %vm2612_vm7, %v2516_v9, %v13864_v52  ;;  %v2649_v12 = vsel %vm2612_vm7, %v2520_v34, %v13864_v52  ;;  %v2901_v5 = vsel %vm2870_vm9, %v2772_v42, %v13865_v53  ;;  %v13874_v52 = vld [vmem:[#allocation407_spill] sm:$0xff] }
 0x4c6   : > { %v2965_v21 = vsel %vm2870_vm9, %v2836_v55, %v10603_v31  ;;  %v2646_v47 = vsel %vm2612_vm7, %v2517_v38, %v13866_v8  ;;  %v2647_v11 = vsel %vm2612_vm7, %v2518_v50, %v13867_v48  ;;  %v2648_v34 = vsel %vm2612_vm7, %v2519_v28, %v13868_v40  ;;  %v13870_v50 = vld [vmem:[#allocation406_spill] sm:$0xff]  ;;  %v13872_v28 = vld [vmem:[#allocation65_spill] sm:$0xff] }
 0x4c7   : > { %v2064_v62 = vpop.permute.xlu1 %2063  ;;  %v2708_v35 = vsel %vm2612_vm7, %v2579_v43, %v13824_v7  ;;  %v2709_v57 = vsel %vm2612_vm7, %v2580_v32, %v13869_v15  ;;  %v2713_v38 = vsel %vm2612_vm7, %v2584_v44, %v13869_v15  ;;  %v2710_v41 = vsel %vm2612_vm7, %v2581_v1, %v13870_v50  ;;  %v13873_v32 = vld [vmem:[#allocation125_spill] sm:$0xff] }
 0x4c8   : > { %v2128_v0 = vpop.permute.xlu0 %2127  ;;  %v3030_v17 = vsel %vm2999_vm10, %v2901_v5, %v2064_v62  ;;  %v2773_v3 = vsel %vm2741_vm8, %v2644_v18, %v13871_v13  ;;  %v2837_v33 = vsel %vm2741_vm8, %v2708_v35, %v13872_v28  ;;  %v2774_v7 = vsel %vm2741_vm8, %v2645_v39, %v13825_v58  ;;  %v13877_v35 = vld [vmem:[#allocation66_spill] sm:$0xff] }
 0x4c9   : > { %v3094_v9 = vsel %vm2999_vm10, %v2965_v21, %v2128_v0  ;;  %4936 = vmatprep.mubr.msk.f32.mxu0 %vm3140_vm11, %v3030_v17  ;;  %v2838_v43 = vsel %vm2741_vm8, %v2709_v57, %v13826_v51  ;;  %v2902_v19 = vsel %vm2870_vm9, %v2773_v3, %v13873_v32  ;;  %v2966_v44 = vsel %vm2870_vm9, %v2837_v33, %v10605_v23  ;;  %v13879_v33 = vld [vmem:[#allocation28_spill] sm:$0xff] }
 0x4ca   : > { %5032 = vmatprep.mubr.msk.f32.mxu1 %vm3140_vm11, %v3094_v9  ;;  %v2903_v18 = vsel %vm2870_vm9, %v2774_v7, %v13827_v29  ;;  %v2967_v42 = vsel %vm2870_vm9, %v2838_v43, %v10479_v63  ;;  %v2711_v51 = vsel %vm2612_vm7, %v2582_v2, %v13874_v52  ;;  %v13875_v29 = vld [vmem:[#allocation410_spill] sm:$0xff]  ;;  %v2775_v21 = vsel %vm2741_vm8, %v2646_v47, %v13833_v6  ;;  %v13880_v7 = vld [vmem:[#allocation64_spill] sm:$0xff] }
 0x4cb   : > { %v2066_v45 = vpop.permute.xlu1 %2065  ;;  %v3032_v39 = vsel %vm2999_vm10, %v2903_v18, %v10513_v60  ;;  %v3096_v5 = vsel %vm2999_vm10, %v2967_v42, %v10515_v26  ;;  %v2712_v63 = vsel %vm2612_vm7, %v2583_v56, %v13875_v29  ;;  %v2839_v17 = vsel %vm2741_vm8, %v2710_v41, %v13834_v54  ;;  %v13884_v42 = vld [vmem:[#allocation69_spill] sm:$0xff] }
 0x4cc   : > { %v2130_v1 = vpop.permute.xlu0 %2129  ;;  %v3031_v55 = vsel %vm2999_vm10, %v2902_v19, %v2066_v45  ;;  %v2776_v60 = vsel %vm2741_vm8, %v2647_v11, %v13862_v20  ;;  %v2840_v26 = vsel %vm2741_vm8, %v2711_v51, %v13863_v49  ;;  %v2904_v2 = vsel %vm2870_vm9, %v2775_v21, %v13838_v10  ;;  %v13881_v19 = vld [vmem:[#allocation29_spill] sm:$0xff] }
 0x4cd   : > { %v3095_v58 = vsel %vm2999_vm10, %v2966_v44, %v2130_v1  ;;  %4937 = vmatmul.mubr.msk.f32.gmra.mrb[30].mxu0 %vm3140_vm11, %v3031_v55  ;;  %v2968_v56 = vsel %vm2870_vm9, %v2839_v17, %v10481_v24  ;;  %v2905_v54 = vsel %vm2870_vm9, %v2776_v60, %v13865_v53  ;;  %v3033_v9 = vsel %vm2999_vm10, %v2904_v2, %v10553_v14  ;;  %v13876_v53 = vld [vmem:[#allocation459_spill] sm:$0xff]  ;;  %v13882_v44 = vld [vmem:[#allocation133_spill] sm:$0xff]  ;;  %v13890_v2 = vld [vmem:[#allocation314_spill] sm:$0xff] }
 0x4ce   : > { %5033 = vmatmul.mubr.msk.f32.gmra.mrb[30].mxu1 %vm3140_vm11, %v3095_v58  ;;  %4939 = vmatprep.mubr.msk.f32.mxu0 %vm3140_vm11, %v3032_v39  ;;  %v3097_v20 = vsel %vm2999_vm10, %v2968_v56, %v10555_v16  ;;  %v2969_v49 = vsel %vm2870_vm9, %v2840_v26, %v10603_v31  ;;  %v2777_v10 = vsel %vm2741_vm8, %v2648_v34, %v13871_v13  ;;  %v13887_v58 = vld [vmem:[#allocation130_spill] sm:$0xff]  ;;  %v13888_v21 = vld [vmem:[#allocation313_spill] sm:$0xff] }
 0x4cf   : > { %5035 = vmatprep.mubr.msk.f32.mxu1 %vm3140_vm11, %v3096_v5  ;;  %v10701_v6 = vpop.permute.xlu1 %1936  ;;  %v3034_v24 = vsel %vm2999_vm10, %v2905_v54, %v2064_v62  ;;  %v3098_v11 = vsel %vm2999_vm10, %v2969_v49, %v2128_v0  ;;  %v2778_v14 = vsel %vm2741_vm8, %v2649_v12, %v13876_v53  ;;  %v2841_v16 = vsel %vm2741_vm8, %v2712_v63, %v13872_v28  ;;  %v13878_v0 = vld [vmem:[#allocation129_spill] sm:$0xff]  ;;  %v13891_v54 = vld [vmem:[#allocation184_spill] sm:$0xff] }
 0x4d0   : > { %v10703_v47 = vpop.permute.xlu0 %1938  ;;  %v2842_v31 = vsel %vm2741_vm8, %v2713_v38, %v13877_v35  ;;  %v2906_v62 = vsel %vm2870_vm9, %v2777_v10, %v13873_v32  ;;  %v2907_v34 = vsel %vm2870_vm9, %v2778_v14, %v13878_v0  ;;  %v2970_v15 = vsel %vm2870_vm9, %v2841_v16, %v10605_v23  ;;  %v13893_v49 = vld [vmem:[#allocation316_spill] sm:$0xff]  ;;  %v13896_v16 = vld [vmem:[#allocation345_spill] sm:$0xff] }
 0x4d1   : > { %4940 = vmatmul.mubr.msk.f32.gmra.mrb[32].mxu0 %vm3140_vm11, %v3033_v9  ;;  %v2971_v12 = vsel %vm2870_vm9, %v2842_v31, %v10701_v6  ;;  %v3035_v38 = vsel %vm2999_vm10, %v2906_v62, %v2066_v45  ;;  %v3099_v13 = vsel %vm2999_vm10, %v2970_v15, %v2130_v1  ;;  %v10748_v23 = vsel %vm2354_vm5, %v13880_v7, %v13879_v33  ;;  %v13883_v1 = vld [vmem:[#allocation460_spill] sm:$0xff]  ;;  %v13897_v31 = vld [vmem:[#allocation425_spill] sm:$0xff] }
 0x4d2   : > { %5036 = vmatmul.mubr.msk.f32.gmra.mrb[32].mxu1 %vm3140_vm11, %v3097_v20  ;;  %4942 = vmatprep.mubr.msk.f32.mxu0 %vm3140_vm11, %v3034_v24  ;;  %v2650_v43 = vsel %vm2612_vm7, %v10593_v36, %v13866_v8  ;;  %v2714_v32 = vsel %vm2612_vm7, %v10617_v59, %v13870_v50  ;;  %v10761_v45 = vsel %vm2354_vm5, %v13882_v44, %v13881_v19  ;;  %v13885_v36 = vld [vmem:[#allocation162_spill] sm:$0xff]  ;;  %v13886_v8 = vld [vmem:[#allocation165_spill] sm:$0xff]  ;;  %v13904_v44 = vld [vmem:[#allocation348_spill] sm:$0xff] }
 0x4d3   : > { %5038 = vmatprep.mubr.msk.f32.mxu1 %vm3140_vm11, %v3098_v11  ;;  %v10735_v57 = vpop.permute.xlu1 %2067  ;;  %v2779_v18 = vsel %vm2741_vm8, %v2650_v43, %v13883_v1  ;;  %v2843_v55 = vsel %vm2741_vm8, %v2714_v32, %v13884_v42  ;;  %v2457_v59 = vsel %vm2354_vm5, %v13885_v36, %v13842_v25  ;;  %v2458_v50 = vsel %vm2354_vm5, %v13886_v8, %v13843_v30  ;;  %v13889_v25 = vld [vmem:[#allocation131_spill] sm:$0xff]  ;;  %v13894_v24 = vld [vmem:[#allocation74_spill] sm:$0xff]  ;;  %v13895_v11 = vld [vmem:[#allocation68_spill] sm:$0xff] }
 0x4d4   : > { %v10737_v41 = vpop.permute.xlu0 %2131  ;;  %v3036_v3 = vsel %vm2999_vm10, %v2907_v34, %v10735_v57  ;;  %v2908_v51 = vsel %vm2870_vm9, %v2779_v18, %v13887_v58  ;;  %v2972_v39 = vsel %vm2870_vm9, %v2843_v55, %v10703_v47  ;;  %v2459_v17 = vsel %vm2354_vm5, %v13837_v46, %v13888_v21  ;;  %v13892_v46 = vld [vmem:[#allocation315_spill] sm:$0xff]  ;;  %v13903_v33 = vld [vmem:[#allocation429_spill] sm:$0xff]  ;;  %v13905_v18 = vld [vmem:[#allocation432_spill] sm:$0xff] }
 0x4d5   : > { %v3100_v28 = vsel %vm2999_vm10, %v2971_v12, %v10737_v41  ;;  %4943 = vmatmul.mubr.msk.f32.gmra.mrb[34].mxu0 %vm3140_vm11, %v3035_v38  ;;  %v2463_v60 = vsel %vm2354_vm5, %v13889_v25, %v13888_v21  ;;  %v2460_v56 = vsel %vm2354_vm5, %v13841_v37, %v13890_v2  ;;  %v10799_v9 = vsel %vm2354_vm5, %v13891_v54, %v13890_v2  ;;  %v13898_v34 = vld [vmem:[#allocation71_spill] sm:$0xff]  ;;  %v13899_v12 = vld [vmem:[#allocation346_spill] sm:$0xff]  ;;  %v13900_v38 = vld [vmem:[#allocation428_spill] sm:$0xff] }
 0x4d6   : > { %5039 = vmatmul.mubr.msk.f32.gmra.mrb[34].mxu1 %vm3140_vm11, %v3099_v13  ;;  %4945 = vmatprep.mubr.msk.f32.mxu0 %vm3140_vm11, %v3036_v3  ;;  %v2461_v20 = vsel %vm2354_vm5, %v13885_v36, %v13892_v46  ;;  %v2462_v10 = vsel %vm2354_vm5, %v13886_v8, %v13893_v49  ;;  %v2522_v37 = vsel %vm2483_vm6, %v13894_v24, %v13854_v4  ;;  %v13901_v3 = vld [vmem:[#allocation76_spill] sm:$0xff] }
 0x4d7   : > { %5041 = vmatprep.mubr.msk.f32.mxu1 %vm3140_vm11, %v3100_v28  ;;  %v10779_v5 = vpop.permute.xlu1 %2069  ;;  %v2523_v14 = vsel %vm2483_vm6, %v13895_v11, %v13856_v22  ;;  %v2524_v62 = vsel %vm2483_vm6, %v13897_v31, %v13896_v16  ;;  %v2528_v15 = vsel %vm2483_vm6, %v13898_v34, %v13896_v16  ;;  %v2525_v13 = vsel %vm2483_vm6, %v13900_v38, %v13899_v12  ;;  %v13902_v28 = vld [vmem:[#allocation347_spill] sm:$0xff]  ;;  %v13911_v16 = vld [vmem:[#allocation70_spill] sm:$0xff]  ;;  %v13914_v38 = vld [vmem:[#allocation233_spill] sm:$0xff] }
 0x4d8   : > { %v10781_v63 = vpop.permute.xlu0 %2133  ;;  %v3037_v30 = vsel %vm2999_vm10, %v2908_v51, %v10779_v5  ;;  %v10827_v4 = vsel %vm2483_vm6, %v13901_v3, %v13899_v12  ;;  %v2526_v22 = vsel %vm2483_vm6, %v13903_v33, %v13902_v28  ;;  %v2527_v55 = vsel %vm2483_vm6, %v13905_v18, %v13904_v44  ;;  %v13906_v51 = vld [vmem:[#allocation369_spill] sm:$0xff]  ;;  %v13908_v11 = vld [vmem:[#allocation371_spill] sm:$0xff]  ;;  %v13912_v31 = vld [vmem:[#allocation230_spill] sm:$0xff] }
 0x4d9   : > { %v3101_v26 = vsel %vm2999_vm10, %v2972_v39, %v10781_v63  ;;  %4946 = vmatmul.mubr.msk.f32.gmra.mrb[36].mxu0 %vm3140_vm11, %v3037_v30  ;;  %v2586_v36 = vsel %vm2483_vm6, %v2457_v59, %v13860_v61  ;;  %v2587_v8 = vsel %vm2483_vm6, %v2458_v50, %v13861_v27  ;;  %v2588_v39 = vsel %vm2483_vm6, %v2459_v17, %v13906_v51  ;;  %v13907_v30 = vld [vmem:[#allocation370_spill] sm:$0xff]  ;;  %v13909_v59 = vld [vmem:[#allocation372_spill] sm:$0xff]  ;;  %v13910_v50 = vld [vmem:[#allocation461_spill] sm:$0xff] }
 0x4da   : > { %5042 = vmatmul.mubr.msk.f32.gmra.mrb[36].mxu1 %vm3140_vm11, %v3101_v26  ;;  %v2592_v21 = vsel %vm2483_vm6, %v2463_v60, %v13906_v51  ;;  %v2589_v26 = vsel %vm2483_vm6, %v2460_v56, %v13907_v30  ;;  %v2651_v2 = vsel %vm2612_vm7, %v2522_v37, %v13867_v48  ;;  %v2715_v24 = vsel %vm2612_vm7, %v2586_v36, %v13874_v52  ;;  %v13913_v37 = vld [vmem:[#allocation138_spill] sm:$0xff]  ;;  %v13916_v18 = vld [vmem:[#allocation237_spill] sm:$0xff] }
 0x4db   : > { %v1941_v43 = vpop.permute.xlu1 %1940  ;;  %v2590_v61 = vsel %vm2483_vm6, %v2461_v20, %v13908_v11  ;;  %v2591_v27 = vsel %vm2483_vm6, %v2462_v10, %v13909_v59  ;;  %v2780_v17 = vsel %vm2741_vm8, %v2651_v2, %v13910_v50  ;;  %v2844_v60 = vsel %vm2741_vm8, %v2715_v24, %v13911_v16  ;;  %v13918_v24 = vld [vmem:[#allocation462_spill] sm:$0xff] }
 0x4dc   : > { %v10832_v32 = vpop.permute.xlu0 %1942  ;;  %v2652_v56 = vsel %vm2612_vm7, %v2523_v14, %v13868_v40  ;;  %v2653_v48 = vsel %vm2612_vm7, %v2524_v62, %v13912_v31  ;;  %v2909_v52 = vsel %vm2870_vm9, %v2780_v17, %v13913_v37  ;;  %v2973_v20 = vsel %vm2870_vm9, %v2844_v60, %v1941_v43  ;;  %v13915_v14 = vld [vmem:[#allocation234_spill] sm:$0xff] }
 0x4dd   : > { %v2657_v10 = vsel %vm2612_vm7, %v2528_v15, %v13912_v31  ;;  %v2654_v3 = vsel %vm2612_vm7, %v2525_v13, %v13914_v38  ;;  %v2655_v62 = vsel %vm2612_vm7, %v2526_v22, %v13915_v14  ;;  %v2656_v36 = vsel %vm2612_vm7, %v2527_v55, %v13916_v18  ;;  %v13917_v15 = vld [vmem:[#allocation411_spill] sm:$0xff]  ;;  %v13919_v22 = vld [vmem:[#allocation477_spill] sm:$0xff] }
 0x4de   : > { %v2716_v51 = vsel %vm2612_vm7, %v2587_v8, %v13875_v29  ;;  %v2717_v13 = vsel %vm2612_vm7, %v2588_v39, %v13917_v15  ;;  %v2721_v2 = vsel %vm2612_vm7, %v2592_v21, %v13917_v15  ;;  %v2781_v17 = vsel %vm2741_vm8, %v2652_v56, %v13918_v24  ;;  %v13920_v8 = vld [vmem:[#allocation141_spill] sm:$0xff] }
 0x4df   : > { %v2072_v34 = vpop.permute.xlu1 %2071  ;;  %v2845_v60 = vsel %vm2741_vm8, %v2716_v51, %v13919_v22  ;;  %v2782_v55 = vsel %vm2741_vm8, %v2653_v48, %v13876_v53  ;;  %v2846_v29 = vsel %vm2741_vm8, %v2717_v13, %v13877_v35  ;;  %v2910_v31 = vsel %vm2870_vm9, %v2781_v17, %v13920_v8  ;;  %v13921_v48 = vld [vmem:[#allocation414_spill] sm:$0xff] }
 0x4e0   : > { %v2136_v12 = vpop.permute.xlu0 %2135  ;;  %v3038_v33 = vsel %vm2999_vm10, %v2909_v52, %v2072_v34  ;;  %v2974_v39 = vsel %vm2870_vm9, %v2845_v60, %v10832_v32  ;;  %v2911_v56 = vsel %vm2870_vm9, %v2782_v55, %v13878_v0  ;;  %v2718_v35 = vsel %vm2612_vm7, %v2589_v26, %v13921_v48  ;;  %v13922_v0 = vld [vmem:[#allocation415_spill] sm:$0xff]  ;;  %v13923_v17 = vld [vmem:[#allocation418_spill] sm:$0xff]  ;;  %v13926_v55 = vld [vmem:[#allocation149_spill] sm:$0xff] }
 0x4e1   : > { %v3102_v40 = vsel %vm2999_vm10, %v2973_v20, %v2136_v12  ;;  %4948 = vmatprep.mubr.msk.f32.mxu0 %vm3140_vm11, %v3038_v33  ;;  %v2975_v20 = vsel %vm2870_vm9, %v2846_v29, %v10701_v6  ;;  %v2719_v6 = vsel %vm2612_vm7, %v2590_v61, %v13922_v0  ;;  %v2783_v15 = vsel %vm2741_vm8, %v2654_v3, %v13883_v1 }
 0x4e2   : > { %5044 = vmatprep.mubr.msk.f32.mxu1 %vm3140_vm11, %v3102_v40  ;;  %v3040_v40 = vsel %vm2999_vm10, %v2911_v56, %v10735_v57  ;;  %v3104_v51 = vsel %vm2999_vm10, %v2975_v20, %v10737_v41  ;;  %v2847_v13 = vsel %vm2741_vm8, %v2718_v35, %v13884_v42  ;;  %v2784_v57 = vsel %vm2741_vm8, %v2655_v62, %v13910_v50 }
 0x4e3   : > { %v2074_v52 = vpop.permute.xlu1 %2073  ;;  %v2848_v41 = vsel %vm2741_vm8, %v2719_v6, %v13911_v16  ;;  %v2912_v26 = vsel %vm2870_vm9, %v2783_v15, %v13887_v58  ;;  %v2976_v61 = vsel %vm2870_vm9, %v2847_v13, %v10703_v47  ;;  %v2913_v42 = vsel %vm2870_vm9, %v2784_v57, %v13913_v37  ;;  %v13924_v37 = vld [vmem:[#allocation463_spill] sm:$0xff]  ;;  %v13935_v13 = vld [vmem:[#allocation128_spill] sm:$0xff] }
 0x4e4   : > { %v2138_v21 = vpop.permute.xlu0 %2137  ;;  %v3039_v33 = vsel %vm2999_vm10, %v2910_v31, %v2074_v52  ;;  %v3041_v3 = vsel %vm2999_vm10, %v2912_v26, %v10779_v5  ;;  %v3105_v50 = vsel %vm2999_vm10, %v2976_v61, %v10781_v63  ;;  %v2977_v62 = vsel %vm2870_vm9, %v2848_v41, %v1941_v43  ;;  %v13934_v15 = vld [vmem:[#allocation31_spill] sm:$0xff]  ;;  %v13936_v41 = vld [vmem:[#allocation32_spill] sm:$0xff] }
 0x4e5   : > { %v3103_v53 = vsel %vm2999_vm10, %v2974_v39, %v2138_v21  ;;  %4949 = vmatmul.mubr.msk.f32.gmra.mrb[38].mxu0 %vm3140_vm11, %v3039_v33  ;;  %v2720_v58 = vsel %vm2612_vm7, %v2591_v27, %v13923_v17  ;;  %v3042_v47 = vsel %vm2999_vm10, %v2913_v42, %v2072_v34  ;;  %v3106_v60 = vsel %vm2999_vm10, %v2977_v62, %v2136_v12  ;;  %v13925_v27 = vld [vmem:[#allocation478_spill] sm:$0xff]  ;;  %v13928_v33 = vld [vmem:[#allocation464_spill] sm:$0xff] }
 0x4e6   : > { %5045 = vmatmul.mubr.msk.f32.gmra.mrb[38].mxu1 %vm3140_vm11, %v3103_v53  ;;  %4951 = vmatprep.mubr.msk.f32.mxu0 %vm3140_vm11, %v3040_v40  ;;  %v2785_v5 = vsel %vm2741_vm8, %v2656_v36, %v13918_v24  ;;  %v2786_v63 = vsel %vm2741_vm8, %v2657_v10, %v13924_v37  ;;  %v2849_v43 = vsel %vm2741_vm8, %v2720_v58, %v13919_v22  ;;  %v13931_v53 = vld [vmem:[#allocation142_spill] sm:$0xff]  ;;  %v13932_v40 = vld [vmem:[#allocation479_spill] sm:$0xff]  ;;  %v13938_v58 = vld [vmem:[#allocation173_spill] sm:$0xff] }
 0x4e7   : > { %5047 = vmatprep.mubr.msk.f32.mxu1 %vm3140_vm11, %v3104_v51  ;;  %v10926_v1 = vpop.permute.xlu1 %1944  ;;  %v2850_v34 = vsel %vm2741_vm8, %v2721_v2, %v13925_v27  ;;  %v2914_v12 = vsel %vm2870_vm9, %v2785_v5, %v13920_v8  ;;  %v2915_v29 = vsel %vm2870_vm9, %v2786_v63, %v13926_v55  ;;  %v2978_v36 = vsel %vm2870_vm9, %v2849_v43, %v10832_v32  ;;  %v13933_v51 = vld [vmem:[#allocation150_spill] sm:$0xff]  ;;  %v13940_v63 = vld [vmem:[#allocation401_spill] sm:$0xff] }
 0x4e8   : > { %v3043_v24 = vsel %vm2999_vm10, %v2914_v12, %v2074_v52  ;;  %v3107_v22 = vsel %vm2999_vm10, %v2978_v36, %v2138_v21  ;;  %v2979_v31 = vsel %vm2870_vm9, %v2850_v34, %v10926_v1  ;;  %v2593_v8 = vsel %vm2483_vm6, %v10799_v9, %v13907_v30  ;;  %v13927_v21 = vld [vmem:[#allocation137_spill] sm:$0xff]  ;;  %v13930_v30 = vld [vmem:[#allocation134_spill] sm:$0xff]  ;;  %v13944_v36 = vld [vmem:[#allocation320_spill] sm:$0xff] }
 0x4e9   : > { %v10935_v16 = vpop.permute.xlu0 %1946  ;;  %4952 = vmatmul.mubr.msk.f32.gmra.mrb[40].mxu0 %vm3140_vm11, %v3041_v3  ;;  %v2658_v32 = vsel %vm2612_vm7, %v10827_v4, %v13914_v38  ;;  %v2407_v56 = vsel %vm2354_vm5, %v13927_v21, %v13881_v19  ;;  %v2722_v20 = vsel %vm2612_vm7, %v2593_v8, %v13921_v48  ;;  %v13929_v4 = vld [vmem:[#allocation30_spill] sm:$0xff]  ;;  %v2405_v57 = vsel %vm2354_vm5, %v13935_v13, %v13934_v15 }
 0x4ea   : > { %5048 = vmatmul.mubr.msk.f32.gmra.mrb[40].mxu1 %vm3140_vm11, %v3105_v50  ;;  %4954 = vmatprep.mubr.msk.f32.mxu0 %vm3140_vm11, %v3042_v47  ;;  %v2787_v9 = vsel %vm2741_vm8, %v2658_v32, %v13928_v33  ;;  %v2404_v38 = vsel %vm2354_vm5, %v13930_v30, %v13929_v4  ;;  %v2408_v35 = vsel %vm2354_vm5, %v13931_v53, %v13929_v4  ;;  %v13937_v50 = vld [vmem:[#allocation166_spill] sm:$0xff] }
 0x4eb   : > { %5050 = vmatprep.mubr.msk.f32.mxu1 %vm3140_vm11, %v3106_v60  ;;  %v10959_v10 = vpop.permute.xlu1 %2075  ;;  %v2851_v19 = vsel %vm2741_vm8, %v2722_v20, %v13932_v40  ;;  %v2916_v48 = vsel %vm2870_vm9, %v2787_v9, %v13933_v51  ;;  %v2406_v26 = vsel %vm2354_vm5, %v13880_v7, %v13936_v41  ;;  %v2465_v62 = vsel %vm2354_vm5, %v13937_v50, %v13892_v46  ;;  %v13939_v60 = vld [vmem:[#allocation317_spill] sm:$0xff]  ;;  %v13941_v34 = vld [vmem:[#allocation318_spill] sm:$0xff] }
 0x4ec   : > { %v3044_v2 = vsel %vm2999_vm10, %v2915_v29, %v10959_v10  ;;  %v2980_v61 = vsel %vm2870_vm9, %v2851_v19, %v10935_v16  ;;  %v2466_v47 = vsel %vm2354_vm5, %v13938_v58, %v13893_v49  ;;  %v2467_v7 = vsel %vm2354_vm5, %v13889_v25, %v13939_v60  ;;  %v13942_v12 = vld [vmem:[#allocation174_spill] sm:$0xff]  ;;  %v13943_v29 = vld [vmem:[#allocation319_spill] sm:$0xff] }
 0x4ed   : > { %v10967_v39 = vpop.permute.xlu0 %2139  ;;  %4955 = vmatmul.mubr.msk.f32.gmra.mrb[42].mxu0 %vm3140_vm11, %v3043_v24  ;;  %v2471_v43 = vsel %vm2354_vm5, %v13940_v63, %v13939_v60  ;;  %v2468_v46 = vsel %vm2354_vm5, %v13891_v54, %v13941_v34  ;;  %v11033_v49 = vsel %vm2354_vm5, %v13942_v12, %v13941_v34  ;;  %v2469_v25 = vsel %vm2354_vm5, %v13937_v50, %v13943_v29  ;;  %v13947_v20 = vld [vmem:[#allocation350_spill] sm:$0xff]  ;;  %v13953_v50 = vld [vmem:[#allocation375_spill] sm:$0xff] }
 0x4ee   : > { %v3108_v52 = vsel %vm2999_vm10, %v2979_v31, %v10967_v39  ;;  %5051 = vmatmul.mubr.msk.f32.gmra.mrb[42].mxu1 %vm3140_vm11, %v3107_v22  ;;  %4957 = vmatprep.mubr.msk.f32.mxu0 %vm3140_vm11, %v3044_v2  ;;  %v2470_v24 = vsel %vm2354_vm5, %v13938_v58, %v13944_v36  ;;  %v13945_v22 = vld [vmem:[#allocation186_spill] sm:$0xff]  ;;  %v2531_v54 = vsel %vm2483_vm6, %v10748_v23, %v13904_v44  ;;  %v13946_v2 = vld [vmem:[#allocation349_spill] sm:$0xff]  ;;  %v13949_v44 = vld [vmem:[#allocation352_spill] sm:$0xff] }
 0x4ef   : > { %5053 = vmatprep.mubr.msk.f32.mxu1 %vm3140_vm11, %v3108_v52  ;;  %v10998_v6 = vpop.permute.xlu1 %2077  ;;  %v2530_v31 = vsel %vm2483_vm6, %v13945_v22, %v13902_v28  ;;  %v2532_v8 = vsel %vm2483_vm6, %v10761_v45, %v13946_v2  ;;  %v2536_v52 = vsel %vm2483_vm6, %v2407_v56, %v13946_v2  ;;  %v2533_v9 = vsel %vm2483_vm6, %v2404_v38, %v13947_v20  ;;  %v13948_v28 = vld [vmem:[#allocation351_spill] sm:$0xff]  ;;  %v13955_v58 = vld [vmem:[#allocation169_spill] sm:$0xff] }
 0x4f0   : > { %v3045_v42 = vsel %vm2999_vm10, %v2916_v48, %v10998_v6  ;;  %v11059_v4 = vsel %vm2483_vm6, %v2408_v35, %v13947_v20  ;;  %v2534_v30 = vsel %vm2483_vm6, %v2405_v57, %v13948_v28  ;;  %v2535_v45 = vsel %vm2483_vm6, %v2406_v26, %v13949_v44  ;;  %v13950_v48 = vld [vmem:[#allocation373_spill] sm:$0xff] }
 0x4f1   : > { %4958 = vmatmul.mubr.msk.f32.gmra.mrb[44].mxu0 %vm3140_vm11, %v3045_v42  ;;  %v2594_v19 = vsel %vm2483_vm6, %v2465_v62, %v13908_v11  ;;  %v2595_v56 = vsel %vm2483_vm6, %v2466_v47, %v13909_v59  ;;  %v2659_v38 = vsel %vm2612_vm7, %v2530_v31, %v13915_v14  ;;  %v2596_v35 = vsel %vm2483_vm6, %v2467_v7, %v13950_v48  ;;  %v13952_v42 = vld [vmem:[#allocation374_spill] sm:$0xff]  ;;  %v13954_v62 = vld [vmem:[#allocation480_spill] sm:$0xff]  ;;  %v13958_v2 = vld [vmem:[#allocation241_spill] sm:$0xff] }
 0x4f2   : > { %v11010_v3 = vpop.permute.xlu0 %2141  ;;  %v2600_v13 = vsel %vm2483_vm6, %v2471_v43, %v13950_v48  ;;  %v2723_v57 = vsel %vm2612_vm7, %v2594_v19, %v13922_v0  ;;  %v2597_v11 = vsel %vm2483_vm6, %v2468_v46, %v13952_v42  ;;  %v2598_v59 = vsel %vm2483_vm6, %v2469_v25, %v13953_v50  ;;  %v13956_v7 = vld [vmem:[#allocation376_spill] sm:$0xff]  ;;  %v13957_v25 = vld [vmem:[#allocation238_spill] sm:$0xff]  ;;  %v13960_v19 = vld [vmem:[#allocation245_spill] sm:$0xff] }
 0x4f3   : > { %v3109_v5 = vsel %vm2999_vm10, %v2980_v61, %v11010_v3  ;;  %v13951_v61 = vld [vmem:[#allocation465_spill] sm:$0xff]  ;;  %v2852_v14 = vsel %vm2741_vm8, %v2723_v57, %v13954_v62  ;;  %v2660_v0 = vsel %vm2612_vm7, %v2531_v54, %v13916_v18  ;;  %v2661_v22 = vsel %vm2612_vm7, %v2532_v8, %v13957_v25  ;;  %v13959_v18 = vld [vmem:[#allocation242_spill] sm:$0xff] }
 0x4f4   : > { %5054 = vmatmul.mubr.msk.f32.gmra.mrb[44].mxu1 %vm3140_vm11, %v3109_v5  ;;  %v11051_v32 = vpop.permute.xlu1 %1948  ;;  %v2788_v26 = vsel %vm2741_vm8, %v2659_v38, %v13951_v61  ;;  %v2599_v5 = vsel %vm2483_vm6, %v2470_v24, %v13956_v7  ;;  %v2665_v31 = vsel %vm2612_vm7, %v2536_v52, %v13957_v25  ;;  %v2662_v20 = vsel %vm2612_vm7, %v2533_v9, %v13958_v2  ;;  %v13961_v8 = vld [vmem:[#allocation466_spill] sm:$0xff]  ;;  %v13962_v52 = vld [vmem:[#allocation419_spill] sm:$0xff] }
 0x4f5   : > { %v2917_v47 = vsel %vm2870_vm9, %v2788_v26, %v13955_v58  ;;  %v2981_v43 = vsel %vm2870_vm9, %v2852_v14, %v11051_v32  ;;  %v2663_v54 = vsel %vm2612_vm7, %v2534_v30, %v13959_v18  ;;  %v2664_v38 = vsel %vm2612_vm7, %v2535_v45, %v13960_v19  ;;  %v13963_v14 = vld [vmem:[#allocation481_spill] sm:$0xff] }
 0x4f6   : > { %v11063_v23 = vpop.permute.xlu0 %1950  ;;  %v2724_v48 = vsel %vm2612_vm7, %v2595_v56, %v13923_v17  ;;  %v2789_v57 = vsel %vm2741_vm8, %v2660_v0, %v13961_v8  ;;  %v2725_v9 = vsel %vm2612_vm7, %v2596_v35, %v13962_v52  ;;  %v2790_v26 = vsel %vm2741_vm8, %v2661_v22, %v13924_v37 }
 0x4f7   : > { %v2853_v30 = vsel %vm2741_vm8, %v2724_v48, %v13963_v14  ;;  %v2854_v17 = vsel %vm2741_vm8, %v2725_v9, %v13925_v27  ;;  %v2919_v56 = vsel %vm2870_vm9, %v2790_v26, %v13926_v55  ;;  %v2729_v37 = vsel %vm2612_vm7, %v2600_v13, %v13962_v52  ;;  %v13965_v55 = vld [vmem:[#allocation422_spill] sm:$0xff] }
 0x4f8   : > { %v2080_v60 = vpop.permute.xlu1 %2079  ;;  %v2982_v0 = vsel %vm2870_vm9, %v2853_v30, %v11063_v23  ;;  %v2983_v25 = vsel %vm2870_vm9, %v2854_v17, %v10926_v1  ;;  %v3048_v22 = vsel %vm2999_vm10, %v2919_v56, %v10959_v10  ;;  %v2791_v48 = vsel %vm2741_vm8, %v2662_v20, %v13928_v33  ;;  %v13966_v1 = vld [vmem:[#allocation423_spill] sm:$0xff] }
 0x4f9   : > { %v3046_v34 = vsel %vm2999_vm10, %v2917_v47, %v2080_v60  ;;  %v13964_v47 = vld [vmem:[#allocation170_spill] sm:$0xff]  ;;  %v2727_v10 = vsel %vm2612_vm7, %v2598_v59, %v13966_v1  ;;  %v2792_v13 = vsel %vm2741_vm8, %v2663_v54, %v13951_v61 }
 0x4fa   : > { %v2144_v46 = vpop.permute.xlu0 %2143  ;;  %4960 = vmatprep.mubr.msk.f32.mxu0 %vm3140_vm11, %v3046_v34  ;;  %v2918_v45 = vsel %vm2870_vm9, %v2789_v57, %v13964_v47  ;;  %v3112_v57 = vsel %vm2999_vm10, %v2983_v25, %v10967_v39  ;;  %v2856_v39 = vsel %vm2741_vm8, %v2727_v10, %v13954_v62  ;;  %v2921_v20 = vsel %vm2870_vm9, %v2792_v13, %v13955_v58  ;;  %v13967_v54 = vld [vmem:[#allocation426_spill] sm:$0xff]  ;;  %v13968_v58 = vld [vmem:[#allocation467_spill] sm:$0xff]  ;;  %v13978_v13 = vld [vmem:[#allocation33_spill] sm:$0xff] }
 0x4fb   : > { %v3110_v24 = vsel %vm2999_vm10, %v2981_v43, %v2144_v46  ;;  %v2985_v62 = vsel %vm2870_vm9, %v2856_v39, %v11051_v32  ;;  %v3050_v26 = vsel %vm2999_vm10, %v2921_v20, %v2080_v60  ;;  %v13969_v32 = vld [vmem:[#allocation482_spill] sm:$0xff] }
 0x4fc   : > { %5056 = vmatprep.mubr.msk.f32.mxu1 %vm3140_vm11, %v3110_v24  ;;  %v2082_v43 = vpop.permute.xlu1 %2081  ;;  %v2726_v24 = vsel %vm2612_vm7, %v2597_v11, %v13965_v55  ;;  %v2920_v11 = vsel %vm2870_vm9, %v2791_v48, %v13933_v51  ;;  %v2728_v51 = vsel %vm2612_vm7, %v2599_v5, %v13967_v54  ;;  %v3114_v30 = vsel %vm2999_vm10, %v2985_v62, %v2144_v46 }
 0x4fd   : > { %v3047_v35 = vsel %vm2999_vm10, %v2918_v45, %v2082_v43  ;;  %v2855_v52 = vsel %vm2741_vm8, %v2726_v24, %v13932_v40  ;;  %v3049_v61 = vsel %vm2999_vm10, %v2920_v11, %v10998_v6  ;;  %v2794_v6 = vsel %vm2741_vm8, %v2665_v31, %v13968_v58  ;;  %v13970_v45 = vld [vmem:[#allocation50_spill] sm:$0xff]  ;;  %v13976_v24 = vld [vmem:[#allocation483_spill] sm:$0xff] }
 0x4fe   : > { %v2146_v34 = vpop.permute.xlu0 %2145  ;;  %4961 = vmatmul.mubr.msk.f32.gmra.mrb[46].mxu0 %vm3140_vm11, %v3047_v35  ;;  %v2984_v59 = vsel %vm2870_vm9, %v2855_v52, %v10935_v16  ;;  %v2793_v16 = vsel %vm2741_vm8, %v2664_v38, %v13961_v8  ;;  %v2858_v60 = vsel %vm2741_vm8, %v2729_v37, %v13969_v32  ;;  %v2923_v38 = vsel %vm2870_vm9, %v2794_v6, %v13970_v45  ;;  %v13971_v35 = vld [vmem:[#allocation289_spill] sm:$0xff]  ;;  %v13972_v37 = vld [vmem:[#allocation126_spill] sm:$0xff] }
 0x4ff   : > { %v3111_v27 = vsel %vm2999_vm10, %v2982_v0, %v2146_v34  ;;  %4963 = vmatprep.mubr.msk.f32.mxu0 %vm3140_vm11, %v3048_v22  ;;  %v3113_v9 = vsel %vm2999_vm10, %v2984_v59, %v11010_v3  ;;  %v2857_v3 = vsel %vm2741_vm8, %v2728_v51, %v13963_v14  ;;  %v2922_v5 = vsel %vm2870_vm9, %v2793_v16, %v13964_v47  ;;  %v13979_v11 = vld [vmem:[#allocation34_spill] sm:$0xff]  ;;  %v13980_v59 = vld [vmem:[#allocation35_spill] sm:$0xff]  ;;  %v13981_v51 = vld [vmem:[#allocation36_spill] sm:$0xff] }
 0x500   : > { %5057 = vmatmul.mubr.msk.f32.gmra.mrb[46].mxu1 %vm3140_vm11, %v3111_v27  ;;  %v11153_v33 = vpop.permute.xlu1 %1952  ;;  %v2986_v46 = vsel %vm2870_vm9, %v2857_v3, %v11063_v23  ;;  %v3051_v8 = vsel %vm2999_vm10, %v2922_v5, %v2082_v43  ;;  %v2601_v47 = vsel %vm2483_vm6, %v11033_v49, %v13952_v42  ;;  %v2666_v0 = vsel %vm2612_vm7, %v11059_v4, %v13958_v2  ;;  %v13973_v49 = vld [vmem:[#allocation468_spill] sm:$0xff]  ;;  %v13974_v4 = vld [vmem:[#allocation145_spill] sm:$0xff]  ;;  %v13986_v5 = vld [vmem:[#allocation322_spill] sm:$0xff] }
 0x501   : > { %5059 = vmatprep.mubr.msk.f32.mxu1 %vm3140_vm11, %v3112_v57  ;;  %v2987_v14 = vsel %vm2870_vm9, %v2858_v60, %v11153_v33  ;;  %v3115_v23 = vsel %vm2999_vm10, %v2986_v46, %v2146_v34  ;;  %v11213_v25 = vsel %vm2288_vm4, %v13972_v37, %v13971_v35  ;;  %v2730_v22 = vsel %vm2612_vm7, %v2601_v47, %v13965_v55  ;;  %v13975_v34 = vld [vmem:[#allocation146_spill] sm:$0xff]  ;;  %v13977_v57 = vld [vmem:[#allocation409_spill] sm:$0xff] }
 0x502   : > { %v11163_v40 = vpop.permute.xlu0 %1954  ;;  %4964 = vmatmul.mubr.msk.f32.gmra.mrb[48].mxu0 %vm3140_vm11, %v3049_v61  ;;  %v2795_v42 = vsel %vm2741_vm8, %v2666_v0, %v13973_v49  ;;  %v2409_v2 = vsel %vm2354_vm5, %v13974_v4, %v13934_v15  ;;  %v2410_v27 = vsel %vm2354_vm5, %v13975_v34, %v13936_v41  ;;  %v2859_v48 = vsel %vm2741_vm8, %v2730_v22, %v13976_v24  ;;  %v13984_v6 = vld [vmem:[#allocation321_spill] sm:$0xff]  ;;  %v13992_v37 = vld [vmem:[#allocation354_spill] sm:$0xff] }
 0x503   : > { %4966 = vmatprep.mubr.msk.f32.mxu0 %vm3140_vm11, %v3050_v26  ;;  %v2924_v55 = vsel %vm2870_vm9, %v2795_v42, %v13977_v57  ;;  %v2411_v52 = vsel %vm2354_vm5, %v13927_v21, %v13978_v13  ;;  %v2412_v15 = vsel %vm2354_vm5, %v13931_v53, %v13979_v11  ;;  %v2988_v41 = vsel %vm2870_vm9, %v2859_v48, %v11163_v40  ;;  %v13983_v26 = vld [vmem:[#allocation49_spill] sm:$0xff]  ;;  %v13994_v48 = vld [vmem:[#allocation356_spill] sm:$0xff] }
 0x504   : > { %5060 = vmatmul.mubr.msk.f32.gmra.mrb[48].mxu1 %vm3140_vm11, %v3113_v9  ;;  %v11189_v31 = vpop.permute.xlu1 %2083  ;;  %v2413_v61 = vsel %vm2354_vm5, %v13974_v4, %v13980_v59  ;;  %v2414_v21 = vsel %vm2354_vm5, %v13975_v34, %v13981_v51  ;;  %v13982_v9 = vld [vmem:[#allocation404_spill] sm:$0xff]  ;;  %v2474_v16 = vsel %vm2354_vm5, %v13983_v26, %v13944_v36  ;;  %v13985_v3 = vld [vmem:[#allocation405_spill] sm:$0xff]  ;;  %v13988_v36 = vld [vmem:[#allocation323_spill] sm:$0xff]  ;;  %v2538_v0 = vsel %vm2483_vm6, %v2409_v2, %v13948_v28 }
 0x505   : > { %5062 = vmatprep.mubr.msk.f32.mxu1 %vm3140_vm11, %v3114_v30  ;;  %v3052_v17 = vsel %vm2999_vm10, %v2923_v38, %v11189_v31  ;;  %v2473_v53 = vsel %vm2354_vm5, %v13982_v9, %v13943_v29  ;;  %v2475_v30 = vsel %vm2354_vm5, %v13940_v63, %v13984_v6  ;;  %v2479_v60 = vsel %vm2354_vm5, %v13985_v3, %v13984_v6  ;;  %v13987_v38 = vld [vmem:[#allocation177_spill] sm:$0xff]  ;;  %v13989_v63 = vld [vmem:[#allocation408_spill] sm:$0xff]  ;;  %v13993_v4 = vld [vmem:[#allocation355_spill] sm:$0xff] }
 0x506   : > { %v11198_v56 = vpop.permute.xlu0 %2147  ;;  %4967 = vmatmul.mubr.msk.f32.gmra.mrb[50].mxu0 %vm3140_vm11, %v3051_v8  ;;  %v2476_v29 = vsel %vm2354_vm5, %v13942_v12, %v13986_v5  ;;  %v11274_v46 = vsel %vm2354_vm5, %v13987_v38, %v13986_v5  ;;  %v2477_v8 = vsel %vm2354_vm5, %v13982_v9, %v13988_v36  ;;  %v2541_v22 = vsel %vm2483_vm6, %v2412_v15, %v13992_v37  ;;  %v13996_v11 = vld [vmem:[#allocation469_spill] sm:$0xff]  ;;  %v13998_v59 = vld [vmem:[#allocation484_spill] sm:$0xff]  ;;  %v14004_v38 = vld [vmem:[#allocation250_spill] sm:$0xff] }
 0x507   : > { %v3116_v43 = vsel %vm2999_vm10, %v2987_v14, %v11198_v56  ;;  %4969 = vmatprep.mubr.msk.f32.mxu0 %vm3140_vm11, %v3052_v17  ;;  %v11282_v14 = vsel %vm2354_vm5, %v13989_v63, %v13988_v36  ;;  %v13990_v17 = vld [vmem:[#allocation324_spill] sm:$0xff]  ;;  %v2542_v34 = vsel %vm2483_vm6, %v2413_v61, %v13993_v4  ;;  %v2602_v28 = vsel %vm2483_vm6, %v2473_v53, %v13953_v50  ;;  %v13999_v61 = vld [vmem:[#allocation53_spill] sm:$0xff] }
 0x508   : > { %5063 = vmatmul.mubr.msk.f32.gmra.mrb[50].mxu1 %vm3140_vm11, %v3115_v23  ;;  %v11232_v10 = vpop.permute.xlu1 %2085  ;;  %v2478_v12 = vsel %vm2354_vm5, %v13983_v26, %v13990_v17  ;;  %v2539_v23 = vsel %vm2483_vm6, %v2410_v27, %v13949_v44  ;;  %v2667_v44 = vsel %vm2612_vm7, %v2538_v0, %v13959_v18  ;;  %v2603_v2 = vsel %vm2483_vm6, %v2474_v16, %v13956_v7  ;;  %v13995_v27 = vld [vmem:[#allocation377_spill] sm:$0xff]  ;;  %v14009_v4 = vld [vmem:[#allocation412_spill] sm:$0xff] }
 0x509   : > { %5065 = vmatprep.mubr.msk.f32.mxu1 %vm3140_vm11, %v3116_v43  ;;  %v3053_v39 = vsel %vm2999_vm10, %v2924_v55, %v11232_v10  ;;  %v13991_v43 = vld [vmem:[#allocation353_spill] sm:$0xff]  ;;  %v2543_v55 = vsel %vm2483_vm6, %v2414_v21, %v13994_v48  ;;  %v2604_v13 = vsel %vm2483_vm6, %v2475_v30, %v13995_v27  ;;  %v2796_v15 = vsel %vm2741_vm8, %v2667_v44, %v13996_v11  ;;  %v14000_v21 = vld [vmem:[#allocation379_spill] sm:$0xff]  ;;  %v14002_v30 = vld [vmem:[#allocation246_spill] sm:$0xff] }
 0x50a   : > { %v11244_v20 = vpop.permute.xlu0 %2149  ;;  %4970 = vmatmul.mubr.msk.f32.gmra.mrb[52].mxu0 %vm3140_vm11, %v3053_v39  ;;  %v2540_v35 = vsel %vm2483_vm6, %v2411_v52, %v13991_v43  ;;  %v2731_v52 = vsel %vm2612_vm7, %v2602_v28, %v13966_v1  ;;  %v13997_v39 = vld [vmem:[#allocation378_spill] sm:$0xff]  ;;  %v2925_v7 = vsel %vm2870_vm9, %v2796_v15, %v13999_v61  ;;  %v2606_v9 = vsel %vm2483_vm6, %v2477_v8, %v14000_v21  ;;  %v14001_v1 = vld [vmem:[#allocation380_spill] sm:$0xff]  ;;  %v14005_v8 = vld [vmem:[#allocation253_spill] sm:$0xff] }
 0x50b   : > { %v3117_v62 = vsel %vm2999_vm10, %v2988_v41, %v11244_v20  ;;  %v2608_v41 = vsel %vm2483_vm6, %v2479_v60, %v13995_v27  ;;  %v2605_v50 = vsel %vm2483_vm6, %v2476_v29, %v13997_v39  ;;  %v2860_v18 = vsel %vm2741_vm8, %v2731_v52, %v13998_v59  ;;  %v14003_v60 = vld [vmem:[#allocation249_spill] sm:$0xff] }
 0x50c   : > { %5066 = vmatmul.mubr.msk.f32.gmra.mrb[52].mxu1 %vm3140_vm11, %v3117_v62  ;;  %v11287_v47 = vpop.permute.xlu1 %1956  ;;  %v2607_v53 = vsel %vm2483_vm6, %v2478_v12, %v14001_v1  ;;  %v2668_v6 = vsel %vm2612_vm7, %v2539_v23, %v13960_v19  ;;  %v2669_v3 = vsel %vm2612_vm7, %v2540_v35, %v14002_v30  ;;  %v2670_v5 = vsel %vm2612_vm7, %v2541_v22, %v14003_v60  ;;  %v14006_v19 = vld [vmem:[#allocation470_spill] sm:$0xff]  ;;  %v14007_v23 = vld [vmem:[#allocation427_spill] sm:$0xff]  ;;  %v14008_v37 = vld [vmem:[#allocation485_spill] sm:$0xff] }
 0x50d   : > { %v2989_v62 = vsel %vm2870_vm9, %v2860_v18, %v11287_v47  ;;  %v2671_v36 = vsel %vm2612_vm7, %v2542_v34, %v14004_v38  ;;  %v2672_v63 = vsel %vm2612_vm7, %v2543_v55, %v14005_v8  ;;  %v2732_v12 = vsel %vm2612_vm7, %v2603_v2, %v13967_v54 }
 0x50e   : > { %v11297_v42 = vpop.permute.xlu0 %1958  ;;  %v2797_v0 = vsel %vm2741_vm8, %v2668_v6, %v14006_v19  ;;  %v2733_v43 = vsel %vm2612_vm7, %v2604_v13, %v14007_v23  ;;  %v2798_v35 = vsel %vm2741_vm8, %v2669_v3, %v13968_v58  ;;  %v2861_v22 = vsel %vm2741_vm8, %v2732_v12, %v14008_v37  ;;  %v14015_v12 = vld [vmem:[#allocation219_spill] sm:$0xff] }
 0x50f   : > { %v2926_v34 = vsel %vm2870_vm9, %v2797_v0, %v14009_v4  ;;  %v2862_v54 = vsel %vm2741_vm8, %v2733_v43, %v13969_v32  ;;  %v2927_v55 = vsel %vm2870_vm9, %v2798_v35, %v13970_v45  ;;  %v2990_v28 = vsel %vm2870_vm9, %v2861_v22, %v11297_v42  ;;  %v14010_v45 = vld [vmem:[#allocation430_spill] sm:$0xff]  ;;  %v14017_v35 = vld [vmem:[#allocation224_spill] sm:$0xff]  ;;  %v11464_v22 = vld [vmem:[#allocation7] ss:$0 sm:$0xff] }
 0x510   : > { %v2088_v51 = vpop.permute.xlu1 %2087  ;;  %v2737_v58 = vsel %vm2612_vm7, %v2608_v41, %v14007_v23  ;;  %v2991_v27 = vsel %vm2870_vm9, %v2862_v54, %v11153_v33  ;;  %v3056_v13 = vsel %vm2999_vm10, %v2927_v55, %v11189_v31  ;;  %v2734_v52 = vsel %vm2612_vm7, %v2605_v50, %v14010_v45  ;;  %v14011_v33 = vld [vmem:[#allocation431_spill] sm:$0xff]  ;;  %v14016_v23 = vld [vmem:[#allocation220_spill] sm:$0xff] }
 0x511   : > { %v3054_v26 = vsel %vm2999_vm10, %v2925_v7, %v2088_v51  ;;  %v2799_v15 = vsel %vm2741_vm8, %v2670_v5, %v13973_v49  ;;  %v3120_v18 = vsel %vm2999_vm10, %v2991_v27, %v11198_v56  ;;  %v2735_v31 = vsel %vm2612_vm7, %v2606_v9, %v14011_v33 }
 0x512   : > { %v2152_v16 = vpop.permute.xlu0 %2151  ;;  %4972 = vmatprep.mubr.msk.f32.mxu0 %vm3140_vm11, %v3054_v26  ;;  %v2800_v41 = vsel %vm2741_vm8, %v2671_v36, %v13996_v11  ;;  %v2863_v7 = vsel %vm2741_vm8, %v2734_v52, %v13976_v24  ;;  %v2928_v50 = vsel %vm2870_vm9, %v2799_v15, %v13977_v57  ;;  %v2864_v56 = vsel %vm2741_vm8, %v2735_v31, %v13998_v59  ;;  %v14012_v26 = vld [vmem:[#allocation434_spill] sm:$0xff] }
 0x513   : > { %v3118_v29 = vsel %vm2999_vm10, %v2989_v62, %v2152_v16  ;;  %v2929_v49 = vsel %vm2870_vm9, %v2800_v41, %v13999_v61  ;;  %v2992_v9 = vsel %vm2870_vm9, %v2863_v7, %v11163_v40  ;;  %v3057_v11 = vsel %vm2999_vm10, %v2928_v50, %v11232_v10  ;;  %v14013_v10 = vld [vmem:[#allocation486_spill] sm:$0xff] }
 0x514   : > { %5068 = vmatprep.mubr.msk.f32.mxu1 %vm3140_vm11, %v3118_v29  ;;  %v2090_v48 = vpop.permute.xlu1 %2089  ;;  %v2736_v24 = vsel %vm2612_vm7, %v2607_v53, %v14012_v26  ;;  %v3121_v57 = vsel %vm2999_vm10, %v2992_v9, %v11244_v20  ;;  %v2993_v6 = vsel %vm2870_vm9, %v2864_v56, %v11287_v47  ;;  %v3058_v59 = vsel %vm2999_vm10, %v2929_v49, %v2088_v51 }
 0x515   : > { %v3055_v44 = vsel %vm2999_vm10, %v2926_v34, %v2090_v48  ;;  %v2801_v40 = vsel %vm2741_vm8, %v2672_v63, %v14006_v19  ;;  %v3122_v61 = vsel %vm2999_vm10, %v2993_v6, %v2152_v16  ;;  %v2866_v53 = vsel %vm2741_vm8, %v2737_v58, %v14013_v10 }
 0x516   : > { %v2154_v2 = vpop.permute.xlu0 %2153  ;;  %4973 = vmatmul.mubr.msk.f32.gmra.mrb[54].mxu0 %vm3140_vm11, %v3055_v44  ;;  %v2609_v20 = vsel %vm2483_vm6, %v11274_v46, %v13997_v39  ;;  %v2865_v47 = vsel %vm2741_vm8, %v2736_v24, %v14008_v37  ;;  %v2930_v51 = vsel %vm2870_vm9, %v2801_v40, %v14009_v4  ;;  %v2610_v3 = vsel %vm2483_vm6, %v11282_v14, %v14000_v21  ;;  %v14014_v21 = vld [vmem:[#allocation216_spill] sm:$0xff] }
 0x517   : > { %v3119_v32 = vsel %vm2999_vm10, %v2990_v28, %v2154_v2  ;;  %4975 = vmatprep.mubr.msk.f32.mxu0 %vm3140_vm11, %v3056_v13  ;;  %v2738_v60 = vsel %vm2612_vm7, %v2609_v20, %v14010_v45  ;;  %v2994_v46 = vsel %vm2870_vm9, %v2865_v47, %v11297_v42  ;;  %v3059_v39 = vsel %vm2999_vm10, %v2930_v51, %v2090_v48 }
 0x518   : > { %5069 = vmatmul.mubr.msk.f32.gmra.mrb[54].mxu1 %vm3140_vm11, %v3119_v32  ;;  %v1961_v62 = vpop.permute.xlu1 %1960  ;;  %v2482_v5 = vsel %vm2354_vm5, %v11213_v25, %v13990_v17  ;;  %v2739_v29 = vsel %vm2612_vm7, %v2610_v3, %v14011_v33  ;;  %v3123_v38 = vsel %vm2999_vm10, %v2994_v46, %v2154_v2  ;;  %v2867_v14 = vsel %vm2741_vm8, %v2738_v60, %v14013_v10 }
 0x519   : > { %5071 = vmatprep.mubr.msk.f32.mxu1 %vm3140_vm11, %v3120_v18  ;;  %v2995_v16 = vsel %vm2870_vm9, %v2866_v53, %v1961_v62  ;;  %v2996_v36 = vsel %vm2870_vm9, %v2867_v14, %v1961_v62  ;;  %v2868_v25 = vsel %vm2741_vm8, %v2739_v29, %v14013_v10  ;;  %v2611_v17 = vsel %vm2483_vm6, %v2482_v5, %v14001_v1 }
 0x51a   : > { %4976 = vmatmul.mubr.msk.f32.gmra.mrb[56].mxu0 %vm3140_vm11, %v3057_v11  ;;  %v2156_v30 = vpop.permute.xlu0 %2155  ;;  %v2997_v8 = vsel %vm2870_vm9, %v2868_v25, %v1961_v62  ;;  %v2740_v63 = vsel %vm2612_vm7, %v2611_v17, %v14012_v26 }
 0x51b   : > { %4978 = vmatprep.mubr.msk.f32.mxu0 %vm3140_vm11, %v3058_v59  ;;  %v3124_v42 = vsel %vm2999_vm10, %v2995_v16, %v2156_v30  ;;  %v3125_v19 = vsel %vm2999_vm10, %v2996_v36, %v2156_v30  ;;  %v2869_v0 = vsel %vm2741_vm8, %v2740_v63, %v14013_v10  ;;  %v3126_v1 = vsel %vm2999_vm10, %v2997_v8, %v2156_v30 }
 0x51c   : > { %5072 = vmatmul.mubr.msk.f32.gmra.mrb[56].mxu1 %vm3140_vm11, %v3121_v57  ;;  %v2998_v43 = vsel %vm2870_vm9, %v2869_v0, %v1961_v62 }
 0x51d   : > { %5074 = vmatprep.mubr.msk.f32.mxu1 %vm3140_vm11, %v3122_v61  ;;  %v3127_v37 = vsel %vm2999_vm10, %v2998_v43, %v2156_v30 }
 0x51e   : > { %4979 = vmatmul.mubr.msk.f32.gmra.mrb[58].mxu0 %vm3140_vm11, %v3059_v39 }
 0x51f   : > { %4981 = vmatprep.mubr.msk.f32.mxu0 %vm3140_vm11, %v14014_v21 }
 0x520   : > { %5075 = vmatmul.mubr.msk.f32.gmra.mrb[58].mxu1 %vm3140_vm11, %v3123_v38 }
 0x521   : > { %5077 = vmatprep.mubr.msk.f32.mxu1 %vm3140_vm11, %v3124_v42 }
 0x522   : > { %4982 = vmatmul.mubr.msk.f32.gmra.mrb[60].mxu0 %vm3140_vm11, %v14015_v12 }
 0x523   : > { %4984 = vmatprep.mubr.msk.f32.mxu0 %vm3140_vm11, %v14016_v23 }
 0x524   : > { %5078 = vmatmul.mubr.msk.f32.gmra.mrb[60].mxu1 %vm3140_vm11, %v3125_v19 }
 0x525   : > { %5080 = vmatprep.mubr.msk.f32.mxu1 %vm3140_vm11, %v3126_v1 }
 0x526   : > { %4985 = vmatmul.mubr.msk.f32.gmra.mrb[62].mxu0 %vm3140_vm11, %v14017_v35 }
 0x528   : > { %5081 = vmatmul.mubr.msk.f32.gmra.mrb[62].mxu1 %vm3140_vm11, %v3127_v37 }
 0x54d   : > { %v4893_v4 = vpop.f32.mrb[0].mxu0 }
 0x54e   : > { %v11466_v34 = vpop.f32.mrb[0].mxu1  ;;  %v3595_v48 = vpop.f32.mrb[1].mxu0  ;;  %v3601_v28 = vadd.f32 %v4893_v4, %v11464_v22 }
 0x54f   : > { %v3596_v54 = vadd.f32 %v11464_v22, %v3595_v48  ;;  %v11469_v55 = vpop.f32.mrb[1].mxu1 }
 0x551   : > { %4234 = vxpose.xlu1.b32.start [1/16] (narrow) %v3596_v54, 8 }
 0x555   : > { %4235 = vxpose.xlu1.b32.cont [2/16] (narrow) %v3601_v28, 8 }
 0x556   : > { %v4896_v44 = vpop.f32.mrb[2].mxu0 }
 0x557   : > { %v11472_v2 = vpop.f32.mrb[2].mxu1  ;;  %v3605_v58 = vpop.f32.mrb[3].mxu0  ;;  %v3611_v32 = vadd.f32 %v4896_v44, %v11464_v22 }
 0x558   : > { %v3606_v27 = vadd.f32 %v11464_v22, %v3605_v58  ;;  %v11475_v13 = vpop.f32.mrb[3].mxu1 }
 0x55a   : > { %4236 = vxpose.xlu1.b32.cont [3/16] (narrow) %v3606_v27, 8 }
 0x55d   : > { %v4899_v45 = vpop.f32.mrb[4].mxu0 }
 0x55e   : > { %4237 = vxpose.xlu1.b32.cont [4/16] (narrow) %v3611_v32, 8  ;;  %v11478_v52 = vpop.f32.mrb[4].mxu1  ;;  %v3615_v15 = vpop.f32.mrb[5].mxu0  ;;  %v3621_v31 = vadd.f32 %v4899_v45, %v11464_v22 }
 0x55f   : > { %v3616_v18 = vadd.f32 %v11464_v22, %v3615_v15  ;;  %v11481_v33 = vpop.f32.mrb[5].mxu1 }
 0x562   : > { %4238 = vxpose.xlu1.b32.cont [5/16] (narrow) %v3616_v18, 8 }
 0x566   : > { %4239 = vxpose.xlu1.b32.cont [6/16] (narrow) %v3621_v31, 8  ;;  %v4902_v41 = vpop.f32.mrb[6].mxu0  ;;  %v11484_v7 = vpop.f32.mrb[6].mxu1 }
 0x567   : > { %v3625_v50 = vpop.f32.mrb[7].mxu0  ;;  %v11487_v49 = vpop.f32.mrb[7].mxu1  ;;  %v3631_v26 = vadd.f32 %v4902_v41, %v11464_v22 }
 0x568   : > { %v3626_v56 = vadd.f32 %v11464_v22, %v3625_v50 }
 0x56a   : > { %v4905_v9 = vpop.f32.mrb[8].mxu0  ;;  %4240 = vxpose.xlu1.b32.cont [7/16] (narrow) %v3626_v56, 8  ;;  %v11489_v11 = vpop.f32.mrb[8].mxu1 }
 0x56b   : > { %v3635_v62 = vpop.f32.mrb[9].mxu0  ;;  %v11492_v24 = vpop.f32.mrb[9].mxu1  ;;  %v3641_v47 = vadd.f32 %v4905_v9, %v11464_v22 }
 0x56c   : > { %v3636_v40 = vadd.f32 %v11464_v22, %v3635_v62 }
 0x56e   : > { %v4908_v57 = vpop.f32.mrb[10].mxu0  ;;  %4241 = vxpose.xlu1.b32.cont [8/16] (narrow) %v3631_v26, 8  ;;  %v11494_v6 = vpop.f32.mrb[10].mxu1 }
 0x56f   : > { %v3645_v59 = vpop.f32.mrb[11].mxu0  ;;  %v11497_v61 = vpop.f32.mrb[11].mxu1  ;;  %v3651_v38 = vadd.f32 %v4908_v57, %v11464_v22 }
 0x570   : > { %v3646_v60 = vadd.f32 %v11464_v22, %v3645_v59 }
 0x572   : > { %4242 = vxpose.xlu1.b32.cont [9/16] (narrow) %v3636_v40, 8  ;;  %v4911_v10 = vpop.f32.mrb[12].mxu0  ;;  %v11499_v53 = vpop.f32.mrb[12].mxu1 }
 0x573   : > { %v3655_v20 = vpop.f32.mrb[13].mxu0  ;;  %v11502_v51 = vpop.f32.mrb[13].mxu1  ;;  %v3661_v23 = vadd.f32 %v4911_v10, %v11464_v22 }
 0x574   : > { %v3656_v17 = vadd.f32 %v11464_v22, %v3655_v20 }
 0x576   : > { %4243 = vxpose.xlu1.b32.cont [10/16] (narrow) %v3641_v47, 8  ;;  %v4914_v30 = vpop.f32.mrb[14].mxu0  ;;  %v11504_v16 = vpop.f32.mrb[14].mxu1 }
 0x577   : > { %v3665_v3 = vpop.f32.mrb[15].mxu0  ;;  %v11507_v46 = vpop.f32.mrb[15].mxu1  ;;  %v3671_v44 = vadd.f32 %v4914_v30, %v11464_v22 }
 0x578   : > { %v3666_v35 = vadd.f32 %v11464_v22, %v3665_v3 }
 0x57a   : > { %4244 = vxpose.xlu1.b32.cont [11/16] (narrow) %v3646_v60, 8  ;;  %v4917_v39 = vpop.f32.mrb[16].mxu0  ;;  %v11509_v5 = vpop.f32.mrb[16].mxu1 }
 0x57b   : > { %v3675_v29 = vpop.f32.mrb[17].mxu0  ;;  %v11513_v21 = vpop.f32.mrb[17].mxu1  ;;  %v3681_v8 = vadd.f32 %v4917_v39, %v11464_v22 }
 0x57c   : > { %v3676_v14 = vadd.f32 %v11464_v22, %v3675_v29 }
 0x57e   : > { %4245 = vxpose.xlu1.b32.cont [12/16] (narrow) %v3651_v38, 8  ;;  %v4920_v42 = vpop.f32.mrb[18].mxu0  ;;  %4266 = vxpose.xlu0.b32.start [1/16] (narrow) %v3676_v14, 8  ;;  %v11515_v36 = vpop.f32.mrb[18].mxu1 }
 0x57f   : > { %v3685_v25 = vpop.f32.mrb[19].mxu0  ;;  %v11519_v63 = vpop.f32.mrb[19].mxu1  ;;  %v3691_v37 = vadd.f32 %v4920_v42, %v11464_v22 }
 0x580   : > { %v3686_v1 = vadd.f32 %v11464_v22, %v3685_v25 }
 0x582   : > { %4246 = vxpose.xlu1.b32.cont [13/16] (narrow) %v3656_v17, 8  ;;  %v4923_v12 = vpop.f32.mrb[20].mxu0  ;;  %4267 = vxpose.xlu0.b32.cont [2/16] (narrow) %v3681_v8, 8  ;;  %v11521_v19 = vpop.f32.mrb[20].mxu1 }
 0x583   : > { %v3695_v0 = vpop.f32.mrb[21].mxu0  ;;  %v11525_v43 = vpop.f32.mrb[21].mxu1  ;;  %v3701_v18 = vadd.f32 %v4923_v12, %v11464_v22 }
 0x584   : > { %v3696_v58 = vadd.f32 %v11464_v22, %v3695_v0 }
 0x586   : > { %4247 = vxpose.xlu1.b32.cont [14/16] (narrow) %v3661_v23, 8  ;;  %4268 = vxpose.xlu0.b32.cont [3/16] (narrow) %v3686_v1, 8 }
 0x588   : > { %v4926_v4 = vpop.f32.mrb[22].mxu0 }
 0x589   : > { %v11529_v48 = vpop.f32.mrb[22].mxu1  ;;  %v3705_v54 = vpop.f32.mrb[23].mxu0  ;;  %v3711_v40 = vadd.f32 %v4926_v4, %v11464_v22 }
 0x58a   : > { %4248 = vxpose.xlu1.b32.cont [15/16] (narrow) %v3666_v35, 8  ;;  %4269 = vxpose.xlu0.b32.cont [4/16] (narrow) %v3691_v37, 8  ;;  %v11531_v28 = vpop.f32.mrb[23].mxu1  ;;  %v3706_v9 = vadd.f32 %v11464_v22, %v3705_v54 }
 0x58c   : > { %v4929_v27 = vpop.f32.mrb[24].mxu0 }
 0x58d   : > { %v11535_v32 = vpop.f32.mrb[24].mxu1  ;;  %v3715_v45 = vpop.f32.mrb[25].mxu0  ;;  %v3721_v20 = vadd.f32 %v4929_v27, %v11464_v22 }
 0x58e   : > { %4249 = vxpose.xlu1.b32.end [16/16] (narrow) %v3671_v44, 8  ;;  %4270 = vxpose.xlu0.b32.cont [5/16] (narrow) %v3696_v58, 8  ;;  %v11537_v15 = vpop.f32.mrb[25].mxu1  ;;  %v3716_v10 = vadd.f32 %v11464_v22, %v3715_v45 }
 0x590   : > { %v4932_v31 = vpop.f32.mrb[26].mxu0 }
 0x591   : > { %v11540_v41 = vpop.f32.mrb[26].mxu1  ;;  %v3725_v50 = vpop.f32.mrb[27].mxu0  ;;  %v3731_v25 = vadd.f32 %v4932_v31, %v11464_v22 }
 0x592   : > { %4271 = vxpose.xlu0.b32.cont [6/16] (narrow) %v3701_v18, 8  ;;  %v11542_v56 = vpop.f32.mrb[27].mxu1  ;;  %v3726_v39 = vadd.f32 %v11464_v22, %v3725_v50 }
 0x594   : > { %v4935_v62 = vpop.f32.mrb[28].mxu0 }
 0x595   : > { %v11545_v26 = vpop.f32.mrb[28].mxu1  ;;  %v3735_v57 = vpop.f32.mrb[29].mxu0  ;;  %v3741_v54 = vadd.f32 %v4935_v62, %v11464_v22 }
 0x596   : > { %4272 = vxpose.xlu0.b32.cont [7/16] (narrow) %v3706_v9, 8  ;;  %v11547_v59 = vpop.f32.mrb[29].mxu1  ;;  %v3736_v23 = vadd.f32 %v11464_v22, %v3735_v57 }
 0x59a   : > { %4273 = vxpose.xlu0.b32.cont [8/16] (narrow) %v3711_v40, 8 }
 0x59e   : > { %4274 = vxpose.xlu0.b32.cont [9/16] (narrow) %v3716_v10, 8 }
 0x5a0   : > { %v4938_v47 = vpop.f32.mrb[30].mxu0 }
 0x5a1   : > { %v11552_v30 = vpop.f32.mrb[30].mxu1  ;;  %v3745_v3 = vpop.f32.mrb[31].mxu0  ;;  %v3751_v58 = vadd.f32 %v4938_v47, %v11464_v22 }
 0x5a2   : > { %4275 = vxpose.xlu0.b32.cont [10/16] (narrow) %v3721_v20, 8  ;;  %v11554_v60 = vpop.f32.mrb[31].mxu1  ;;  %v3746_v44 = vadd.f32 %v11464_v22, %v3745_v3 }
 0x5a4   : > { %v4941_v29 = vpop.f32.mrb[32].mxu0 }
 0x5a5   : > { %v11557_v38 = vpop.f32.mrb[32].mxu1  ;;  %v3755_v14 = vpop.f32.mrb[33].mxu0  ;;  %v3761_v10 = vadd.f32 %v4941_v29, %v11464_v22 }
 0x5a6   : > { %4276 = vxpose.xlu0.b32.cont [11/16] (narrow) %v3726_v39, 8  ;;  %v11559_v42 = vpop.f32.mrb[33].mxu1  ;;  %v3756_v50 = vadd.f32 %v11464_v22, %v3755_v14 }
 0x5a8   : > { %v4944_v17 = vpop.f32.mrb[34].mxu0 }
 0x5a9   : > { %v11562_v8 = vpop.f32.mrb[34].mxu1  ;;  %v3765_v12 = vpop.f32.mrb[35].mxu0 }
 0x5aa   : > { %4277 = vxpose.xlu0.b32.cont [12/16] (narrow) %v3731_v25, 8  ;;  %v11564_v0 = vpop.f32.mrb[35].mxu1  ;;  %v3766_v25 = vadd.f32 %v11464_v22, %v3765_v12 }
 0x5ac   : > { %v4947_v1 = vpop.f32.mrb[36].mxu0 }
 0x5ad   : > { %v11567_v35 = vpop.f32.mrb[36].mxu1  ;;  %v3775_v37 = vpop.f32.mrb[37].mxu0 }
 0x5ae   : > { %4278 = vxpose.xlu0.b32.cont [13/16] (narrow) %v3736_v23, 8  ;;  %v11569_v4 = vpop.f32.mrb[37].mxu1  ;;  %v3776_v29 = vadd.f32 %v11464_v22, %v3775_v37 }
 0x5b2   : > { %4279 = vxpose.xlu0.b32.cont [14/16] (narrow) %v3741_v54, 8 }
 0x5b6   : > { %4280 = vxpose.xlu0.b32.cont [15/16] (narrow) %v3746_v44, 8  ;;  %v3771_v44 = vadd.f32 %v4944_v17, %v11464_v22 }
 0x5b8   : > { %v4950_v27 = vpop.f32.mrb[38].mxu0 }
 0x5b9   : > { %v11574_v45 = vpop.f32.mrb[38].mxu1  ;;  %v3785_v18 = vpop.f32.mrb[39].mxu0  ;;  %v3791_v37 = vadd.f32 %v4950_v27, %v11464_v22 }
 0x5ba   : > { %4281 = vxpose.xlu0.b32.end [16/16] (narrow) %v3751_v58, 8  ;;  %v11576_v31 = vpop.f32.mrb[39].mxu1 }
 0x5bc   : > { %v4953_v9 = vpop.f32.mrb[40].mxu0 }
 0x5bd   : > { %v11579_v57 = vpop.f32.mrb[40].mxu1  ;;  %v3795_v62 = vpop.f32.mrb[41].mxu0 }
 0x5be   : > { %4298 = vxpose.xlu0.b32.start [1/16] (narrow) %v3756_v50, 8  ;;  %14018 = vst [vmem:[#allocation72_spill] sm:$0xff] %v11579_v57  ;;  %v11581_v40 = vpop.f32.mrb[41].mxu1  ;;  %v3781_v50 = vadd.f32 %v4947_v1, %v11464_v22 }
 0x5c0   : > { %v4956_v20 = vpop.f32.mrb[42].mxu0 }
 0x5c1   : > { %v11584_v47 = vpop.f32.mrb[42].mxu1  ;;  %v3805_v3 = vpop.f32.mrb[43].mxu0 }
 0x5c2   : > { %4299 = vxpose.xlu0.b32.cont [2/16] (narrow) %v3761_v10, 8  ;;  %14019 = vst [vmem:[#allocation227_spill] sm:$0xff] %v11584_v47  ;;  %v11586_v39 = vpop.f32.mrb[43].mxu1 }
 0x5c3   : > { %14020 = vst [vmem:[#allocation228_spill] sm:$0xff] %v11586_v39 }
 0x5c4   : > { %v4959_v23 = vpop.f32.mrb[44].mxu0 }
 0x5c5   : > { %v3815_v54 = vpop.f32.mrb[45].mxu0 }
 0x5c6   : > { %4300 = vxpose.xlu0.b32.cont [3/16] (narrow) %v3766_v25, 8  ;;  %v3786_v25 = vadd.f32 %v11464_v22, %v3785_v18  ;;  %v3796_v18 = vadd.f32 %v11464_v22, %v3795_v62  ;;  %v3806_v62 = vadd.f32 %v11464_v22, %v3805_v3 }
 0x5c7   : > { %v11589_v14 = vpop.f32.mrb[44].mxu1 }
 0x5c8   : > { %14021 = vst [vmem:[#allocation231_spill] sm:$0xff] %v11589_v14  ;;  %v11592_v58 = vpop.f32.mrb[45].mxu1 }
 0x5c9   : > { %14022 = vst [vmem:[#allocation232_spill] sm:$0xff] %v11592_v58 }
 0x5ca   : > { %4301 = vxpose.xlu0.b32.cont [4/16] (narrow) %v3771_v44, 8 }
 0x5ce   : > { %4302 = vxpose.xlu0.b32.cont [5/16] (narrow) %v3776_v29, 8 }
 0x5d1   : > { %v11596_v10 = vpop.f32.mrb[46].mxu0 }
 0x5d2   : > { %4303 = vxpose.xlu0.b32.cont [6/16] (narrow) %v3781_v50, 8  ;;  %v3825_v12 = vpop.f32.mrb[47].mxu0 }
 0x5d3   : > { %v11598_v47 = vpop.f32.mrb[46].mxu1 }
 0x5d4   : > { %14023 = vst [vmem:[#allocation235_spill] sm:$0xff] %v11598_v47  ;;  %v11601_v14 = vpop.f32.mrb[47].mxu1 }
 0x5d5   : > { %14024 = vst [vmem:[#allocation236_spill] sm:$0xff] %v11601_v14  ;;  %v4965_v39 = vpop.f32.mrb[48].mxu0 }
 0x5d6   : > { %4304 = vxpose.xlu0.b32.cont [7/16] (narrow) %v3786_v25, 8  ;;  %v3835_v44 = vpop.f32.mrb[49].mxu0  ;;  %v3841_v14 = vadd.f32 %v4965_v39, %v11464_v22 }
 0x5d7   : > { %v11603_v17 = vpop.f32.mrb[48].mxu1  ;;  %v3836_v29 = vadd.f32 %v11464_v22, %v3835_v44 }
 0x5d8   : > { %14025 = vst [vmem:[#allocation239_spill] sm:$0xff] %v11603_v17  ;;  %v11607_v1 = vpop.f32.mrb[49].mxu1  ;;  %v3801_v17 = vadd.f32 %v4953_v9, %v11464_v22 }
 0x5d9   : > { %v4968_v58 = vpop.f32.mrb[50].mxu0  ;;  %4330 = vxpose.xlu1.b32.start [1/16] (narrow) %v3836_v29, 8 }
 0x5da   : > { %4305 = vxpose.xlu0.b32.cont [8/16] (narrow) %v3791_v37, 8  ;;  %v3845_v47 = vpop.f32.mrb[51].mxu0  ;;  %v3851_v39 = vadd.f32 %v4968_v58, %v11464_v22 }
 0x5db   : > { %v11609_v50 = vpop.f32.mrb[50].mxu1  ;;  %v3846_v29 = vadd.f32 %v11464_v22, %v3845_v47 }
 0x5dc   : > { %v11613_v25 = vpop.f32.mrb[51].mxu1 }
 0x5dd   : > { %4331 = vxpose.xlu1.b32.cont [2/16] (narrow) %v3841_v14, 8  ;;  %v4971_v57 = vpop.f32.mrb[52].mxu0  ;;  %v3811_v14 = vadd.f32 %v4956_v20, %v11464_v22 }
 0x5de   : > { %4306 = vxpose.xlu0.b32.cont [9/16] (narrow) %v3796_v18, 8  ;;  %v3855_v44 = vpop.f32.mrb[53].mxu0 }
 0x5df   : > { %v11615_v27 = vpop.f32.mrb[52].mxu1  ;;  %v3856_v18 = vadd.f32 %v11464_v22, %v3855_v44  ;;  %v3821_v44 = vadd.f32 %v4959_v23, %v11464_v22 }
 0x5e0   : > { %14026 = vst [vmem:[#allocation240_spill] sm:$0xff] %v11615_v27  ;;  %v11619_v37 = vpop.f32.mrb[53].mxu1 }
 0x5e1   : > { %14027 = vst [vmem:[#allocation243_spill] sm:$0xff] %v11619_v37  ;;  %4332 = vxpose.xlu1.b32.cont [3/16] (narrow) %v3846_v29, 8  ;;  %v3816_v37 = vadd.f32 %v11464_v22, %v3815_v54 }
 0x5e2   : > { %4307 = vxpose.xlu0.b32.cont [10/16] (narrow) %v3801_v17, 8  ;;  %v3861_v17 = vadd.f32 %v4971_v57, %v11464_v22 }
 0x5e5   : > { %4333 = vxpose.xlu1.b32.cont [4/16] (narrow) %v3851_v39, 8 }
 0x5e6   : > { %4308 = vxpose.xlu0.b32.cont [11/16] (narrow) %v3806_v62, 8 }
 0x5e9   : > { %4334 = vxpose.xlu1.b32.cont [5/16] (narrow) %v3856_v18, 8  ;;  %v4974_v27 = vpop.f32.mrb[54].mxu0  ;;  %v3826_v18 = vadd.f32 %v11464_v22, %v3825_v12 }
 0x5ea   : > { %4309 = vxpose.xlu0.b32.cont [12/16] (narrow) %v3811_v14, 8  ;;  %v3865_v47 = vpop.f32.mrb[55].mxu0 }
 0x5eb   : > { %v11625_v9 = vpop.f32.mrb[54].mxu1  ;;  %v3866_v62 = vadd.f32 %v11464_v22, %v3865_v47 }
 0x5ec   : > { %v11629_v29 = vpop.f32.mrb[55].mxu1 }
 0x5ed   : > { %4335 = vxpose.xlu1.b32.cont [6/16] (narrow) %v3861_v17, 8  ;;  %v4977_v3 = vpop.f32.mrb[56].mxu0  ;;  %v3871_v17 = vadd.f32 %v4974_v27, %v11464_v22 }
 0x5ee   : > { %4310 = vxpose.xlu0.b32.cont [13/16] (narrow) %v3816_v37, 8  ;;  %v3875_v20 = vpop.f32.mrb[57].mxu0 }
 0x5ef   : > { %v11631_v58 = vpop.f32.mrb[56].mxu1 }
 0x5f0   : > { %14028 = vst [vmem:[#allocation244_spill] sm:$0xff] %v11631_v58  ;;  %v11635_v39 = vpop.f32.mrb[57].mxu1 }
 0x5f1   : > { %14029 = vst [vmem:[#allocation247_spill] sm:$0xff] %v11635_v39  ;;  %v4980_v14 = vpop.f32.mrb[58].mxu0  ;;  %4336 = vxpose.xlu1.b32.cont [7/16] (narrow) %v3866_v62, 8  ;;  %v3831_v39 = vadd.f32 %v11596_v10, %v11464_v22  ;;  %v3921_v10 = vadd.f32 %v11466_v34, %v11464_v22  ;;  %v3936_v34 = vadd.f32 %v11464_v22, %v11481_v33  ;;  %v4250_v33 = vpop.trf.xlu1 }
 0x5f2   : > { %4311 = vxpose.xlu0.b32.cont [14/16] (narrow) %v3821_v44, 8  ;;  %v3885_v57 = vpop.f32.mrb[59].mxu0  ;;  %v3876_v44 = vadd.f32 %v11464_v22, %v3875_v20  ;;  %4490 = vst [vmem:[%s11680_s24] sm:$0xff] %v4250_v33  ;;  %v4186_v33 = vadd.f32 %v11464_v22, %v11629_v29 }
 0x5f3   : > { %v11637_v54 = vpop.f32.mrb[58].mxu1  ;;  %v3886_v20 = vadd.f32 %v11464_v22, %v3885_v57 }
 0x5f4   : > { %14030 = vst [vmem:[#allocation248_spill] sm:$0xff] %v11637_v54  ;;  %v11641_v37 = vpop.f32.mrb[59].mxu1 }
 0x5f5   : > { %4337 = vxpose.xlu1.b32.cont [8/16] (narrow) %v3871_v17, 8  ;;  %v4983_v58 = vpop.f32.mrb[60].mxu0  ;;  %v3881_v17 = vadd.f32 %v4977_v3, %v11464_v22 }
 0x5f6   : > { %4312 = vxpose.xlu0.b32.cont [15/16] (narrow) %v3826_v18, 8  ;;  %v3895_v47 = vpop.f32.mrb[61].mxu0  ;;  %v3916_v18 = vadd.f32 %v11464_v22, %v11469_v55  ;;  %v3931_v55 = vadd.f32 %v11472_v2, %v11464_v22  ;;  %v3901_v57 = vadd.f32 %v4983_v58, %v11464_v22  ;;  %v3946_v2 = vadd.f32 %v11464_v22, %v11487_v49 }
 0x5f7   : > { %v11643_v23 = vpop.f32.mrb[60].mxu1  ;;  %v3896_v3 = vadd.f32 %v11464_v22, %v3895_v47  ;;  %v3951_v58 = vadd.f32 %v11484_v7, %v11464_v22  ;;  %v3956_v49 = vadd.f32 %v11464_v22, %v11492_v24  ;;  %v3961_v7 = vadd.f32 %v11489_v11, %v11464_v22  ;;  %v14043_v29 = vld [vmem:[#allocation244_spill] sm:$0xff] }
 0x5f8   : > { %14031 = vst [vmem:[#allocation251_spill] sm:$0xff] %v11643_v23  ;;  %v11648_v62 = vpop.f32.mrb[61].mxu1  ;;  %v3971_v24 = vadd.f32 %v11494_v6, %v11464_v22  ;;  %v3976_v11 = vadd.f32 %v11464_v22, %v11502_v51  ;;  %v3986_v6 = vadd.f32 %v11464_v22, %v11507_v46  ;;  %v4031_v51 = vadd.f32 %v11529_v48, %v11464_v22 }
 0x5f9   : > { %4338 = vxpose.xlu1.b32.cont [9/16] (narrow) %v3876_v44, 8  ;;  %v4986_v12 = vpop.f32.mrb[62].mxu0  ;;  %v3891_v44 = vadd.f32 %v4980_v14, %v11464_v22  ;;  %v4046_v48 = vadd.f32 %v11464_v22, %v11542_v56  ;;  %v4061_v56 = vadd.f32 %v11545_v26, %v11464_v22  ;;  %v4106_v26 = vadd.f32 %v11464_v22, %v11576_v31  ;;  %v14033_v31 = vld [vmem:[#allocation72_spill] sm:$0xff] }
 0x5fa   : > { %4313 = vxpose.xlu0.b32.end [16/16] (narrow) %v3831_v39, 8  ;;  %v3905_v27 = vpop.f32.mrb[63].mxu0  ;;  %v3926_v39 = vadd.f32 %v11464_v22, %v11475_v13  ;;  %v3941_v13 = vadd.f32 %v11478_v52, %v11464_v22  ;;  %v3911_v47 = vadd.f32 %v4986_v12, %v11464_v22  ;;  %v3996_v52 = vadd.f32 %v11464_v22, %v11513_v21 }
 0x5fb   : > { %v11650_v54 = vpop.f32.mrb[62].mxu1  ;;  %v3906_v14 = vadd.f32 %v11464_v22, %v3905_v27  ;;  %v4001_v12 = vadd.f32 %v11509_v5, %v11464_v22  ;;  %v4006_v21 = vadd.f32 %v11464_v22, %v11519_v63  ;;  %v3966_v27 = vadd.f32 %v11464_v22, %v11497_v61 }
 0x5fc   : > { %v11655_v23 = vpop.f32.mrb[63].mxu1  ;;  %v4016_v5 = vadd.f32 %v11464_v22, %v11525_v43  ;;  %v4021_v63 = vadd.f32 %v11521_v19, %v11464_v22  ;;  %v3981_v61 = vadd.f32 %v11499_v53, %v11464_v22  ;;  %v3991_v19 = vadd.f32 %v11504_v16, %v11464_v22 }
 0x5fd   : > { %4339 = vxpose.xlu1.b32.cont [10/16] (narrow) %v3881_v17, 8  ;;  %v4011_v17 = vadd.f32 %v11515_v36, %v11464_v22  ;;  %v4026_v36 = vadd.f32 %v11464_v22, %v11531_v28  ;;  %v4036_v53 = vadd.f32 %v11464_v22, %v11537_v15  ;;  %v4041_v43 = vadd.f32 %v11535_v32, %v11464_v22 }
 0x5fe   : > { %4362 = vxpose.xlu0.b32.start [1/16] (narrow) %v3916_v18, 8  ;;  %v4282_v18 = vpop.trf.xlu0  ;;  %v4076_v28 = vadd.f32 %v11464_v22, %v11559_v42  ;;  %v4081_v16 = vadd.f32 %v11557_v38, %v11464_v22  ;;  %v4051_v15 = vadd.f32 %v11540_v41, %v11464_v22  ;;  %v4086_v32 = vadd.f32 %v11464_v22, %v11564_v0 }
 0x5ff   : > { %4491 = vst [vmem:[%s11680_s24 + $0x8] sm:$0xff] %v4282_v18  ;;  %v4056_v42 = vadd.f32 %v11464_v22, %v11547_v59  ;;  %v4096_v38 = vadd.f32 %v11464_v22, %v11569_v4  ;;  %v4066_v41 = vadd.f32 %v11464_v22, %v11554_v60  ;;  %v4101_v59 = vadd.f32 %v11567_v35, %v11464_v22  ;;  %v14040_v18 = vld [vmem:[#allocation236_spill] sm:$0xff] }
 0x600   : > { %v4111_v0 = vadd.f32 %v11574_v45, %v11464_v22  ;;  %v4156_v4 = vadd.f32 %v11464_v22, %v11607_v1  ;;  %v4116_v35 = vadd.f32 %v11464_v22, %v11581_v40  ;;  %v4166_v45 = vadd.f32 %v11464_v22, %v11613_v25  ;;  %v14034_v1 = vld [vmem:[#allocation228_spill] sm:$0xff]  ;;  %v14035_v40 = vld [vmem:[#allocation227_spill] sm:$0xff] }
 0x601   : > { %4340 = vxpose.xlu1.b32.cont [11/16] (narrow) %v3886_v20, 8 }
 0x602   : > { %4363 = vxpose.xlu0.b32.cont [2/16] (narrow) %v3921_v10, 8  ;;  %v4091_v10 = vadd.f32 %v11562_v8, %v11464_v22  ;;  %v4071_v8 = vadd.f32 %v11552_v30, %v11464_v22  ;;  %v14032_v30 = vld [vmem:[#allocation239_spill] sm:$0xff] }
 0x603   : > { %v4161_v20 = vadd.f32 %v14032_v30, %v11464_v22 }
 0x605   : > { %4341 = vxpose.xlu1.b32.cont [12/16] (narrow) %v3891_v44, 8  ;;  %v4126_v44 = vadd.f32 %v11464_v22, %v14034_v1 }
 0x606   : > { %4364 = vxpose.xlu0.b32.cont [3/16] (narrow) %v3926_v39, 8  ;;  %v4121_v39 = vadd.f32 %v14033_v31, %v11464_v22 }
 0x609   : > { %4342 = vxpose.xlu1.b32.cont [13/16] (narrow) %v3896_v3, 8  ;;  %v4131_v3 = vadd.f32 %v14035_v40, %v11464_v22 }
 0x60a   : > { %4365 = vxpose.xlu0.b32.cont [4/16] (narrow) %v3931_v55, 8  ;;  %v4171_v55 = vadd.f32 %v11609_v50, %v11464_v22  ;;  %v14039_v50 = vld [vmem:[#allocation231_spill] sm:$0xff] }
 0x60d   : > { %4343 = vxpose.xlu1.b32.cont [14/16] (narrow) %v3901_v57, 8 }
 0x60e   : > { %4366 = vxpose.xlu0.b32.cont [5/16] (narrow) %v3936_v34, 8  ;;  %v14036_v34 = vld [vmem:[#allocation243_spill] sm:$0xff] }
 0x60f   : > { %v4176_v57 = vadd.f32 %v11464_v22, %v14036_v34 }
 0x611   : > { %4344 = vxpose.xlu1.b32.cont [15/16] (narrow) %v3906_v14, 8  ;;  %v14038_v14 = vld [vmem:[#allocation240_spill] sm:$0xff] }
 0x612   : > { %4367 = vxpose.xlu0.b32.cont [6/16] (narrow) %v3941_v13, 8  ;;  %v14037_v13 = vld [vmem:[#allocation232_spill] sm:$0xff] }
 0x613   : > { %v4136_v25 = vadd.f32 %v11464_v22, %v14037_v13 }
 0x615   : > { %4345 = vxpose.xlu1.b32.end [16/16] (narrow) %v3911_v47, 8  ;;  %v4141_v47 = vadd.f32 %v14039_v50, %v11464_v22 }
 0x616   : > { %4368 = vxpose.xlu0.b32.cont [7/16] (narrow) %v3946_v2, 8  ;;  %v4181_v2 = vadd.f32 %v14038_v14, %v11464_v22 }
 0x619   : > { %4394 = vxpose.xlu1.b32.start [1/16] (narrow) %v3996_v52, 8  ;;  %v4191_v52 = vadd.f32 %v11625_v9, %v11464_v22  ;;  %v4206_v9 = vadd.f32 %v11464_v22, %v11641_v37  ;;  %v4226_v37 = vadd.f32 %v11464_v22, %v11655_v23 }
 0x61a   : > { %4369 = vxpose.xlu0.b32.cont [8/16] (narrow) %v3951_v58, 8  ;;  %v4146_v58 = vadd.f32 %v11464_v22, %v14040_v18 }
 0x61d   : > { %4395 = vxpose.xlu1.b32.cont [2/16] (narrow) %v4001_v12, 8 }
 0x61e   : > { %4370 = vxpose.xlu0.b32.cont [9/16] (narrow) %v3956_v49, 8  ;;  %v14041_v49 = vld [vmem:[#allocation235_spill] sm:$0xff] }
 0x61f   : > { %v4151_v12 = vadd.f32 %v14041_v49, %v11464_v22 }
 0x621   : > { %4396 = vxpose.xlu1.b32.cont [3/16] (narrow) %v4006_v21, 8 }
 0x622   : > { %4371 = vxpose.xlu0.b32.cont [10/16] (narrow) %v3961_v7, 8  ;;  %v14042_v7 = vld [vmem:[#allocation247_spill] sm:$0xff] }
 0x623   : > { %v4196_v21 = vadd.f32 %v11464_v22, %v14042_v7 }
 0x625   : > { %4397 = vxpose.xlu1.b32.cont [4/16] (narrow) %v4011_v17, 8 }
 0x626   : > { %4372 = vxpose.xlu0.b32.cont [11/16] (narrow) %v3966_v27, 8  ;;  %v4201_v27 = vadd.f32 %v14043_v29, %v11464_v22 }
 0x629   : > { %4398 = vxpose.xlu1.b32.cont [5/16] (narrow) %v4016_v5, 8 }
 0x62a   : > { %4373 = vxpose.xlu0.b32.cont [12/16] (narrow) %v3971_v24, 8  ;;  %v14044_v24 = vld [vmem:[#allocation248_spill] sm:$0xff] }
 0x62b   : > { %v4211_v5 = vadd.f32 %v14044_v24, %v11464_v22 }
 0x62d   : > { %4399 = vxpose.xlu1.b32.cont [6/16] (narrow) %v4021_v63, 8  ;;  %v14045_v63 = vld [vmem:[#allocation251_spill] sm:$0xff] }
 0x62e   : > { %4374 = vxpose.xlu0.b32.cont [13/16] (narrow) %v3976_v11, 8  ;;  %v4216_v11 = vadd.f32 %v11464_v22, %v11648_v62 }
 0x631   : > { %4400 = vxpose.xlu1.b32.cont [7/16] (narrow) %v4026_v36, 8  ;;  %v4231_v36 = vadd.f32 %v11650_v54, %v11464_v22 }
 0x632   : > { %4375 = vxpose.xlu0.b32.cont [14/16] (narrow) %v3981_v61, 8  ;;  %v4221_v61 = vadd.f32 %v14045_v63, %v11464_v22 }
 0x635   : > { %4401 = vxpose.xlu1.b32.cont [8/16] (narrow) %v4031_v51, 8 }
 0x636   : > { %4376 = vxpose.xlu0.b32.cont [15/16] (narrow) %v3986_v6, 8 }
 0x639   : > { %4402 = vxpose.xlu1.b32.cont [9/16] (narrow) %v4036_v53, 8 }
 0x63a   : > { %4377 = vxpose.xlu0.b32.end [16/16] (narrow) %v3991_v19, 8 }
 0x63d   : > { %4403 = vxpose.xlu1.b32.cont [10/16] (narrow) %v4041_v43, 8 }
 0x63e   : > { %4426 = vxpose.xlu0.b32.start [1/16] (narrow) %v4076_v28, 8  ;;  %v4314_v46 = vpop.trf.xlu0 }
 0x63f   : > { %4492 = vst [vmem:[%s11680_s24 + $0x10] sm:$0xff] %v4314_v46 }
 0x641   : > { %4404 = vxpose.xlu1.b32.cont [11/16] (narrow) %v4046_v48, 8 }
 0x642   : > { %4427 = vxpose.xlu0.b32.cont [2/16] (narrow) %v4081_v16, 8 }
 0x645   : > { %4405 = vxpose.xlu1.b32.cont [12/16] (narrow) %v4051_v15, 8 }
 0x646   : > { %4428 = vxpose.xlu0.b32.cont [3/16] (narrow) %v4086_v32, 8 }
 0x649   : > { %4406 = vxpose.xlu1.b32.cont [13/16] (narrow) %v4056_v42, 8 }
 0x64a   : > { %4429 = vxpose.xlu0.b32.cont [4/16] (narrow) %v4091_v10, 8 }
 0x64d   : > { %4407 = vxpose.xlu1.b32.cont [14/16] (narrow) %v4061_v56, 8 }
 0x64e   : > { %4430 = vxpose.xlu0.b32.cont [5/16] (narrow) %v4096_v38, 8 }
 0x651   : > { %4408 = vxpose.xlu1.b32.cont [15/16] (narrow) %v4066_v41, 8 }
 0x652   : > { %4431 = vxpose.xlu0.b32.cont [6/16] (narrow) %v4101_v59, 8 }
 0x655   : > { %4409 = vxpose.xlu1.b32.end [16/16] (narrow) %v4071_v8, 8 }
 0x656   : > { %4432 = vxpose.xlu0.b32.cont [7/16] (narrow) %v4106_v26, 8 }
 0x659   : > { %4458 = vxpose.xlu1.b32.start [1/16] (narrow) %v4156_v4, 8  ;;  %v4346_v60 = vpop.trf.xlu1 }
 0x65a   : > { %4433 = vxpose.xlu0.b32.cont [8/16] (narrow) %v4111_v0, 8  ;;  %4493 = vst [vmem:[%s11680_s24 + $0x18] sm:$0xff] %v4346_v60 }
 0x65d   : > { %4459 = vxpose.xlu1.b32.cont [2/16] (narrow) %v4161_v20, 8 }
 0x65e   : > { %4434 = vxpose.xlu0.b32.cont [9/16] (narrow) %v4116_v35, 8 }
 0x661   : > { %4460 = vxpose.xlu1.b32.cont [3/16] (narrow) %v4166_v45, 8 }
 0x662   : > { %4435 = vxpose.xlu0.b32.cont [10/16] (narrow) %v4121_v39, 8 }
 0x665   : > { %4461 = vxpose.xlu1.b32.cont [4/16] (narrow) %v4171_v55, 8 }
 0x666   : > { %4436 = vxpose.xlu0.b32.cont [11/16] (narrow) %v4126_v44, 8 }
 0x669   : > { %4462 = vxpose.xlu1.b32.cont [5/16] (narrow) %v4176_v57, 8 }
 0x66a   : > { %4437 = vxpose.xlu0.b32.cont [12/16] (narrow) %v4131_v3, 8 }
 0x66d   : > { %4463 = vxpose.xlu1.b32.cont [6/16] (narrow) %v4181_v2, 8 }
 0x66e   : > { %4438 = vxpose.xlu0.b32.cont [13/16] (narrow) %v4136_v25, 8 }
 0x671   : > { %4464 = vxpose.xlu1.b32.cont [7/16] (narrow) %v4186_v33, 8 }
 0x672   : > { %4439 = vxpose.xlu0.b32.cont [14/16] (narrow) %v4141_v47, 8 }
 0x675   : > { %4465 = vxpose.xlu1.b32.cont [8/16] (narrow) %v4191_v52, 8 }
 0x676   : > { %4440 = vxpose.xlu0.b32.cont [15/16] (narrow) %v4146_v58, 8 }
 0x679   : > { %4466 = vxpose.xlu1.b32.cont [9/16] (narrow) %v4196_v21, 8 }
 0x67a   : > { %4441 = vxpose.xlu0.b32.end [16/16] (narrow) %v4151_v12, 8 }
 0x67d   : > { %4467 = vxpose.xlu1.b32.cont [10/16] (narrow) %v4201_v27, 8 }
 0x67e   : > { %v4378_v17 = vpop.trf.xlu0 }
 0x67f   : > { %4494 = vst [vmem:[%s11680_s24 + $0x20] sm:$0xff] %v4378_v17 }
 0x681   : > { %4468 = vxpose.xlu1.b32.cont [11/16] (narrow) %v4206_v9, 8 }
 0x685   : > { %4469 = vxpose.xlu1.b32.cont [12/16] (narrow) %v4211_v5, 8 }
 0x689   : > { %4470 = vxpose.xlu1.b32.cont [13/16] (narrow) %v4216_v11, 8 }
 0x68d   : > { %4471 = vxpose.xlu1.b32.cont [14/16] (narrow) %v4221_v61, 8 }
 0x691   : > { %4472 = vxpose.xlu1.b32.cont [15/16] (narrow) %v4226_v37, 8 }
 0x695   : > { %4473 = vxpose.xlu1.b32.end [16/16] (narrow) %v4231_v36, 8 }
 0x699   : > { %v4410_v6 = vpop.trf.xlu1 }
 0x69a   : > { %4495 = vst [vmem:[%s11680_s24 + $0x28] sm:$0xff] %v4410_v6 }
 0x6be   : > { %v4442_v51 = vpop.trf.xlu0 }
 0x6bf   : > { %4496 = vst [vmem:[%s11680_s24 + $0x30] sm:$0xff] %v4442_v51 }
 0x6d9   : > { %v4474_v23 = vpop.trf.xlu1 }
 0x6da   : > { %4497 = vst [vmem:[%s11680_s24 + $0x38] sm:$0xff] %v4474_v23 }
 0x6db   : > { %5371 = shalt.err (!%p5368_p1)
}
 0x6dc   : > { %s5372_s30 = scalar_lea.hbm %s11804_s4, 1024  ;;  %s5376_s21 = scalar_lea.hbm %s11852_s3, 2048 }
 0x6dd   : > { %p5373_p13 = scmp.ne.s32.totalorder %s11804_s4, %s5372_s30  ;;  %p5377_p4 = scmp.lt.u32.totalorder %s11804_s4, %s11852_s3 }
 0x6de   : > { %p5378_p5 = scmp.lt.u32.totalorder %s5376_s21, %s5372_s30  ;;  %p5380_p11 = scmp.lt.u32.totalorder %s5372_s30, %s11804_s4 }
 0x6df   : > { %p5374_p6 = pnand %p5373_p13, %p14046_p0 }
 0x6e0   : > { %p5379_p8 = por %p5378_p5, %p5377_p4 }
 0x6e1   : > { %p5375_p10 = pneg %p5374_p6 }
 0x6e2   : > { %p5381_p2 = por %p5380_p11, %p5379_p8 }
 0x6e4   : > { %p5382_p3 = pnand %p5381_p2, %p5375_p10 }
 0x6e6   : > { %5385 = shalt.err (!%p5382_p3)
}
 0x6e7   : > { %5110 = dma.vmem_to_hbm [thread:$0]  (%p14046_p0), %s11806_s17, 1024, %s11804_s4, %s4499_s23  }
 0x6e8 PF: > { %s4525_s29 = sand.u32 1, %s5416_s12   ;;  %p14047_p7 = scmp.ne.s32.totalorder %s12498_s19, 0 }
 0x6e9   : > { %p14048_p9 = scmp.ge.s32.totalorder %s5428_s15, 2  ;;  %s4526_s25 = scalar_lea.sflag [#allocation4], %s4525_s29 }
 0x6eb   : > { %p5124_p12 = pnand %p14048_p9, %p14047_p7 }
 0x6ed   : > { %5411 = dma.done.wait (!%p5124_p12), %s4526_s25, 1024  }
 0x6ee   : > { %5413 = vsyncadd (!%p5124_p12), %s4526_s25, 4294966272  ;;  %p17_p1 = scmp.ge.s32.totalorder %s5579_s5, 4   ;;  %s14049_s12 = smov %s5420_s13 }
 0x6ef   : > { %s14050_s13 = smov %s5424_s14  ;;  %s14051_s14 = smov %s5595_s10 }
 0x6f0   : > { %s14052_s15 = smov %s5579_s5  ;;  %19 = sbr.rel (!%p17_p1) target bundleno = 6 (0x6), region = 85 }
 0x6f7   :  { %4531 = vsyncpa [#allocation3], 1 }
 0x6f8   :  { %4533 = vsyncpa [#allocation3 + $0x1], 1 }
 0x6f9   :  { %4534 = vsyncpa [#allocation6], 1 }
 0x6fa   :  { %4535 = vsyncpa [#allocation4], 1 }
 0x6fb   :  { %4537 = vsyncpa [#allocation4 + $0x1], 1 }

</bundles_post_ra>
